<compile_context>
chip_gen: v7x
topology: tpu7x:2x2x1
jax: 0.10.0
libtpu: 0.0.40
codegen_flags: <defaults>
</compile_context>

<pallas_src>
import jax
import jax.numpy as jnp
from jax.experimental import pallas as pl
from jax.experimental.pallas import tpu as pltpu

# ----------------------------- mini-BERT config ------------------------------
VOCAB = 100
TYPE_VOCAB = 2
MAX_POS = 16
HIDDEN = 32
NUM_HEADS = 2
HEAD_DIM = HIDDEN // NUM_HEADS
FFN = 64
NUM_LAYERS = 2
NUM_CLASSES = 3
LN_EPS = 1e-12

ROW_BLOCK = 128    # MXU row width (v5e); also a fine block for v6e/v7x row sharding
CLS_PAD = 128      # classifier output padded to a full lane width


# ------------------------------ fused Pallas kernel ----------------------------
def _ln(v, g, b):
    mu = jnp.mean(v, axis=-1, keepdims=True)
    var = jnp.mean((v - mu) ** 2, axis=-1, keepdims=True)
    return (v - mu) * jax.lax.rsqrt(var + LN_EPS) * g + b


def bert_forward_kernel(emb_ref, maskb_ref, eg_ref, eb_ref,
                        wqkv_ref, bqkv_ref, wo_ref, bo_ref,
                        ln1g_ref, ln1b_ref, w1_ref, b1_ref, w2_ref, b2_ref,
                        ln2g_ref, ln2b_ref,
                        wp_ref, bp_ref, wc_ref, bc_ref, o_ref):
    BS, H = emb_ref.shape                  # (ROW_BLOCK, HIDDEN) block of flattened rows
    B = maskb_ref.shape[0]                 # sequences in this row block
    S = maskb_ref.shape[2]
    HD = HEAD_DIM
    inv_sqrt_d = 1.0 / jnp.sqrt(jnp.float32(HD))

    # Embedding LayerNorm on the 2-D slab (reshape already done in the wrapper).
    x = _ln(emb_ref[...], eg_ref[...], eb_ref[...])          # (BS, H) f32
    mask_bias = maskb_ref[...]                                # (B, 1, S) f32

    # Encoder layers (NUM_LAYERS=2 -> trace-time unroll; all weights already in VMEM).
    for l in range(NUM_LAYERS):
        # Fused Q|K|V projection: one bf16 (BS,H)@(H,3H) MXU matmul, f32 accumulate.
        qkv = (jnp.dot(x.astype(jnp.bfloat16), wqkv_ref[l],
                       preferred_element_type=jnp.float32) + bqkv_ref[l])   # (BS, 3H) f32
        qkv3 = qkv.reshape(B, S, 3 * H)     # leading-dim split only (cheap relayout)

        attn = bo_ref[l]                    # (1, H): accumulator starts from the bias
        for h in range(NUM_HEADS):          # trace-time unroll (NUM_HEADS=2)
            q = qkv3[:, :, h * HD:(h + 1) * HD]
            k = qkv3[:, :, H + h * HD:H + (h + 1) * HD]
            v = qkv3[:, :, 2 * H + h * HD:2 * H + (h + 1) * HD]

            # Batched over B: scores[b, q, k] = <q[b,q], k[b,k]> / sqrt(hd) + mask
            scores = jax.lax.dot_general(
                q.astype(jnp.bfloat16), k.astype(jnp.bfloat16),
                (((2,), (2,)), ((0,), (0,))),
                preferred_element_type=jnp.float32) * inv_sqrt_d + mask_bias
            scores = scores - jnp.max(scores, axis=-1, keepdims=True)
            p = jnp.exp(scores)
            p = p * pl.reciprocal(jnp.sum(p, axis=-1, keepdims=True), approx=True)

            ctx = jax.lax.dot_general(
                p.astype(jnp.bfloat16), v.astype(jnp.bfloat16),
                (((2,), (1,)), ((0,), (0,))),
                preferred_element_type=jnp.float32)                         # (B, S, HD)

            # Accumulate output projection per head (no lane-axis concat needed).
            attn = attn + jnp.dot(ctx.reshape(BS, HD).astype(jnp.bfloat16),
                                  wo_ref[l, h], preferred_element_type=jnp.float32)

        h1 = _ln(x + attn, ln1g_ref[l], ln1b_ref[l])

        ffn = (jnp.dot(h1.astype(jnp.bfloat16), w1_ref[l],
                       preferred_element_type=jnp.float32) + b1_ref[l])
        # TODO(synk): HF BERT uses the exact erf GELU; tanh approximation used here.
        ffn = jax.nn.gelu(ffn, approximate=True)
        ffn = (jnp.dot(ffn.astype(jnp.bfloat16), w2_ref[l],
                       preferred_element_type=jnp.float32) + b2_ref[l])

        x = _ln(h1 + ffn, ln2g_ref[l], ln2b_ref[l])

    # Pooler + classifier applied to ALL rows (lane/sublane-dense store; the wrapper picks
    # out the CLS rows for free).  Dropout(p=0.3) is identity in eval mode.
    # TODO(synk): training-mode dropout would use pltpu.prng_seed / pltpu.prng_random_bits.
    pooled = jnp.tanh(jnp.dot(x.astype(jnp.bfloat16), wp_ref[...],
                              preferred_element_type=jnp.float32) + bp_ref[...])
    o_ref[...] = (jnp.dot(pooled.astype(jnp.bfloat16), wc_ref[...],
                          preferred_element_type=jnp.float32) + bc_ref[...])


# ------------------------------ wrapper ----------------------------------------
def _resident_spec(arr):
    """Full-array block with a constant index_map -> DMA'd once, resident across grid."""
    nd = arr.ndim
    return pl.BlockSpec(arr.shape, lambda i, _nd=nd: (0,) * _nd)


def sentiment_classifier_forward(params, input_ids, attention_mask):
    B, S = input_ids.shape
    assert ROW_BLOCK % S == 0, "sequence length must divide the row block"
    seqs_per_block = ROW_BLOCK // S

    # Pad the batch so B*S fills whole 128-row MXU blocks (padded rows sliced off below).
    B_pad = pl.cdiv(B, seqs_per_block) * seqs_per_block
    if B_pad != B:
        pad = B_pad - B
        input_ids = jnp.concatenate(
            [input_ids, jnp.zeros((pad, S), input_ids.dtype)], axis=0)
        attention_mask = jnp.concatenate(
            [attention_mask, jnp.ones((pad, S), attention_mask.dtype)], axis=0)

    # Embedding gathers + (B,S,H)->(rows,H) reshape are wrapper-side glue (free layout
    # plumbing in XLA); everything else runs inside one kernel.
    emb = (params["word_emb"][input_ids]
           + params["pos_emb"][None, :S, :]
           + params["type_emb"][0][None, None, :]).astype(jnp.float32)
    emb2d = emb.reshape(B_pad * S, HIDDEN)
    mask_bias = ((1.0 - attention_mask.astype(jnp.float32)) * -1e9)[:, None, :]  # (B_pad,1,S)

    weights = (
        params["emb_ln_g"], params["emb_ln_b"],
        params["wqkv"], params["bqkv"], params["wo"], params["bo"],
        params["ln1_g"], params["ln1_b"], params["w1"], params["b1"],
        params["w2"], params["b2"], params["ln2_g"], params["ln2_b"],
        params["pool_w"], params["pool_b"], params["cls_w"], params["cls_b"])

    n_blocks = (B_pad * S) // ROW_BLOCK
    grid_spec = pltpu.PrefetchScalarGridSpec(
        num_scalar_prefetch=0,
        grid=(n_blocks,),
        in_specs=[
            pl.BlockSpec((ROW_BLOCK, HIDDEN), lambda i: (i, 0)),          # activation rows
            pl.BlockSpec((seqs_per_block, 1, S), lambda i: (i, 0, 0)),    # mask bias
        ] + [_resident_spec(w) for w in weights],
        out_specs=pl.BlockSpec((ROW_BLOCK, CLS_PAD), lambda i: (i, 0)),
    )

    out_all = pl.pallas_call(
        bert_forward_kernel,
        out_shape=jax.ShapeDtypeStruct((B_pad * S, CLS_PAD), jnp.float32),
        grid_spec=grid_spec,
        compiler_params=pltpu.CompilerParams(dimension_semantics=("parallel",)),
    )(emb2d, mask_bias, *weights)

    # CLS row of each (real) sequence, first NUM_CLASSES lanes -> logits.
    return out_all.reshape(B_pad, S, CLS_PAD)[:B, 0, :NUM_CLASSES]


# ------------------------------ param init -------------------------------------
def init_params(key):
    def nrm(k, shape, scale=0.02, dtype=jnp.bfloat16):
        return (scale * jax.random.normal(k, shape, jnp.float32)).astype(dtype)

    keys = iter(jax.random.split(key, 12))
    H, F_, L, NH, HD, C = HIDDEN, FFN, NUM_LAYERS, NUM_HEADS, HEAD_DIM, NUM_CLASSES

    cls_w_core = 0.02 * jax.random.normal(next(keys), (H, C), jnp.float32)
    cls_w = jnp.zeros((H, CLS_PAD), jnp.float32).at[:, :C].set(cls_w_core)

    return {
        # Embeddings stay f32 (gathered in the wrapper, never hit the MXU).
        "word_emb": nrm(next(keys), (VOCAB, H), dtype=jnp.float32),
        "pos_emb": nrm(next(keys), (MAX_POS, H), dtype=jnp.float32),
        "type_emb": nrm(next(keys), (TYPE_VOCAB, H), dtype=jnp.float32),
        "emb_ln_g": jnp.ones((1, H), jnp.float32),
        "emb_ln_b": jnp.zeros((1, H), jnp.float32),
        # MXU weights stored bf16 (f32 accumulation via preferred_element_type).
        "wqkv": nrm(next(keys), (L, H, 3 * H)),                    # fused Q|K|V
        "bqkv": jnp.zeros((L, 1, 3 * H), jnp.float32),
        "wo": nrm(next(keys), (L, NH, HD, H)),                     # per-head out proj
        "bo": jnp.zeros((L, 1, H), jnp.float32),
        "ln1_g": jnp.ones((L, 1, H), jnp.float32),
        "ln1_b": jnp.zeros((L, 1, H), jnp.float32),
        "w1": nrm(next(keys), (L, H, F_)),
        "b1": jnp.zeros((L, 1, F_), jnp.float32),
        "w2": nrm(next(keys), (L, F_, H)),
        "b2": jnp.zeros((L, 1, H), jnp.float32),
        "ln2_g": jnp.ones((L, 1, H), jnp.float32),
        "ln2_b": jnp.zeros((L, 1, H), jnp.float32),
        "pool_w": nrm(next(keys), (H, H)),
        "pool_b": jnp.zeros((1, H), jnp.float32),
        # Classifier padded to a full 128-lane output (wrapper slices [:, :3]).
        "cls_w": cls_w.astype(jnp.bfloat16),
        "cls_b": jnp.zeros((1, CLS_PAD), jnp.float32),
    }


# ---------------------------------- main ----------------------------------------
if __name__ == "__main__":
    key = jax.random.PRNGKey(0)
    k_params, k_ids = jax.random.split(key)

    B, S = 2, 8
    params = init_params(k_params)
    input_ids = jax.random.randint(k_ids, (B, S), 0, VOCAB, dtype=jnp.int32)
    attention_mask = jnp.array([[1] * S, [1] * (S - 2) + [0] * 2], dtype=jnp.int32)

    fwd = jax.jit(sentiment_classifier_forward)
    logits = fwd(params, input_ids, attention_mask)
    logits = jax.block_until_ready(logits)
    assert logits.shape == (B, NUM_CLASSES) and logits.dtype == jnp.float32
    print("KERNEL_OK")
</pallas_src>

<mosaic_0001>
module attributes {stable_mosaic.version = 11 : i64} {
  func.func @bert_forward_kernel(%arg0: i32, %arg1: memref<128x32xf32, #tpu.memory_space<vmem>>, %arg2: memref<16x1x8xf32, #tpu.memory_space<vmem>>, %arg3: memref<1x32xf32, #tpu.memory_space<vmem>>, %arg4: memref<1x32xf32, #tpu.memory_space<vmem>>, %arg5: memref<2x32x96xbf16, #tpu.memory_space<vmem>>, %arg6: memref<2x1x96xf32, #tpu.memory_space<vmem>>, %arg7: memref<2x2x16x32xbf16, #tpu.memory_space<vmem>>, %arg8: memref<2x1x32xf32, #tpu.memory_space<vmem>>, %arg9: memref<2x1x32xf32, #tpu.memory_space<vmem>>, %arg10: memref<2x1x32xf32, #tpu.memory_space<vmem>>, %arg11: memref<2x32x64xbf16, #tpu.memory_space<vmem>>, %arg12: memref<2x1x64xf32, #tpu.memory_space<vmem>>, %arg13: memref<2x64x32xbf16, #tpu.memory_space<vmem>>, %arg14: memref<2x1x32xf32, #tpu.memory_space<vmem>>, %arg15: memref<2x1x32xf32, #tpu.memory_space<vmem>>, %arg16: memref<2x1x32xf32, #tpu.memory_space<vmem>>, %arg17: memref<32x32xbf16, #tpu.memory_space<vmem>>, %arg18: memref<1x32xf32, #tpu.memory_space<vmem>>, %arg19: memref<32x128xbf16, #tpu.memory_space<vmem>>, %arg20: memref<1x128xf32, #tpu.memory_space<vmem>>, %arg21: memref<128x128xf32, #tpu.memory_space<vmem>>) attributes {dimension_semantics = [#tpu.dimension_semantics<parallel>], iteration_bounds = array<i64: 1>, scalar_prefetch = 0 : i64, scratch_operands = 0 : i64, tpu.core_type = #tpu.core_type<tc>, window_params = [{transform_indices = @transform_0, window_bounds = array<i64: 128, 32>}, {transform_indices = @transform_1, window_bounds = array<i64: 16, 1, 8>}, {pipeline_mode = #tpu.pipeline_mode<synchronous>, transform_indices = @transform_2, window_bounds = array<i64: 1, 32>}, {pipeline_mode = #tpu.pipeline_mode<synchronous>, transform_indices = @transform_3, window_bounds = array<i64: 1, 32>}, {pipeline_mode = #tpu.pipeline_mode<synchronous>, transform_indices = @transform_4, window_bounds = array<i64: 2, 32, 96>}, {pipeline_mode = #tpu.pipeline_mode<synchronous>, transform_indices = @transform_5, window_bounds = array<i64: 2, 1, 96>}, {pipeline_mode = #tpu.pipeline_mode<synchronous>, transform_indices = @transform_6, window_bounds = array<i64: 2, 2, 16, 32>}, {pipeline_mode = #tpu.pipeline_mode<synchronous>, transform_indices = @transform_7, window_bounds = array<i64: 2, 1, 32>}, {pipeline_mode = #tpu.pipeline_mode<synchronous>, transform_indices = @transform_8, window_bounds = array<i64: 2, 1, 32>}, {pipeline_mode = #tpu.pipeline_mode<synchronous>, transform_indices = @transform_9, window_bounds = array<i64: 2, 1, 32>}, {pipeline_mode = #tpu.pipeline_mode<synchronous>, transform_indices = @transform_10, window_bounds = array<i64: 2, 32, 64>}, {pipeline_mode = #tpu.pipeline_mode<synchronous>, transform_indices = @transform_11, window_bounds = array<i64: 2, 1, 64>}, {pipeline_mode = #tpu.pipeline_mode<synchronous>, transform_indices = @transform_12, window_bounds = array<i64: 2, 64, 32>}, {pipeline_mode = #tpu.pipeline_mode<synchronous>, transform_indices = @transform_13, window_bounds = array<i64: 2, 1, 32>}, {pipeline_mode = #tpu.pipeline_mode<synchronous>, transform_indices = @transform_14, window_bounds = array<i64: 2, 1, 32>}, {pipeline_mode = #tpu.pipeline_mode<synchronous>, transform_indices = @transform_15, window_bounds = array<i64: 2, 1, 32>}, {pipeline_mode = #tpu.pipeline_mode<synchronous>, transform_indices = @transform_16, window_bounds = array<i64: 32, 32>}, {pipeline_mode = #tpu.pipeline_mode<synchronous>, transform_indices = @transform_17, window_bounds = array<i64: 1, 32>}, {pipeline_mode = #tpu.pipeline_mode<synchronous>, transform_indices = @transform_18, window_bounds = array<i64: 32, 128>}, {pipeline_mode = #tpu.pipeline_mode<synchronous>, transform_indices = @transform_19, window_bounds = array<i64: 1, 128>}, {transform_indices = @transform_20, window_bounds = array<i64: 128, 128>}]} {
    %cst = arith.constant 1.600000e+01 : f32
    %0 = math.sqrt %cst : f32
    %cst_0 = arith.constant 1.000000e+00 : f32
    %1 = arith.divf %cst_0, %0 : f32
    %c0 = arith.constant 0 : index
    %c0_1 = arith.constant 0 : index
    %2 = vector.load %arg1[%c0, %c0_1] : memref<128x32xf32, #tpu.memory_space<vmem>>, vector<128x32xf32>
    %c0_2 = arith.constant 0 : index
    %c0_3 = arith.constant 0 : index
    %3 = vector.load %arg3[%c0_2, %c0_3] : memref<1x32xf32, #tpu.memory_space<vmem>>, vector<1x32xf32>
    %c0_4 = arith.constant 0 : index
    %c0_5 = arith.constant 0 : index
    %4 = vector.load %arg4[%c0_4, %c0_5] : memref<1x32xf32, #tpu.memory_space<vmem>>, vector<1x32xf32>
    %cst_6 = arith.constant dense<0.000000e+00> : vector<128xf32>
    %5 = vector.multi_reduction <add>, %2, %cst_6 [1] : vector<128x32xf32> to vector<128xf32>
    %6 = vector.shape_cast %5 : vector<128xf32> to vector<128x1xf32>
    %cst_7 = arith.constant 3.200000e+01 : f32
    %7 = vector.broadcast %cst_7 : f32 to vector<128x1xf32>
    %8 = arith.divf %6, %7 : vector<128x1xf32>
    %9 = vector.broadcast %8 : vector<128x1xf32> to vector<128x32xf32>
    %10 = arith.subf %2, %9 : vector<128x32xf32>
    %11 = arith.mulf %10, %10 : vector<128x32xf32>
    %cst_8 = arith.constant dense<0.000000e+00> : vector<128xf32>
    %12 = vector.multi_reduction <add>, %11, %cst_8 [1] : vector<128x32xf32> to vector<128xf32>
    %13 = vector.shape_cast %12 : vector<128xf32> to vector<128x1xf32>
    %cst_9 = arith.constant 3.200000e+01 : f32
    %14 = vector.broadcast %cst_9 : f32 to vector<128x1xf32>
    %15 = arith.divf %13, %14 : vector<128x1xf32>
    %16 = vector.broadcast %8 : vector<128x1xf32> to vector<128x32xf32>
    %17 = arith.subf %2, %16 : vector<128x32xf32>
    %cst_10 = arith.constant 9.99999996E-13 : f32
    %18 = vector.broadcast %cst_10 : f32 to vector<128x1xf32>
    %19 = arith.addf %15, %18 : vector<128x1xf32>
    %20 = math.rsqrt %19 : vector<128x1xf32>
    %21 = vector.broadcast %20 : vector<128x1xf32> to vector<128x32xf32>
    %22 = arith.mulf %17, %21 : vector<128x32xf32>
    %23 = vector.broadcast %3 : vector<1x32xf32> to vector<128x32xf32>
    %24 = arith.mulf %22, %23 : vector<128x32xf32>
    %25 = vector.broadcast %4 : vector<1x32xf32> to vector<128x32xf32>
    %26 = arith.addf %24, %25 : vector<128x32xf32>
    %c0_11 = arith.constant 0 : index
    %c0_12 = arith.constant 0 : index
    %c0_13 = arith.constant 0 : index
    %27 = vector.load %arg2[%c0_11, %c0_12, %c0_13] : memref<16x1x8xf32, #tpu.memory_space<vmem>>, vector<16x1x8xf32>
    %28 = arith.truncf %26 : vector<128x32xf32> to vector<128x32xbf16>
    %c0_14 = arith.constant 0 : index
    %c0_15 = arith.constant 0 : index
    %c0_16 = arith.constant 0 : index
    %29 = vector.load %arg5[%c0_14, %c0_15, %c0_16] : memref<2x32x96xbf16, #tpu.memory_space<vmem>>, vector<1x32x96xbf16>
    %30 = vector.shape_cast %29 : vector<1x32x96xbf16> to vector<32x96xbf16>
    %cst_17 = arith.constant dense<0.000000e+00> : vector<128x96xf32>
    %31 = tpu.matmul %28, %30, %cst_17 {dimension_numbers = #tpu.dot_dimension_numbers<[1], [0], [0], [1], [0, 0, 1, 1], [], []>} : vector<128x32xbf16>, vector<32x96xbf16>, vector<128x96xf32> -> vector<128x96xf32>
    %c0_18 = arith.constant 0 : index
    %c0_19 = arith.constant 0 : index
    %c0_20 = arith.constant 0 : index
    %32 = vector.load %arg6[%c0_18, %c0_19, %c0_20] : memref<2x1x96xf32, #tpu.memory_space<vmem>>, vector<1x1x96xf32>
    %33 = vector.shape_cast %32 : vector<1x1x96xf32> to vector<1x96xf32>
    %34 = vector.broadcast %33 : vector<1x96xf32> to vector<128x96xf32>
    %35 = arith.addf %31, %34 : vector<128x96xf32>
    %36 = vector.shape_cast %35 : vector<128x96xf32> to vector<16x8x96xf32>
    %c0_21 = arith.constant 0 : index
    %c0_22 = arith.constant 0 : index
    %c0_23 = arith.constant 0 : index
    %37 = vector.load %arg8[%c0_21, %c0_22, %c0_23] : memref<2x1x32xf32, #tpu.memory_space<vmem>>, vector<1x1x32xf32>
    %38 = vector.shape_cast %37 : vector<1x1x32xf32> to vector<1x32xf32>
    %39 = vector.extract_strided_slice %36 {offsets = [0, 0, 0], sizes = [16, 8, 16], strides = [1, 1, 1]} : vector<16x8x96xf32> to vector<16x8x16xf32>
    %40 = vector.extract_strided_slice %36 {offsets = [0, 0, 32], sizes = [16, 8, 16], strides = [1, 1, 1]} : vector<16x8x96xf32> to vector<16x8x16xf32>
    %41 = vector.extract_strided_slice %36 {offsets = [0, 0, 64], sizes = [16, 8, 16], strides = [1, 1, 1]} : vector<16x8x96xf32> to vector<16x8x16xf32>
    %42 = arith.truncf %39 : vector<16x8x16xf32> to vector<16x8x16xbf16>
    %43 = arith.truncf %40 : vector<16x8x16xf32> to vector<16x8x16xbf16>
    %cst_24 = arith.constant dense<0.000000e+00> : vector<16x8x8xf32>
    %44 = tpu.matmul %42, %43, %cst_24 {dimension_numbers = #tpu.dot_dimension_numbers<[2], [2], [1], [1], [0, 0, 0, 1, 1, 1], [0], [0]>} : vector<16x8x16xbf16>, vector<16x8x16xbf16>, vector<16x8x8xf32> -> vector<16x8x8xf32>
    %45 = vector.broadcast %1 : f32 to vector<16x8x8xf32>
    %46 = arith.mulf %44, %45 : vector<16x8x8xf32>
    %47 = vector.broadcast %27 : vector<16x1x8xf32> to vector<16x8x8xf32>
    %48 = arith.addf %46, %47 : vector<16x8x8xf32>
    %cst_25 = arith.constant dense<0xFF800000> : vector<16x8xf32>
    %49 = vector.multi_reduction <maximumf>, %48, %cst_25 [2] : vector<16x8x8xf32> to vector<16x8xf32>
    %50 = vector.shape_cast %49 : vector<16x8xf32> to vector<16x8x1xf32>
    %51 = vector.broadcast %50 : vector<16x8x1xf32> to vector<16x8x8xf32>
    %52 = arith.subf %48, %51 : vector<16x8x8xf32>
    %53 = math.exp %52 : vector<16x8x8xf32>
    %cst_26 = arith.constant dense<0.000000e+00> : vector<16x8xf32>
    %54 = vector.multi_reduction <add>, %53, %cst_26 [2] : vector<16x8x8xf32> to vector<16x8xf32>
    %55 = vector.shape_cast %54 : vector<16x8xf32> to vector<16x8x1xf32>
    %56 = tpu.reciprocal %55 {approx = true} : vector<16x8x1xf32> -> vector<16x8x1xf32>
    %57 = vector.broadcast %56 : vector<16x8x1xf32> to vector<16x8x8xf32>
    %58 = arith.mulf %53, %57 : vector<16x8x8xf32>
    %59 = arith.truncf %58 : vector<16x8x8xf32> to vector<16x8x8xbf16>
    %60 = arith.truncf %41 : vector<16x8x16xf32> to vector<16x8x16xbf16>
    %cst_27 = arith.constant dense<0.000000e+00> : vector<16x8x16xf32>
    %61 = tpu.matmul %59, %60, %cst_27 {dimension_numbers = #tpu.dot_dimension_numbers<[2], [1], [1], [2], [0, 0, 0, 1, 1, 2], [0], [0]>} : vector<16x8x8xbf16>, vector<16x8x16xbf16>, vector<16x8x16xf32> -> vector<16x8x16xf32>
    %62 = vector.shape_cast %61 : vector<16x8x16xf32> to vector<128x16xf32>
    %63 = arith.truncf %62 : vector<128x16xf32> to vector<128x16xbf16>
    %c0_28 = arith.constant 0 : index
    %c0_29 = arith.constant 0 : index
    %c0_30 = arith.constant 0 : index
    %c0_31 = arith.constant 0 : index
    %64 = vector.load %arg7[%c0_28, %c0_29, %c0_30, %c0_31] : memref<2x2x16x32xbf16, #tpu.memory_space<vmem>>, vector<1x1x16x32xbf16>
    %65 = vector.shape_cast %64 : vector<1x1x16x32xbf16> to vector<16x32xbf16>
    %cst_32 = arith.constant dense<0.000000e+00> : vector<128x32xf32>
    %66 = tpu.matmul %63, %65, %cst_32 {dimension_numbers = #tpu.dot_dimension_numbers<[1], [0], [0], [1], [0, 0, 1, 1], [], []>} : vector<128x16xbf16>, vector<16x32xbf16>, vector<128x32xf32> -> vector<128x32xf32>
    %67 = vector.broadcast %38 : vector<1x32xf32> to vector<128x32xf32>
    %68 = arith.addf %67, %66 : vector<128x32xf32>
    %69 = vector.extract_strided_slice %36 {offsets = [0, 0, 16], sizes = [16, 8, 16], strides = [1, 1, 1]} : vector<16x8x96xf32> to vector<16x8x16xf32>
    %70 = vector.extract_strided_slice %36 {offsets = [0, 0, 48], sizes = [16, 8, 16], strides = [1, 1, 1]} : vector<16x8x96xf32> to vector<16x8x16xf32>
    %71 = vector.extract_strided_slice %36 {offsets = [0, 0, 80], sizes = [16, 8, 16], strides = [1, 1, 1]} : vector<16x8x96xf32> to vector<16x8x16xf32>
    %72 = arith.truncf %69 : vector<16x8x16xf32> to vector<16x8x16xbf16>
    %73 = arith.truncf %70 : vector<16x8x16xf32> to vector<16x8x16xbf16>
    %cst_33 = arith.constant dense<0.000000e+00> : vector<16x8x8xf32>
    %74 = tpu.matmul %72, %73, %cst_33 {dimension_numbers = #tpu.dot_dimension_numbers<[2], [2], [1], [1], [0, 0, 0, 1, 1, 1], [0], [0]>} : vector<16x8x16xbf16>, vector<16x8x16xbf16>, vector<16x8x8xf32> -> vector<16x8x8xf32>
    %75 = vector.broadcast %1 : f32 to vector<16x8x8xf32>
    %76 = arith.mulf %74, %75 : vector<16x8x8xf32>
    %77 = vector.broadcast %27 : vector<16x1x8xf32> to vector<16x8x8xf32>
    %78 = arith.addf %76, %77 : vector<16x8x8xf32>
    %cst_34 = arith.constant dense<0xFF800000> : vector<16x8xf32>
    %79 = vector.multi_reduction <maximumf>, %78, %cst_34 [2] : vector<16x8x8xf32> to vector<16x8xf32>
    %80 = vector.shape_cast %79 : vector<16x8xf32> to vector<16x8x1xf32>
    %81 = vector.broadcast %80 : vector<16x8x1xf32> to vector<16x8x8xf32>
    %82 = arith.subf %78, %81 : vector<16x8x8xf32>
    %83 = math.exp %82 : vector<16x8x8xf32>
    %cst_35 = arith.constant dense<0.000000e+00> : vector<16x8xf32>
    %84 = vector.multi_reduction <add>, %83, %cst_35 [2] : vector<16x8x8xf32> to vector<16x8xf32>
    %85 = vector.shape_cast %84 : vector<16x8xf32> to vector<16x8x1xf32>
    %86 = tpu.reciprocal %85 {approx = true} : vector<16x8x1xf32> -> vector<16x8x1xf32>
    %87 = vector.broadcast %86 : vector<16x8x1xf32> to vector<16x8x8xf32>
    %88 = arith.mulf %83, %87 : vector<16x8x8xf32>
    %89 = arith.truncf %88 : vector<16x8x8xf32> to vector<16x8x8xbf16>
    %90 = arith.truncf %71 : vector<16x8x16xf32> to vector<16x8x16xbf16>
    %cst_36 = arith.constant dense<0.000000e+00> : vector<16x8x16xf32>
    %91 = tpu.matmul %89, %90, %cst_36 {dimension_numbers = #tpu.dot_dimension_numbers<[2], [1], [1], [2], [0, 0, 0, 1, 1, 2], [0], [0]>} : vector<16x8x8xbf16>, vector<16x8x16xbf16>, vector<16x8x16xf32> -> vector<16x8x16xf32>
    %92 = vector.shape_cast %91 : vector<16x8x16xf32> to vector<128x16xf32>
    %93 = arith.truncf %92 : vector<128x16xf32> to vector<128x16xbf16>
    %c0_37 = arith.constant 0 : index
    %c1 = arith.constant 1 : index
    %c0_38 = arith.constant 0 : index
    %c0_39 = arith.constant 0 : index
    %94 = vector.load %arg7[%c0_37, %c1, %c0_38, %c0_39] : memref<2x2x16x32xbf16, #tpu.memory_space<vmem>>, vector<1x1x16x32xbf16>
    %95 = vector.shape_cast %94 : vector<1x1x16x32xbf16> to vector<16x32xbf16>
    %cst_40 = arith.constant dense<0.000000e+00> : vector<128x32xf32>
    %96 = tpu.matmul %93, %95, %cst_40 {dimension_numbers = #tpu.dot_dimension_numbers<[1], [0], [0], [1], [0, 0, 1, 1], [], []>} : vector<128x16xbf16>, vector<16x32xbf16>, vector<128x32xf32> -> vector<128x32xf32>
    %97 = arith.addf %68, %96 : vector<128x32xf32>
    %98 = arith.addf %26, %97 : vector<128x32xf32>
    %c0_41 = arith.constant 0 : index
    %c0_42 = arith.constant 0 : index
    %c0_43 = arith.constant 0 : index
    %99 = vector.load %arg9[%c0_41, %c0_42, %c0_43] : memref<2x1x32xf32, #tpu.memory_space<vmem>>, vector<1x1x32xf32>
    %100 = vector.shape_cast %99 : vector<1x1x32xf32> to vector<1x32xf32>
    %c0_44 = arith.constant 0 : index
    %c0_45 = arith.constant 0 : index
    %c0_46 = arith.constant 0 : index
    %101 = vector.load %arg10[%c0_44, %c0_45, %c0_46] : memref<2x1x32xf32, #tpu.memory_space<vmem>>, vector<1x1x32xf32>
    %102 = vector.shape_cast %101 : vector<1x1x32xf32> to vector<1x32xf32>
    %cst_47 = arith.constant dense<0.000000e+00> : vector<128xf32>
    %103 = vector.multi_reduction <add>, %98, %cst_47 [1] : vector<128x32xf32> to vector<128xf32>
    %104 = vector.shape_cast %103 : vector<128xf32> to vector<128x1xf32>
    %cst_48 = arith.constant 3.200000e+01 : f32
    %105 = vector.broadcast %cst_48 : f32 to vector<128x1xf32>
    %106 = arith.divf %104, %105 : vector<128x1xf32>
    %107 = vector.broadcast %106 : vector<128x1xf32> to vector<128x32xf32>
    %108 = arith.subf %98, %107 : vector<128x32xf32>
    %109 = arith.mulf %108, %108 : vector<128x32xf32>
    %cst_49 = arith.constant dense<0.000000e+00> : vector<128xf32>
    %110 = vector.multi_reduction <add>, %109, %cst_49 [1] : vector<128x32xf32> to vector<128xf32>
    %111 = vector.shape_cast %110 : vector<128xf32> to vector<128x1xf32>
    %cst_50 = arith.constant 3.200000e+01 : f32
    %112 = vector.broadcast %cst_50 : f32 to vector<128x1xf32>
    %113 = arith.divf %111, %112 : vector<128x1xf32>
    %114 = vector.broadcast %106 : vector<128x1xf32> to vector<128x32xf32>
    %115 = arith.subf %98, %114 : vector<128x32xf32>
    %cst_51 = arith.constant 9.99999996E-13 : f32
    %116 = vector.broadcast %cst_51 : f32 to vector<128x1xf32>
    %117 = arith.addf %113, %116 : vector<128x1xf32>
    %118 = math.rsqrt %117 : vector<128x1xf32>
    %119 = vector.broadcast %118 : vector<128x1xf32> to vector<128x32xf32>
    %120 = arith.mulf %115, %119 : vector<128x32xf32>
    %121 = vector.broadcast %100 : vector<1x32xf32> to vector<128x32xf32>
    %122 = arith.mulf %120, %121 : vector<128x32xf32>
    %123 = vector.broadcast %102 : vector<1x32xf32> to vector<128x32xf32>
    %124 = arith.addf %122, %123 : vector<128x32xf32>
    %125 = arith.truncf %124 : vector<128x32xf32> to vector<128x32xbf16>
    %c0_52 = arith.constant 0 : index
    %c0_53 = arith.constant 0 : index
    %c0_54 = arith.constant 0 : index
    %126 = vector.load %arg11[%c0_52, %c0_53, %c0_54] : memref<2x32x64xbf16, #tpu.memory_space<vmem>>, vector<1x32x64xbf16>
    %127 = vector.shape_cast %126 : vector<1x32x64xbf16> to vector<32x64xbf16>
    %cst_55 = arith.constant dense<0.000000e+00> : vector<128x64xf32>
    %128 = tpu.matmul %125, %127, %cst_55 {dimension_numbers = #tpu.dot_dimension_numbers<[1], [0], [0], [1], [0, 0, 1, 1], [], []>} : vector<128x32xbf16>, vector<32x64xbf16>, vector<128x64xf32> -> vector<128x64xf32>
    %c0_56 = arith.constant 0 : index
    %c0_57 = arith.constant 0 : index
    %c0_58 = arith.constant 0 : index
    %129 = vector.load %arg12[%c0_56, %c0_57, %c0_58] : memref<2x1x64xf32, #tpu.memory_space<vmem>>, vector<1x1x64xf32>
    %130 = vector.shape_cast %129 : vector<1x1x64xf32> to vector<1x64xf32>
    %131 = vector.broadcast %130 : vector<1x64xf32> to vector<128x64xf32>
    %132 = arith.addf %128, %131 : vector<128x64xf32>
    %133 = arith.mulf %132, %132 : vector<128x64xf32>
    %134 = arith.mulf %132, %133 : vector<128x64xf32>
    %cst_59 = arith.constant 4.471500e-02 : f32
    %135 = vector.broadcast %cst_59 : f32 to vector<128x64xf32>
    %136 = arith.mulf %135, %134 : vector<128x64xf32>
    %137 = arith.addf %132, %136 : vector<128x64xf32>
    %cst_60 = arith.constant 0.797884583 : f32
    %138 = vector.broadcast %cst_60 : f32 to vector<128x64xf32>
    %139 = arith.mulf %138, %137 : vector<128x64xf32>
    %140 = math.tanh %139 : vector<128x64xf32>
    %cst_61 = arith.constant 1.000000e+00 : f32
    %141 = vector.broadcast %cst_61 : f32 to vector<128x64xf32>
    %142 = arith.addf %141, %140 : vector<128x64xf32>
    %cst_62 = arith.constant 5.000000e-01 : f32
    %143 = vector.broadcast %cst_62 : f32 to vector<128x64xf32>
    %144 = arith.mulf %143, %142 : vector<128x64xf32>
    %145 = arith.mulf %132, %144 : vector<128x64xf32>
    %146 = arith.truncf %145 : vector<128x64xf32> to vector<128x64xbf16>
    %c0_63 = arith.constant 0 : index
    %c0_64 = arith.constant 0 : index
    %c0_65 = arith.constant 0 : index
    %147 = vector.load %arg13[%c0_63, %c0_64, %c0_65] : memref<2x64x32xbf16, #tpu.memory_space<vmem>>, vector<1x64x32xbf16>
    %148 = vector.shape_cast %147 : vector<1x64x32xbf16> to vector<64x32xbf16>
    %cst_66 = arith.constant dense<0.000000e+00> : vector<128x32xf32>
    %149 = tpu.matmul %146, %148, %cst_66 {dimension_numbers = #tpu.dot_dimension_numbers<[1], [0], [0], [1], [0, 0, 1, 1], [], []>} : vector<128x64xbf16>, vector<64x32xbf16>, vector<128x32xf32> -> vector<128x32xf32>
    %c0_67 = arith.constant 0 : index
    %c0_68 = arith.constant 0 : index
    %c0_69 = arith.constant 0 : index
    %150 = vector.load %arg14[%c0_67, %c0_68, %c0_69] : memref<2x1x32xf32, #tpu.memory_space<vmem>>, vector<1x1x32xf32>
    %151 = vector.shape_cast %150 : vector<1x1x32xf32> to vector<1x32xf32>
    %152 = vector.broadcast %151 : vector<1x32xf32> to vector<128x32xf32>
    %153 = arith.addf %149, %152 : vector<128x32xf32>
    %154 = arith.addf %124, %153 : vector<128x32xf32>
    %c0_70 = arith.constant 0 : index
    %c0_71 = arith.constant 0 : index
    %c0_72 = arith.constant 0 : index
    %155 = vector.load %arg15[%c0_70, %c0_71, %c0_72] : memref<2x1x32xf32, #tpu.memory_space<vmem>>, vector<1x1x32xf32>
    %156 = vector.shape_cast %155 : vector<1x1x32xf32> to vector<1x32xf32>
    %c0_73 = arith.constant 0 : index
    %c0_74 = arith.constant 0 : index
    %c0_75 = arith.constant 0 : index
    %157 = vector.load %arg16[%c0_73, %c0_74, %c0_75] : memref<2x1x32xf32, #tpu.memory_space<vmem>>, vector<1x1x32xf32>
    %158 = vector.shape_cast %157 : vector<1x1x32xf32> to vector<1x32xf32>
    %cst_76 = arith.constant dense<0.000000e+00> : vector<128xf32>
    %159 = vector.multi_reduction <add>, %154, %cst_76 [1] : vector<128x32xf32> to vector<128xf32>
    %160 = vector.shape_cast %159 : vector<128xf32> to vector<128x1xf32>
    %cst_77 = arith.constant 3.200000e+01 : f32
    %161 = vector.broadcast %cst_77 : f32 to vector<128x1xf32>
    %162 = arith.divf %160, %161 : vector<128x1xf32>
    %163 = vector.broadcast %162 : vector<128x1xf32> to vector<128x32xf32>
    %164 = arith.subf %154, %163 : vector<128x32xf32>
    %165 = arith.mulf %164, %164 : vector<128x32xf32>
    %cst_78 = arith.constant dense<0.000000e+00> : vector<128xf32>
    %166 = vector.multi_reduction <add>, %165, %cst_78 [1] : vector<128x32xf32> to vector<128xf32>
    %167 = vector.shape_cast %166 : vector<128xf32> to vector<128x1xf32>
    %cst_79 = arith.constant 3.200000e+01 : f32
    %168 = vector.broadcast %cst_79 : f32 to vector<128x1xf32>
    %169 = arith.divf %167, %168 : vector<128x1xf32>
    %170 = vector.broadcast %162 : vector<128x1xf32> to vector<128x32xf32>
    %171 = arith.subf %154, %170 : vector<128x32xf32>
    %cst_80 = arith.constant 9.99999996E-13 : f32
    %172 = vector.broadcast %cst_80 : f32 to vector<128x1xf32>
    %173 = arith.addf %169, %172 : vector<128x1xf32>
    %174 = math.rsqrt %173 : vector<128x1xf32>
    %175 = vector.broadcast %174 : vector<128x1xf32> to vector<128x32xf32>
    %176 = arith.mulf %171, %175 : vector<128x32xf32>
    %177 = vector.broadcast %156 : vector<1x32xf32> to vector<128x32xf32>
    %178 = arith.mulf %176, %177 : vector<128x32xf32>
    %179 = vector.broadcast %158 : vector<1x32xf32> to vector<128x32xf32>
    %180 = arith.addf %178, %179 : vector<128x32xf32>
    %181 = arith.truncf %180 : vector<128x32xf32> to vector<128x32xbf16>
    %c1_81 = arith.constant 1 : index
    %c0_82 = arith.constant 0 : index
    %c0_83 = arith.constant 0 : index
    %182 = vector.load %arg5[%c1_81, %c0_82, %c0_83] : memref<2x32x96xbf16, #tpu.memory_space<vmem>>, vector<1x32x96xbf16>
    %183 = vector.shape_cast %182 : vector<1x32x96xbf16> to vector<32x96xbf16>
    %cst_84 = arith.constant dense<0.000000e+00> : vector<128x96xf32>
    %184 = tpu.matmul %181, %183, %cst_84 {dimension_numbers = #tpu.dot_dimension_numbers<[1], [0], [0], [1], [0, 0, 1, 1], [], []>} : vector<128x32xbf16>, vector<32x96xbf16>, vector<128x96xf32> -> vector<128x96xf32>
    %c1_85 = arith.constant 1 : index
    %c0_86 = arith.constant 0 : index
    %c0_87 = arith.constant 0 : index
    %185 = vector.load %arg6[%c1_85, %c0_86, %c0_87] : memref<2x1x96xf32, #tpu.memory_space<vmem>>, vector<1x1x96xf32>
    %186 = vector.shape_cast %185 : vector<1x1x96xf32> to vector<1x96xf32>
    %187 = vector.broadcast %186 : vector<1x96xf32> to vector<128x96xf32>
    %188 = arith.addf %184, %187 : vector<128x96xf32>
    %189 = vector.shape_cast %188 : vector<128x96xf32> to vector<16x8x96xf32>
    %c1_88 = arith.constant 1 : index
    %c0_89 = arith.constant 0 : index
    %c0_90 = arith.constant 0 : index
    %190 = vector.load %arg8[%c1_88, %c0_89, %c0_90] : memref<2x1x32xf32, #tpu.memory_space<vmem>>, vector<1x1x32xf32>
    %191 = vector.shape_cast %190 : vector<1x1x32xf32> to vector<1x32xf32>
    %192 = vector.extract_strided_slice %189 {offsets = [0, 0, 0], sizes = [16, 8, 16], strides = [1, 1, 1]} : vector<16x8x96xf32> to vector<16x8x16xf32>
    %193 = vector.extract_strided_slice %189 {offsets = [0, 0, 32], sizes = [16, 8, 16], strides = [1, 1, 1]} : vector<16x8x96xf32> to vector<16x8x16xf32>
    %194 = vector.extract_strided_slice %189 {offsets = [0, 0, 64], sizes = [16, 8, 16], strides = [1, 1, 1]} : vector<16x8x96xf32> to vector<16x8x16xf32>
    %195 = arith.truncf %192 : vector<16x8x16xf32> to vector<16x8x16xbf16>
    %196 = arith.truncf %193 : vector<16x8x16xf32> to vector<16x8x16xbf16>
    %cst_91 = arith.constant dense<0.000000e+00> : vector<16x8x8xf32>
    %197 = tpu.matmul %195, %196, %cst_91 {dimension_numbers = #tpu.dot_dimension_numbers<[2], [2], [1], [1], [0, 0, 0, 1, 1, 1], [0], [0]>} : vector<16x8x16xbf16>, vector<16x8x16xbf16>, vector<16x8x8xf32> -> vector<16x8x8xf32>
    %198 = vector.broadcast %1 : f32 to vector<16x8x8xf32>
    %199 = arith.mulf %197, %198 : vector<16x8x8xf32>
    %200 = vector.broadcast %27 : vector<16x1x8xf32> to vector<16x8x8xf32>
    %201 = arith.addf %199, %200 : vector<16x8x8xf32>
    %cst_92 = arith.constant dense<0xFF800000> : vector<16x8xf32>
    %202 = vector.multi_reduction <maximumf>, %201, %cst_92 [2] : vector<16x8x8xf32> to vector<16x8xf32>
    %203 = vector.shape_cast %202 : vector<16x8xf32> to vector<16x8x1xf32>
    %204 = vector.broadcast %203 : vector<16x8x1xf32> to vector<16x8x8xf32>
    %205 = arith.subf %201, %204 : vector<16x8x8xf32>
    %206 = math.exp %205 : vector<16x8x8xf32>
    %cst_93 = arith.constant dense<0.000000e+00> : vector<16x8xf32>
    %207 = vector.multi_reduction <add>, %206, %cst_93 [2] : vector<16x8x8xf32> to vector<16x8xf32>
    %208 = vector.shape_cast %207 : vector<16x8xf32> to vector<16x8x1xf32>
    %209 = tpu.reciprocal %208 {approx = true} : vector<16x8x1xf32> -> vector<16x8x1xf32>
    %210 = vector.broadcast %209 : vector<16x8x1xf32> to vector<16x8x8xf32>
    %211 = arith.mulf %206, %210 : vector<16x8x8xf32>
    %212 = arith.truncf %211 : vector<16x8x8xf32> to vector<16x8x8xbf16>
    %213 = arith.truncf %194 : vector<16x8x16xf32> to vector<16x8x16xbf16>
    %cst_94 = arith.constant dense<0.000000e+00> : vector<16x8x16xf32>
    %214 = tpu.matmul %212, %213, %cst_94 {dimension_numbers = #tpu.dot_dimension_numbers<[2], [1], [1], [2], [0, 0, 0, 1, 1, 2], [0], [0]>} : vector<16x8x8xbf16>, vector<16x8x16xbf16>, vector<16x8x16xf32> -> vector<16x8x16xf32>
    %215 = vector.shape_cast %214 : vector<16x8x16xf32> to vector<128x16xf32>
    %216 = arith.truncf %215 : vector<128x16xf32> to vector<128x16xbf16>
    %c1_95 = arith.constant 1 : index
    %c0_96 = arith.constant 0 : index
    %c0_97 = arith.constant 0 : index
    %c0_98 = arith.constant 0 : index
    %217 = vector.load %arg7[%c1_95, %c0_96, %c0_97, %c0_98] : memref<2x2x16x32xbf16, #tpu.memory_space<vmem>>, vector<1x1x16x32xbf16>
    %218 = vector.shape_cast %217 : vector<1x1x16x32xbf16> to vector<16x32xbf16>
    %cst_99 = arith.constant dense<0.000000e+00> : vector<128x32xf32>
    %219 = tpu.matmul %216, %218, %cst_99 {dimension_numbers = #tpu.dot_dimension_numbers<[1], [0], [0], [1], [0, 0, 1, 1], [], []>} : vector<128x16xbf16>, vector<16x32xbf16>, vector<128x32xf32> -> vector<128x32xf32>
    %220 = vector.broadcast %191 : vector<1x32xf32> to vector<128x32xf32>
    %221 = arith.addf %220, %219 : vector<128x32xf32>
    %222 = vector.extract_strided_slice %189 {offsets = [0, 0, 16], sizes = [16, 8, 16], strides = [1, 1, 1]} : vector<16x8x96xf32> to vector<16x8x16xf32>
    %223 = vector.extract_strided_slice %189 {offsets = [0, 0, 48], sizes = [16, 8, 16], strides = [1, 1, 1]} : vector<16x8x96xf32> to vector<16x8x16xf32>
    %224 = vector.extract_strided_slice %189 {offsets = [0, 0, 80], sizes = [16, 8, 16], strides = [1, 1, 1]} : vector<16x8x96xf32> to vector<16x8x16xf32>
    %225 = arith.truncf %222 : vector<16x8x16xf32> to vector<16x8x16xbf16>
    %226 = arith.truncf %223 : vector<16x8x16xf32> to vector<16x8x16xbf16>
    %cst_100 = arith.constant dense<0.000000e+00> : vector<16x8x8xf32>
    %227 = tpu.matmul %225, %226, %cst_100 {dimension_numbers = #tpu.dot_dimension_numbers<[2], [2], [1], [1], [0, 0, 0, 1, 1, 1], [0], [0]>} : vector<16x8x16xbf16>, vector<16x8x16xbf16>, vector<16x8x8xf32> -> vector<16x8x8xf32>
    %228 = vector.broadcast %1 : f32 to vector<16x8x8xf32>
    %229 = arith.mulf %227, %228 : vector<16x8x8xf32>
    %230 = vector.broadcast %27 : vector<16x1x8xf32> to vector<16x8x8xf32>
    %231 = arith.addf %229, %230 : vector<16x8x8xf32>
    %cst_101 = arith.constant dense<0xFF800000> : vector<16x8xf32>
    %232 = vector.multi_reduction <maximumf>, %231, %cst_101 [2] : vector<16x8x8xf32> to vector<16x8xf32>
    %233 = vector.shape_cast %232 : vector<16x8xf32> to vector<16x8x1xf32>
    %234 = vector.broadcast %233 : vector<16x8x1xf32> to vector<16x8x8xf32>
    %235 = arith.subf %231, %234 : vector<16x8x8xf32>
    %236 = math.exp %235 : vector<16x8x8xf32>
    %cst_102 = arith.constant dense<0.000000e+00> : vector<16x8xf32>
    %237 = vector.multi_reduction <add>, %236, %cst_102 [2] : vector<16x8x8xf32> to vector<16x8xf32>
    %238 = vector.shape_cast %237 : vector<16x8xf32> to vector<16x8x1xf32>
    %239 = tpu.reciprocal %238 {approx = true} : vector<16x8x1xf32> -> vector<16x8x1xf32>
    %240 = vector.broadcast %239 : vector<16x8x1xf32> to vector<16x8x8xf32>
    %241 = arith.mulf %236, %240 : vector<16x8x8xf32>
    %242 = arith.truncf %241 : vector<16x8x8xf32> to vector<16x8x8xbf16>
    %243 = arith.truncf %224 : vector<16x8x16xf32> to vector<16x8x16xbf16>
    %cst_103 = arith.constant dense<0.000000e+00> : vector<16x8x16xf32>
    %244 = tpu.matmul %242, %243, %cst_103 {dimension_numbers = #tpu.dot_dimension_numbers<[2], [1], [1], [2], [0, 0, 0, 1, 1, 2], [0], [0]>} : vector<16x8x8xbf16>, vector<16x8x16xbf16>, vector<16x8x16xf32> -> vector<16x8x16xf32>
    %245 = vector.shape_cast %244 : vector<16x8x16xf32> to vector<128x16xf32>
    %246 = arith.truncf %245 : vector<128x16xf32> to vector<128x16xbf16>
    %c1_104 = arith.constant 1 : index
    %c1_105 = arith.constant 1 : index
    %c0_106 = arith.constant 0 : index
    %c0_107 = arith.constant 0 : index
    %247 = vector.load %arg7[%c1_104, %c1_105, %c0_106, %c0_107] : memref<2x2x16x32xbf16, #tpu.memory_space<vmem>>, vector<1x1x16x32xbf16>
    %248 = vector.shape_cast %247 : vector<1x1x16x32xbf16> to vector<16x32xbf16>
    %cst_108 = arith.constant dense<0.000000e+00> : vector<128x32xf32>
    %249 = tpu.matmul %246, %248, %cst_108 {dimension_numbers = #tpu.dot_dimension_numbers<[1], [0], [0], [1], [0, 0, 1, 1], [], []>} : vector<128x16xbf16>, vector<16x32xbf16>, vector<128x32xf32> -> vector<128x32xf32>
    %250 = arith.addf %221, %249 : vector<128x32xf32>
    %251 = arith.addf %180, %250 : vector<128x32xf32>
    %c1_109 = arith.constant 1 : index
    %c0_110 = arith.constant 0 : index
    %c0_111 = arith.constant 0 : index
    %252 = vector.load %arg9[%c1_109, %c0_110, %c0_111] : memref<2x1x32xf32, #tpu.memory_space<vmem>>, vector<1x1x32xf32>
    %253 = vector.shape_cast %252 : vector<1x1x32xf32> to vector<1x32xf32>
    %c1_112 = arith.constant 1 : index
    %c0_113 = arith.constant 0 : index
    %c0_114 = arith.constant 0 : index
    %254 = vector.load %arg10[%c1_112, %c0_113, %c0_114] : memref<2x1x32xf32, #tpu.memory_space<vmem>>, vector<1x1x32xf32>
    %255 = vector.shape_cast %254 : vector<1x1x32xf32> to vector<1x32xf32>
    %cst_115 = arith.constant dense<0.000000e+00> : vector<128xf32>
    %256 = vector.multi_reduction <add>, %251, %cst_115 [1] : vector<128x32xf32> to vector<128xf32>
    %257 = vector.shape_cast %256 : vector<128xf32> to vector<128x1xf32>
    %cst_116 = arith.constant 3.200000e+01 : f32
    %258 = vector.broadcast %cst_116 : f32 to vector<128x1xf32>
    %259 = arith.divf %257, %258 : vector<128x1xf32>
    %260 = vector.broadcast %259 : vector<128x1xf32> to vector<128x32xf32>
    %261 = arith.subf %251, %260 : vector<128x32xf32>
    %262 = arith.mulf %261, %261 : vector<128x32xf32>
    %cst_117 = arith.constant dense<0.000000e+00> : vector<128xf32>
    %263 = vector.multi_reduction <add>, %262, %cst_117 [1] : vector<128x32xf32> to vector<128xf32>
    %264 = vector.shape_cast %263 : vector<128xf32> to vector<128x1xf32>
    %cst_118 = arith.constant 3.200000e+01 : f32
    %265 = vector.broadcast %cst_118 : f32 to vector<128x1xf32>
    %266 = arith.divf %264, %265 : vector<128x1xf32>
    %267 = vector.broadcast %259 : vector<128x1xf32> to vector<128x32xf32>
    %268 = arith.subf %251, %267 : vector<128x32xf32>
    %cst_119 = arith.constant 9.99999996E-13 : f32
    %269 = vector.broadcast %cst_119 : f32 to vector<128x1xf32>
    %270 = arith.addf %266, %269 : vector<128x1xf32>
    %271 = math.rsqrt %270 : vector<128x1xf32>
    %272 = vector.broadcast %271 : vector<128x1xf32> to vector<128x32xf32>
    %273 = arith.mulf %268, %272 : vector<128x32xf32>
    %274 = vector.broadcast %253 : vector<1x32xf32> to vector<128x32xf32>
    %275 = arith.mulf %273, %274 : vector<128x32xf32>
    %276 = vector.broadcast %255 : vector<1x32xf32> to vector<128x32xf32>
    %277 = arith.addf %275, %276 : vector<128x32xf32>
    %278 = arith.truncf %277 : vector<128x32xf32> to vector<128x32xbf16>
    %c1_120 = arith.constant 1 : index
    %c0_121 = arith.constant 0 : index
    %c0_122 = arith.constant 0 : index
    %279 = vector.load %arg11[%c1_120, %c0_121, %c0_122] : memref<2x32x64xbf16, #tpu.memory_space<vmem>>, vector<1x32x64xbf16>
    %280 = vector.shape_cast %279 : vector<1x32x64xbf16> to vector<32x64xbf16>
    %cst_123 = arith.constant dense<0.000000e+00> : vector<128x64xf32>
    %281 = tpu.matmul %278, %280, %cst_123 {dimension_numbers = #tpu.dot_dimension_numbers<[1], [0], [0], [1], [0, 0, 1, 1], [], []>} : vector<128x32xbf16>, vector<32x64xbf16>, vector<128x64xf32> -> vector<128x64xf32>
    %c1_124 = arith.constant 1 : index
    %c0_125 = arith.constant 0 : index
    %c0_126 = arith.constant 0 : index
    %282 = vector.load %arg12[%c1_124, %c0_125, %c0_126] : memref<2x1x64xf32, #tpu.memory_space<vmem>>, vector<1x1x64xf32>
    %283 = vector.shape_cast %282 : vector<1x1x64xf32> to vector<1x64xf32>
    %284 = vector.broadcast %283 : vector<1x64xf32> to vector<128x64xf32>
    %285 = arith.addf %281, %284 : vector<128x64xf32>
    %286 = arith.mulf %285, %285 : vector<128x64xf32>
    %287 = arith.mulf %285, %286 : vector<128x64xf32>
    %cst_127 = arith.constant 4.471500e-02 : f32
    %288 = vector.broadcast %cst_127 : f32 to vector<128x64xf32>
    %289 = arith.mulf %288, %287 : vector<128x64xf32>
    %290 = arith.addf %285, %289 : vector<128x64xf32>
    %cst_128 = arith.constant 0.797884583 : f32
    %291 = vector.broadcast %cst_128 : f32 to vector<128x64xf32>
    %292 = arith.mulf %291, %290 : vector<128x64xf32>
    %293 = math.tanh %292 : vector<128x64xf32>
    %cst_129 = arith.constant 1.000000e+00 : f32
    %294 = vector.broadcast %cst_129 : f32 to vector<128x64xf32>
    %295 = arith.addf %294, %293 : vector<128x64xf32>
    %cst_130 = arith.constant 5.000000e-01 : f32
    %296 = vector.broadcast %cst_130 : f32 to vector<128x64xf32>
    %297 = arith.mulf %296, %295 : vector<128x64xf32>
    %298 = arith.mulf %285, %297 : vector<128x64xf32>
    %299 = arith.truncf %298 : vector<128x64xf32> to vector<128x64xbf16>
    %c1_131 = arith.constant 1 : index
    %c0_132 = arith.constant 0 : index
    %c0_133 = arith.constant 0 : index
    %300 = vector.load %arg13[%c1_131, %c0_132, %c0_133] : memref<2x64x32xbf16, #tpu.memory_space<vmem>>, vector<1x64x32xbf16>
    %301 = vector.shape_cast %300 : vector<1x64x32xbf16> to vector<64x32xbf16>
    %cst_134 = arith.constant dense<0.000000e+00> : vector<128x32xf32>
    %302 = tpu.matmul %299, %301, %cst_134 {dimension_numbers = #tpu.dot_dimension_numbers<[1], [0], [0], [1], [0, 0, 1, 1], [], []>} : vector<128x64xbf16>, vector<64x32xbf16>, vector<128x32xf32> -> vector<128x32xf32>
    %c1_135 = arith.constant 1 : index
    %c0_136 = arith.constant 0 : index
    %c0_137 = arith.constant 0 : index
    %303 = vector.load %arg14[%c1_135, %c0_136, %c0_137] : memref<2x1x32xf32, #tpu.memory_space<vmem>>, vector<1x1x32xf32>
    %304 = vector.shape_cast %303 : vector<1x1x32xf32> to vector<1x32xf32>
    %305 = vector.broadcast %304 : vector<1x32xf32> to vector<128x32xf32>
    %306 = arith.addf %302, %305 : vector<128x32xf32>
    %307 = arith.addf %277, %306 : vector<128x32xf32>
    %c1_138 = arith.constant 1 : index
    %c0_139 = arith.constant 0 : index
    %c0_140 = arith.constant 0 : index
    %308 = vector.load %arg15[%c1_138, %c0_139, %c0_140] : memref<2x1x32xf32, #tpu.memory_space<vmem>>, vector<1x1x32xf32>
    %309 = vector.shape_cast %308 : vector<1x1x32xf32> to vector<1x32xf32>
    %c1_141 = arith.constant 1 : index
    %c0_142 = arith.constant 0 : index
    %c0_143 = arith.constant 0 : index
    %310 = vector.load %arg16[%c1_141, %c0_142, %c0_143] : memref<2x1x32xf32, #tpu.memory_space<vmem>>, vector<1x1x32xf32>
    %311 = vector.shape_cast %310 : vector<1x1x32xf32> to vector<1x32xf32>
    %cst_144 = arith.constant dense<0.000000e+00> : vector<128xf32>
    %312 = vector.multi_reduction <add>, %307, %cst_144 [1] : vector<128x32xf32> to vector<128xf32>
    %313 = vector.shape_cast %312 : vector<128xf32> to vector<128x1xf32>
    %cst_145 = arith.constant 3.200000e+01 : f32
    %314 = vector.broadcast %cst_145 : f32 to vector<128x1xf32>
    %315 = arith.divf %313, %314 : vector<128x1xf32>
    %316 = vector.broadcast %315 : vector<128x1xf32> to vector<128x32xf32>
    %317 = arith.subf %307, %316 : vector<128x32xf32>
    %318 = arith.mulf %317, %317 : vector<128x32xf32>
    %cst_146 = arith.constant dense<0.000000e+00> : vector<128xf32>
    %319 = vector.multi_reduction <add>, %318, %cst_146 [1] : vector<128x32xf32> to vector<128xf32>
    %320 = vector.shape_cast %319 : vector<128xf32> to vector<128x1xf32>
    %cst_147 = arith.constant 3.200000e+01 : f32
    %321 = vector.broadcast %cst_147 : f32 to vector<128x1xf32>
    %322 = arith.divf %320, %321 : vector<128x1xf32>
    %323 = vector.broadcast %315 : vector<128x1xf32> to vector<128x32xf32>
    %324 = arith.subf %307, %323 : vector<128x32xf32>
    %cst_148 = arith.constant 9.99999996E-13 : f32
    %325 = vector.broadcast %cst_148 : f32 to vector<128x1xf32>
    %326 = arith.addf %322, %325 : vector<128x1xf32>
    %327 = math.rsqrt %326 : vector<128x1xf32>
    %328 = vector.broadcast %327 : vector<128x1xf32> to vector<128x32xf32>
    %329 = arith.mulf %324, %328 : vector<128x32xf32>
    %330 = vector.broadcast %309 : vector<1x32xf32> to vector<128x32xf32>
    %331 = arith.mulf %329, %330 : vector<128x32xf32>
    %332 = vector.broadcast %311 : vector<1x32xf32> to vector<128x32xf32>
    %333 = arith.addf %331, %332 : vector<128x32xf32>
    %334 = arith.truncf %333 : vector<128x32xf32> to vector<128x32xbf16>
    %c0_149 = arith.constant 0 : index
    %c0_150 = arith.constant 0 : index
    %335 = vector.load %arg17[%c0_149, %c0_150] : memref<32x32xbf16, #tpu.memory_space<vmem>>, vector<32x32xbf16>
    %cst_151 = arith.constant dense<0.000000e+00> : vector<128x32xf32>
    %336 = tpu.matmul %334, %335, %cst_151 {dimension_numbers = #tpu.dot_dimension_numbers<[1], [0], [0], [1], [0, 0, 1, 1], [], []>} : vector<128x32xbf16>, vector<32x32xbf16>, vector<128x32xf32> -> vector<128x32xf32>
    %c0_152 = arith.constant 0 : index
    %c0_153 = arith.constant 0 : index
    %337 = vector.load %arg18[%c0_152, %c0_153] : memref<1x32xf32, #tpu.memory_space<vmem>>, vector<1x32xf32>
    %338 = vector.broadcast %337 : vector<1x32xf32> to vector<128x32xf32>
    %339 = arith.addf %336, %338 : vector<128x32xf32>
    %340 = math.tanh %339 : vector<128x32xf32>
    %341 = arith.truncf %340 : vector<128x32xf32> to vector<128x32xbf16>
    %c0_154 = arith.constant 0 : index
    %c0_155 = arith.constant 0 : index
    %342 = vector.load %arg19[%c0_154, %c0_155] : memref<32x128xbf16, #tpu.memory_space<vmem>>, vector<32x128xbf16>
    %cst_156 = arith.constant dense<0.000000e+00> : vector<128x128xf32>
    %343 = tpu.matmul %341, %342, %cst_156 {dimension_numbers = #tpu.dot_dimension_numbers<[1], [0], [0], [1], [0, 0, 1, 1], [], []>} : vector<128x32xbf16>, vector<32x128xbf16>, vector<128x128xf32> -> vector<128x128xf32>
    %c0_157 = arith.constant 0 : index
    %c0_158 = arith.constant 0 : index
    %344 = vector.load %arg20[%c0_157, %c0_158] : memref<1x128xf32, #tpu.memory_space<vmem>>, vector<1x128xf32>
    %345 = vector.broadcast %344 : vector<1x128xf32> to vector<128x128xf32>
    %346 = arith.addf %343, %345 : vector<128x128xf32>
    %c0_159 = arith.constant 0 : index
    %c0_160 = arith.constant 0 : index
    %347 = vector.load %arg21[%c0_159, %c0_160] : memref<128x128xf32, #tpu.memory_space<vmem>>, vector<128x128xf32>
    tpu.vector_store %arg21[%c0_159, %c0_160], %346 {strides = array<i32>} : memref<128x128xf32, #tpu.memory_space<vmem>>, vector<128x128xf32>,
    return
  }
  func.func @transform_0(%arg0: i32) -> (i32, i32) {
    %c0_i32 = arith.constant 0 : i32
    %c0_i32_0 = arith.constant 0 : i32
    return %arg0, %c0_i32 : i32, i32
  }
  func.func @transform_1(%arg0: i32) -> (i32, i32, i32) {
    %c0_i32 = arith.constant 0 : i32
    %c0_i32_0 = arith.constant 0 : i32
    %c0_i32_1 = arith.constant 0 : i32
    return %arg0, %c0_i32, %c0_i32_0 : i32, i32, i32
  }
  func.func @transform_2(%arg0: i32) -> (i32, i32) {
    %c0_i32 = arith.constant 0 : i32
    %c0_i32_0 = arith.constant 0 : i32
    %c0_i32_1 = arith.constant 0 : i32
    return %c0_i32, %c0_i32_0 : i32, i32
  }
  func.func @transform_3(%arg0: i32) -> (i32, i32) {
    %c0_i32 = arith.constant 0 : i32
    %c0_i32_0 = arith.constant 0 : i32
    %c0_i32_1 = arith.constant 0 : i32
    return %c0_i32, %c0_i32_0 : i32, i32
  }
  func.func @transform_4(%arg0: i32) -> (i32, i32, i32) {
    %c0_i32 = arith.constant 0 : i32
    %c0_i32_0 = arith.constant 0 : i32
    %c0_i32_1 = arith.constant 0 : i32
    %c0_i32_2 = arith.constant 0 : i32
    return %c0_i32, %c0_i32_0, %c0_i32_1 : i32, i32, i32
  }
  func.func @transform_5(%arg0: i32) -> (i32, i32, i32) {
    %c0_i32 = arith.constant 0 : i32
    %c0_i32_0 = arith.constant 0 : i32
    %c0_i32_1 = arith.constant 0 : i32
    %c0_i32_2 = arith.constant 0 : i32
    return %c0_i32, %c0_i32_0, %c0_i32_1 : i32, i32, i32
  }
  func.func @transform_6(%arg0: i32) -> (i32, i32, i32, i32) {
    %c0_i32 = arith.constant 0 : i32
    %c0_i32_0 = arith.constant 0 : i32
    %c0_i32_1 = arith.constant 0 : i32
    %c0_i32_2 = arith.constant 0 : i32
    %c0_i32_3 = arith.constant 0 : i32
    return %c0_i32, %c0_i32_0, %c0_i32_1, %c0_i32_2 : i32, i32, i32, i32
  }
  func.func @transform_7(%arg0: i32) -> (i32, i32, i32) {
    %c0_i32 = arith.constant 0 : i32
    %c0_i32_0 = arith.constant 0 : i32
    %c0_i32_1 = arith.constant 0 : i32
    %c0_i32_2 = arith.constant 0 : i32
    return %c0_i32, %c0_i32_0, %c0_i32_1 : i32, i32, i32
  }
  func.func @transform_8(%arg0: i32) -> (i32, i32, i32) {
    %c0_i32 = arith.constant 0 : i32
    %c0_i32_0 = arith.constant 0 : i32
    %c0_i32_1 = arith.constant 0 : i32
    %c0_i32_2 = arith.constant 0 : i32
    return %c0_i32, %c0_i32_0, %c0_i32_1 : i32, i32, i32
  }
  func.func @transform_9(%arg0: i32) -> (i32, i32, i32) {
    %c0_i32 = arith.constant 0 : i32
    %c0_i32_0 = arith.constant 0 : i32
    %c0_i32_1 = arith.constant 0 : i32
    %c0_i32_2 = arith.constant 0 : i32
    return %c0_i32, %c0_i32_0, %c0_i32_1 : i32, i32, i32
  }
  func.func @transform_10(%arg0: i32) -> (i32, i32, i32) {
    %c0_i32 = arith.constant 0 : i32
    %c0_i32_0 = arith.constant 0 : i32
    %c0_i32_1 = arith.constant 0 : i32
    %c0_i32_2 = arith.constant 0 : i32
    return %c0_i32, %c0_i32_0, %c0_i32_1 : i32, i32, i32
  }
  func.func @transform_11(%arg0: i32) -> (i32, i32, i32) {
    %c0_i32 = arith.constant 0 : i32
    %c0_i32_0 = arith.constant 0 : i32
    %c0_i32_1 = arith.constant 0 : i32
    %c0_i32_2 = arith.constant 0 : i32
    return %c0_i32, %c0_i32_0, %c0_i32_1 : i32, i32, i32
  }
  func.func @transform_12(%arg0: i32) -> (i32, i32, i32) {
    %c0_i32 = arith.constant 0 : i32
    %c0_i32_0 = arith.constant 0 : i32
    %c0_i32_1 = arith.constant 0 : i32
    %c0_i32_2 = arith.constant 0 : i32
    return %c0_i32, %c0_i32_0, %c0_i32_1 : i32, i32, i32
  }
  func.func @transform_13(%arg0: i32) -> (i32, i32, i32) {
    %c0_i32 = arith.constant 0 : i32
    %c0_i32_0 = arith.constant 0 : i32
    %c0_i32_1 = arith.constant 0 : i32
    %c0_i32_2 = arith.constant 0 : i32
    return %c0_i32, %c0_i32_0, %c0_i32_1 : i32, i32, i32
  }
  func.func @transform_14(%arg0: i32) -> (i32, i32, i32) {
    %c0_i32 = arith.constant 0 : i32
    %c0_i32_0 = arith.constant 0 : i32
    %c0_i32_1 = arith.constant 0 : i32
    %c0_i32_2 = arith.constant 0 : i32
    return %c0_i32, %c0_i32_0, %c0_i32_1 : i32, i32, i32
  }
  func.func @transform_15(%arg0: i32) -> (i32, i32, i32) {
    %c0_i32 = arith.constant 0 : i32
    %c0_i32_0 = arith.constant 0 : i32
    %c0_i32_1 = arith.constant 0 : i32
    %c0_i32_2 = arith.constant 0 : i32
    return %c0_i32, %c0_i32_0, %c0_i32_1 : i32, i32, i32
  }
  func.func @transform_16(%arg0: i32) -> (i32, i32) {
    %c0_i32 = arith.constant 0 : i32
    %c0_i32_0 = arith.constant 0 : i32
    %c0_i32_1 = arith.constant 0 : i32
    return %c0_i32, %c0_i32_0 : i32, i32
  }
  func.func @transform_17(%arg0: i32) -> (i32, i32) {
    %c0_i32 = arith.constant 0 : i32
    %c0_i32_0 = arith.constant 0 : i32
    %c0_i32_1 = arith.constant 0 : i32
    return %c0_i32, %c0_i32_0 : i32, i32
  }
  func.func @transform_18(%arg0: i32) -> (i32, i32) {
    %c0_i32 = arith.constant 0 : i32
    %c0_i32_0 = arith.constant 0 : i32
    %c0_i32_1 = arith.constant 0 : i32
    return %c0_i32, %c0_i32_0 : i32, i32
  }
  func.func @transform_19(%arg0: i32) -> (i32, i32) {
    %c0_i32 = arith.constant 0 : i32
    %c0_i32_0 = arith.constant 0 : i32
    %c0_i32_1 = arith.constant 0 : i32
    return %c0_i32, %c0_i32_0 : i32, i32
  }
  func.func @transform_20(%arg0: i32) -> (i32, i32) {
    %c0_i32 = arith.constant 0 : i32
    %c0_i32_0 = arith.constant 0 : i32
    return %arg0, %c0_i32 : i32, i32
  }
}

</mosaic_0001>

<bundles_post_ra>
// kernel: sentiment_classifier_forward.1
= control target key start
LH: loop header
LB: loop body
LE: loop exit
PB: predicated region body
PF: predicated region fallthrough
CT: control target
= control target key end

     0   :  { %vm84_vm0 = vcmask 261120   ;;  %vm13272_vm1 = vmmov 0   ;;  %vm526_vm2 = vcmask 130048   ;;  %vm1634_vm3 = vcmask 1043456   ;;  %s13275_s22 = smov 112   ;;  %s13276_s25 = smov 80   ;;  %s17369_s0 = inlined_call_operand.vmem [shape: f32[128,32], index: 0, kind: input, shape index: {}]   ;;  %s17370_s4 = inlined_call_operand.vmem [shape: bf16[2,32,96], index: 4, kind: input, shape index: {}]   ;;  %s17371_s2 = inlined_call_operand.vmem [shape: f32[1,32], index: 2, kind: input, shape index: {}]   ;;  %s17372_s3 = inlined_call_operand.vmem [shape: f32[1,32], index: 3, kind: input, shape index: {}]   ;;  %s17373_s5 = inlined_call_operand.vmem [shape: f32[2,1,96], index: 5, kind: input, shape index: {}]   ;;  %s17374_s1 = inlined_call_operand.vmem [shape: f32[16,1,8], index: 1, kind: input, shape index: {}]   ;;  %s17375_s6 = inlined_call_operand.vmem [shape: bf16[2,2,16,32], index: 6, kind: input, shape index: {}]   ;;  %s17376_s7 = inlined_call_operand.vmem [shape: f32[2,1,32], index: 7, kind: input, shape index: {}]   ;;  %s17377_s10 = inlined_call_operand.vmem [shape: bf16[2,32,64], index: 10, kind: input, shape index: {}]   ;;  %s17378_s8 = inlined_call_operand.vmem [shape: f32[2,1,32], index: 8, kind: input, shape index: {}]   ;;  %s17379_s9 = inlined_call_operand.vmem [shape: f32[2,1,32], index: 9, kind: input, shape index: {}]   ;;  %s17380_s12 = inlined_call_operand.vmem [shape: bf16[2,64,32], index: 12, kind: input, shape index: {}]   ;;  %s17381_s11 = inlined_call_operand.vmem [shape: f32[2,1,64], index: 11, kind: input, shape index: {}]   ;;  %s17382_s13 = inlined_call_operand.vmem [shape: f32[2,1,32], index: 13, kind: input, shape index: {}]   ;;  %s17383_s14 = inlined_call_operand.vmem [shape: f32[2,1,32], index: 14, kind: input, shape index: {}]   ;;  %s17384_s15 = inlined_call_operand.vmem [shape: f32[2,1,32], index: 15, kind: input, shape index: {}]   ;;  %s17385_s16 = inlined_call_operand.vmem [shape: bf16[32,32], index: 16, kind: input, shape index: {}]   ;;  %s17386_s18 = inlined_call_operand.vmem [shape: bf16[32,128], index: 18, kind: input, shape index: {}]   ;;  %s17387_s17 = inlined_call_operand.vmem [shape: f32[1,32], index: 17, kind: input, shape index: {}]   ;;  %s17388_s19 = inlined_call_operand.vmem [shape: f32[1,128], index: 19, kind: input, shape index: {}]   ;;  %s17389_s20 = inlined_call_operand.vmem [shape: f32[128,128], index: 20, kind: output, shape index: {}]  }
   0x1   :  { %17402 = sst [smem:[#allocation7_spill]] %s17369_s0  ;;  %vm1436_vm4 = vcmask 64512   ;;  %s13277_s26 = smov 48   ;;  %vm5116_vm5 = vcmask 523264  }
   0x2   :  { %17403 = sst [smem:[#allocation8_spill]] %s17370_s4  ;;  %s17407_s23 = sld [smem:[#allocation7_spill]] }
   0x3   :  { %17404 = sst [smem:[#allocation9_spill]] %s17371_s2  ;;  %s13273_s2 = smov 96  }
   0x4   :  { %17405 = sst [smem:[#allocation10_spill]] %s17372_s3  ;;  %s17408_s3 = sld [smem:[#allocation8_spill]] }
   0x5   :  { %17406 = sst [smem:[#allocation11_spill]] %s17373_s5  ;;  %s17409_s29 = sld [smem:[#allocation9_spill]] }
   0x6   :  { %s17410_s21 = sld [smem:[#allocation10_spill]]  ;;  %s17413_s24 = sld [smem:[#allocation11_spill]] }
   0x8   :  { %v66_v0 = vld [vmem:[%s17407_s23] sm:$0xff]  ;;  %v68_v1 = vld [vmem:[%s17407_s23 + $0x10] sm:$0xff]  ;;  %v67_v2 = vld [vmem:[%s17407_s23 + $0x8] sm:$0xff] }
   0x9   :  { %v85_v3 = vsel %vm84_vm0, %v66_v0, 0.0  ;;  %v91_v4 = vsel %vm84_vm0, %v68_v1, 0.0  ;;  %v69_v5 = vld [vmem:[%s17407_s23 + $0x18] sm:$0xff]  ;;  %v88_v6 = vsel %vm84_vm0, %v67_v2, 0.0  ;;  %v70_v8 = vld [vmem:[%s17407_s23 + $0x20] sm:$0xff]  ;;  %v71_v9 = vld [vmem:[%s17407_s23 + $0x28] sm:$0xff] }
   0xa   :  { %86 = vadd.xlane.f32.xlu0 %v85_v3  ;;  %92 = vadd.xlane.f32.xlu1 %v91_v4  ;;  %v94_v7 = vsel %vm84_vm0, %v69_v5, 0.0  ;;  %v97_v10 = vsel %vm84_vm0, %v70_v8, 0.0  ;;  %v100_v11 = vsel %vm84_vm0, %v71_v9, 0.0  ;;  %v13410_v12 = vld [vmem:[%s17407_s23 + $0x30] sm:$0xff]  ;;  %v13415_v13 = vld [vmem:[%s17407_s23 + $0x38] sm:$0xff]  ;;  %v13424_v16 = vld [vmem:[%s17407_s23 + $0x40] sm:$0xff] }
   0xb   :  { %v103_v14 = vsel %vm84_vm0, %v13410_v12, 0.0  ;;  %v106_v15 = vsel %vm84_vm0, %v13415_v13, 0.0  ;;  %v13429_v17 = vld [vmem:[%s17407_s23 + $0x48] sm:$0xff]  ;;  %v109_v18 = vsel %vm84_vm0, %v13424_v16, 0.0  ;;  %v13438_v20 = vld [vmem:[%s17407_s23 + $0x50] sm:$0xff]  ;;  %v13443_v21 = vld [vmem:[%s17407_s23 + $0x58] sm:$0xff] }
   0xc   :  { %v112_v19 = vsel %vm84_vm0, %v13429_v17, 0.0  ;;  %v115_v22 = vsel %vm84_vm0, %v13438_v20, 0.0  ;;  %v118_v23 = vsel %vm84_vm0, %v13443_v21, 0.0  ;;  %v13452_v24 = vld [vmem:[%s17407_s23 + $0x60] sm:$0xff]  ;;  %v13457_v25 = vld [vmem:[%s17407_s23 + $0x68] sm:$0xff]  ;;  %v13466_v28 = vld [vmem:[%s17407_s23 + $0x70] sm:$0xff] }
   0xd   :  { %v121_v26 = vsel %vm84_vm0, %v13452_v24, 0.0  ;;  %v124_v27 = vsel %vm84_vm0, %v13457_v25, 0.0  ;;  %v13471_v29 = vld [vmem:[%s17407_s23 + $0x78] sm:$0xff]  ;;  %v127_v30 = vsel %vm84_vm0, %v13466_v28, 0.0  ;;  %s13274_s23 = smov 64  }
   0xe   :  { %89 = vadd.xlane.f32.xlu0 %v88_v6  ;;  %95 = vadd.xlane.f32.xlu1 %v94_v7  ;;  %v130_v31 = vsel %vm84_vm0, %v13471_v29, 0.0 }
  0x12   :  { %98 = vadd.xlane.f32.xlu0 %v97_v10  ;;  %101 = vadd.xlane.f32.xlu1 %v100_v11 }
  0x16   :  { %104 = vadd.xlane.f32.xlu0 %v103_v14  ;;  %107 = vadd.xlane.f32.xlu1 %v106_v15 }
  0x1a   :  { %110 = vadd.xlane.f32.xlu0 %v109_v18  ;;  %113 = vadd.xlane.f32.xlu1 %v112_v19 }
  0x1e   :  { %116 = vadd.xlane.f32.xlu0 %v115_v22  ;;  %119 = vadd.xlane.f32.xlu1 %v118_v23 }
  0x22   :  { %122 = vadd.xlane.f32.xlu0 %v121_v26  ;;  %125 = vadd.xlane.f32.xlu1 %v124_v27 }
  0x26   :  { %128 = vadd.xlane.f32.xlu0 %v127_v30  ;;  %131 = vadd.xlane.f32.xlu1 %v130_v31 }
  0x97   :  { %v87_v32 = vpop.xlane.xlu0 %86  ;;  %v93_v33 = vpop.xlane.xlu1 %92 }
  0x98   :  { %v134_v34 = vmul.f32 0.03125, %v87_v32  ;;  %v136_v35 = vmul.f32 0.03125, %v93_v33 }
  0x9a   :  { %v13477_v36 = vsub.f32 %v66_v0, %v134_v34  ;;  %v13479_v37 = vsub.f32 %v68_v1, %v136_v35 }
  0x9b   :  { %v90_v38 = vpop.xlane.xlu0 %89  ;;  %v96_v39 = vpop.xlane.xlu1 %95 }
  0x9c   :  { %v135_v40 = vmul.f32 0.03125, %v90_v38  ;;  %v137_v41 = vmul.f32 0.03125, %v96_v39  ;;  %v166_v42 = vmul.f32 %v13477_v36, %v13477_v36  ;;  %v168_v43 = vmul.f32 %v13479_v37, %v13479_v37 }
  0x9e   :  { %v13485_v44 = vsub.f32 %v67_v2, %v135_v40  ;;  %v13487_v45 = vsub.f32 %v69_v5, %v137_v41  ;;  %v182_v46 = vsel %vm84_vm0, %v166_v42, 0.0  ;;  %v188_v49 = vsel %vm84_vm0, %v168_v43, 0.0 }
  0x9f   :  { %183 = vadd.xlane.f32.xlu0 %v182_v46  ;;  %v99_v47 = vpop.xlane.xlu0 %98  ;;  %v102_v48 = vpop.xlane.xlu1 %101 }
  0xa0   :  { %v138_v50 = vmul.f32 0.03125, %v99_v47  ;;  %v139_v51 = vmul.f32 0.03125, %v102_v48  ;;  %v167_v52 = vmul.f32 %v13485_v44, %v13485_v44  ;;  %v169_v53 = vmul.f32 %v13487_v45, %v13487_v45 }
  0xa2   :  { %v13495_v54 = vsub.f32 %v70_v8, %v138_v50  ;;  %v13497_v55 = vsub.f32 %v71_v9, %v139_v51  ;;  %v185_v56 = vsel %vm84_vm0, %v167_v52, 0.0  ;;  %v191_v59 = vsel %vm84_vm0, %v169_v53, 0.0  ;;  %v12688_v53 = vld [vmem:[%s17408_s3 + $0x8] sm:$0xff]  }
  0xa3   :  { %189 = vadd.xlane.f32.xlu0 %v188_v49  ;;  %186 = vadd.xlane.f32.xlu1 %v185_v56  ;;  %v105_v57 = vpop.xlane.xlu0 %104  ;;  %v108_v58 = vpop.xlane.xlu1 %107 }
  0xa4   :  { %v140_v60 = vmul.f32 0.03125, %v105_v57  ;;  %v141_v61 = vmul.f32 0.03125, %v108_v58  ;;  %v170_v62 = vmul.f32 %v13495_v54, %v13495_v54  ;;  %v171_v63 = vmul.f32 %v13497_v55, %v13497_v55 }
  0xa6   :  { %v13506_v0 = vsub.f32 %v13410_v12, %v140_v60  ;;  %v13509_v1 = vsub.f32 %v13415_v13, %v141_v61  ;;  %v194_v2 = vsel %vm84_vm0, %v170_v62, 0.0  ;;  %v197_v5 = vsel %vm84_vm0, %v171_v63, 0.0 }
  0xa7   :  { %192 = vadd.xlane.f32.xlu1 %v191_v59  ;;  %195 = vadd.xlane.f32.xlu0 %v194_v2  ;;  %v111_v3 = vpop.xlane.xlu0 %110  ;;  %v114_v4 = vpop.xlane.xlu1 %113 }
  0xa8   :  { %v142_v6 = vmul.f32 0.03125, %v111_v3  ;;  %v143_v7 = vmul.f32 0.03125, %v114_v4  ;;  %v172_v8 = vmul.f32 %v13506_v0, %v13506_v0  ;;  %v173_v9 = vmul.f32 %v13509_v1, %v13509_v1 }
  0xaa   :  { %v13518_v10 = vsub.f32 %v13424_v16, %v142_v6  ;;  %v13521_v11 = vsub.f32 %v13429_v17, %v143_v7  ;;  %v200_v12 = vsel %vm84_vm0, %v172_v8, 0.0  ;;  %v203_v15 = vsel %vm84_vm0, %v173_v9, 0.0 }
  0xab   :  { %198 = vadd.xlane.f32.xlu1 %v197_v5  ;;  %201 = vadd.xlane.f32.xlu0 %v200_v12  ;;  %v117_v13 = vpop.xlane.xlu0 %116  ;;  %v120_v14 = vpop.xlane.xlu1 %119 }
  0xac   :  { %v144_v18 = vmul.f32 0.03125, %v117_v13  ;;  %v145_v19 = vmul.f32 0.03125, %v120_v14  ;;  %v174_v22 = vmul.f32 %v13518_v10, %v13518_v10  ;;  %v175_v16 = vmul.f32 %v13521_v11, %v13521_v11 }
  0xae   :  { %v13530_v23 = vsub.f32 %v13438_v20, %v144_v18  ;;  %v13533_v17 = vsub.f32 %v13443_v21, %v145_v19  ;;  %v206_v26 = vsel %vm84_vm0, %v174_v22, 0.0  ;;  %v209_v31 = vsel %vm84_vm0, %v175_v16, 0.0 }
  0xaf   :  { %204 = vadd.xlane.f32.xlu1 %v203_v15  ;;  %207 = vadd.xlane.f32.xlu0 %v206_v26  ;;  %v123_v27 = vpop.xlane.xlu0 %122  ;;  %v126_v30 = vpop.xlane.xlu1 %125 }
  0xb0   :  { %v146_v32 = vmul.f32 0.03125, %v123_v27  ;;  %v147_v33 = vmul.f32 0.03125, %v126_v30  ;;  %v176_v34 = vmul.f32 %v13530_v23, %v13530_v23  ;;  %v177_v20 = vmul.f32 %v13533_v17, %v13533_v17 }
  0xb2   :  { %v13542_v35 = vsub.f32 %v13452_v24, %v146_v32  ;;  %v13545_v21 = vsub.f32 %v13457_v25, %v147_v33  ;;  %v212_v38 = vsel %vm84_vm0, %v176_v34, 0.0  ;;  %v215_v41 = vsel %vm84_vm0, %v177_v20, 0.0 }
  0xb3   :  { %210 = vadd.xlane.f32.xlu1 %v209_v31  ;;  %213 = vadd.xlane.f32.xlu0 %v212_v38  ;;  %v129_v39 = vpop.xlane.xlu0 %128  ;;  %v132_v40 = vpop.xlane.xlu1 %131  ;;  %v13577_v31 = vld [vmem:[%s17409_s29] ss:$0 sm:$0xff] }
  0xb4   :  { %v148_v42 = vmul.f32 0.03125, %v129_v39  ;;  %v149_v43 = vmul.f32 0.03125, %v132_v40  ;;  %v178_v46 = vmul.f32 %v13542_v35, %v13542_v35  ;;  %v179_v24 = vmul.f32 %v13545_v21, %v13545_v21 }
  0xb6   :  { %v13554_v47 = vsub.f32 %v13466_v28, %v148_v42  ;;  %v13557_v25 = vsub.f32 %v13471_v29, %v149_v43  ;;  %v218_v48 = vsel %vm84_vm0, %v178_v46, 0.0  ;;  %v221_v49 = vsel %vm84_vm0, %v179_v24, 0.0  ;;  %v12687_v29 = vld [vmem:[%s17408_s3] sm:$0xff]  }
  0xb7   :  { %216 = vadd.xlane.f32.xlu1 %v215_v41  ;;  %219 = vadd.xlane.f32.xlu0 %v218_v48  ;;  %v13584_v43 = vld [vmem:[%s17410_s21] ss:$0 sm:$0xff] }
  0xb8   :  { %v180_v50 = vmul.f32 %v13554_v47, %v13554_v47  ;;  %v181_v51 = vmul.f32 %v13557_v25, %v13557_v25  ;;  %11604 = vmatprep.subr.bf16.mxu0 %v12687_v29  ;;  %12612 = vmatprep.subr.bf16.mxu1 %v12687_v29 }
  0xb9   :  { %11605 = vmatpush3.bf16.msra.mxu0 %v12687_v29  ;;  %12614 = vmatpush3.bf16.msra.mxu1 %v12687_v29 }
  0xba   :  { %v224_v52 = vsel %vm84_vm0, %v180_v50, 0.0  ;;  %v227_v28 = vsel %vm84_vm0, %v181_v51, 0.0  ;;  %11606 = vmatprep.subr.bf16.mxu0 %v12688_v53  ;;  %12613 = vmatprep.subr.bf16.mxu1 %v12688_v53 }
  0xbb   :  { %222 = vadd.xlane.f32.xlu1 %v221_v49  ;;  %225 = vadd.xlane.f32.xlu0 %v224_v52 }
  0xbd   :  { %11607 = vmatpush3.bf16.msra.mxu0 %v12688_v53  ;;  %12615 = vmatpush3.bf16.msra.mxu1 %v12688_v53 }
  0xbf   :  { %228 = vadd.xlane.f32.xlu1 %v227_v28 }
 0x12c   :  { %v184_v56 = vpop.xlane.xlu0 %183 }
 0x12d   :  { %v230_v57 = vmul.f32 0.03125, %v184_v56 }
 0x12f   :  { %v246_v58 = vadd.f32 1e-12, %v230_v57 }
 0x130   :  { %v187_v59 = vpop.xlane.xlu1 %186  ;;  %v190_v60 = vpop.xlane.xlu0 %189 }
 0x131   :  { %12711 = vrsqrt.f32 %v246_v58  ;;  %v231_v61 = vmul.f32 0.03125, %v187_v59  ;;  %v232_v62 = vmul.f32 0.03125, %v190_v60 }
 0x133   :  { %v247_v63 = vadd.f32 1e-12, %v231_v61  ;;  %v248_v2 = vadd.f32 1e-12, %v232_v62 }
 0x134   :  { %v193_v3 = vpop.xlane.xlu1 %192  ;;  %v196_v4 = vpop.xlane.xlu0 %195 }
 0x135   :  { %12713 = vrsqrt.f32 %v247_v63  ;;  %v233_v5 = vmul.f32 0.03125, %v193_v3  ;;  %v234_v6 = vmul.f32 0.03125, %v196_v4 }
 0x136   :  { %12715 = vrsqrt.f32 %v248_v2 }
 0x137   :  { %v249_v7 = vadd.f32 1e-12, %v233_v5  ;;  %v250_v8 = vadd.f32 1e-12, %v234_v6 }
 0x138   :  { %v199_v9 = vpop.xlane.xlu1 %198  ;;  %v202_v12 = vpop.xlane.xlu0 %201 }
 0x139   :  { %12717 = vrsqrt.f32 %v249_v7  ;;  %v235_v13 = vmul.f32 0.03125, %v199_v9  ;;  %v236_v14 = vmul.f32 0.03125, %v202_v12 }
 0x13a   :  { %12719 = vrsqrt.f32 %v250_v8 }
 0x13b   :  { %v12712_v15 = vpop.eup %12711  ;;  %v251_v18 = vadd.f32 1e-12, %v235_v13  ;;  %v252_v19 = vadd.f32 1e-12, %v236_v14 }
 0x13c   :  { %v205_v22 = vpop.xlane.xlu1 %204  ;;  %v208_v16 = vpop.xlane.xlu0 %207  ;;  %v278_v26 = vmul.f32 %v12712_v15, %v13477_v36 }
 0x13d   :  { %12721 = vrsqrt.f32 %v251_v18  ;;  %v237_v27 = vmul.f32 0.03125, %v205_v22  ;;  %v238_v30 = vmul.f32 0.03125, %v208_v16 }
 0x13e   :  { %12723 = vrsqrt.f32 %v252_v19  ;;  %v300_v41 = vmul.f32 %v13577_v31, %v278_v26 }
 0x13f   :  { %v12714_v32 = vpop.eup %12713  ;;  %v253_v33 = vadd.f32 1e-12, %v237_v27  ;;  %v254_v34 = vadd.f32 1e-12, %v238_v30 }
 0x140   :  { %v12716_v20 = vpop.eup %12715  ;;  %v211_v38 = vpop.xlane.xlu1 %210  ;;  %v279_v40 = vmul.f32 %v12714_v32, %v13485_v44  ;;  %v13589_v28 = vadd.f32 %v13584_v43, %v300_v41 }
 0x141   :  { %v214_v39 = vpop.xlane.xlu0 %213  ;;  %12725 = vrsqrt.f32 %v253_v33  ;;  %v239_v36 = vmul.f32 0.03125, %v211_v38  ;;  %v280_v46 = vmul.f32 %v12716_v20, %v13479_v37 }
 0x142   :  { %v240_v42 = vmul.f32 0.03125, %v214_v39  ;;  %12727 = vrsqrt.f32 %v254_v34  ;;  %v301_v24 = vmul.f32 %v13577_v31, %v279_v40 }
 0x143   :  { %v12718_v48 = vpop.eup %12717  ;;  %v255_v49 = vadd.f32 1e-12, %v239_v36  ;;  %v302_v56 = vmul.f32 %v13577_v31, %v280_v46 }
 0x144   :  { %v256_v50 = vadd.f32 1e-12, %v240_v42  ;;  %v12720_v51 = vpop.eup %12719  ;;  %v217_v44 = vpop.xlane.xlu1 %216  ;;  %v13592_v29 = vadd.f32 %v13584_v43, %v301_v24  ;;  %v281_v53 = vmul.f32 %v12718_v48, %v13487_v45 }
 0x145   :  { %v220_v52 = vpop.xlane.xlu0 %219  ;;  %12729 = vrsqrt.f32 %v255_v49  ;;  %v241_v37 = vmul.f32 0.03125, %v217_v44  ;;  %v282_v60 = vmul.f32 %v12720_v51, %v13495_v54  ;;  %v13602_v4 = vadd.f32 %v13584_v43, %v302_v56 }
 0x146   :  { %v242_v57 = vmul.f32 0.03125, %v220_v52  ;;  %12731 = vrsqrt.f32 %v256_v50  ;;  %v354_v58 = vpack.c.bf16 %v13592_v29, %v13589_v28  ;;  %v303_v59 = vmul.f32 %v13577_v31, %v281_v53 }
 0x147   :  { %v12722_v61 = vpop.eup %12721  ;;  %v257_v62 = vadd.f32 1e-12, %v241_v37  ;;  %v304_v7 = vmul.f32 %v13577_v31, %v282_v60 }
 0x148   :  { %v258_v63 = vadd.f32 1e-12, %v242_v57  ;;  %v12724_v2 = vpop.eup %12723  ;;  %v223_v3 = vpop.xlane.xlu1 %222  ;;  %11608 = vmatprep.mubr.msk.bf16.mxu0 %vm84_vm0, %v354_v58  ;;  %v13605_v5 = vadd.f32 %v13584_v43, %v303_v59  ;;  %v283_v6 = vmul.f32 %v12722_v61, %v13497_v55 }
 0x149   :  { %v226_v45 = vpop.xlane.xlu0 %225  ;;  %12733 = vrsqrt.f32 %v257_v62  ;;  %v243_v54 = vmul.f32 0.03125, %v223_v3  ;;  %v284_v9 = vmul.f32 %v12724_v2, %v13506_v0  ;;  %v13615_v55 = vadd.f32 %v13584_v43, %v304_v7 }
 0x14a   :  { %v244_v8 = vmul.f32 0.03125, %v226_v45  ;;  %12735 = vrsqrt.f32 %v258_v63  ;;  %v355_v12 = vpack.c.bf16 %v13605_v5, %v13602_v4  ;;  %v305_v13 = vmul.f32 %v13577_v31, %v283_v6 }
 0x14b   :  { %v12726_v14 = vpop.eup %12725  ;;  %v259_v15 = vadd.f32 1e-12, %v243_v54  ;;  %v306_v26 = vmul.f32 %v13577_v31, %v284_v9 }
 0x14c   :  { %v260_v18 = vadd.f32 1e-12, %v244_v8  ;;  %v12728_v19 = vpop.eup %12727  ;;  %v229_v22 = vpop.xlane.xlu1 %228  ;;  %11609 = vmatmul.mubr.msk.bf16.vlgmr.msra.gmra.mrb[0].mxu0 %vm84_vm0, %v355_v12  ;;  %v13618_v16 = vadd.f32 %v13584_v43, %v305_v13  ;;  %v285_v0 = vmul.f32 %v12726_v14, %v13509_v1 }
 0x14d   :  { %12737 = vrsqrt.f32 %v259_v15  ;;  %v245_v27 = vmul.f32 0.03125, %v229_v22  ;;  %v286_v30 = vmul.f32 %v12728_v19, %v13518_v10  ;;  %v13628_v39 = vadd.f32 %v13584_v43, %v306_v26 }
 0x14e   :  { %12739 = vrsqrt.f32 %v260_v18  ;;  %v356_v32 = vpack.c.bf16 %v13618_v16, %v13615_v55  ;;  %v307_v33 = vmul.f32 %v13577_v31, %v285_v0 }
 0x14f   :  { %v12730_v34 = vpop.eup %12729  ;;  %v261_v20 = vadd.f32 1e-12, %v245_v27  ;;  %v308_v10 = vmul.f32 %v13577_v31, %v286_v30 }
 0x150   :  { %v12732_v38 = vpop.eup %12731  ;;  %11612 = vmatprep.mubr.msk.bf16.mxu0 %vm84_vm0, %v356_v32  ;;  %v13631_v1 = vadd.f32 %v13584_v43, %v307_v33  ;;  %v287_v40 = vmul.f32 %v12730_v34, %v13521_v11 }
 0x151   :  { %12741 = vrsqrt.f32 %v261_v20  ;;  %v288_v41 = vmul.f32 %v12732_v38, %v13530_v23  ;;  %v13641_v48 = vadd.f32 %v13584_v43, %v308_v10 }
 0x152   :  { %v357_v36 = vpack.c.bf16 %v13631_v1, %v13628_v39  ;;  %v309_v42 = vmul.f32 %v13577_v31, %v287_v40 }
 0x153   :  { %v12734_v46 = vpop.eup %12733  ;;  %v310_v50 = vmul.f32 %v13577_v31, %v288_v41 }
 0x154   :  { %v12736_v24 = vpop.eup %12735  ;;  %11613 = vmatmul.mubr.msk.bf16.gmra.mrb[4].mxu0 %vm84_vm0, %v357_v36  ;;  %v13644_v49 = vadd.f32 %v13584_v43, %v309_v42  ;;  %v289_v11 = vmul.f32 %v12734_v46, %v13533_v17 }
 0x155   :  { %v290_v23 = vmul.f32 %v12736_v24, %v13542_v35  ;;  %v13654_v56 = vadd.f32 %v13584_v43, %v310_v50 }
 0x156   :  { %v358_v51 = vpack.c.bf16 %v13644_v49, %v13641_v48  ;;  %v311_v44 = vmul.f32 %v13577_v31, %v289_v11 }
 0x157   :  { %v12738_v52 = vpop.eup %12737  ;;  %v312_v57 = vmul.f32 %v13577_v31, %v290_v23 }
 0x158   :  { %v12740_v53 = vpop.eup %12739  ;;  %11616 = vmatprep.mubr.msk.bf16.mxu1 %vm84_vm0, %v358_v51  ;;  %v13657_v37 = vadd.f32 %v13584_v43, %v311_v44  ;;  %v291_v17 = vmul.f32 %v12738_v52, %v13545_v21 }
 0x159   :  { %v292_v35 = vmul.f32 %v12740_v53, %v13554_v47  ;;  %v13667_v61 = vadd.f32 %v13584_v43, %v312_v57 }
 0x15a   :  { %v359_v58 = vpack.c.bf16 %v13657_v37, %v13654_v56  ;;  %v313_v59 = vmul.f32 %v13577_v31, %v291_v17 }
 0x15b   :  { %v12742_v60 = vpop.eup %12741  ;;  %v314_v63 = vmul.f32 %v13577_v31, %v292_v35 }
 0x15c   :  { %11617 = vmatmul.mubr.msk.bf16.vlgmr.msra.gmra.mrb[0].mxu1 %vm84_vm0, %v359_v58  ;;  %v13670_v62 = vadd.f32 %v13584_v43, %v313_v59  ;;  %v293_v21 = vmul.f32 %v12742_v60, %v13557_v25  ;;  %v17393_v25 = vmov 0.0  }
 0x15d   :  { %v13679_v3 = vadd.f32 %v13584_v43, %v314_v63  ;;  %11624 = vmatprep.subr.bf16.mxu1 %v17393_v25  ;;  %11648 = vmatprep.subr.bf16.mxu0 %v17393_v25 }
 0x15e   :  { %17411 = vst [vmem:[#allocation2_spill] sm:$0xff] %v13670_v62  ;;  %v360_v47 = vpack.c.bf16 %v13670_v62, %v13667_v61  ;;  %v315_v2 = vmul.f32 %v13577_v31, %v293_v21  ;;  %v13692_v31 = vld [vmem:[%s17413_s24] ss:$0 sm:$0xff]  ;;  %11650 = vmatprep.mubr.msk.bf16.mxu0 %vm13272_vm1, %v17393_v25 }
 0x160   :  { %11620 = vmatprep.mubr.msk.bf16.mxu1 %vm84_vm0, %v360_v47  ;;  %v13682_v45 = vadd.f32 %v13584_v43, %v315_v2 }
 0x162   :  { %17412 = vst [vmem:[#allocation3_spill] sm:$0xff] %v13682_v45  ;;  %v361_v6 = vpack.c.bf16 %v13682_v45, %v13679_v3 }
 0x164   :  { %11621 = vmatmul.mubr.msk.bf16.gmra.mrb[4].mxu1 %vm84_vm0, %v361_v6 }
 0x165   :  { %11626 = vmatprep.mubr.msk.bf16.mxu1 %vm13272_vm1, %v17393_v25 }
 0x21f   :  { %v11610_v7 = vpop.f32.mrb[0].mxu0 }
 0x220   :  { %v443_v43 = vpop.f32.mrb[1].mxu0  ;;  %v452_v14 = vadd.f32 %v11610_v7, %v13692_v31 }
 0x221   :  { %v444_v54 = vadd.f32 %v13692_v31, %v443_v43  ;;  %v11611_v8 = vpop.f32.mrb[2].mxu0 }
 0x222   :  { %v446_v9 = vpop.f32.mrb[3].mxu0  ;;  %v13709_v22 = vpack.c.bf16 %v452_v14, %v452_v14  ;;  %v455_v0 = vadd.f32 %v11611_v8, %v13692_v31 }
 0x223   :  { %v13699_v12 = vpack.c.bf16 %v444_v54, %v444_v54  ;;  %v447_v13 = vadd.f32 %v13692_v31, %v446_v9 }
 0x224   :  { %v13718_v34 = vpack.c.bf16 %v455_v0, %v455_v0 }
 0x225   :  { %v13703_v15 = vpack.c.bf16 %v447_v13, %v447_v13  ;;  %524 = vrot.lane.b32.xlu0 %v13699_v12, %s13273_s2 }
 0x227   :  { %574 = vrot.lane.b32.xlu1 %v13703_v15, %s13273_s2  ;;  %v11614_v18 = vpop.f32.mrb[4].mxu0 }
 0x228   :  { %v459_v19 = vpop.f32.mrb[5].mxu0  ;;  %v468_v32 = vadd.f32 %v11614_v18, %v13692_v31 }
 0x229   :  { %v460_v26 = vadd.f32 %v13692_v31, %v459_v19  ;;  %v11615_v27 = vpop.f32.mrb[6].mxu0 }
 0x22a   :  { %v462_v30 = vpop.f32.mrb[7].mxu0  ;;  %v13723_v38 = vpack.c.bf16 %v468_v32, %v468_v32  ;;  %v471_v41 = vadd.f32 %v11615_v27, %v13692_v31 }
 0x22b   :  { %v13714_v33 = vpack.c.bf16 %v460_v26, %v460_v26  ;;  %623 = vrot.lane.b32.xlu1 %v13709_v22, %s13273_s2  ;;  %v463_v20 = vadd.f32 %v13692_v31, %v462_v30 }
 0x22c   :  { %v13738_v23 = vpack.c.bf16 %v471_v41, %v471_v41 }
 0x22d   :  { %721 = vrot.lane.b32.xlu0 %v13714_v33, %s13273_s2  ;;  %v13728_v36 = vpack.c.bf16 %v463_v20, %v463_v20 }
 0x22f   :  { %672 = vrot.lane.b32.xlu1 %v13718_v34, %s13273_s2  ;;  %v11618_v40 = vpop.f32.mrb[0].mxu1 }
 0x230   :  { %v475_v10 = vpop.f32.mrb[1].mxu1  ;;  %v484_v11 = vadd.f32 %v11618_v40, %v13692_v31 }
 0x231   :  { %v476_v42 = vadd.f32 %v13692_v31, %v475_v10  ;;  %819 = vrot.lane.b32.xlu0 %v13723_v38, %s13273_s2  ;;  %v11619_v46 = vpop.f32.mrb[2].mxu1 }
 0x232   :  { %v478_v24 = vpop.f32.mrb[3].mxu1  ;;  %v13743_v44 = vpack.c.bf16 %v484_v11, %v484_v11  ;;  %v487_v17 = vadd.f32 %v11619_v46, %v13692_v31 }
 0x233   :  { %v13734_v50 = vpack.c.bf16 %v476_v42, %v476_v42  ;;  %770 = vrot.lane.b32.xlu1 %v13728_v36, %s13273_s2  ;;  %v479_v51 = vadd.f32 %v13692_v31, %v478_v24 }
 0x234   :  { %v13758_v63 = vpack.c.bf16 %v487_v17, %v487_v17 }
 0x235   :  { %917 = vrot.lane.b32.xlu0 %v13734_v50, %s13273_s2  ;;  %v13748_v57 = vpack.c.bf16 %v479_v51, %v479_v51 }
 0x237   :  { %868 = vrot.lane.b32.xlu1 %v13738_v23, %s13273_s2  ;;  %v11622_v52 = vpop.f32.mrb[4].mxu1 }
 0x238   :  { %v491_v53 = vpop.f32.mrb[5].mxu1  ;;  %v500_v60 = vadd.f32 %v11622_v52, %v13692_v31 }
 0x239   :  { %v492_v35 = vadd.f32 %v13692_v31, %v491_v53  ;;  %1015 = vrot.lane.b32.xlu0 %v13743_v44, %s13273_s2  ;;  %v11623_v58 = vpop.f32.mrb[6].mxu1 }
 0x23a   :  { %v494_v59 = vpop.f32.mrb[7].mxu1  ;;  %v13763_v2 = vpack.c.bf16 %v500_v60, %v500_v60  ;;  %v503_v6 = vadd.f32 %v11623_v58, %v13692_v31 }
 0x23b   :  { %v13754_v21 = vpack.c.bf16 %v492_v35, %v492_v35  ;;  %966 = vrot.lane.b32.xlu1 %v13748_v57, %s13273_s2  ;;  %v495_v47 = vadd.f32 %v13692_v31, %v494_v59 }
 0x23c   :  { %v13774_v43 = vpack.c.bf16 %v503_v6, %v503_v6 }
 0x23d   :  { %1113 = vrot.lane.b32.xlu0 %v13754_v21, %s13273_s2  ;;  %v13768_v7 = vpack.c.bf16 %v495_v47, %v495_v47 }
 0x23f   :  { %1064 = vrot.lane.b32.xlu1 %v13758_v63, %s13273_s2 }
 0x241   :  { %1211 = vrot.lane.b32.xlu0 %v13763_v2, %s13273_s2 }
 0x243   :  { %1162 = vrot.lane.b32.xlu1 %v13768_v7, %s13273_s2 }
 0x245   :  { %1629 = vrot.lane.b32.xlu0 %v13699_v12, %s13274_s23 }
 0x247   :  { %1260 = vrot.lane.b32.xlu1 %v13774_v43, %s13273_s2 }
 0x249   :  { %1726 = vrot.lane.b32.xlu0 %v13709_v22, %s13274_s23 }
 0x24b   :  { %1678 = vrot.lane.b32.xlu1 %v13703_v15, %s13274_s23 }
 0x24d   :  { %1822 = vrot.lane.b32.xlu0 %v13714_v33, %s13274_s23 }
 0x24f   :  { %1774 = vrot.lane.b32.xlu1 %v13718_v34, %s13274_s23 }
 0x251   :  { %1918 = vrot.lane.b32.xlu0 %v13723_v38, %s13274_s23 }
 0x253   :  { %1966 = vrot.lane.b32.xlu1 %v13738_v23, %s13274_s23 }
 0x257   :  { %1870 = vrot.lane.b32.xlu1 %v13728_v36, %s13274_s23 }
 0x297   :  { %v525_v31 = vpop.permute.xlu0 %524 }
 0x298   :  { %v531_v54 = vsel %vm526_vm2, %v525_v31, 0 }
 0x299   :  { %11625 = vmatpush3.bf16.xpose.msra.mxu1 %v531_v54  ;;  %v575_v8 = vpop.permute.xlu1 %574 }
 0x29a   :  { %11630 = vmatprep.subr.bf16.mxu1 %v17393_v25  ;;  %v580_v13 = vsel %vm526_vm2, %v575_v8, 0 }
 0x29d   :  { %v624_v18 = vpop.permute.xlu1 %623 }
 0x29e   :  { %v629_v0 = vsel %vm526_vm2, %v624_v18, 0  ;;  %v10943_v18 = vld [vmem:[%s17374_s1] ss:$0 sm:$0xff] }
 0x29f   :  { %v722_v9 = vpop.permute.xlu0 %721 }
 0x2a0   :  { %v727_v14 = vsel %vm526_vm2, %v722_v9, 0  ;;  %11627 = vmatmul.mubr.msk.bf16.vlgmr.msra.gmra.mrb[8].mxu1 %vm526_vm2, %v13699_v12 }
 0x2a1   :  { %11631 = vmatpush3.bf16.xpose.msra.mxu1 %v580_v13  ;;  %11649 = vmatpush3.bf16.xpose.msra.mxu0 %v727_v14  ;;  %v673_v27 = vpop.permute.xlu1 %672 }
 0x2a2   :  { %11632 = vmatprep.mubr.msk.bf16.mxu1 %vm13272_vm1, %v17393_v25  ;;  %11636 = vmatprep.subr.bf16.mxu1 %v17393_v25  ;;  %v678_v32 = vsel %vm526_vm2, %v673_v27, 0 }
 0x2a3   :  { %11660 = vmatprep.subr.bf16.mxu0 %v17393_v25  ;;  %v820_v19 = vpop.permute.xlu0 %819 }
 0x2a4   :  { %v825_v26 = vsel %vm526_vm2, %v820_v19, 0 }
 0x2a5   :  { %v771_v40 = vpop.permute.xlu1 %770 }
 0x2a6   :  { %v776_v41 = vsel %vm526_vm2, %v771_v40, 0 }
 0x2a7   :  { %v918_v30 = vpop.permute.xlu0 %917 }
 0x2a8   :  { %11633 = vmatmul.mubr.msk.bf16.vlgmr.msra.gmra.mrb[12].mxu1 %vm526_vm2, %v13703_v15  ;;  %11651 = vmatmul.mubr.msk.bf16.vlgmr.msra.gmra.mrb[8].mxu0 %vm526_vm2, %v13714_v33  ;;  %v923_v20 = vsel %vm526_vm2, %v918_v30, 0 }
 0x2a9   :  { %11637 = vmatpush3.bf16.xpose.msra.mxu1 %v629_v0  ;;  %11661 = vmatpush3.bf16.xpose.msra.mxu0 %v825_v26  ;;  %v869_v46 = vpop.permute.xlu1 %868 }
 0x2aa   :  { %11638 = vmatprep.mubr.msk.bf16.mxu1 %vm13272_vm1, %v17393_v25  ;;  %11662 = vmatprep.mubr.msk.bf16.mxu0 %vm13272_vm1, %v17393_v25  ;;  %v874_v11 = vsel %vm526_vm2, %v869_v46, 0 }
 0x2ab   :  { %11642 = vmatprep.subr.bf16.mxu1 %v17393_v25  ;;  %11672 = vmatprep.subr.bf16.mxu0 %v17393_v25  ;;  %v1016_v10 = vpop.permute.xlu0 %1015 }
 0x2ac   :  { %v1021_v42 = vsel %vm526_vm2, %v1016_v10, 0  ;;  %v10944_v10 = vld [vmem:[%s17374_s1 + $0x1] ss:$0 sm:$0xff] }
 0x2ad   :  { %v967_v52 = vpop.permute.xlu1 %966 }
 0x2ae   :  { %v972_v17 = vsel %vm526_vm2, %v967_v52, 0 }
 0x2af   :  { %v1114_v24 = vpop.permute.xlu0 %1113 }
 0x2b0   :  { %11639 = vmatmul.mubr.msk.bf16.vlgmr.msra.gmra.mrb[16].mxu1 %vm526_vm2, %v13709_v22  ;;  %11663 = vmatmul.mubr.msk.bf16.vlgmr.msra.gmra.mrb[12].mxu0 %vm526_vm2, %v13723_v38  ;;  %v1119_v51 = vsel %vm526_vm2, %v1114_v24, 0 }
 0x2b1   :  { %11643 = vmatpush3.bf16.xpose.msra.mxu1 %v678_v32  ;;  %11673 = vmatpush3.bf16.xpose.msra.mxu0 %v923_v20  ;;  %v1065_v58 = vpop.permute.xlu1 %1064 }
 0x2b2   :  { %11644 = vmatprep.mubr.msk.bf16.mxu1 %vm13272_vm1, %v17393_v25  ;;  %11674 = vmatprep.mubr.msk.bf16.mxu0 %vm13272_vm1, %v17393_v25  ;;  %v1070_v60 = vsel %vm526_vm2, %v1065_v58, 0 }
 0x2b3   :  { %11654 = vmatprep.subr.bf16.mxu1 %v17393_v25  ;;  %11684 = vmatprep.subr.bf16.mxu0 %v17393_v25  ;;  %v1212_v53 = vpop.permute.xlu0 %1211 }
 0x2b4   :  { %v1217_v35 = vsel %vm526_vm2, %v1212_v53, 0 }
 0x2b5   :  { %v1163_v6 = vpop.permute.xlu1 %1162 }
 0x2b6   :  { %v1168_v31 = vsel %vm526_vm2, %v1163_v6, 0 }
 0x2b7   :  { %v1630_v59 = vpop.permute.xlu0 %1629 }
 0x2b8   :  { %11645 = vmatmul.mubr.msk.bf16.vlgmr.msra.gmra.mrb[20].mxu1 %vm526_vm2, %v13718_v34  ;;  %11675 = vmatmul.mubr.msk.bf16.vlgmr.msra.gmra.mrb[16].mxu0 %vm526_vm2, %v13734_v50  ;;  %v1636_v47 = vsel %vm1634_vm3, %v1630_v59, 0 }
 0x2b9   :  { %11655 = vmatpush3.bf16.xpose.msra.mxu1 %v776_v41  ;;  %11685 = vmatpush3.bf16.xpose.msra.mxu0 %v1021_v42  ;;  %v1261_v54 = vpop.permute.xlu1 %1260  ;;  %v10947_v41 = vld [vmem:[%s17374_s1 + $0x4] ss:$0 sm:$0xff] }
 0x2ba   :  { %11656 = vmatprep.mubr.msk.bf16.mxu1 %vm13272_vm1, %v17393_v25  ;;  %11686 = vmatprep.mubr.msk.bf16.mxu0 %vm13272_vm1, %v17393_v25  ;;  %v1266_v8 = vsel %vm526_vm2, %v1261_v54, 0 }
 0x2bb   :  { %11666 = vmatprep.subr.bf16.mxu1 %v17393_v25  ;;  %11696 = vmatprep.subr.bf16.mxu0 %v17393_v25 }
 0x2bd   :  { %v1679_v9 = vpop.permute.xlu1 %1678 }
 0x2be   :  { %v1684_v13 = vsel %vm1634_vm3, %v1679_v9, 0 }
 0x2c0   :  { %11657 = vmatmul.mubr.msk.bf16.vlgmr.msra.gmra.mrb[24].mxu1 %vm526_vm2, %v13728_v36  ;;  %11687 = vmatmul.mubr.msk.bf16.vlgmr.msra.gmra.mrb[20].mxu0 %vm526_vm2, %v13743_v44 }
 0x2c1   :  { %11667 = vmatpush3.bf16.xpose.msra.mxu1 %v874_v11  ;;  %11697 = vmatpush3.bf16.xpose.msra.mxu0 %v1119_v51 }
 0x2c2   :  { %11668 = vmatprep.mubr.msk.bf16.mxu1 %vm13272_vm1, %v17393_v25  ;;  %11698 = vmatprep.mubr.msk.bf16.mxu0 %vm13272_vm1, %v17393_v25 }
 0x2c3   :  { %11678 = vmatprep.subr.bf16.mxu1 %v17393_v25  ;;  %11708 = vmatprep.subr.bf16.mxu0 %v17393_v25 }
 0x2c8   :  { %11669 = vmatmul.mubr.msk.bf16.vlgmr.msra.gmra.mrb[28].mxu1 %vm526_vm2, %v13738_v23  ;;  %11699 = vmatmul.mubr.msk.bf16.vlgmr.msra.gmra.mrb[24].mxu0 %vm526_vm2, %v13754_v21 }
 0x2c9   :  { %11679 = vmatpush3.bf16.xpose.msra.mxu1 %v972_v17  ;;  %11709 = vmatpush3.bf16.xpose.msra.mxu0 %v1217_v35 }
 0x2ca   :  { %11680 = vmatprep.mubr.msk.bf16.mxu1 %vm13272_vm1, %v17393_v25  ;;  %11710 = vmatprep.mubr.msk.bf16.mxu0 %vm13272_vm1, %v17393_v25 }
 0x2cb   :  { %11690 = vmatprep.subr.bf16.mxu1 %v17393_v25  ;;  %11720 = vmatprep.subr.bf16.mxu0 %v17393_v25 }
 0x2d0   :  { %11681 = vmatmul.mubr.msk.bf16.vlgmr.msra.gmra.mrb[32].mxu1 %vm526_vm2, %v13748_v57  ;;  %11711 = vmatmul.mubr.msk.bf16.vlgmr.msra.gmra.mrb[28].mxu0 %vm526_vm2, %v13763_v2 }
 0x2d1   :  { %11691 = vmatpush3.bf16.xpose.msra.mxu1 %v1070_v60  ;;  %11721 = vmatpush3.bf16.msra.mxu0 %v1636_v47 }
 0x2d2   :  { %11692 = vmatprep.mubr.msk.bf16.mxu1 %vm13272_vm1, %v17393_v25  ;;  %11702 = vmatprep.subr.bf16.mxu1 %v17393_v25 }
 0x2d3   :  { %11722 = vmatprep.mubr.msk.bf16.mxu0 %vm13272_vm1, %v17393_v25  ;;  %11732 = vmatprep.subr.bf16.mxu0 %v17393_v25 }
 0x2d8   :  { %11693 = vmatmul.mubr.msk.bf16.vlgmr.msra.gmra.mrb[36].mxu1 %vm526_vm2, %v13758_v63 }
 0x2d9   :  { %11703 = vmatpush3.bf16.xpose.msra.mxu1 %v1168_v31  ;;  %11704 = vmatprep.mubr.msk.bf16.mxu1 %vm13272_vm1, %v17393_v25  ;;  %v10945_v31 = vld [vmem:[%s17374_s1 + $0x2] ss:$0 sm:$0xff] }
 0x2da   :  { %11714 = vmatprep.subr.bf16.mxu1 %v17393_v25 }
 0x2e0   :  { %11705 = vmatmul.mubr.msk.bf16.vlgmr.msra.gmra.mrb[40].mxu1 %vm526_vm2, %v13768_v7 }
 0x2e1   :  { %11715 = vmatpush3.bf16.xpose.msra.mxu1 %v1266_v8  ;;  %11716 = vmatprep.mubr.msk.bf16.mxu1 %vm13272_vm1, %v17393_v25 }
 0x2e2   :  { %11726 = vmatprep.subr.bf16.mxu1 %v17393_v25 }
 0x2e8   :  { %11717 = vmatmul.mubr.msk.bf16.vlgmr.msra.gmra.mrb[44].mxu1 %vm526_vm2, %v13774_v43 }
 0x2e9   :  { %11727 = vmatpush3.bf16.msra.mxu1 %v1684_v13  ;;  %11728 = vmatprep.mubr.msk.bf16.mxu1 %vm13272_vm1, %v17393_v25 }
 0x2ea   :  { %11738 = vmatprep.subr.bf16.mxu1 %v17393_v25 }
 0x373   :  { %v567_v14 = vpop.f32.mrb[8].mxu1 }
 0x374   :  { %v1308_v19 = vmul.f32 0.25, %v567_v14  ;;  %v11628_v0 = vpop.f32.mrb[9].mxu1 }
 0x375   :  { %v570_v26 = vpop.f32.mrb[10].mxu1 }
 0x376   :  { %v11629_v27 = vpop.f32.mrb[11].mxu1  ;;  %v13897_v30 = vadd.f32 %v10943_v18, %v1308_v19  ;;  %v10949_v19 = vld [vmem:[%s17374_s1 + $0x6] ss:$0 sm:$0xff] }
 0x378   :  { %v1437_v32 = vsel %vm1436_vm4, %v13897_v30, -inf }
 0x379   :  { %1438 = vmax.xlane.f32.xlu0 %v1437_v32 }
 0x37b   :  { %v616_v20 = vpop.f32.mrb[12].mxu1  ;;  %v763_v40 = vpop.f32.mrb[8].mxu0 }
 0x37c   :  { %v1309_v42 = vmul.f32 0.25, %v616_v20  ;;  %v1312_v46 = vmul.f32 0.25, %v763_v40  ;;  %v11634_v24 = vpop.f32.mrb[13].mxu1  ;;  %v11652_v11 = vpop.f32.mrb[9].mxu0 }
 0x37d   :  { %v619_v51 = vpop.f32.mrb[14].mxu1  ;;  %v766_v52 = vpop.f32.mrb[10].mxu0 }
 0x37e   :  { %v11635_v53 = vpop.f32.mrb[15].mxu1  ;;  %v11653_v17 = vpop.f32.mrb[11].mxu0  ;;  %v13907_v35 = vadd.f32 %v10944_v10, %v1309_v42  ;;  %v13909_v58 = vadd.f32 %v10947_v41, %v1312_v46  ;;  %v10946_v41 = vld [vmem:[%s17374_s1 + $0x3] ss:$0 sm:$0xff] }
 0x37f   :  { %v10951_v17 = vld [vmem:[%s17374_s1 + $0x8] ss:$0 sm:$0xff] }
 0x380   :  { %v1440_v59 = vsel %vm1436_vm4, %v13907_v35, -inf  ;;  %v1449_v60 = vsel %vm1436_vm4, %v13909_v58, -inf }
 0x381   :  { %1441 = vmax.xlane.f32.xlu1 %v1440_v59  ;;  %1450 = vmax.xlane.f32.xlu0 %v1449_v60 }
 0x383   :  { %v665_v47 = vpop.f32.mrb[16].mxu1  ;;  %v861_v6 = vpop.f32.mrb[12].mxu0 }
 0x384   :  { %v1310_v54 = vmul.f32 0.25, %v665_v47  ;;  %v1314_v8 = vmul.f32 0.25, %v861_v6  ;;  %v11640_v9 = vpop.f32.mrb[17].mxu1  ;;  %v11664_v13 = vpop.f32.mrb[13].mxu0 }
 0x385   :  { %v668_v14 = vpop.f32.mrb[18].mxu1  ;;  %v864_v18 = vpop.f32.mrb[14].mxu0  ;;  %v10948_v9 = vld [vmem:[%s17374_s1 + $0x5] ss:$0 sm:$0xff]  ;;  %v10953_v13 = vld [vmem:[%s17374_s1 + $0xa] ss:$0 sm:$0xff] }
 0x386   :  { %v11641_v0 = vpop.f32.mrb[19].mxu1  ;;  %v11665_v26 = vpop.f32.mrb[15].mxu0  ;;  %v13921_v27 = vadd.f32 %v10945_v31, %v1310_v54  ;;  %v13925_v20 = vadd.f32 %v10949_v19, %v1314_v8 }
 0x388   :  { %v1443_v32 = vsel %vm1436_vm4, %v13921_v27, -inf  ;;  %v1455_v51 = vsel %vm1436_vm4, %v13925_v20, -inf }
 0x389   :  { %1444 = vmax.xlane.f32.xlu0 %v1443_v32 }
 0x38b   :  { %v714_v40 = vpop.f32.mrb[20].mxu1  ;;  %v959_v10 = vpop.f32.mrb[16].mxu0 }
 0x38c   :  { %v1311_v42 = vmul.f32 0.25, %v714_v40  ;;  %v1316_v46 = vmul.f32 0.25, %v959_v10  ;;  %v11646_v24 = vpop.f32.mrb[21].mxu1  ;;  %v11676_v11 = vpop.f32.mrb[17].mxu0 }
 0x38d   :  { %v717_v52 = vpop.f32.mrb[22].mxu1  ;;  %1456 = vmax.xlane.f32.xlu0 %v1455_v51  ;;  %v962_v53 = vpop.f32.mrb[18].mxu0 }
 0x38e   :  { %v11647_v59 = vpop.f32.mrb[23].mxu1  ;;  %v11677_v60 = vpop.f32.mrb[19].mxu0  ;;  %v13935_v47 = vadd.f32 %v10946_v41, %v1311_v42  ;;  %v13939_v31 = vadd.f32 %v10951_v17, %v1316_v46  ;;  %v10950_v53 = vld [vmem:[%s17374_s1 + $0x7] ss:$0 sm:$0xff]  ;;  %v10955_v17 = vld [vmem:[%s17374_s1 + $0xc] ss:$0 sm:$0xff] }
 0x390   :  { %v1446_v6 = vsel %vm1436_vm4, %v13935_v47, -inf  ;;  %v1461_v26 = vsel %vm1436_vm4, %v13939_v31, -inf }
 0x391   :  { %1447 = vmax.xlane.f32.xlu0 %v1446_v6 }
 0x393   :  { %v812_v54 = vpop.f32.mrb[24].mxu1  ;;  %v1057_v8 = vpop.f32.mrb[20].mxu0 }
 0x394   :  { %v1313_v14 = vmul.f32 0.25, %v812_v54  ;;  %v1318_v18 = vmul.f32 0.25, %v1057_v8  ;;  %v11658_v19 = vpop.f32.mrb[25].mxu1  ;;  %v11688_v0 = vpop.f32.mrb[21].mxu0 }
 0x395   :  { %v815_v32 = vpop.f32.mrb[26].mxu1  ;;  %1462 = vmax.xlane.f32.xlu0 %v1461_v26  ;;  %v1060_v40 = vpop.f32.mrb[22].mxu0 }
 0x396   :  { %v11659_v10 = vpop.f32.mrb[27].mxu1  ;;  %v11689_v41 = vpop.f32.mrb[23].mxu0  ;;  %v13949_v42 = vadd.f32 %v10948_v9, %v1313_v14  ;;  %v13951_v46 = vadd.f32 %v10953_v13, %v1318_v18 }
 0x397   :  { %v10952_v10 = vld [vmem:[%s17374_s1 + $0x9] ss:$0 sm:$0xff]  ;;  %v10957_v41 = vld [vmem:[%s17374_s1 + $0xe] ss:$0 sm:$0xff] }
 0x398   :  { %v1452_v24 = vsel %vm1436_vm4, %v13949_v42, -inf  ;;  %v1467_v11 = vsel %vm1436_vm4, %v13951_v46, -inf }
 0x399   :  { %1453 = vmax.xlane.f32.xlu1 %v1452_v24  ;;  %1468 = vmax.xlane.f32.xlu0 %v1467_v11 }
 0x39b   :  { %v910_v51 = vpop.f32.mrb[28].mxu1  ;;  %v1155_v52 = vpop.f32.mrb[24].mxu0 }
 0x39c   :  { %v1315_v59 = vmul.f32 0.25, %v910_v51  ;;  %v1320_v60 = vmul.f32 0.25, %v1155_v52  ;;  %v11670_v6 = vpop.f32.mrb[29].mxu1  ;;  %v11700_v54 = vpop.f32.mrb[25].mxu0 }
 0x39d   :  { %v913_v8 = vpop.f32.mrb[30].mxu1  ;;  %v1158_v9 = vpop.f32.mrb[26].mxu0 }
 0x39e   :  { %v11671_v13 = vpop.f32.mrb[31].mxu1  ;;  %v11701_v14 = vpop.f32.mrb[27].mxu0  ;;  %v13963_v18 = vadd.f32 %v10950_v53, %v1315_v59  ;;  %v13965_v19 = vadd.f32 %v10955_v17, %v1320_v60 }
 0x3a0   :  { %v1458_v0 = vsel %vm1436_vm4, %v13963_v18, -inf  ;;  %v1473_v26 = vsel %vm1436_vm4, %v13965_v19, -inf }
 0x3a1   :  { %1459 = vmax.xlane.f32.xlu1 %v1458_v0  ;;  %1474 = vmax.xlane.f32.xlu0 %v1473_v26 }
 0x3a3   :  { %v1008_v32 = vpop.f32.mrb[32].mxu1  ;;  %v1253_v40 = vpop.f32.mrb[28].mxu0 }
 0x3a4   :  { %v1317_v24 = vmul.f32 0.25, %v1008_v32  ;;  %v1322_v11 = vmul.f32 0.25, %v1253_v40  ;;  %v11682_v51 = vpop.f32.mrb[33].mxu1  ;;  %v11712_v52 = vpop.f32.mrb[29].mxu0 }
 0x3a5   :  { %v1011_v53 = vpop.f32.mrb[34].mxu1  ;;  %v1256_v17 = vpop.f32.mrb[30].mxu0 }
 0x3a6   :  { %v11683_v59 = vpop.f32.mrb[35].mxu1  ;;  %v11713_v60 = vpop.f32.mrb[31].mxu0  ;;  %v13977_v6 = vadd.f32 %v10952_v10, %v1317_v24  ;;  %v13979_v54 = vadd.f32 %v10957_v41, %v1322_v11  ;;  %v10954_v17 = vld [vmem:[%s17374_s1 + $0xb] ss:$0 sm:$0xff] }
 0x3a8   :  { %v1464_v8 = vsel %vm1436_vm4, %v13977_v6, -inf  ;;  %v1479_v9 = vsel %vm1436_vm4, %v13979_v54, -inf }
 0x3a9   :  { %1465 = vmax.xlane.f32.xlu1 %v1464_v8  ;;  %1480 = vmax.xlane.f32.xlu0 %v1479_v9  ;;  %v10956_v8 = vld [vmem:[%s17374_s1 + $0xd] ss:$0 sm:$0xff] }
 0x3ab   :  { %v1106_v13 = vpop.f32.mrb[36].mxu1 }
 0x3ac   :  { %v11694_v14 = vpop.f32.mrb[37].mxu1  ;;  %v1319_v53 = vmul.f32 0.25, %v1106_v13  ;;  %v10958_v13 = vld [vmem:[%s17374_s1 + $0xf] ss:$0 sm:$0xff] }
 0x3ad   :  { %v1109_v0 = vpop.f32.mrb[38].mxu1 }
 0x3ae   :  { %v11695_v26 = vpop.f32.mrb[39].mxu1  ;;  %v13994_v60 = vadd.f32 %v10954_v17, %v1319_v53 }
 0x3b0   :  { %v1470_v14 = vsel %vm1436_vm4, %v13994_v60, -inf }
 0x3b3   :  { %v1204_v32 = vpop.f32.mrb[40].mxu1 }
 0x3b4   :  { %v11706_v40 = vpop.f32.mrb[41].mxu1  ;;  %v1321_v59 = vmul.f32 0.25, %v1204_v32 }
 0x3b5   :  { %v1207_v51 = vpop.f32.mrb[42].mxu1 }
 0x3b6   :  { %v11707_v52 = vpop.f32.mrb[43].mxu1  ;;  %v14001_v0 = vadd.f32 %v10956_v8, %v1321_v59  ;;  %v14012_v51 = vpop.permute.xlu0 %1726 }
 0x3b8   :  { %v1476_v26 = vsel %vm1436_vm4, %v14001_v0, -inf }
 0x3ba   :  { %2062 = vrot.lane.b32.xlu1 %v13748_v57, %s13274_s23  ;;  %v14014_v52 = vpop.permute.xlu0 %1822 }
 0x3bb   :  { %v1302_v10 = vpop.f32.mrb[44].mxu1 }
 0x3bc   :  { %v11718_v41 = vpop.f32.mrb[45].mxu1  ;;  %v1323_v9 = vmul.f32 0.25, %v1302_v10  ;;  %v14016_v10 = vpop.permute.xlu1 %1774 }
 0x3bd   :  { %v1305_v24 = vpop.f32.mrb[46].mxu1 }
 0x3be   :  { %2110 = vrot.lane.b32.xlu1 %v13743_v44, %s13274_s23  ;;  %v11719_v11 = vpop.f32.mrb[47].mxu1  ;;  %v14008_v32 = vadd.f32 %v10958_v13, %v1323_v9  ;;  %v14018_v41 = vpop.permute.xlu0 %1918 }
 0x3bf   :  { %2014 = vrot.lane.b32.xlu0 %v13734_v50, %s13274_s23 }
 0x3c0   :  { %v1482_v40 = vsel %vm1436_vm4, %v14008_v32, -inf  ;;  %v14020_v24 = vpop.permute.xlu1 %1966 }
 0x3c4   :  { %v14023_v59 = vpop.permute.xlu1 %1870 }
 0x3e2   :  { %1471 = vmax.xlane.f32.xlu1 %v1470_v14 }
 0x3e6   :  { %1477 = vmax.xlane.f32.xlu1 %v1476_v26 }
 0x3ea   :  { %1483 = vmax.xlane.f32.xlu1 %v1482_v40 }
 0x406   :  { %v1439_v11 = vpop.xlane.xlu0 %1438 }
 0x407   :  { %v1485_v53 = vsub.f32 %v13897_v30, %v1439_v11 }
 0x409   :  { %v1501_v17 = vmul.f32 1.442695, %v1485_v53 }
 0x40b   :  { %12743 = vpow2.f32 %v1501_v17 }
 0x40e   :  { %v1442_v8 = vpop.xlane.xlu1 %1441  ;;  %v1451_v9 = vpop.xlane.xlu0 %1450 }
 0x40f   :  { %v1486_v14 = vsub.f32 %v13907_v35, %v1442_v8  ;;  %v1489_v13 = vsub.f32 %v13909_v58, %v1451_v9 }
 0x411   :  { %v1503_v26 = vmul.f32 1.442695, %v1486_v14  ;;  %v1509_v40 = vmul.f32 1.442695, %v1489_v13 }
 0x413   :  { %12745 = vpow2.f32 %v1503_v26 }
 0x414   :  { %12747 = vpow2.f32 %v1509_v40 }
 0x415   :  { %v14027_v25 = vpop.eup %12743 }
 0x416   :  { %v1445_v45 = vpop.xlane.xlu0 %1444  ;;  %v1533_v30 = vsel %vm1436_vm4, %v14027_v25, 0.0 }
 0x417   :  { %v1487_v11 = vsub.f32 %v13921_v27, %v1445_v45  ;;  %1534 = vadd.xlane.f32.xlu0 %v1533_v30 }
 0x419   :  { %v1505_v53 = vmul.f32 1.442695, %v1487_v11 }
 0x41a   :  { %v1457_v17 = vpop.xlane.xlu0 %1456 }
 0x41b   :  { %12749 = vpow2.f32 %v1505_v53  ;;  %v1491_v35 = vsub.f32 %v13925_v20, %v1457_v17 }
 0x41d   :  { %v14033_v8 = vpop.eup %12745  ;;  %v1513_v58 = vmul.f32 1.442695, %v1491_v35 }
 0x41e   :  { %v14035_v9 = vpop.eup %12747  ;;  %v1448_v14 = vpop.xlane.xlu0 %1447  ;;  %v1536_v13 = vsel %vm1436_vm4, %v14033_v8, 0.0 }
 0x41f   :  { %12751 = vpow2.f32 %v1513_v58  ;;  %v1488_v26 = vsub.f32 %v13935_v47, %v1448_v14  ;;  %1537 = vadd.xlane.f32.xlu1 %v1536_v13  ;;  %v1545_v45 = vsel %vm1436_vm4, %v14035_v9, 0.0 }
 0x420   :  { %1546 = vadd.xlane.f32.xlu0 %v1545_v45 }
 0x421   :  { %v1507_v27 = vmul.f32 1.442695, %v1488_v26 }
 0x422   :  { %v1463_v40 = vpop.xlane.xlu0 %1462 }
 0x423   :  { %12753 = vpow2.f32 %v1507_v27  ;;  %v1493_v20 = vsub.f32 %v13939_v31, %v1463_v40 }
 0x425   :  { %v14043_v30 = vpop.eup %12749  ;;  %v1517_v11 = vmul.f32 1.442695, %v1493_v20 }
 0x426   :  { %v1454_v53 = vpop.xlane.xlu1 %1453  ;;  %v1469_v17 = vpop.xlane.xlu0 %1468  ;;  %v1539_v35 = vsel %vm1436_vm4, %v14043_v30, 0.0 }
 0x427   :  { %12755 = vpow2.f32 %v1517_v11  ;;  %v1490_v47 = vsub.f32 %v13949_v42, %v1454_v53  ;;  %v1495_v58 = vsub.f32 %v13951_v46, %v1469_v17  ;;  %1540 = vadd.xlane.f32.xlu0 %v1539_v35 }
 0x429   :  { %v14049_v14 = vpop.eup %12751  ;;  %v1511_v13 = vmul.f32 1.442695, %v1490_v47  ;;  %v1521_v26 = vmul.f32 1.442695, %v1495_v58 }
 0x42a   :  { %v1551_v31 = vsel %vm1436_vm4, %v14049_v14, 0.0 }
 0x42b   :  { %12757 = vpow2.f32 %v1511_v13  ;;  %1552 = vadd.xlane.f32.xlu0 %v1551_v31 }
 0x42c   :  { %12759 = vpow2.f32 %v1521_v26 }
 0x42d   :  { %v14053_v45 = vpop.eup %12753 }
 0x42e   :  { %v1460_v27 = vpop.xlane.xlu1 %1459  ;;  %v1542_v40 = vsel %vm1436_vm4, %v14053_v45, 0.0 }
 0x42f   :  { %v1492_v42 = vsub.f32 %v13963_v18, %v1460_v27  ;;  %1543 = vadd.xlane.f32.xlu1 %v1542_v40 }
 0x431   :  { %v14058_v46 = vpop.eup %12755  ;;  %v1515_v20 = vmul.f32 1.442695, %v1492_v42 }
 0x432   :  { %v1557_v11 = vsel %vm1436_vm4, %v14058_v46, 0.0 }
 0x433   :  { %12761 = vpow2.f32 %v1515_v20  ;;  %1558 = vadd.xlane.f32.xlu1 %v1557_v11 }
 0x435   :  { %v14062_v53 = vpop.eup %12757 }
 0x436   :  { %v1466_v17 = vpop.xlane.xlu1 %1465  ;;  %v1548_v35 = vsel %vm1436_vm4, %v14062_v53, 0.0  ;;  %v14066_v47 = vpop.eup %12759 }
 0x437   :  { %v1494_v58 = vsub.f32 %v13977_v6, %v1466_v17  ;;  %1549 = vadd.xlane.f32.xlu1 %v1548_v35  ;;  %v1563_v13 = vsel %vm1436_vm4, %v14066_v47, 0.0  ;;  %v1475_v6 = vpop.xlane.xlu0 %1474 }
 0x438   :  { %v1497_v42 = vsub.f32 %v13965_v19, %v1475_v6 }
 0x439   :  { %v1519_v18 = vmul.f32 1.442695, %v1494_v58 }
 0x43a   :  { %v1525_v11 = vmul.f32 1.442695, %v1497_v42  ;;  %v14083_v35 = vpop.permute.xlu1 %2062 }
 0x43b   :  { %12763 = vpow2.f32 %v1519_v18  ;;  %1564 = vadd.xlane.f32.xlu1 %v1563_v13  ;;  %v1481_v20 = vpop.xlane.xlu0 %1480 }
 0x43c   :  { %v1499_v17 = vsub.f32 %v13979_v54, %v1481_v20  ;;  %12765 = vpow2.f32 %v1525_v11 }
 0x43d   :  { %v14071_v26 = vpop.eup %12761 }
 0x43e   :  { %v1554_v31 = vsel %vm1436_vm4, %v14071_v26, 0.0  ;;  %v1529_v58 = vmul.f32 1.442695, %v1499_v17  ;;  %v14085_v18 = vpop.permute.xlu1 %2110 }
 0x43f   :  { %1555 = vadd.xlane.f32.xlu1 %v1554_v31  ;;  %v14115_v11 = vpop.permute.xlu0 %2014 }
 0x440   :  { %12767 = vpow2.f32 %v1529_v58 }
 0x445   :  { %v14075_v27 = vpop.eup %12763 }
 0x446   :  { %v1560_v40 = vsel %vm1436_vm4, %v14075_v27, 0.0  ;;  %v14087_v31 = vpop.eup %12765 }
 0x447   :  { %1561 = vadd.xlane.f32.xlu0 %v1560_v40  ;;  %v1569_v19 = vsel %vm1436_vm4, %v14087_v31, 0.0 }
 0x44a   :  { %v14092_v6 = vpop.eup %12767 }
 0x44b   :  { %v1575_v54 = vsel %vm1436_vm4, %v14092_v6, 0.0 }
 0x450   :  { %2158 = vrot.lane.b32.xlu1 %v13758_v63, %s13274_s23 }
 0x46f   :  { %v1472_v13 = vpop.xlane.xlu1 %1471 }
 0x470   :  { %v1496_v40 = vsub.f32 %v13994_v60, %v1472_v13 }
 0x472   :  { %v1523_v62 = vmul.f32 1.442695, %v1496_v40 }
 0x474   :  { %12769 = vpow2.f32 %v1523_v62  ;;  %1570 = vadd.xlane.f32.xlu1 %v1569_v19  ;;  %v1478_v62 = vpop.xlane.xlu1 %1477 }
 0x475   :  { %v1498_v60 = vsub.f32 %v14001_v0, %v1478_v62 }
 0x477   :  { %v1527_v58 = vmul.f32 1.442695, %v1498_v60 }
 0x478   :  { %1576 = vadd.xlane.f32.xlu1 %v1575_v54  ;;  %v1484_v17 = vpop.xlane.xlu1 %1483 }
 0x479   :  { %v1500_v13 = vsub.f32 %v14008_v32, %v1484_v17  ;;  %v1732_v17 = vsel %vm1634_vm3, %v14012_v51, 0 }
 0x47b   :  { %v1531_v19 = vmul.f32 1.442695, %v1500_v13 }
 0x47e   :  { %v14096_v42 = vpop.eup %12769 }
 0x47f   :  { %v1566_v20 = vsel %vm1436_vm4, %v14096_v42, 0.0 }
 0x480   :  { %1567 = vadd.xlane.f32.xlu0 %v1566_v20 }
 0x489   :  { %2254 = vrot.lane.b32.xlu1 %v13768_v7, %s13274_s23 }
 0x48d   :  { %2350 = vrot.lane.b32.xlu1 %v13774_v43, %s13274_s23 }
 0x491   :  { %2557 = vrot.lane.b32.xlu1 %v13699_v12, %s13275_s22 }
 0x495   :  { %2607 = vrot.lane.b32.xlu1 %v13703_v15, %s13275_s22 }
 0x496   :  { %2206 = vrot.lane.b32.xlu0 %v13754_v21, %s13274_s23 }
 0x499   :  { %2657 = vrot.lane.b32.xlu1 %v13709_v22, %s13275_s22 }
 0x49d   :  { %2707 = vrot.lane.b32.xlu1 %v13718_v34, %s13275_s22 }
 0x4a1   :  { %2809 = vrot.lane.b32.xlu1 %v13728_v36, %s13276_s25 }
 0x4a4   :  { %v1535_v40 = vpop.xlane.xlu0 %1534 }
 0x4a5   :  { %12771 = vrcp.f32 %v1535_v40  ;;  %2807 = vrot.lane.b32.xlu1 %v13728_v36, %s13275_s22 }
 0x4a6   :  { %12773 = vpow2.f32 %v1527_v58 }
 0x4a7   :  { %12775 = vpow2.f32 %v1531_v19 }
 0x4a9   :  { %2909 = vrot.lane.b32.xlu1 %v13738_v23, %s13276_s25 }
 0x4ac   :  { %v1538_v0 = vpop.xlane.xlu1 %1537 }
 0x4ad   :  { %12777 = vrcp.f32 %v1538_v0  ;;  %2907 = vrot.lane.b32.xlu1 %v13738_v23, %s13275_s22  ;;  %v1547_v20 = vpop.xlane.xlu0 %1546 }
 0x4af   :  { %v12772_v54 = vpop.eup %12771 }
 0x4b0   :  { %v1597_v32 = vmul.f32 %v12772_v54, %v14027_v25  ;;  %v14127_v62 = vpop.eup %12773  ;;  %v17414_v25 = vmov 0.0  }
 0x4b1   :  { %3009 = vrot.lane.b32.xlu1 %v13748_v57, %s13276_s25  ;;  %v1572_v13 = vsel %vm1436_vm4, %v14127_v62, 0.0  ;;  %v14136_v40 = vpop.eup %12775 }
 0x4b2   :  { %v1613_v60 = vpack.c.bf16 %v1597_v32, %v1597_v32  ;;  %v1578_v51 = vsel %vm1436_vm4, %v14136_v40, 0.0  ;;  %v1780_v32 = vsel %vm1634_vm3, %v14016_v10, 0 }
 0x4b4   :  { %11723 = vmatmul.mubr.msk.bf16.vlgmr.msra.gmra.mrb[32].mxu0 %vm1436_vm4, %v1613_v60  ;;  %v1541_v58 = vpop.xlane.xlu0 %1540 }
 0x4b5   :  { %11733 = vmatpush3.bf16.msra.mxu0 %v1732_v17  ;;  %12779 = vrcp.f32 %v1541_v58  ;;  %1573 = vadd.xlane.f32.xlu0 %v1572_v13 }
 0x4b6   :  { %3007 = vrot.lane.b32.xlu1 %v13748_v57, %s13275_s22  ;;  %11734 = vmatprep.mubr.msk.bf16.mxu0 %vm13272_vm1, %v17414_v25  ;;  %12781 = vrcp.f32 %v1547_v20 }
 0x4b7   :  { %v12778_v19 = vpop.eup %12777  ;;  %11744 = vmatprep.subr.bf16.mxu0 %v17414_v25 }
 0x4b8   :  { %v1598_v0 = vmul.f32 %v12778_v19, %v14033_v8  ;;  %v1553_v17 = vpop.xlane.xlu0 %1552  ;;  %v1828_v19 = vsel %vm1634_vm3, %v14014_v52, 0 }
 0x4b9   :  { %1579 = vadd.xlane.f32.xlu0 %v1578_v51 }
 0x4ba   :  { %3109 = vrot.lane.b32.xlu1 %v13758_v63, %s13276_s25  ;;  %v1614_v54 = vpack.c.bf16 %v1598_v0, %v1598_v0 }
 0x4bc   :  { %11729 = vmatmul.mubr.msk.bf16.vlgmr.msra.gmra.mrb[48].mxu1 %vm1436_vm4, %v1614_v54  ;;  %v1544_v60 = vpop.xlane.xlu1 %1543 }
 0x4bd   :  { %11739 = vmatpush3.bf16.msra.mxu1 %v1780_v32  ;;  %12783 = vrcp.f32 %v1544_v60  ;;  %11740 = vmatprep.mubr.msk.bf16.mxu1 %vm13272_vm1, %v17414_v25 }
 0x4be   :  { %3107 = vrot.lane.b32.xlu1 %v13758_v63, %s13275_s22  ;;  %11750 = vmatprep.subr.bf16.mxu1 %v17414_v25  ;;  %12785 = vrcp.f32 %v1553_v17 }
 0x4bf   :  { %v12780_v8 = vpop.eup %12779 }
 0x4c0   :  { %v1559_v20 = vpop.xlane.xlu1 %1558  ;;  %v1599_v58 = vmul.f32 %v12780_v8, %v14043_v30  ;;  %v12782_v13 = vpop.eup %12781  ;;  %v1924_v8 = vsel %vm1634_vm3, %v14018_v41, 0 }
 0x4c1   :  { %v1601_v30 = vmul.f32 %v12782_v13, %v14035_v9  ;;  %v1972_v13 = vsel %vm1634_vm3, %v14020_v24, 0 }
 0x4c2   :  { %3209 = vrot.lane.b32.xlu1 %v13768_v7, %s13276_s25  ;;  %v1615_v10 = vpack.c.bf16 %v1599_v58, %v1599_v58  ;;  %v1876_v58 = vsel %vm1634_vm3, %v14023_v59, 0 }
 0x4c3   :  { %v1617_v60 = vpack.c.bf16 %v1601_v30, %v1601_v30 }
 0x4c4   :  { %v1550_v51 = vpop.xlane.xlu1 %1549  ;;  %11735 = vmatmul.mubr.msk.bf16.vlgmr.msra.gmra.mrb[36].mxu0 %vm1436_vm4, %v1615_v10 }
 0x4c5   :  { %12787 = vrcp.f32 %v1550_v51  ;;  %11745 = vmatpush3.bf16.msra.mxu0 %v1828_v19  ;;  %11746 = vmatprep.mubr.msk.bf16.mxu0 %vm13272_vm1, %v17414_v25  ;;  %v2020_v19 = vsel %vm1634_vm3, %v14115_v11, 0 }
 0x4c6   :  { %3207 = vrot.lane.b32.xlu1 %v13768_v7, %s13275_s22  ;;  %11756 = vmatprep.subr.bf16.mxu0 %v17414_v25  ;;  %12789 = vrcp.f32 %v1559_v20 }
 0x4c7   :  { %v12784_v0 = vpop.eup %12783 }
 0x4c8   :  { %v1565_v54 = vpop.xlane.xlu1 %1564  ;;  %v1600_v32 = vmul.f32 %v12784_v0, %v14053_v45  ;;  %v12786_v17 = vpop.eup %12785 }
 0x4c9   :  { %v1603_v45 = vmul.f32 %v12786_v17, %v14049_v14 }
 0x4ca   :  { %3309 = vrot.lane.b32.xlu1 %v13774_v43, %s13276_s25  ;;  %v1616_v52 = vpack.c.bf16 %v1600_v32, %v1600_v32 }
 0x4cb   :  { %v1619_v14 = vpack.c.bf16 %v1603_v45, %v1603_v45 }
 0x4cc   :  { %11741 = vmatmul.mubr.msk.bf16.vlgmr.msra.gmra.mrb[52].mxu1 %vm1436_vm4, %v1616_v52  ;;  %v1556_v9 = vpop.xlane.xlu1 %1555  ;;  %11747 = vmatmul.mubr.msk.bf16.vlgmr.msra.gmra.mrb[40].mxu0 %vm1436_vm4, %v1617_v60 }
 0x4cd   :  { %11751 = vmatpush3.bf16.msra.mxu1 %v1876_v58  ;;  %12791 = vrcp.f32 %v1556_v9  ;;  %11757 = vmatpush3.bf16.msra.mxu0 %v1924_v8 }
 0x4ce   :  { %3307 = vrot.lane.b32.xlu1 %v13774_v43, %s13275_s22  ;;  %11752 = vmatprep.mubr.msk.bf16.mxu1 %vm13272_vm1, %v17414_v25  ;;  %12793 = vrcp.f32 %v1565_v54 }
 0x4cf   :  { %v12788_v41 = vpop.eup %12787  ;;  %2302 = vrot.lane.b32.xlu0 %v13763_v2, %s13274_s23  ;;  %11758 = vmatprep.mubr.msk.bf16.mxu0 %vm13272_vm1, %v17414_v25 }
 0x4d0   :  { %11762 = vmatprep.subr.bf16.mxu1 %v17414_v25  ;;  %11768 = vmatprep.subr.bf16.mxu0 %v17414_v25  ;;  %v1602_v59 = vmul.f32 %v12788_v41, %v14062_v53  ;;  %v12790_v10 = vpop.eup %12789 }
 0x4d1   :  { %v1605_v51 = vmul.f32 %v12790_v10, %v14058_v46  ;;  %v2068_v46 = vsel %vm1634_vm3, %v14083_v35, 0 }
 0x4d2   :  { %3629 = vrot.lane.b32.xlu1 %v13703_v15, %s13277_s26  ;;  %v1618_v20 = vpack.c.bf16 %v1602_v59, %v1602_v59 }
 0x4d3   :  { %2559 = vrot.lane.b32.xlu0 %v13699_v12, %s13276_s25  ;;  %v1621_v0 = vpack.c.bf16 %v1605_v51, %v1605_v51  ;;  %v12689_v51 = vld [vmem:[%s17375_s6] sm:$0xff]  }
 0x4d4   :  { %11753 = vmatmul.mubr.msk.bf16.vlgmr.msra.gmra.mrb[56].mxu1 %vm1436_vm4, %v1618_v20  ;;  %11759 = vmatmul.mubr.msk.bf16.vlgmr.msra.gmra.mrb[44].mxu0 %vm1436_vm4, %v1619_v14  ;;  %v1562_v53 = vpop.xlane.xlu0 %1561 }
 0x4d5   :  { %11763 = vmatpush3.bf16.msra.mxu1 %v1972_v13  ;;  %11769 = vmatpush3.bf16.msra.mxu0 %v2020_v19  ;;  %12795 = vrcp.f32 %v1562_v53 }
 0x4d6   :  { %3725 = vrot.lane.b32.xlu1 %v13718_v34, %s13277_s26  ;;  %11764 = vmatprep.mubr.msk.bf16.mxu1 %vm13272_vm1, %v17414_v25 }
 0x4d7   :  { %v12792_v24 = vpop.eup %12791  ;;  %2609 = vrot.lane.b32.xlu0 %v13703_v15, %s13276_s25  ;;  %11770 = vmatprep.mubr.msk.bf16.mxu0 %vm13272_vm1, %v17414_v25  ;;  %v2116_v15 = vsel %vm1634_vm3, %v14085_v18, 0  ;;  %v2159_v18 = vpop.permute.xlu1 %2158 }
 0x4d8   :  { %11774 = vmatprep.subr.bf16.mxu1 %v17414_v25  ;;  %11780 = vmatprep.subr.bf16.mxu0 %v17414_v25  ;;  %v1604_v11 = vmul.f32 %v12792_v24, %v14071_v26  ;;  %v12794_v54 = vpop.eup %12793  ;;  %v2164_v17 = vsel %vm1634_vm3, %v2159_v18, 0 }
 0x4d9   :  { %v1607_v26 = vmul.f32 %v12794_v54, %v14066_v47 }
 0x4da   :  { %v1620_v30 = vpack.c.bf16 %v1604_v11, %v1604_v11 }
 0x4db   :  { %2659 = vrot.lane.b32.xlu0 %v13709_v22, %s13276_s25  ;;  %v1623_v60 = vpack.c.bf16 %v1607_v26, %v1607_v26 }
 0x4dc   :  { %11765 = vmatmul.mubr.msk.bf16.vlgmr.msra.gmra.mrb[60].mxu1 %vm1436_vm4, %v1620_v30  ;;  %11771 = vmatmul.mubr.msk.bf16.vlgmr.msra.gmra.mrb[48].mxu0 %vm1436_vm4, %v1621_v0 }
 0x4dd   :  { %11775 = vmatpush3.bf16.msra.mxu1 %v2068_v46  ;;  %11781 = vmatpush3.bf16.msra.mxu0 %v2116_v15 }
 0x4de   :  { %11776 = vmatprep.mubr.msk.bf16.mxu1 %vm13272_vm1, %v17414_v25  ;;  %11782 = vmatprep.mubr.msk.bf16.mxu0 %vm13272_vm1, %v17414_v25 }
 0x4df   :  { %v12796_v32 = vpop.eup %12795  ;;  %2709 = vrot.lane.b32.xlu0 %v13718_v34, %s13276_s25  ;;  %11786 = vmatprep.subr.bf16.mxu1 %v17414_v25 }
 0x4e0   :  { %v1606_v35 = vmul.f32 %v12796_v32, %v14075_v27  ;;  %11792 = vmatprep.subr.bf16.mxu0 %v17414_v25 }
 0x4e2   :  { %v1622_v52 = vpack.c.bf16 %v1606_v35, %v1606_v35 }
 0x4e3   :  { %2759 = vrot.lane.b32.xlu0 %v13714_v33, %s13276_s25 }
 0x4e4   :  { %11777 = vmatmul.mubr.msk.bf16.vlgmr.msra.gmra.mrb[64].mxu1 %vm1436_vm4, %v1622_v52  ;;  %11783 = vmatmul.mubr.msk.bf16.vlgmr.msra.gmra.mrb[52].mxu0 %vm1436_vm4, %v1623_v60 }
 0x4e5   :  { %11787 = vmatpush3.bf16.msra.mxu1 %v2164_v17  ;;  %11794 = vmatprep.mubr.msk.bf16.mxu0 %vm13272_vm1, %v17414_v25 }
 0x4e6   :  { %11788 = vmatprep.mubr.msk.bf16.mxu1 %vm13272_vm1, %v17414_v25  ;;  %11798 = vmatprep.subr.bf16.mxu1 %v17414_v25 }
 0x4e7   :  { %2757 = vrot.lane.b32.xlu0 %v13714_v33, %s13275_s22 }
 0x4eb   :  { %2859 = vrot.lane.b32.xlu0 %v13723_v38, %s13276_s25 }
 0x4ef   :  { %2857 = vrot.lane.b32.xlu0 %v13723_v38, %s13275_s22 }
 0x4f3   :  { %2959 = vrot.lane.b32.xlu0 %v13734_v50, %s13276_s25 }
 0x4f7   :  { %2957 = vrot.lane.b32.xlu0 %v13734_v50, %s13275_s22 }
 0x4fb   :  { %3059 = vrot.lane.b32.xlu0 %v13743_v44, %s13276_s25 }
 0x4ff   :  { %3057 = vrot.lane.b32.xlu0 %v13743_v44, %s13275_s22 }
 0x501   :  { %v1571_v34 = vpop.xlane.xlu1 %1570 }
 0x502   :  { %12797 = vrcp.f32 %v1571_v34 }
 0x503   :  { %3159 = vrot.lane.b32.xlu0 %v13754_v21, %s13276_s25 }
 0x505   :  { %v1577_v45 = vpop.xlane.xlu1 %1576 }
 0x507   :  { %3157 = vrot.lane.b32.xlu0 %v13754_v21, %s13275_s22 }
 0x509   :  { %v2255_v20 = vpop.permute.xlu1 %2254 }
 0x50b   :  { %3259 = vrot.lane.b32.xlu0 %v13763_v2, %s13276_s25 }
 0x50c   :  { %v12798_v47 = vpop.eup %12797 }
 0x50d   :  { %v1568_v27 = vpop.xlane.xlu0 %1567  ;;  %v1609_v8 = vmul.f32 %v12798_v47, %v14087_v31 }
 0x50e   :  { %12799 = vrcp.f32 %v1568_v27 }
 0x50f   :  { %3257 = vrot.lane.b32.xlu0 %v13763_v2, %s13275_s22  ;;  %v1625_v41 = vpack.c.bf16 %v1609_v8, %v1609_v8  ;;  %12801 = vrcp.f32 %v1577_v45 }
 0x511   :  { %v2207_v58 = vpop.permute.xlu0 %2206 }
 0x512   :  { %v2212_v9 = vsel %vm1634_vm3, %v2207_v58, 0 }
 0x513   :  { %3581 = vrot.lane.b32.xlu0 %v13699_v12, %s13277_s26  ;;  %11793 = vmatpush3.bf16.msra.mxu0 %v2212_v9  ;;  %v2260_v12 = vsel %vm1634_vm3, %v2255_v20, 0 }
 0x514   :  { %11804 = vmatprep.subr.bf16.mxu0 %v17414_v25 }
 0x516   :  { %11795 = vmatmul.mubr.msk.bf16.vlgmr.msra.gmra.mrb[56].mxu0 %vm1436_vm4, %v1625_v41 }
 0x517   :  { %3677 = vrot.lane.b32.xlu0 %v13709_v22, %s13277_s26  ;;  %11806 = vmatprep.mubr.msk.bf16.mxu0 %vm13272_vm1, %v17414_v25  ;;  %v2351_v22 = vpop.permute.xlu1 %2350 }
 0x518   :  { %v12800_v31 = vpop.eup %12799  ;;  %v2356_v32 = vsel %vm1634_vm3, %v2351_v22, 0 }
 0x519   :  { %v1608_v59 = vmul.f32 %v12800_v31, %v14096_v42  ;;  %v12802_v19 = vpop.eup %12801 }
 0x51a   :  { %v1611_v42 = vmul.f32 %v12802_v19, %v14092_v6 }
 0x51b   :  { %v1624_v14 = vpack.c.bf16 %v1608_v59, %v1608_v59  ;;  %v2558_v13 = vpop.permute.xlu1 %2557 }
 0x51c   :  { %v1627_v54 = vpack.c.bf16 %v1611_v42, %v1611_v42 }
 0x51d   :  { %11789 = vmatmul.mubr.msk.bf16.vlgmr.msra.gmra.mrb[68].mxu1 %vm1436_vm4, %v1624_v14 }
 0x51e   :  { %11799 = vmatpush3.bf16.msra.mxu1 %v2260_v12  ;;  %11800 = vmatprep.mubr.msk.bf16.mxu1 %vm13272_vm1, %v17414_v25 }
 0x51f   :  { %11810 = vmatprep.subr.bf16.mxu1 %v17414_v25  ;;  %v2608_v24 = vpop.permute.xlu1 %2607 }
 0x523   :  { %v2658_v15 = vpop.permute.xlu1 %2657 }
 0x542   :  { %v1574_v10 = vpop.xlane.xlu0 %1573 }
 0x543   :  { %12803 = vrcp.f32 %v1574_v10 }
 0x546   :  { %v1580_v53 = vpop.xlane.xlu0 %1579 }
 0x547   :  { %12805 = vrcp.f32 %v1580_v53 }
 0x54a   :  { %v2303_v11 = vpop.permute.xlu0 %2302 }
 0x54b   :  { %v2308_v30 = vsel %vm1634_vm3, %v2303_v11, 0 }
 0x54c   :  { %11805 = vmatpush3.bf16.msra.mxu0 %v2308_v30 }
 0x54d   :  { %v12804_v0 = vpop.eup %12803  ;;  %11816 = vmatprep.subr.bf16.mxu0 %v12689_v51 }
 0x54e   :  { %v1610_v46 = vmul.f32 %v12804_v0, %v14127_v62  ;;  %v2708_v62 = vpop.permute.xlu1 %2707  ;;  %v2560_v18 = vpop.permute.xlu0 %2559 }
 0x54f   :  { %11807 = vmatmul.mubr.msk.bf16.vlgmr.msra.gmra.mrb[60].mxu0 %vm1436_vm4, %v1627_v54  ;;  %v2565_v60 = vsel %vm526_vm2, %v2560_v18, 0 }
 0x550   :  { %v1626_v26 = vpack.c.bf16 %v1610_v46, %v1610_v46  ;;  %11817 = vmatpush3.bf16.msra.mxu0 %v12689_v51 }
 0x551   :  { %v12806_v6 = vpop.eup %12805  ;;  %11858 = vmatprep.subr.bf16.mxu0 %v17414_v25 }
 0x552   :  { %11801 = vmatmul.mubr.msk.bf16.vlgmr.msra.gmra.mrb[72].mxu1 %vm1436_vm4, %v1626_v26  ;;  %v1612_v35 = vmul.f32 %v12806_v6, %v14136_v40  ;;  %v2810_v17 = vpop.permute.xlu1 %2809  ;;  %v2610_v34 = vpop.permute.xlu0 %2609 }
 0x553   :  { %11811 = vmatpush3.bf16.msra.mxu1 %v2356_v32  ;;  %11812 = vmatprep.mubr.msk.bf16.mxu1 %vm13272_vm1, %v17414_v25  ;;  %v2615_v40 = vsel %vm526_vm2, %v2610_v34, 0  ;;  %v2815_v20 = vsel %vm526_vm2, %v2810_v17, 0 }
 0x554   :  { %11834 = vmatprep.subr.bf16.mxu1 %v17414_v25  ;;  %v1628_v52 = vpack.c.bf16 %v1612_v35, %v1612_v35 }
 0x556   :  { %v2808_v47 = vpop.permute.xlu1 %2807  ;;  %v2660_v8 = vpop.permute.xlu0 %2659 }
 0x557   :  { %v2665_v58 = vsel %vm526_vm2, %v2660_v8, 0 }
 0x55a   :  { %11813 = vmatmul.mubr.msk.bf16.vlgmr.msra.gmra.mrb[76].mxu1 %vm1436_vm4, %v1628_v52  ;;  %v2910_v27 = vpop.permute.xlu1 %2909  ;;  %v2710_v45 = vpop.permute.xlu0 %2709 }
 0x55b   :  { %11836 = vmatprep.mubr.msk.bf16.mxu1 %vm13272_vm1, %v17414_v25  ;;  %v2715_v41 = vsel %vm526_vm2, %v2710_v45, 0  ;;  %v2915_v12 = vsel %vm526_vm2, %v2910_v27, 0 }
 0x55c   :  { %11835 = vmatpush3.bf16.xpose.msra.mxu1 %v2565_v60 }
 0x55d   :  { %11840 = vmatprep.subr.bf16.mxu1 %v17414_v25 }
 0x55e   :  { %v2908_v9 = vpop.permute.xlu1 %2907  ;;  %v2760_v60 = vpop.permute.xlu0 %2759 }
 0x562   :  { %v3010_v31 = vpop.permute.xlu1 %3009 }
 0x563   :  { %11837 = vmatmul.mubr.msk.bf16.vlgmr.msra.gmra.mrb[80].mxu1 %vm526_vm2, %v2558_v13  ;;  %v3015_v42 = vsel %vm526_vm2, %v3010_v31, 0 }
 0x564   :  { %11841 = vmatpush3.bf16.xpose.msra.mxu1 %v2615_v40  ;;  %11842 = vmatprep.mubr.msk.bf16.mxu1 %vm13272_vm1, %v17414_v25 }
 0x565   :  { %11846 = vmatprep.subr.bf16.mxu1 %v17414_v25 }
 0x566   :  { %v3008_v59 = vpop.permute.xlu1 %3007 }
 0x56a   :  { %v3110_v14 = vpop.permute.xlu1 %3109 }
 0x56b   :  { %11843 = vmatmul.mubr.msk.bf16.vlgmr.msra.gmra.mrb[84].mxu1 %vm526_vm2, %v2608_v24 }
 0x56c   :  { %11847 = vmatpush3.bf16.xpose.msra.mxu1 %v2665_v58  ;;  %11848 = vmatprep.mubr.msk.bf16.mxu1 %vm13272_vm1, %v17414_v25 }
 0x56d   :  { %11852 = vmatprep.subr.bf16.mxu1 %v17414_v25 }
 0x56e   :  { %v3108_v22 = vpop.permute.xlu1 %3107 }
 0x572   :  { %v3210_v51 = vpop.permute.xlu1 %3209 }
 0x573   :  { %11849 = vmatmul.mubr.msk.bf16.vlgmr.msra.gmra.mrb[88].mxu1 %vm526_vm2, %v2658_v15  ;;  %v3115_v15 = vsel %vm526_vm2, %v3110_v14, 0  ;;  %v3215_v18 = vsel %vm526_vm2, %v3210_v51, 0 }
 0x574   :  { %11853 = vmatpush3.bf16.xpose.msra.mxu1 %v2715_v41  ;;  %11854 = vmatprep.mubr.msk.bf16.mxu1 %vm13272_vm1, %v17414_v25 }
 0x575   :  { %11864 = vmatprep.subr.bf16.mxu1 %v17414_v25 }
 0x576   :  { %v3208_v54 = vpop.permute.xlu1 %3207 }
 0x57a   :  { %v3310_v6 = vpop.permute.xlu1 %3309 }
 0x57b   :  { %11855 = vmatmul.mubr.msk.bf16.vlgmr.msra.gmra.mrb[92].mxu1 %vm526_vm2, %v2708_v62  ;;  %v3315_v31 = vsel %vm526_vm2, %v3310_v6, 0 }
 0x57c   :  { %11865 = vmatpush3.bf16.xpose.msra.mxu1 %v2815_v20  ;;  %11866 = vmatprep.mubr.msk.bf16.mxu1 %vm13272_vm1, %v17414_v25 }
 0x57d   :  { %11876 = vmatprep.subr.bf16.mxu1 %v17414_v25 }
 0x57e   :  { %v3308_v52 = vpop.permute.xlu1 %3307 }
 0x583   :  { %11867 = vmatmul.mubr.msk.bf16.vlgmr.msra.gmra.mrb[96].mxu1 %vm526_vm2, %v2808_v47 }
 0x584   :  { %11877 = vmatpush3.bf16.xpose.msra.mxu1 %v2915_v12  ;;  %11878 = vmatprep.mubr.msk.bf16.mxu1 %vm13272_vm1, %v17414_v25 }
 0x585   :  { %11888 = vmatprep.subr.bf16.mxu1 %v17414_v25 }
 0x587   :  { %v1672_v10 = vpop.f32.mrb[32].mxu0 }
 0x588   :  { %v11724_v13 = vpop.f32.mrb[33].mxu0 }
 0x589   :  { %v1675_v19 = vpop.f32.mrb[34].mxu0 }
 0x58a   :  { %v11725_v53 = vpop.f32.mrb[35].mxu0 }
 0x58b   :  { %11879 = vmatmul.mubr.msk.bf16.vlgmr.msra.gmra.mrb[100].mxu1 %vm526_vm2, %v2908_v9  ;;  %v2765_v9 = vsel %vm526_vm2, %v2760_v60, 0 }
 0x58c   :  { %11889 = vmatpush3.bf16.xpose.msra.mxu1 %v3015_v42  ;;  %11890 = vmatprep.mubr.msk.bf16.mxu1 %vm13272_vm1, %v17414_v25 }
 0x58d   :  { %11900 = vmatprep.subr.bf16.mxu1 %v17414_v25 }
 0x58f   :  { %v1720_v24 = vpop.f32.mrb[48].mxu1 }
 0x590   :  { %v2398_v11 = vpack.c.bf16 %v1720_v24, %v1672_v10  ;;  %v11730_v30 = vpop.f32.mrb[49].mxu1 }
 0x591   :  { %v1723_v0 = vpop.f32.mrb[50].mxu1 }
 0x592   :  { %v11731_v46 = vpop.f32.mrb[51].mxu1  ;;  %11818 = vmatprep.mubr.msk.bf16.mxu0 %vm526_vm2, %v2398_v11 }
 0x593   :  { %11891 = vmatmul.mubr.msk.bf16.vlgmr.msra.gmra.mrb[104].mxu1 %vm526_vm2, %v3008_v59  ;;  %v3630_v59 = vpop.permute.xlu1 %3629 }
 0x594   :  { %11901 = vmatpush3.bf16.xpose.msra.mxu1 %v3115_v15  ;;  %11902 = vmatprep.mubr.msk.bf16.mxu1 %vm13272_vm1, %v17414_v25  ;;  %v3635_v51 = vsel %vm1634_vm3, %v3630_v59, 0 }
 0x595   :  { %11912 = vmatprep.subr.bf16.mxu1 %v17414_v25 }
 0x597   :  { %v1768_v26 = vpop.f32.mrb[36].mxu0 }
 0x598   :  { %v11736_v32 = vpop.f32.mrb[37].mxu0 }
 0x599   :  { %v1771_v35 = vpop.f32.mrb[38].mxu0 }
 0x59a   :  { %v11737_v62 = vpop.f32.mrb[39].mxu0 }
 0x59b   :  { %11903 = vmatmul.mubr.msk.bf16.vlgmr.msra.gmra.mrb[108].mxu1 %vm526_vm2, %v3108_v22 }
 0x59c   :  { %11913 = vmatpush3.bf16.xpose.msra.mxu1 %v3215_v18  ;;  %11914 = vmatprep.mubr.msk.bf16.mxu1 %vm13272_vm1, %v17414_v25 }
 0x59d   :  { %11924 = vmatprep.subr.bf16.mxu1 %v17414_v25 }
 0x59f   :  { %v1816_v17 = vpop.f32.mrb[52].mxu1  ;;  %v1864_v34 = vpop.f32.mrb[40].mxu0 }
 0x5a0   :  { %v2399_v47 = vpack.c.bf16 %v1816_v17, %v1768_v26  ;;  %v11742_v40 = vpop.f32.mrb[53].mxu1  ;;  %v11748_v27 = vpop.f32.mrb[41].mxu0 }
 0x5a1   :  { %v1819_v8 = vpop.f32.mrb[54].mxu1  ;;  %v1867_v58 = vpop.f32.mrb[42].mxu0 }
 0x5a2   :  { %v11743_v45 = vpop.f32.mrb[55].mxu1  ;;  %v11749_v41 = vpop.f32.mrb[43].mxu0  ;;  %11819 = vmatmul.mubr.msk.bf16.vlgmr.msra.gmra.mrb[64].mxu0 %vm526_vm2, %v2399_v47 }
 0x5a3   :  { %11859 = vmatpush3.bf16.xpose.msra.mxu0 %v2765_v9  ;;  %11915 = vmatmul.mubr.msk.bf16.vlgmr.msra.gmra.mrb[112].mxu1 %vm526_vm2, %v3208_v54 }
 0x5a4   :  { %11925 = vmatpush3.bf16.xpose.msra.mxu1 %v3315_v31  ;;  %11926 = vmatprep.mubr.msk.bf16.mxu1 %vm13272_vm1, %v17414_v25 }
 0x5a5   :  { %11936 = vmatprep.subr.bf16.mxu1 %v17414_v25  ;;  %11870 = vmatprep.subr.bf16.mxu0 %v17414_v25 }
 0x5a7   :  { %v1912_v20 = vpop.f32.mrb[56].mxu1  ;;  %v1960_v14 = vpop.f32.mrb[44].mxu0 }
 0x5a8   :  { %v2400_v12 = vpack.c.bf16 %v1912_v20, %v1864_v34  ;;  %v11754_v22 = vpop.f32.mrb[57].mxu1  ;;  %v11760_v10 = vpop.f32.mrb[45].mxu0 }
 0x5a9   :  { %v1915_v13 = vpop.f32.mrb[58].mxu1  ;;  %v1963_v19 = vpop.f32.mrb[46].mxu0 }
 0x5aa   :  { %v11755_v53 = vpop.f32.mrb[59].mxu1  ;;  %v11761_v42 = vpop.f32.mrb[47].mxu0  ;;  %11822 = vmatprep.mubr.msk.bf16.mxu0 %vm526_vm2, %v2400_v12 }
 0x5ab   :  { %11927 = vmatmul.mubr.msk.bf16.vlgmr.msra.gmra.mrb[116].mxu1 %vm526_vm2, %v3308_v52  ;;  %v2758_v20 = vpop.permute.xlu0 %2757 }
 0x5ac   :  { %11937 = vmatpush3.bf16.msra.mxu1 %v3635_v51  ;;  %11938 = vmatprep.mubr.msk.bf16.mxu1 %vm13272_vm1, %v17414_v25 }
 0x5ad   :  { %11948 = vmatprep.subr.bf16.mxu1 %v17414_v25 }
 0x5af   :  { %v2008_v24 = vpop.f32.mrb[60].mxu1  ;;  %v2056_v11 = vpop.f32.mrb[48].mxu0 }
 0x5b0   :  { %v2401_v30 = vpack.c.bf16 %v2008_v24, %v1960_v14  ;;  %v11766_v0 = vpop.f32.mrb[61].mxu1  ;;  %v11772_v54 = vpop.f32.mrb[49].mxu0 }
 0x5b1   :  { %v2011_v46 = vpop.f32.mrb[62].mxu1  ;;  %v2059_v15 = vpop.f32.mrb[50].mxu0 }
 0x5b2   :  { %v11767_v26 = vpop.f32.mrb[63].mxu1  ;;  %v11773_v6 = vpop.f32.mrb[51].mxu0  ;;  %11823 = vmatmul.mubr.msk.bf16.gmra.mrb[68].mxu0 %vm526_vm2, %v2401_v30 }
 0x5b3   :  { %v2860_v14 = vpop.permute.xlu0 %2859 }
 0x5b7   :  { %v2104_v32 = vpop.f32.mrb[64].mxu1  ;;  %v2152_v35 = vpop.f32.mrb[52].mxu0 }
 0x5b8   :  { %v2402_v62 = vpack.c.bf16 %v2104_v32, %v2056_v11  ;;  %v11778_v18 = vpop.f32.mrb[65].mxu1  ;;  %v11784_v52 = vpop.f32.mrb[53].mxu0 }
 0x5b9   :  { %v2107_v60 = vpop.f32.mrb[66].mxu1  ;;  %v2155_v17 = vpop.f32.mrb[54].mxu0  ;;  %v2865_v18 = vsel %vm526_vm2, %v2860_v14, 0 }
 0x5ba   :  { %v11779_v34 = vpop.f32.mrb[67].mxu1  ;;  %v11785_v47 = vpop.f32.mrb[55].mxu0  ;;  %11826 = vmatprep.mubr.msk.bf16.mxu0 %vm526_vm2, %v2402_v62 }
 0x5bb   :  { %v2858_v51 = vpop.permute.xlu0 %2857  ;;  %v13223_v34 = vld [vmem:[%s17374_s1] ss:$0 sm:$0xff] }
 0x5bf   :  { %v2960_v30 = vpop.permute.xlu0 %2959 }
 0x5c3   :  { %v2958_v6 = vpop.permute.xlu0 %2957 }
 0x5c7   :  { %v3060_v60 = vpop.permute.xlu0 %3059 }
 0x5e9   :  { %v2248_v40 = vpop.f32.mrb[56].mxu0 }
 0x5ea   :  { %v11796_v27 = vpop.f32.mrb[57].mxu0 }
 0x5eb   :  { %v2251_v8 = vpop.f32.mrb[58].mxu0 }
 0x5ec   :  { %v11797_v58 = vpop.f32.mrb[59].mxu0  ;;  %v3058_v8 = vpop.permute.xlu0 %3057 }
 0x5f0   :  { %v2200_v9 = vpop.f32.mrb[68].mxu1 }
 0x5f1   :  { %v2403_v45 = vpack.c.bf16 %v2200_v9, %v2152_v35  ;;  %v11790_v41 = vpop.f32.mrb[69].mxu1 }
 0x5f2   :  { %v2203_v31 = vpop.f32.mrb[70].mxu1 }
 0x5f3   :  { %v11791_v59 = vpop.f32.mrb[71].mxu1  ;;  %11827 = vmatmul.mubr.msk.bf16.gmra.mrb[72].mxu0 %vm526_vm2, %v2403_v45  ;;  %v2965_v45 = vsel %vm526_vm2, %v2960_v30, 0 }
 0x5f4   :  { %v13224_v59 = vld [vmem:[%s17374_s1 + $0x1] ss:$0 sm:$0xff] }
 0x622   :  { %v2344_v12 = vpop.f32.mrb[60].mxu0 }
 0x623   :  { %v11808_v22 = vpop.f32.mrb[61].mxu0 }
 0x624   :  { %v2347_v10 = vpop.f32.mrb[62].mxu0 }
 0x625   :  { %v2296_v13 = vpop.f32.mrb[72].mxu1  ;;  %v11809_v19 = vpop.f32.mrb[63].mxu0 }
 0x626   :  { %v2404_v53 = vpack.c.bf16 %v2296_v13, %v2248_v40  ;;  %v11802_v42 = vpop.f32.mrb[73].mxu1  ;;  %v3065_v19 = vsel %vm526_vm2, %v3060_v60, 0 }
 0x627   :  { %v2299_v24 = vpop.f32.mrb[74].mxu1 }
 0x628   :  { %v11803_v11 = vpop.f32.mrb[75].mxu1  ;;  %11830 = vmatprep.mubr.msk.bf16.mxu0 %vm526_vm2, %v2404_v53 }
 0x62d   :  { %v2392_v0 = vpop.f32.mrb[76].mxu1 }
 0x62e   :  { %v2405_v54 = vpack.c.bf16 %v2392_v0, %v2344_v12  ;;  %v11814_v46 = vpop.f32.mrb[77].mxu1  ;;  %v3160_v12 = vpop.permute.xlu0 %3159 }
 0x62f   :  { %v2395_v15 = vpop.f32.mrb[78].mxu1 }
 0x630   :  { %v11815_v26 = vpop.f32.mrb[79].mxu1  ;;  %11831 = vmatmul.mubr.msk.bf16.gmra.mrb[76].mxu0 %vm526_vm2, %v2405_v54  ;;  %v3165_v15 = vsel %vm526_vm2, %v3160_v12, 0 }
 0x631   :  { %11860 = vmatprep.mubr.msk.bf16.mxu0 %vm13272_vm1, %v17414_v25 }
 0x632   :  { %v3158_v11 = vpop.permute.xlu0 %3157 }
 0x636   :  { %v2601_v32 = vpop.f32.mrb[80].mxu1 }
 0x637   :  { %v3357_v35 = vmul.f32 0.25, %v2601_v32  ;;  %v11838_v62 = vpop.f32.mrb[81].mxu1 }
 0x638   :  { %v2604_v52 = vpop.f32.mrb[82].mxu1  ;;  %11861 = vmatmul.mubr.msk.bf16.vlgmr.msra.gmra.mrb[80].mxu0 %vm526_vm2, %v2758_v20 }
 0x639   :  { %v11839_v17 = vpop.f32.mrb[83].mxu1  ;;  %11871 = vmatpush3.bf16.xpose.msra.mxu0 %v2865_v18  ;;  %v14363_v47 = vadd.f32 %v13223_v34, %v3357_v35  ;;  %11872 = vmatprep.mubr.msk.bf16.mxu0 %vm13272_vm1, %v17414_v25  ;;  %v13226_v35 = vld [vmem:[%s17374_s1 + $0x3] ss:$0 sm:$0xff] }
 0x63a   :  { %11882 = vmatprep.subr.bf16.mxu0 %v17414_v25 }
 0x63b   :  { %v3389_v40 = vsel %vm1436_vm4, %v14363_v47, -inf }
 0x63c   :  { %3390 = vmax.xlane.f32.xlu0 %v3389_v40 }
 0x63e   :  { %v2651_v27 = vpop.f32.mrb[84].mxu1 }
 0x63f   :  { %v3358_v58 = vmul.f32 0.25, %v2651_v27  ;;  %v11844_v9 = vpop.f32.mrb[85].mxu1 }
 0x640   :  { %v2654_v41 = vpop.f32.mrb[86].mxu1  ;;  %11873 = vmatmul.mubr.msk.bf16.vlgmr.msra.gmra.mrb[84].mxu0 %vm526_vm2, %v2858_v51  ;;  %v13225_v51 = vld [vmem:[%s17374_s1 + $0x2] ss:$0 sm:$0xff] }
 0x641   :  { %v11845_v31 = vpop.f32.mrb[87].mxu1  ;;  %11883 = vmatpush3.bf16.xpose.msra.mxu0 %v2965_v45  ;;  %v14375_v20 = vadd.f32 %v13224_v59, %v3358_v58  ;;  %11884 = vmatprep.mubr.msk.bf16.mxu0 %vm13272_vm1, %v17414_v25 }
 0x642   :  { %11894 = vmatprep.subr.bf16.mxu0 %v17414_v25 }
 0x643   :  { %v3392_v14 = vsel %vm1436_vm4, %v14375_v20, -inf }
 0x644   :  { %3393 = vmax.xlane.f32.xlu1 %v3392_v14 }
 0x646   :  { %v2701_v22 = vpop.f32.mrb[88].mxu1 }
 0x647   :  { %v3359_v10 = vmul.f32 0.25, %v2701_v22  ;;  %v11850_v13 = vpop.f32.mrb[89].mxu1 }
 0x648   :  { %v2704_v53 = vpop.f32.mrb[90].mxu1  ;;  %11885 = vmatmul.mubr.msk.bf16.vlgmr.msra.gmra.mrb[88].mxu0 %vm526_vm2, %v2958_v6  ;;  %v3260_v6 = vpop.permute.xlu0 %3259 }
 0x649   :  { %v11851_v42 = vpop.f32.mrb[91].mxu1  ;;  %11895 = vmatpush3.bf16.xpose.msra.mxu0 %v3065_v19  ;;  %v14387_v24 = vadd.f32 %v13225_v51, %v3359_v10  ;;  %11896 = vmatprep.mubr.msk.bf16.mxu0 %vm13272_vm1, %v17414_v25  ;;  %v3265_v40 = vsel %vm526_vm2, %v3260_v6, 0  ;;  %v13228_v10 = vld [vmem:[%s17374_s1 + $0x7] ss:$0 sm:$0xff] }
 0x64a   :  { %11906 = vmatprep.subr.bf16.mxu0 %v17414_v25 }
 0x64b   :  { %v3395_v30 = vsel %vm1436_vm4, %v14387_v24, -inf }
 0x64c   :  { %3396 = vmax.xlane.f32.xlu0 %v3395_v30  ;;  %v3258_v60 = vpop.permute.xlu0 %3257 }
 0x64e   :  { %v2751_v0 = vpop.f32.mrb[92].mxu1 }
 0x64f   :  { %v3360_v54 = vmul.f32 0.25, %v2751_v0  ;;  %v11856_v46 = vpop.f32.mrb[93].mxu1  ;;  %v13229_v0 = vld [vmem:[%s17374_s1 + $0x9] ss:$0 sm:$0xff] }
 0x650   :  { %v2754_v26 = vpop.f32.mrb[94].mxu1  ;;  %11897 = vmatmul.mubr.msk.bf16.vlgmr.msra.gmra.mrb[92].mxu0 %vm526_vm2, %v3058_v8  ;;  %v13227_v8 = vld [vmem:[%s17374_s1 + $0x5] ss:$0 sm:$0xff]  ;;  %v3582_v41 = vpop.permute.xlu0 %3581 }
 0x651   :  { %v11857_v32 = vpop.f32.mrb[95].mxu1  ;;  %11907 = vmatpush3.bf16.xpose.msra.mxu0 %v3165_v15  ;;  %v14399_v62 = vadd.f32 %v13226_v35, %v3360_v54  ;;  %11908 = vmatprep.mubr.msk.bf16.mxu0 %vm13272_vm1, %v17414_v25  ;;  %v3587_v12 = vsel %vm1634_vm3, %v3582_v41, 0 }
 0x652   :  { %11918 = vmatprep.subr.bf16.mxu0 %v17414_v25 }
 0x653   :  { %v3398_v18 = vsel %vm1436_vm4, %v14399_v62, -inf }
 0x654   :  { %3399 = vmax.xlane.f32.xlu0 %v3398_v18  ;;  %v13230_v18 = vld [vmem:[%s17374_s1 + $0xb] ss:$0 sm:$0xff] }
 0x656   :  { %v2851_v52 = vpop.f32.mrb[96].mxu1 }
 0x657   :  { %v3362_v17 = vmul.f32 0.25, %v2851_v52  ;;  %v11868_v34 = vpop.f32.mrb[97].mxu1 }
 0x658   :  { %v2854_v27 = vpop.f32.mrb[98].mxu1  ;;  %11909 = vmatmul.mubr.msk.bf16.vlgmr.msra.gmra.mrb[96].mxu0 %vm526_vm2, %v3158_v11 }
 0x659   :  { %v14411_v58 = vadd.f32 %v13227_v8, %v3362_v17  ;;  %v11869_v9 = vpop.f32.mrb[99].mxu1  ;;  %11919 = vmatpush3.bf16.xpose.msra.mxu0 %v3265_v40  ;;  %11920 = vmatprep.mubr.msk.bf16.mxu0 %vm13272_vm1, %v17414_v25 }
 0x65a   :  { %11930 = vmatprep.subr.bf16.mxu0 %v17414_v25  ;;  %v13231_v9 = vld [vmem:[%s17374_s1 + $0xd] ss:$0 sm:$0xff] }
 0x65b   :  { %v3404_v45 = vsel %vm1436_vm4, %v14411_v58, -inf }
 0x65c   :  { %3405 = vmax.xlane.f32.xlu1 %v3404_v45 }
 0x65e   :  { %v2951_v31 = vpop.f32.mrb[100].mxu1 }
 0x65f   :  { %v3364_v59 = vmul.f32 0.25, %v2951_v31  ;;  %v11880_v14 = vpop.f32.mrb[101].mxu1 }
 0x660   :  { %v2954_v22 = vpop.f32.mrb[102].mxu1  ;;  %11921 = vmatmul.mubr.msk.bf16.vlgmr.msra.gmra.mrb[100].mxu0 %vm526_vm2, %v3258_v60 }
 0x661   :  { %v14423_v13 = vadd.f32 %v13228_v10, %v3364_v59  ;;  %v11881_v19 = vpop.f32.mrb[103].mxu1  ;;  %11931 = vmatpush3.bf16.msra.mxu0 %v3587_v12  ;;  %11932 = vmatprep.mubr.msk.bf16.mxu0 %vm13272_vm1, %v17414_v25  ;;  %v13232_v10 = vld [vmem:[%s17374_s1 + $0xf] ss:$0 sm:$0xff] }
 0x662   :  { %11942 = vmatprep.subr.bf16.mxu0 %v17414_v25 }
 0x663   :  { %v3410_v53 = vsel %vm1436_vm4, %v14423_v13, -inf }
 0x664   :  { %3411 = vmax.xlane.f32.xlu1 %v3410_v53 }
 0x666   :  { %v3051_v42 = vpop.f32.mrb[104].mxu1 }
 0x667   :  { %v3366_v51 = vmul.f32 0.25, %v3051_v42  ;;  %v11892_v11 = vpop.f32.mrb[105].mxu1 }
 0x668   :  { %v3054_v30 = vpop.f32.mrb[106].mxu1 }
 0x669   :  { %v14433_v54 = vadd.f32 %v13229_v0, %v3366_v51  ;;  %v11893_v46 = vpop.f32.mrb[107].mxu1  ;;  %v14458_v51 = vpop.permute.xlu0 %3677 }
 0x66a   :  { %v14461_v46 = vpop.permute.xlu1 %3725 }
 0x66b   :  { %v3416_v15 = vsel %vm1436_vm4, %v14433_v54, -inf }
 0x66c   :  { %3417 = vmax.xlane.f32.xlu1 %v3416_v15 }
 0x66e   :  { %v3151_v26 = vpop.f32.mrb[108].mxu1 }
 0x66f   :  { %v3368_v6 = vmul.f32 0.25, %v3151_v26  ;;  %v11904_v32 = vpop.f32.mrb[109].mxu1 }
 0x670   :  { %v3154_v35 = vpop.f32.mrb[110].mxu1 }
 0x671   :  { %v14440_v52 = vadd.f32 %v13230_v18, %v3368_v6  ;;  %v11905_v60 = vpop.f32.mrb[111].mxu1 }
 0x673   :  { %v3422_v17 = vsel %vm1436_vm4, %v14440_v52, -inf }
 0x674   :  { %3423 = vmax.xlane.f32.xlu1 %v3422_v17 }
 0x676   :  { %v3251_v34 = vpop.f32.mrb[112].mxu1 }
 0x677   :  { %v3370_v40 = vmul.f32 0.25, %v3251_v34  ;;  %v11916_v27 = vpop.f32.mrb[113].mxu1 }
 0x678   :  { %v3254_v8 = vpop.f32.mrb[114].mxu1 }
 0x679   :  { %v14447_v45 = vadd.f32 %v13231_v9, %v3370_v40  ;;  %v11917_v41 = vpop.f32.mrb[115].mxu1 }
 0x67b   :  { %v3428_v31 = vsel %vm1436_vm4, %v14447_v45, -inf }
 0x67c   :  { %3429 = vmax.xlane.f32.xlu1 %v3428_v31 }
 0x67e   :  { %v3351_v59 = vpop.f32.mrb[116].mxu1 }
 0x67f   :  { %v3372_v14 = vmul.f32 0.25, %v3351_v59  ;;  %v11928_v12 = vpop.f32.mrb[117].mxu1 }
 0x680   :  { %v3354_v22 = vpop.f32.mrb[118].mxu1 }
 0x681   :  { %v14454_v19 = vadd.f32 %v13232_v10, %v3372_v14  ;;  %v11929_v53 = vpop.f32.mrb[119].mxu1 }
 0x683   :  { %v3434_v42 = vsel %vm1436_vm4, %v14454_v19, -inf }
 0x684   :  { %3435 = vmax.xlane.f32.xlu1 %v3434_v42 }
 0x6c9   :  { %v3391_v11 = vpop.xlane.xlu0 %3390 }
 0x6ca   :  { %v3437_v30 = vsub.f32 %v14363_v47, %v3391_v11 }
 0x6cc   :  { %v3453_v0 = vmul.f32 1.442695, %v3437_v30 }
 0x6ce   :  { %12807 = vpow2.f32 %v3453_v0 }
 0x6d1   :  { %v3394_v15 = vpop.xlane.xlu1 %3393 }
 0x6d2   :  { %v3438_v26 = vsub.f32 %v14375_v20, %v3394_v15 }
 0x6d4   :  { %v3455_v6 = vmul.f32 1.442695, %v3438_v26 }
 0x6d6   :  { %12809 = vpow2.f32 %v3455_v6 }
 0x6d8   :  { %v14464_v32 = vpop.eup %12807 }
 0x6d9   :  { %v3397_v35 = vpop.xlane.xlu0 %3396  ;;  %v3485_v18 = vsel %vm1436_vm4, %v14464_v32, 0.0 }
 0x6da   :  { %v3439_v60 = vsub.f32 %v14387_v24, %v3397_v35  ;;  %3486 = vadd.xlane.f32.xlu0 %v3485_v18 }
 0x6dc   :  { %v3457_v17 = vmul.f32 1.442695, %v3439_v60 }
 0x6de   :  { %12811 = vpow2.f32 %v3457_v17 }
 0x6e0   :  { %v14469_v47 = vpop.eup %12809 }
 0x6e1   :  { %v3400_v34 = vpop.xlane.xlu0 %3399  ;;  %v3488_v40 = vsel %vm1436_vm4, %v14469_v47, 0.0 }
 0x6e2   :  { %v3440_v20 = vsub.f32 %v14399_v62, %v3400_v34  ;;  %3489 = vadd.xlane.f32.xlu1 %v3488_v40  ;;  %v13233_v34 = vld [vmem:[%s17374_s1 + $0x4] ss:$0 sm:$0xff] }
 0x6e4   :  { %v3459_v27 = vmul.f32 1.442695, %v3440_v20 }
 0x6e6   :  { %12813 = vpow2.f32 %v3459_v27 }
 0x6e8   :  { %v14474_v8 = vpop.eup %12811 }
 0x6e9   :  { %v3406_v9 = vpop.xlane.xlu1 %3405  ;;  %v3491_v24 = vsel %vm1436_vm4, %v14474_v8, 0.0 }
 0x6ea   :  { %v3442_v41 = vsub.f32 %v14411_v58, %v3406_v9  ;;  %3492 = vadd.xlane.f32.xlu0 %v3491_v24 }
 0x6ec   :  { %v3463_v31 = vmul.f32 1.442695, %v3442_v41 }
 0x6ee   :  { %12815 = vpow2.f32 %v3463_v31 }
 0x6f0   :  { %v14479_v59 = vpop.eup %12813 }
 0x6f1   :  { %v3412_v14 = vpop.xlane.xlu1 %3411  ;;  %v3494_v62 = vsel %vm1436_vm4, %v14479_v59, 0.0 }
 0x6f2   :  { %v3444_v12 = vsub.f32 %v14423_v13, %v3412_v14  ;;  %3495 = vadd.xlane.f32.xlu1 %v3494_v62  ;;  %v13234_v62 = vld [vmem:[%s17374_s1 + $0x6] ss:$0 sm:$0xff] }
 0x6f4   :  { %v3467_v22 = vmul.f32 1.442695, %v3444_v12 }
 0x6f6   :  { %12817 = vpow2.f32 %v3467_v22 }
 0x6f8   :  { %v14484_v10 = vpop.eup %12815 }
 0x6f9   :  { %v3418_v53 = vpop.xlane.xlu1 %3417  ;;  %v3500_v58 = vsel %vm1436_vm4, %v14484_v10, 0.0 }
 0x6fa   :  { %v3446_v42 = vsub.f32 %v14433_v54, %v3418_v53  ;;  %3501 = vadd.xlane.f32.xlu1 %v3500_v58 }
 0x6fc   :  { %v3471_v11 = vmul.f32 1.442695, %v3446_v42 }
 0x6fe   :  { %12819 = vpow2.f32 %v3471_v11 }
 0x700   :  { %v14489_v30 = vpop.eup %12817 }
 0x701   :  { %v3424_v0 = vpop.xlane.xlu1 %3423  ;;  %v3506_v13 = vsel %vm1436_vm4, %v14489_v30, 0.0 }
 0x702   :  { %v3448_v15 = vsub.f32 %v14440_v52, %v3424_v0  ;;  %3507 = vadd.xlane.f32.xlu1 %v3506_v13  ;;  %v13235_v0 = vld [vmem:[%s17374_s1 + $0x8] ss:$0 sm:$0xff] }
 0x704   :  { %v3475_v26 = vmul.f32 1.442695, %v3448_v15 }
 0x706   :  { %12821 = vpow2.f32 %v3475_v26 }
 0x708   :  { %v14494_v6 = vpop.eup %12819 }
 0x709   :  { %v3512_v35 = vsel %vm1436_vm4, %v14494_v6, 0.0 }
 0x70a   :  { %3513 = vadd.xlane.f32.xlu0 %v3512_v35 }
 0x70b   :  { %v2801_v54 = vpop.f32.mrb[80].mxu0 }
 0x70c   :  { %v3361_v18 = vmul.f32 0.25, %v2801_v54  ;;  %v11862_v60 = vpop.f32.mrb[81].mxu0 }
 0x70d   :  { %v2804_v17 = vpop.f32.mrb[82].mxu0 }
 0x70e   :  { %v14501_v40 = vadd.f32 %v13233_v34, %v3361_v18  ;;  %v11863_v52 = vpop.f32.mrb[83].mxu0  ;;  %v13236_v18 = vld [vmem:[%s17374_s1 + $0xa] ss:$0 sm:$0xff] }
 0x710   :  { %v3401_v20 = vsel %vm1436_vm4, %v14501_v40, -inf  ;;  %v14505_v27 = vpop.eup %12821 }
 0x711   :  { %3402 = vmax.xlane.f32.xlu0 %v3401_v20  ;;  %v3518_v31 = vsel %vm1436_vm4, %v14505_v27, 0.0 }
 0x713   :  { %3821 = vrot.lane.b32.xlu1 %v13728_v36, %s13277_s26  ;;  %v2901_v9 = vpop.f32.mrb[84].mxu0 }
 0x714   :  { %v3363_v24 = vmul.f32 0.25, %v2901_v9  ;;  %v11874_v41 = vpop.f32.mrb[85].mxu0 }
 0x715   :  { %v2904_v14 = vpop.f32.mrb[86].mxu0  ;;  %3519 = vadd.xlane.f32.xlu0 %v3518_v31 }
 0x716   :  { %v14514_v12 = vadd.f32 %v13234_v62, %v3363_v24  ;;  %v11875_v22 = vpop.f32.mrb[87].mxu0  ;;  %v3430_v14 = vpop.xlane.xlu1 %3429 }
 0x717   :  { %3917 = vrot.lane.b32.xlu1 %v13738_v23, %s13277_s26  ;;  %v3450_v62 = vsub.f32 %v14447_v45, %v3430_v14 }
 0x718   :  { %v3407_v36 = vsel %vm1436_vm4, %v14514_v12, -inf }
 0x719   :  { %3408 = vmax.xlane.f32.xlu0 %v3407_v36  ;;  %v3479_v22 = vmul.f32 1.442695, %v3450_v62 }
 0x71b   :  { %4013 = vrot.lane.b32.xlu1 %v13748_v57, %s13277_s26  ;;  %v3001_v53 = vpop.f32.mrb[88].mxu0  ;;  %12823 = vpow2.f32 %v3479_v22 }
 0x71c   :  { %v3365_v58 = vmul.f32 0.25, %v3001_v53  ;;  %v11886_v42 = vpop.f32.mrb[89].mxu0  ;;  %v13237_v53 = vld [vmem:[%s17374_s1 + $0xc] ss:$0 sm:$0xff] }
 0x71d   :  { %v3004_v11 = vpop.f32.mrb[90].mxu0 }
 0x71e   :  { %v14525_v13 = vadd.f32 %v13235_v0, %v3365_v58  ;;  %v11887_v15 = vpop.f32.mrb[91].mxu0 }
 0x71f   :  { %4061 = vrot.lane.b32.xlu1 %v13743_v44, %s13277_s26 }
 0x720   :  { %v3413_v23 = vsel %vm1436_vm4, %v14525_v13, -inf }
 0x721   :  { %3414 = vmax.xlane.f32.xlu0 %v3413_v23 }
 0x723   :  { %4109 = vrot.lane.b32.xlu1 %v13758_v63, %s13277_s26  ;;  %v3101_v57 = vpop.f32.mrb[92].mxu0 }
 0x724   :  { %v3367_v26 = vmul.f32 0.25, %v3101_v57  ;;  %v11898_v35 = vpop.f32.mrb[93].mxu0 }
 0x725   :  { %v3104_v54 = vpop.f32.mrb[94].mxu0  ;;  %v14550_v0 = vpop.eup %12823 }
 0x726   :  { %v14536_v60 = vadd.f32 %v13236_v18, %v3367_v26  ;;  %v11899_v17 = vpop.f32.mrb[95].mxu0  ;;  %v3524_v15 = vsel %vm1436_vm4, %v14550_v0, 0.0  ;;  %v14561_v26 = vpop.xlane.xlu1 %3435 }
 0x728   :  { %v3419_v44 = vsel %vm1436_vm4, %v14536_v60, -inf }
 0x729   :  { %3420 = vmax.xlane.f32.xlu0 %v3419_v44  ;;  %v3683_v44 = vsel %vm1634_vm3, %v14458_v51, 0 }
 0x72b   :  { %v3201_v34 = vpop.f32.mrb[96].mxu0 }
 0x72c   :  { %v11910_v52 = vpop.f32.mrb[97].mxu0  ;;  %v3369_v36 = vmul.f32 0.25, %v3201_v34 }
 0x72d   :  { %v3204_v20 = vpop.f32.mrb[98].mxu0 }
 0x72e   :  { %v11911_v9 = vpop.f32.mrb[99].mxu0  ;;  %v14546_v58 = vadd.f32 %v13237_v53, %v3369_v36 }
 0x730   :  { %v3425_v11 = vsel %vm1436_vm4, %v14546_v58, -inf }
 0x733   :  { %v3301_v63 = vpop.f32.mrb[100].mxu0 }
 0x734   :  { %v11922_v24 = vpop.f32.mrb[101].mxu0  ;;  %v3371_v42 = vmul.f32 0.25, %v3301_v63 }
 0x735   :  { %v3304_v41 = vpop.f32.mrb[102].mxu0 }
 0x736   :  { %v11923_v31 = vpop.f32.mrb[103].mxu0 }
 0x73f   :  { %3773 = vrot.lane.b32.xlu0 %v13714_v33, %s13277_s26  ;;  %v13238_v33 = vld [vmem:[%s17374_s1 + $0xe] ss:$0 sm:$0xff] }
 0x740   :  { %v14555_v45 = vadd.f32 %v13238_v33, %v3371_v42 }
 0x742   :  { %v3431_v23 = vsel %vm1436_vm4, %v14555_v45, -inf }
 0x75e   :  { %3426 = vmax.xlane.f32.xlu0 %v3425_v11 }
 0x762   :  { %3525 = vadd.xlane.f32.xlu0 %v3524_v15 }
 0x766   :  { %3432 = vmax.xlane.f32.xlu0 %v3431_v23 }
 0x767   :  { %v3487_v57 = vpop.xlane.xlu0 %3486 }
 0x768   :  { %12825 = vrcp.f32 %v3487_v57 }
 0x76f   :  { %v3490_v35 = vpop.xlane.xlu1 %3489 }
 0x770   :  { %12827 = vrcp.f32 %v3490_v35 }
 0x772   :  { %v12826_v54 = vpop.eup %12825 }
 0x773   :  { %v3549_v18 = vmul.f32 %v12826_v54, %v14464_v32  ;;  %v3731_v32 = vsel %vm1634_vm3, %v14461_v46, 0 }
 0x775   :  { %v3565_v17 = vpack.c.bf16 %v3549_v18, %v3549_v18 }
 0x777   :  { %11933 = vmatmul.mubr.msk.bf16.vlgmr.msra.gmra.mrb[104].mxu0 %vm1436_vm4, %v3565_v17  ;;  %v3493_v34 = vpop.xlane.xlu0 %3492 }
 0x778   :  { %11943 = vmatpush3.bf16.msra.mxu0 %v3683_v44  ;;  %12829 = vrcp.f32 %v3493_v34  ;;  %11944 = vmatprep.mubr.msk.bf16.mxu0 %vm13272_vm1, %v17414_v25 }
 0x779   :  { %11954 = vmatprep.subr.bf16.mxu0 %v17414_v25 }
 0x77a   :  { %v12828_v52 = vpop.eup %12827 }
 0x77b   :  { %v3550_v20 = vmul.f32 %v12828_v52, %v14469_v47 }
 0x77d   :  { %v3566_v9 = vpack.c.bf16 %v3550_v20, %v3550_v20 }
 0x77f   :  { %11939 = vmatmul.mubr.msk.bf16.vlgmr.msra.gmra.mrb[120].mxu1 %vm1436_vm4, %v3566_v9  ;;  %v3496_v51 = vpop.xlane.xlu1 %3495 }
 0x780   :  { %11949 = vmatpush3.bf16.msra.mxu1 %v3731_v32  ;;  %12831 = vrcp.f32 %v3496_v51  ;;  %11950 = vmatprep.mubr.msk.bf16.mxu1 %vm13272_vm1, %v17414_v25 }
 0x781   :  { %11960 = vmatprep.subr.bf16.mxu1 %v17414_v25 }
 0x782   :  { %v12830_v63 = vpop.eup %12829 }
 0x783   :  { %v3551_v24 = vmul.f32 %v12830_v63, %v14474_v8 }
 0x785   :  { %v3567_v41 = vpack.c.bf16 %v3551_v24, %v3551_v24 }
 0x787   :  { %v3502_v31 = vpop.xlane.xlu1 %3501  ;;  %11945 = vmatmul.mubr.msk.bf16.vlgmr.msra.gmra.mrb[108].mxu0 %vm1436_vm4, %v3567_v41 }
 0x788   :  { %12833 = vrcp.f32 %v3502_v31  ;;  %11956 = vmatprep.mubr.msk.bf16.mxu0 %vm13272_vm1, %v17414_v25 }
 0x78a   :  { %v12832_v46 = vpop.eup %12831 }
 0x78b   :  { %v3552_v47 = vmul.f32 %v12832_v46, %v14479_v59 }
 0x78d   :  { %v3568_v14 = vpack.c.bf16 %v3552_v47, %v3552_v47 }
 0x78f   :  { %11951 = vmatmul.mubr.msk.bf16.vlgmr.msra.gmra.mrb[124].mxu1 %vm1436_vm4, %v3568_v14  ;;  %v3508_v62 = vpop.xlane.xlu1 %3507 }
 0x790   :  { %12835 = vrcp.f32 %v3508_v62  ;;  %11962 = vmatprep.mubr.msk.bf16.mxu1 %vm13272_vm1, %v17414_v25 }
 0x792   :  { %v12834_v8 = vpop.eup %12833 }
 0x793   :  { %v3822_v22 = vpop.permute.xlu1 %3821  ;;  %v3554_v36 = vmul.f32 %v12834_v8, %v14484_v10 }
 0x794   :  { %v3827_v53 = vsel %vm1634_vm3, %v3822_v22, 0 }
 0x795   :  { %11961 = vmatpush3.bf16.msra.mxu1 %v3827_v53  ;;  %v3570_v42 = vpack.c.bf16 %v3554_v36, %v3554_v36  ;;  %v3452_v36 = vsub.f32 %v14454_v19, %v14561_v26 }
 0x796   :  { %11972 = vmatprep.subr.bf16.mxu1 %v17414_v25 }
 0x797   :  { %v3918_v11 = vpop.permute.xlu1 %3917  ;;  %v3514_v59 = vpop.xlane.xlu0 %3513 }
 0x798   :  { %v3923_v33 = vsel %vm1634_vm3, %v3918_v11, 0  ;;  %12837 = vrcp.f32 %v3514_v59  ;;  %11963 = vmatmul.mubr.msk.bf16.vlgmr.msra.gmra.mrb[128].mxu1 %vm1436_vm4, %v3570_v42  ;;  %v3483_v42 = vmul.f32 1.442695, %v3452_v36 }
 0x799   :  { %11973 = vmatpush3.bf16.msra.mxu1 %v3923_v33  ;;  %11974 = vmatprep.mubr.msk.bf16.mxu1 %vm13272_vm1, %v17414_v25 }
 0x79a   :  { %v12836_v15 = vpop.eup %12835  ;;  %11984 = vmatprep.subr.bf16.mxu1 %v17414_v25 }
 0x79b   :  { %v4014_v10 = vpop.permute.xlu1 %4013  ;;  %v3556_v23 = vmul.f32 %v12836_v15, %v14489_v30 }
 0x79c   :  { %v4019_v17 = vsel %vm1634_vm3, %v4014_v10, 0 }
 0x79d   :  { %v3572_v57 = vpack.c.bf16 %v3556_v23, %v3556_v23 }
 0x79e   :  { %v3403_v35 = vpop.xlane.xlu0 %3402 }
 0x79f   :  { %v14594_v54 = vpop.permute.xlu1 %4061  ;;  %v3441_v18 = vsub.f32 %v14501_v40, %v3403_v35 }
 0x7a0   :  { %11975 = vmatmul.mubr.msk.bf16.vlgmr.msra.gmra.mrb[132].mxu1 %vm1436_vm4, %v3572_v57 }
 0x7a1   :  { %v3461_v44 = vmul.f32 1.442695, %v3441_v18  ;;  %11985 = vmatpush3.bf16.msra.mxu1 %v4019_v17  ;;  %11986 = vmatprep.mubr.msk.bf16.mxu1 %vm13272_vm1, %v17414_v25 }
 0x7a2   :  { %v12838_v34 = vpop.eup %12837  ;;  %v3520_v52 = vpop.xlane.xlu0 %3519  ;;  %11996 = vmatprep.subr.bf16.mxu1 %v17414_v25 }
 0x7a3   :  { %12839 = vpow2.f32 %v3461_v44  ;;  %v3558_v30 = vmul.f32 %v12838_v34, %v14494_v6  ;;  %v4110_v20 = vpop.permute.xlu1 %4109 }
 0x7a4   :  { %12841 = vrcp.f32 %v3520_v52  ;;  %v4115_v40 = vsel %vm1634_vm3, %v4110_v20, 0 }
 0x7a5   :  { %v3574_v9 = vpack.c.bf16 %v3558_v30, %v3558_v30 }
 0x7a6   :  { %v3409_v32 = vpop.xlane.xlu0 %3408 }
 0x7a8   :  { %11987 = vmatmul.mubr.msk.bf16.vlgmr.msra.gmra.mrb[136].mxu1 %vm1436_vm4, %v3574_v9 }
 0x7a9   :  { %11997 = vmatpush3.bf16.msra.mxu1 %v4115_v40  ;;  %11998 = vmatprep.mubr.msk.bf16.mxu1 %vm13272_vm1, %v17414_v25 }
 0x7aa   :  { %12008 = vmatprep.subr.bf16.mxu1 %v17414_v25 }
 0x7ad   :  { %v14608_v51 = vpop.eup %12839 }
 0x7ae   :  { %v12842_v63 = vpop.eup %12841  ;;  %v3415_v24 = vpop.xlane.xlu0 %3414  ;;  %v3497_v6 = vsel %vm1436_vm4, %v14608_v51, 0.0 }
 0x7af   :  { %v3445_v41 = vsub.f32 %v14525_v13, %v3415_v24  ;;  %3498 = vadd.xlane.f32.xlu0 %v3497_v6  ;;  %v3560_v31 = vmul.f32 %v12842_v63, %v14505_v27  ;;  %v3443_v13 = vsub.f32 %v14514_v12, %v3409_v32 }
 0x7b1   :  { %v3469_v46 = vmul.f32 1.442695, %v3445_v41  ;;  %v3576_v47 = vpack.c.bf16 %v3560_v31, %v3560_v31  ;;  %v3465_v53 = vmul.f32 1.442695, %v3443_v13 }
 0x7b3   :  { %12843 = vpow2.f32 %v3469_v46  ;;  %11999 = vmatmul.mubr.msk.bf16.vlgmr.msra.gmra.mrb[140].mxu1 %vm1436_vm4, %v3576_v47 }
 0x7b4   :  { %12010 = vmatprep.mubr.msk.bf16.mxu1 %vm13272_vm1, %v17414_v25  ;;  %12845 = vpow2.f32 %v3465_v53 }
 0x7b5   :  { %12847 = vpow2.f32 %v3483_v42 }
 0x7b6   :  { %v3421_v14 = vpop.xlane.xlu0 %3420 }
 0x7b7   :  { %v3447_v11 = vsub.f32 %v14536_v60, %v3421_v14 }
 0x7b9   :  { %v3473_v33 = vmul.f32 1.442695, %v3447_v11 }
 0x7ba   :  { %v3774_v62 = vpop.permute.xlu0 %3773 }
 0x7bb   :  { %v3779_v8 = vsel %vm1634_vm3, %v3774_v62, 0  ;;  %12849 = vpow2.f32 %v3473_v33 }
 0x7bc   :  { %11955 = vmatpush3.bf16.msra.mxu0 %v3779_v8 }
 0x7bd   :  { %v14618_v22 = vpop.eup %12843  ;;  %11966 = vmatprep.subr.bf16.mxu0 %v17414_v25 }
 0x7be   :  { %v3509_v27 = vsel %vm1436_vm4, %v14618_v22, 0.0  ;;  %v14631_v59 = vpop.eup %12845 }
 0x7bf   :  { %3510 = vadd.xlane.f32.xlu1 %v3509_v27  ;;  %v14635_v15 = vpop.eup %12847 }
 0x7c5   :  { %3869 = vrot.lane.b32.xlu0 %v13723_v38, %s13277_s26  ;;  %v3503_v38 = vsel %vm1436_vm4, %v14631_v59, 0.0  ;;  %v14640_v60 = vpop.eup %12849 }
 0x7c6   :  { %v3515_v57 = vsel %vm1436_vm4, %v14640_v60, 0.0 }
 0x7d0   :  { %4205 = vrot.lane.b32.xlu1 %v13768_v7, %s13277_s26  ;;  %v3530_v7 = vsel %vm1436_vm4, %v14635_v15, 0.0 }
 0x7e4   :  { %3504 = vadd.xlane.f32.xlu0 %v3503_v38 }
 0x7e8   :  { %3531 = vadd.xlane.f32.xlu0 %v3530_v7 }
 0x7eb   :  { %v3427_v19 = vpop.xlane.xlu0 %3426 }
 0x7ec   :  { %v3449_v12 = vsub.f32 %v14546_v58, %v3427_v19 }
 0x7ee   :  { %v3477_v26 = vmul.f32 1.442695, %v3449_v12 }
 0x7ef   :  { %v3526_v10 = vpop.xlane.xlu0 %3525 }
 0x7f0   :  { %12851 = vpow2.f32 %v3477_v26 }
 0x7f3   :  { %v3433_v23 = vpop.xlane.xlu0 %3432 }
 0x7f4   :  { %v3451_v35 = vsub.f32 %v14555_v45, %v3433_v23  ;;  %3516 = vadd.xlane.f32.xlu1 %v3515_v57 }
 0x7f6   :  { %v3481_v18 = vmul.f32 1.442695, %v3451_v35 }
 0x7f8   :  { %12853 = vpow2.f32 %v3481_v18 }
 0x7fa   :  { %v14645_v17 = vpop.eup %12851 }
 0x7fb   :  { %v3521_v44 = vsel %vm1436_vm4, %v14645_v17, 0.0 }
 0x7fc   :  { %3522 = vadd.xlane.f32.xlu1 %v3521_v44 }
 0x7fe   :  { %3965 = vrot.lane.b32.xlu0 %v13734_v50, %s13277_s26 }
 0x802   :  { %v14651_v58 = vpop.eup %12853  ;;  %4157 = vrot.lane.b32.xlu0 %v13754_v21, %s13277_s26 }
 0x803   :  { %v3527_v45 = vsel %vm1436_vm4, %v14651_v58, 0.0 }
 0x804   :  { %3528 = vadd.xlane.f32.xlu1 %v3527_v45 }
 0x806   :  { %4253 = vrot.lane.b32.xlu0 %v13763_v2, %s13277_s26 }
 0x815   :  { %4301 = vrot.lane.b32.xlu1 %v13774_v43, %s13277_s26 }
 0x83c   :  { %v3499_v34 = vpop.xlane.xlu0 %3498 }
 0x83d   :  { %12855 = vrcp.f32 %v3499_v34 }
 0x83e   :  { %12857 = vrcp.f32 %v3526_v10 }
 0x840   :  { %v3870_v30 = vpop.permute.xlu0 %3869 }
 0x841   :  { %v3875_v32 = vsel %vm1634_vm3, %v3870_v30, 0 }
 0x847   :  { %v12856_v52 = vpop.eup %12855 }
 0x848   :  { %v3553_v50 = vmul.f32 %v12856_v52, %v14608_v51  ;;  %v12858_v40 = vpop.eup %12857 }
 0x849   :  { %v3562_v43 = vmul.f32 %v12858_v40, %v14550_v0 }
 0x84a   :  { %v14662_v20 = vpop.f32.mrb[104].mxu0  ;;  %v3569_v21 = vpack.c.bf16 %v3553_v50, %v3553_v50 }
 0x84b   :  { %v11934_v9 = vpop.f32.mrb[105].mxu0  ;;  %v3578_v47 = vpack.c.bf16 %v3562_v43, %v3562_v43 }
 0x84c   :  { %v3626_v63 = vpop.f32.mrb[106].mxu0  ;;  %v3511_v24 = vpop.xlane.xlu1 %3510  ;;  %11957 = vmatmul.mubr.msk.bf16.vlgmr.msra.gmra.mrb[112].mxu0 %vm1436_vm4, %v3569_v21 }
 0x84d   :  { %v11935_v2 = vpop.f32.mrb[107].mxu0  ;;  %11967 = vmatpush3.bf16.msra.mxu0 %v3875_v32  ;;  %11968 = vmatprep.mubr.msk.bf16.mxu0 %vm13272_vm1, %v17414_v25 }
 0x84e   :  { %11978 = vmatprep.subr.bf16.mxu0 %v17414_v25 }
 0x850   :  { %v4206_v51 = vpop.permute.xlu1 %4205 }
 0x851   :  { %v4211_v6 = vsel %vm1634_vm3, %v4206_v51, 0 }
 0x852   :  { %v14671_v41 = vpop.f32.mrb[120].mxu1  ;;  %12009 = vmatpush3.bf16.msra.mxu1 %v4211_v6  ;;  %v4067_v6 = vsel %vm1634_vm3, %v14594_v54, 0 }
 0x853   :  { %v4349_v31 = vpack.c.bf16 %v14671_v41, %v14662_v20  ;;  %v11940_v46 = vpop.f32.mrb[121].mxu1  ;;  %12020 = vmatprep.subr.bf16.mxu1 %v17414_v25 }
 0x854   :  { %v3674_v14 = vpop.f32.mrb[122].mxu1 }
 0x855   :  { %v11941_v62 = vpop.f32.mrb[123].mxu1  ;;  %12011 = vmatmul.mubr.msk.bf16.vlgmr.msra.gmra.mrb[144].mxu1 %vm1436_vm4, %v3578_v47 }
 0x856   :  { %12022 = vmatprep.mubr.msk.bf16.mxu1 %vm13272_vm1, %v17414_v25 }
 0x85a   :  { %v14679_v0 = vpop.f32.mrb[108].mxu0 }
 0x85b   :  { %v11946_v8 = vpop.f32.mrb[109].mxu0 }
 0x85c   :  { %v3722_v27 = vpop.f32.mrb[110].mxu0 }
 0x85d   :  { %v11947_v13 = vpop.f32.mrb[111].mxu0 }
 0x862   :  { %v14681_v36 = vpop.f32.mrb[124].mxu1 }
 0x863   :  { %v4350_v53 = vpack.c.bf16 %v14681_v36, %v14679_v0  ;;  %v11952_v42 = vpop.f32.mrb[125].mxu1 }
 0x864   :  { %v3770_v11 = vpop.f32.mrb[126].mxu1 }
 0x865   :  { %v11953_v33 = vpop.f32.mrb[127].mxu1 }
 0x86b   :  { %v14685_v38 = vpop.f32.mrb[128].mxu1 }
 0x86c   :  { %v11964_v7 = vpop.f32.mrb[129].mxu1 }
 0x86d   :  { %v3866_v19 = vpop.f32.mrb[130].mxu1 }
 0x86e   :  { %v11965_v12 = vpop.f32.mrb[131].mxu1 }
 0x871   :  { %v3505_v26 = vpop.xlane.xlu0 %3504 }
 0x872   :  { %12859 = vrcp.f32 %v3505_v26  ;;  %v12690_v26 = vld [vmem:[%s17375_s6 + $0x8] sm:$0xff]  }
 0x873   :  { %v14687_v10 = vpop.f32.mrb[132].mxu1  ;;  %12861 = vrcp.f32 %v3511_v24 }
 0x874   :  { %v11976_v23 = vpop.f32.mrb[133].mxu1 }
 0x875   :  { %v3962_v57 = vpop.f32.mrb[134].mxu1  ;;  %v3532_v18 = vpop.xlane.xlu0 %3531 }
 0x876   :  { %v11977_v35 = vpop.f32.mrb[135].mxu1 }
 0x879   :  { %v3966_v30 = vpop.permute.xlu0 %3965 }
 0x87a   :  { %v3971_v32 = vsel %vm1634_vm3, %v3966_v30, 0 }
 0x87b   :  { %v14689_v44 = vpop.f32.mrb[136].mxu1 }
 0x87c   :  { %v12860_v45 = vpop.eup %12859  ;;  %v11988_v34 = vpop.f32.mrb[137].mxu1 }
 0x87d   :  { %v4058_v52 = vpop.f32.mrb[138].mxu1  ;;  %v3555_v50 = vmul.f32 %v12860_v45, %v14631_v59  ;;  %v12862_v40 = vpop.eup %12861 }
 0x87e   :  { %v11989_v21 = vpop.f32.mrb[139].mxu1  ;;  %v3557_v24 = vmul.f32 %v12862_v40, %v14618_v22  ;;  %v4158_v62 = vpop.permute.xlu0 %4157 }
 0x87f   :  { %v3571_v9 = vpack.c.bf16 %v3555_v50, %v3555_v50  ;;  %v4163_v13 = vsel %vm1634_vm3, %v4158_v62, 0 }
 0x880   :  { %v3573_v43 = vpack.c.bf16 %v3557_v24, %v3557_v24 }
 0x881   :  { %v3517_v63 = vpop.xlane.xlu1 %3516  ;;  %11969 = vmatmul.mubr.msk.bf16.vlgmr.msra.gmra.mrb[116].mxu0 %vm1436_vm4, %v3571_v9 }
 0x882   :  { %12863 = vrcp.f32 %v3517_v63  ;;  %11979 = vmatpush3.bf16.msra.mxu0 %v3971_v32  ;;  %11980 = vmatprep.mubr.msk.bf16.mxu0 %vm13272_vm1, %v17414_v25  ;;  %v4254_v7 = vpop.permute.xlu0 %4253 }
 0x883   :  { %11990 = vmatprep.subr.bf16.mxu0 %v17414_v25  ;;  %12865 = vrcp.f32 %v3532_v18  ;;  %v4259_v57 = vsel %vm1634_vm3, %v4254_v7, 0 }
 0x886   :  { %v14698_v2 = vpop.f32.mrb[140].mxu1 }
 0x887   :  { %v12000_v59 = vpop.f32.mrb[141].mxu1 }
 0x888   :  { %v4154_v51 = vpop.f32.mrb[142].mxu1 }
 0x889   :  { %v12001_v46 = vpop.f32.mrb[143].mxu1  ;;  %v3523_v47 = vpop.xlane.xlu1 %3522  ;;  %11981 = vmatmul.mubr.msk.bf16.vlgmr.msra.gmra.mrb[120].mxu0 %vm1436_vm4, %v3573_v43 }
 0x88a   :  { %12867 = vrcp.f32 %v3523_v47  ;;  %11991 = vmatpush3.bf16.msra.mxu0 %v4067_v6  ;;  %11992 = vmatprep.mubr.msk.bf16.mxu0 %vm13272_vm1, %v17414_v25 }
 0x88b   :  { %12002 = vmatprep.subr.bf16.mxu0 %v17414_v25 }
 0x88c   :  { %v12864_v22 = vpop.eup %12863 }
 0x88d   :  { %v3559_v14 = vmul.f32 %v12864_v22, %v14640_v60  ;;  %v12866_v27 = vpop.eup %12865 }
 0x88e   :  { %v3564_v11 = vmul.f32 %v12866_v27, %v14635_v15 }
 0x88f   :  { %v3575_v8 = vpack.c.bf16 %v3559_v14, %v3559_v14 }
 0x890   :  { %v3580_v23 = vpack.c.bf16 %v3564_v11, %v3564_v11 }
 0x891   :  { %v3529_v54 = vpop.xlane.xlu1 %3528  ;;  %11993 = vmatmul.mubr.msk.bf16.vlgmr.msra.gmra.mrb[124].mxu0 %vm1436_vm4, %v3575_v8 }
 0x892   :  { %12869 = vrcp.f32 %v3529_v54  ;;  %12003 = vmatpush3.bf16.msra.mxu0 %v4163_v13  ;;  %12004 = vmatprep.mubr.msk.bf16.mxu0 %vm13272_vm1, %v17414_v25 }
 0x893   :  { %12014 = vmatprep.subr.bf16.mxu0 %v17414_v25 }
 0x894   :  { %v12868_v42 = vpop.eup %12867 }
 0x895   :  { %v4302_v33 = vpop.permute.xlu1 %4301  ;;  %v3561_v60 = vmul.f32 %v12868_v42, %v14645_v17 }
 0x896   :  { %v4307_v19 = vsel %vm1634_vm3, %v4302_v33, 0  ;;  %v14746_v33 = vld [vmem:[%s17376_s7] ss:$0 sm:$0xff] }
 0x897   :  { %12021 = vmatpush3.bf16.msra.mxu1 %v4307_v19  ;;  %v3577_v12 = vpack.c.bf16 %v3561_v60, %v3561_v60 }
 0x899   :  { %12005 = vmatmul.mubr.msk.bf16.vlgmr.msra.gmra.mrb[128].mxu0 %vm1436_vm4, %v3577_v12 }
 0x89a   :  { %12015 = vmatpush3.bf16.msra.mxu0 %v4259_v57  ;;  %12023 = vmatmul.mubr.msk.bf16.vlgmr.msra.gmra.mrb[148].mxu1 %vm1436_vm4, %v3580_v23 }
 0x89b   :  { %12016 = vmatprep.mubr.msk.bf16.mxu0 %vm13272_vm1, %v17414_v25  ;;  %12026 = vmatprep.subr.bf16.mxu0 %v12690_v26 }
 0x89c   :  { %v12870_v15 = vpop.eup %12869 }
 0x89d   :  { %v3563_v17 = vmul.f32 %v12870_v15, %v14651_v58 }
 0x89f   :  { %v3579_v35 = vpack.c.bf16 %v3563_v17, %v3563_v17 }
 0x8a1   :  { %12017 = vmatmul.mubr.msk.bf16.vlgmr.msra.gmra.mrb[132].mxu0 %vm1436_vm4, %v3579_v35 }
 0x8a2   :  { %12028 = vmatprep.mubr.msk.bf16.mxu0 %vm526_vm2, %v4349_v31  ;;  %12027 = vmatpush3.bf16.msra.mxu0 %v12690_v26 }
 0x8a9   :  { %12029 = vmatmul.mubr.msk.bf16.vlgmr.msra.gmra.mrb[64].mxu0 %vm526_vm2, %v4350_v53 }
 0x91f   :  { %v3815_v18 = vpop.f32.mrb[112].mxu0 }
 0x920   :  { %v4351_v45 = vpack.c.bf16 %v14685_v38, %v3815_v18  ;;  %v11958_v34 = vpop.f32.mrb[113].mxu0 }
 0x921   :  { %v3818_v52 = vpop.f32.mrb[114].mxu0 }
 0x922   :  { %v11959_v58 = vpop.f32.mrb[115].mxu0  ;;  %12032 = vmatprep.mubr.msk.bf16.mxu0 %vm526_vm2, %v4351_v45 }
 0x928   :  { %v4247_v50 = vpop.f32.mrb[144].mxu1 }
 0x929   :  { %v12012_v30 = vpop.f32.mrb[145].mxu1 }
 0x92a   :  { %v4250_v21 = vpop.f32.mrb[146].mxu1 }
 0x92b   :  { %v12013_v20 = vpop.f32.mrb[147].mxu1 }
 0x954   :  { %v3911_v41 = vpop.f32.mrb[116].mxu0 }
 0x955   :  { %v4352_v31 = vpack.c.bf16 %v14687_v10, %v3911_v41  ;;  %v11970_v9 = vpop.f32.mrb[117].mxu0 }
 0x956   :  { %v3914_v40 = vpop.f32.mrb[118].mxu0 }
 0x957   :  { %v11971_v0 = vpop.f32.mrb[119].mxu0  ;;  %12033 = vmatmul.mubr.msk.bf16.gmra.mrb[68].mxu0 %vm526_vm2, %v4352_v31 }
 0x95c   :  { %v4007_v36 = vpop.f32.mrb[120].mxu0 }
 0x95d   :  { %v4353_v53 = vpack.c.bf16 %v14689_v44, %v4007_v36  ;;  %v11982_v38 = vpop.f32.mrb[121].mxu0 }
 0x95e   :  { %v4010_v32 = vpop.f32.mrb[122].mxu0 }
 0x95f   :  { %v11983_v63 = vpop.f32.mrb[123].mxu0  ;;  %12036 = vmatprep.mubr.msk.bf16.mxu0 %vm526_vm2, %v4353_v53 }
 0x964   :  { %v4103_v24 = vpop.f32.mrb[124].mxu0 }
 0x965   :  { %v4354_v59 = vpack.c.bf16 %v14698_v2, %v4103_v24  ;;  %v11994_v43 = vpop.f32.mrb[125].mxu0 }
 0x966   :  { %v4106_v51 = vpop.f32.mrb[126].mxu0 }
 0x967   :  { %v11995_v6 = vpop.f32.mrb[127].mxu0  ;;  %12037 = vmatmul.mubr.msk.bf16.gmra.mrb[72].mxu0 %vm526_vm2, %v4354_v59 }
 0x96c   :  { %v4199_v10 = vpop.f32.mrb[128].mxu0 }
 0x96d   :  { %v4355_v46 = vpack.c.bf16 %v4247_v50, %v4199_v10  ;;  %v12006_v47 = vpop.f32.mrb[129].mxu0  ;;  %v4343_v22 = vpop.f32.mrb[148].mxu1 }
 0x96e   :  { %v4202_v14 = vpop.f32.mrb[130].mxu0  ;;  %v12024_v62 = vpop.f32.mrb[149].mxu1 }
 0x96f   :  { %v12007_v44 = vpop.f32.mrb[131].mxu0  ;;  %v4346_v8 = vpop.f32.mrb[150].mxu1  ;;  %12040 = vmatprep.mubr.msk.bf16.mxu0 %vm526_vm2, %v4355_v46 }
 0x970   :  { %v12025_v27 = vpop.f32.mrb[151].mxu1 }
 0x974   :  { %v4295_v13 = vpop.f32.mrb[132].mxu0 }
 0x975   :  { %v4356_v54 = vpack.c.bf16 %v4343_v22, %v4295_v13  ;;  %v12018_v42 = vpop.f32.mrb[133].mxu0 }
 0x976   :  { %v4298_v2 = vpop.f32.mrb[134].mxu0 }
 0x977   :  { %v12019_v11 = vpop.f32.mrb[135].mxu0  ;;  %12041 = vmatmul.mubr.msk.bf16.gmra.mrb[76].mxu0 %vm526_vm2, %v4356_v54 }
 0x97c   :  { %v12030_v60 = vpop.f32.mrb[64].mxu0 }
 0x97d   :  { %v4424_v7 = vpop.f32.mrb[65].mxu0  ;;  %v12616_v19 = vadd.f32 %v12030_v60, %v14746_v33 }
 0x97e   :  { %v12617_v12 = vadd.f32 %v14746_v33, %v4424_v7  ;;  %v12031_v26 = vpop.f32.mrb[66].mxu0 }
 0x97f   :  { %v4427_v23 = vpop.f32.mrb[67].mxu0  ;;  %v14755_v17 = vadd.f32 %v12616_v19, %v13602_v4  ;;  %v12618_v35 = vadd.f32 %v12031_v26, %v14746_v33 }
 0x980   :  { %v14751_v57 = vadd.f32 %v12617_v12, %v13589_v28  ;;  %v12619_v15 = vadd.f32 %v14746_v33, %v4427_v23 }
 0x981   :  { %v14766_v28 = vadd.f32 %v12618_v35, %v13605_v5  ;;  %v4527_v4 = vsel %vm84_vm0, %v14755_v17, 0.0 }
 0x982   :  { %v14759_v18 = vadd.f32 %v12619_v15, %v13592_v29  ;;  %v4521_v45 = vsel %vm84_vm0, %v14751_v57, 0.0  ;;  %v17415_v15 = vld [vmem:[#allocation2_spill] sm:$0xff] }
 0x983   :  { %4522 = vadd.xlane.f32.xlu0 %v4521_v45  ;;  %v4530_v52 = vsel %vm84_vm0, %v14766_v28, 0.0 }
 0x984   :  { %v4524_v34 = vsel %vm84_vm0, %v14759_v18, 0.0 }
 0x985   :  { %4525 = vadd.xlane.f32.xlu1 %v4524_v34 }
 0x987   :  { %4528 = vadd.xlane.f32.xlu0 %v4527_v4 }
 0x98b   :  { %4531 = vadd.xlane.f32.xlu0 %v4530_v52 }
 0xa10   :  { %v4523_v22 = vpop.xlane.xlu0 %4522 }
 0xa11   :  { %v4569_v44 = vmul.f32 0.03125, %v4523_v22 }
 0xa12   :  { %v4526_v8 = vpop.xlane.xlu1 %4525 }
 0xa13   :  { %v4570_v2 = vmul.f32 0.03125, %v4526_v8  ;;  %v14828_v19 = vsub.f32 %v14751_v57, %v4569_v44 }
 0xa2a   :  { %v12034_v29 = vpop.f32.mrb[68].mxu0 }
 0xa2b   :  { %v4440_v58 = vpop.f32.mrb[69].mxu0  ;;  %v12620_v50 = vadd.f32 %v12034_v29, %v14746_v33  ;;  %v4601_v29 = vmul.f32 %v14828_v19, %v14828_v19 }
 0xa2c   :  { %v12621_v30 = vadd.f32 %v14746_v33, %v4440_v58  ;;  %v12035_v21 = vpop.f32.mrb[70].mxu0 }
 0xa2d   :  { %v4443_v20 = vpop.f32.mrb[71].mxu0  ;;  %v12622_v5 = vadd.f32 %v12035_v21, %v14746_v33  ;;  %v14780_v9 = vadd.f32 %v12620_v50, %v13628_v39 }
 0xa2e   :  { %v14775_v41 = vadd.f32 %v12621_v30, %v13615_v55  ;;  %v12623_v31 = vadd.f32 %v14746_v33, %v4443_v20 }
 0xa2f   :  { %v14788_v36 = vadd.f32 %v12622_v5, %v13631_v1  ;;  %v4539_v53 = vsel %vm84_vm0, %v14780_v9, 0.0 }
 0xa30   :  { %v14783_v40 = vadd.f32 %v12623_v31, %v13618_v16  ;;  %v4533_v0 = vsel %vm84_vm0, %v14775_v41, 0.0  ;;  %v12691_v31 = vld [vmem:[%s17377_s10] sm:$0xff]  }
 0xa31   :  { %4534 = vadd.xlane.f32.xlu0 %v4533_v0  ;;  %v4542_v39 = vsel %vm84_vm0, %v14788_v36, 0.0  ;;  %12044 = vmatprep.subr.bf16.mxu1 %v12691_v31  ;;  %v12692_v0 = vld [vmem:[%s17377_s10 + $0x8] sm:$0xff]  }
 0xa32   :  { %v4536_v55 = vsel %vm84_vm0, %v14783_v40, 0.0  ;;  %12045 = vmatpush3.bf16.msra.mxu1 %v12691_v31 }
 0xa33   :  { %4537 = vadd.xlane.f32.xlu1 %v4536_v55  ;;  %12046 = vmatprep.subr.bf16.mxu1 %v12692_v0 }
 0xa35   :  { %4540 = vadd.xlane.f32.xlu0 %v4539_v53 }
 0xa36   :  { %12047 = vmatpush3.bf16.msra.mxu1 %v12692_v0 }
 0xa37   :  { %4543 = vadd.xlane.f32.xlu1 %v4542_v39 }
 0xa3a   :  { %v12038_v16 = vpop.f32.mrb[72].mxu0 }
 0xa3b   :  { %v4456_v38 = vpop.f32.mrb[73].mxu0  ;;  %v12624_v32 = vadd.f32 %v12038_v16, %v14746_v33 }
 0xa3c   :  { %v12625_v63 = vadd.f32 %v14746_v33, %v4456_v38  ;;  %v12039_v1 = vpop.f32.mrb[74].mxu0 }
 0xa3d   :  { %v4459_v24 = vpop.f32.mrb[75].mxu0  ;;  %v12626_v43 = vadd.f32 %v12039_v1, %v14746_v33  ;;  %v14804_v6 = vadd.f32 %v12624_v32, %v13654_v56  ;;  %v4529_v56 = vpop.xlane.xlu0 %4528 }
 0xa3e   :  { %v14799_v59 = vadd.f32 %v12625_v63, %v13641_v48  ;;  %v12627_v51 = vadd.f32 %v14746_v33, %v4459_v24  ;;  %v4571_v26 = vmul.f32 0.03125, %v4529_v56 }
 0xa3f   :  { %v14812_v47 = vadd.f32 %v12626_v43, %v13657_v37  ;;  %v4551_v14 = vsel %vm84_vm0, %v14804_v6, 0.0 }
 0xa40   :  { %v14807_v10 = vadd.f32 %v12627_v51, %v13644_v49  ;;  %v4545_v46 = vsel %vm84_vm0, %v14799_v59, 0.0 }
 0xa41   :  { %4546 = vadd.xlane.f32.xlu0 %v4545_v46  ;;  %v4554_v49 = vsel %vm84_vm0, %v14812_v47, 0.0  ;;  %v4532_v12 = vpop.xlane.xlu0 %4531 }
 0xa42   :  { %v4548_v48 = vsel %vm84_vm0, %v14807_v10, 0.0  ;;  %v4572_v34 = vmul.f32 0.03125, %v4532_v12 }
 0xa43   :  { %4549 = vadd.xlane.f32.xlu1 %v4548_v48 }
 0xa45   :  { %4552 = vadd.xlane.f32.xlu0 %v4551_v14 }
 0xa47   :  { %4555 = vadd.xlane.f32.xlu1 %v4554_v49 }
 0xa4a   :  { %v12042_v62 = vpop.f32.mrb[76].mxu0 }
 0xa4b   :  { %v4472_v27 = vpop.f32.mrb[77].mxu0  ;;  %v12628_v37 = vadd.f32 %v12042_v62, %v14746_v33 }
 0xa4c   :  { %v12629_v13 = vadd.f32 %v14746_v33, %v4472_v27  ;;  %v12043_v54 = vpop.f32.mrb[78].mxu0 }
 0xa4d   :  { %v4475_v42 = vpop.f32.mrb[79].mxu0  ;;  %v12630_v60 = vadd.f32 %v12043_v54, %v14746_v33  ;;  %v14831_v23 = vadd.f32 %v12628_v37, %v13679_v3  ;;  %v14847_v3 = vsub.f32 %v14755_v17, %v4571_v26  ;;  %v4617_v17 = vsel %vm84_vm0, %v4601_v29, 0.0 }
 0xa4e   :  { %v14823_v11 = vadd.f32 %v12629_v13, %v13667_v61  ;;  %v12631_v7 = vadd.f32 %v14746_v33, %v4475_v42  ;;  %v14839_v61 = vsub.f32 %v14759_v18, %v4570_v2  ;;  %v17416_v33 = vld [vmem:[#allocation3_spill] sm:$0xff]  ;;  %v14854_v18 = vsub.f32 %v14766_v28, %v4572_v34 }
 0xa4f   :  { %v14842_v4 = vadd.f32 %v12630_v60, %v17416_v33  ;;  %v4563_v52 = vsel %vm84_vm0, %v14831_v23, 0.0  ;;  %v4603_v30 = vmul.f32 %v14847_v3, %v14847_v3 }
 0xa50   :  { %v14834_v35 = vadd.f32 %v12631_v7, %v17415_v15  ;;  %v4557_v45 = vsel %vm84_vm0, %v14823_v11, 0.0  ;;  %v4602_v50 = vmul.f32 %v14839_v61, %v14839_v61  ;;  %v4604_v20 = vmul.f32 %v14854_v18, %v14854_v18 }
 0xa51   :  { %4558 = vadd.xlane.f32.xlu0 %v4557_v45  ;;  %v4566_v58 = vsel %vm84_vm0, %v14842_v4, 0.0  ;;  %v4623_v28 = vsel %vm84_vm0, %v4603_v30, 0.0 }
 0xa52   :  { %v4560_v57 = vsel %vm84_vm0, %v14834_v35, 0.0  ;;  %v4620_v21 = vsel %vm84_vm0, %v4602_v50, 0.0  ;;  %v4626_v5 = vsel %vm84_vm0, %v4604_v20, 0.0 }
 0xa53   :  { %4561 = vadd.xlane.f32.xlu1 %v4560_v57 }
 0xa55   :  { %4564 = vadd.xlane.f32.xlu0 %v4563_v52 }
 0xa57   :  { %4567 = vadd.xlane.f32.xlu1 %v4566_v58 }
 0xa59   :  { %4618 = vadd.xlane.f32.xlu0 %v4617_v17 }
 0xa5b   :  { %4621 = vadd.xlane.f32.xlu1 %v4620_v21 }
 0xa5d   :  { %4624 = vadd.xlane.f32.xlu0 %v4623_v28 }
 0xa5f   :  { %4627 = vadd.xlane.f32.xlu1 %v4626_v5 }
 0xabe   :  { %v4535_v55 = vpop.xlane.xlu0 %4534 }
 0xabf   :  { %v4573_v53 = vmul.f32 0.03125, %v4535_v55 }
 0xac0   :  { %v4538_v39 = vpop.xlane.xlu1 %4537 }
 0xac1   :  { %v14875_v16 = vsub.f32 %v14775_v41, %v4573_v53  ;;  %v4574_v38 = vmul.f32 0.03125, %v4538_v39 }
 0xac2   :  { %v4541_v32 = vpop.xlane.xlu0 %4540 }
 0xac3   :  { %v14878_v63 = vsub.f32 %v14783_v40, %v4574_v38  ;;  %v4575_v1 = vmul.f32 0.03125, %v4541_v32  ;;  %v4605_v24 = vmul.f32 %v14875_v16, %v14875_v16 }
 0xac4   :  { %v4544_v43 = vpop.xlane.xlu1 %4543 }
 0xac5   :  { %v14883_v51 = vsub.f32 %v14780_v9, %v4575_v1  ;;  %v4576_v46 = vmul.f32 0.03125, %v4544_v43  ;;  %v4629_v48 = vsel %vm84_vm0, %v4605_v24, 0.0  ;;  %v4606_v41 = vmul.f32 %v14878_v63, %v14878_v63 }
 0xac6   :  { %4630 = vadd.xlane.f32.xlu0 %v4629_v48 }
 0xac7   :  { %v14889_v22 = vsub.f32 %v14788_v36, %v4576_v46  ;;  %v4632_v40 = vsel %vm84_vm0, %v4606_v41, 0.0  ;;  %v4607_v14 = vmul.f32 %v14883_v51, %v14883_v51 }
 0xac8   :  { %4633 = vadd.xlane.f32.xlu1 %v4632_v40 }
 0xac9   :  { %v4635_v49 = vsel %vm84_vm0, %v4607_v14, 0.0  ;;  %v4608_v9 = vmul.f32 %v14889_v22, %v14889_v22 }
 0xaca   :  { %4636 = vadd.xlane.f32.xlu0 %v4635_v49 }
 0xacb   :  { %v4638_v56 = vsel %vm84_vm0, %v4608_v9, 0.0  ;;  %v14949_v9 = vld [vmem:[%s17378_s8] ss:$0 sm:$0xff] }
 0xacc   :  { %4639 = vadd.xlane.f32.xlu1 %v4638_v56 }
 0xace   :  { %v4547_v62 = vpop.xlane.xlu0 %4546 }
 0xacf   :  { %v4577_v44 = vmul.f32 0.03125, %v4547_v62 }
 0xad0   :  { %v4550_v8 = vpop.xlane.xlu1 %4549 }
 0xad1   :  { %v14899_v36 = vsub.f32 %v14799_v59, %v4577_v44  ;;  %v4578_v27 = vmul.f32 0.03125, %v4550_v8 }
 0xad2   :  { %v4553_v37 = vpop.xlane.xlu0 %4552 }
 0xad3   :  { %v14902_v13 = vsub.f32 %v14807_v10, %v4578_v27  ;;  %v4579_v54 = vmul.f32 0.03125, %v4553_v37  ;;  %v4609_v42 = vmul.f32 %v14899_v36, %v14899_v36  ;;  %v14957_v37 = vld [vmem:[%s17379_s9] ss:$0 sm:$0xff] }
 0xad4   :  { %v4556_v2 = vpop.xlane.xlu1 %4555 }
 0xad5   :  { %v14907_v60 = vsub.f32 %v14804_v6, %v4579_v54  ;;  %v4580_v7 = vmul.f32 0.03125, %v4556_v2  ;;  %v4641_v12 = vsel %vm84_vm0, %v4609_v42, 0.0  ;;  %v4610_v59 = vmul.f32 %v14902_v13, %v14902_v13 }
 0xad6   :  { %4642 = vadd.xlane.f32.xlu0 %v4641_v12 }
 0xad7   :  { %v14913_v26 = vsub.f32 %v14812_v47, %v4580_v7  ;;  %v4644_v10 = vsel %vm84_vm0, %v4610_v59, 0.0  ;;  %v4611_v15 = vmul.f32 %v14907_v60, %v14907_v60 }
 0xad8   :  { %4645 = vadd.xlane.f32.xlu1 %v4644_v10 }
 0xad9   :  { %v4647_v45 = vsel %vm84_vm0, %v4611_v15, 0.0  ;;  %v4612_v6 = vmul.f32 %v14913_v26, %v14913_v26 }
 0xada   :  { %4648 = vadd.xlane.f32.xlu0 %v4647_v45 }
 0xadb   :  { %v4650_v34 = vsel %vm84_vm0, %v4612_v6, 0.0 }
 0xadc   :  { %4651 = vadd.xlane.f32.xlu1 %v4650_v34 }
 0xade   :  { %v4559_v33 = vpop.xlane.xlu0 %4558 }
 0xadf   :  { %v4581_v57 = vmul.f32 0.03125, %v4559_v33 }
 0xae0   :  { %v4562_v52 = vpop.xlane.xlu1 %4561 }
 0xae1   :  { %v14923_v47 = vsub.f32 %v14823_v11, %v4581_v57  ;;  %v4582_v29 = vmul.f32 0.03125, %v4562_v52 }
 0xae2   :  { %v4565_v58 = vpop.xlane.xlu0 %4564 }
 0xae3   :  { %v14926_v50 = vsub.f32 %v14834_v35, %v4582_v29  ;;  %v4583_v17 = vmul.f32 0.03125, %v4565_v58  ;;  %v4613_v30 = vmul.f32 %v14923_v47, %v14923_v47 }
 0xae4   :  { %v4568_v21 = vpop.xlane.xlu1 %4567 }
 0xae5   :  { %v14931_v20 = vsub.f32 %v14831_v23, %v4583_v17  ;;  %v4584_v28 = vmul.f32 0.03125, %v4568_v21  ;;  %v4653_v5 = vsel %vm84_vm0, %v4613_v30, 0.0  ;;  %v4614_v11 = vmul.f32 %v14926_v50, %v14926_v50 }
 0xae6   :  { %4654 = vadd.xlane.f32.xlu0 %v4653_v5  ;;  %v4619_v31 = vpop.xlane.xlu0 %4618 }
 0xae7   :  { %v14937_v0 = vsub.f32 %v14842_v4, %v4584_v28  ;;  %v4665_v35 = vmul.f32 0.03125, %v4619_v31  ;;  %v4656_v55 = vsel %vm84_vm0, %v4614_v11, 0.0  ;;  %v4615_v53 = vmul.f32 %v14931_v20, %v14931_v20 }
 0xae8   :  { %4657 = vadd.xlane.f32.xlu1 %v4656_v55  ;;  %v4622_v23 = vpop.xlane.xlu1 %4621 }
 0xae9   :  { %v4681_v39 = vadd.f32 1e-12, %v4665_v35  ;;  %v4666_v38 = vmul.f32 0.03125, %v4622_v23  ;;  %v4659_v32 = vsel %vm84_vm0, %v4615_v53, 0.0  ;;  %v4616_v1 = vmul.f32 %v14937_v0, %v14937_v0 }
 0xaea   :  { %4660 = vadd.xlane.f32.xlu0 %v4659_v32  ;;  %v4625_v24 = vpop.xlane.xlu0 %4624 }
 0xaeb   :  { %12871 = vrsqrt.f32 %v4681_v39  ;;  %v4682_v4 = vadd.f32 1e-12, %v4666_v38  ;;  %v4667_v43 = vmul.f32 0.03125, %v4625_v24  ;;  %v4662_v46 = vsel %vm84_vm0, %v4616_v1, 0.0 }
 0xaec   :  { %4663 = vadd.xlane.f32.xlu1 %v4662_v46  ;;  %v4628_v48 = vpop.xlane.xlu1 %4627 }
 0xaed   :  { %12873 = vrsqrt.f32 %v4682_v4  ;;  %v4683_v41 = vadd.f32 1e-12, %v4667_v43  ;;  %v4668_v40 = vmul.f32 0.03125, %v4628_v48 }
 0xaef   :  { %12875 = vrsqrt.f32 %v4683_v41  ;;  %v4684_v14 = vadd.f32 1e-12, %v4668_v40 }
 0xaf1   :  { %12877 = vrsqrt.f32 %v4684_v14 }
 0xaf5   :  { %v12872_v49 = vpop.eup %12871 }
 0xaf6   :  { %v4713_v56 = vmul.f32 %v12872_v49, %v14828_v19 }
 0xaf7   :  { %v12874_v62 = vpop.eup %12873 }
 0xaf8   :  { %v4714_v44 = vmul.f32 %v12874_v62, %v14839_v61  ;;  %v4735_v8 = vmul.f32 %v14949_v9, %v4713_v56 }
 0xaf9   :  { %v12876_v27 = vpop.eup %12875 }
 0xafa   :  { %v4715_v54 = vmul.f32 %v12876_v27, %v14847_v3  ;;  %v4736_v42 = vmul.f32 %v14949_v9, %v4714_v44  ;;  %v14964_v12 = vadd.f32 %v14957_v37, %v4735_v8  ;;  %v12693_v8 = vld [vmem:[%s17380_s12] sm:$0xff]  }
 0xafb   :  { %v12878_v2 = vpop.eup %12877  ;;  %12064 = vmatprep.subr.bf16.mxu0 %v12693_v8 }
 0xafc   :  { %v4737_v7 = vmul.f32 %v14949_v9, %v4715_v54  ;;  %v4716_v19 = vmul.f32 %v12878_v2, %v14854_v18  ;;  %v14967_v61 = vadd.f32 %v14957_v37, %v4736_v42  ;;  %12065 = vmatpush3.bf16.msra.mxu0 %v12693_v8  ;;  %v12694_v2 = vld [vmem:[%s17380_s12 + $0x8] sm:$0xff]  }
 0xafd   :  { %12066 = vmatprep.subr.bf16.mxu0 %v12694_v2 }
 0xafe   :  { %v4738_v59 = vmul.f32 %v14949_v9, %v4716_v19  ;;  %v4773_v10 = vpack.c.bf16 %v14967_v61, %v14964_v12  ;;  %v14974_v3 = vadd.f32 %v14957_v37, %v4737_v7 }
 0xb00   :  { %12048 = vmatprep.mubr.msk.bf16.mxu1 %vm84_vm0, %v4773_v10  ;;  %v14977_v15 = vadd.f32 %v14957_v37, %v4738_v59  ;;  %12067 = vmatpush3.bf16.msra.mxu0 %v12694_v2  ;;  %v12695_v10 = vld [vmem:[%s17380_s12 + $0x10] sm:$0xff]  }
 0xb01   :  { %12068 = vmatprep.subr.bf16.mxu0 %v12695_v10 }
 0xb02   :  { %v4774_v18 = vpack.c.bf16 %v14977_v15, %v14974_v3 }
 0xb04   :  { %12049 = vmatmul.mubr.msk.bf16.vlgmr.msra.gmra.mrb[152].mxu1 %vm84_vm0, %v4774_v18  ;;  %12069 = vmatpush3.bf16.msra.mxu0 %v12695_v10 }
 0xb53   :  { %v4631_v45 = vpop.xlane.xlu0 %4630 }
 0xb54   :  { %v4669_v6 = vmul.f32 0.03125, %v4631_v45 }
 0xb55   :  { %v4634_v34 = vpop.xlane.xlu1 %4633 }
 0xb56   :  { %v4685_v33 = vadd.f32 1e-12, %v4669_v6  ;;  %v4670_v57 = vmul.f32 0.03125, %v4634_v34 }
 0xb57   :  { %v4637_v52 = vpop.xlane.xlu0 %4636 }
 0xb58   :  { %12879 = vrsqrt.f32 %v4685_v33  ;;  %v4686_v29 = vadd.f32 1e-12, %v4670_v57  ;;  %v4671_v58 = vmul.f32 0.03125, %v4637_v52 }
 0xb59   :  { %v4640_v17 = vpop.xlane.xlu1 %4639 }
 0xb5a   :  { %12881 = vrsqrt.f32 %v4686_v29  ;;  %v4687_v30 = vadd.f32 1e-12, %v4671_v58  ;;  %v4672_v21 = vmul.f32 0.03125, %v4640_v17 }
 0xb5c   :  { %12883 = vrsqrt.f32 %v4687_v30  ;;  %v4688_v28 = vadd.f32 1e-12, %v4672_v21  ;;  %v12696_v30 = vld [vmem:[%s17380_s12 + $0x18] sm:$0xff]  }
 0xb5d   :  { %12070 = vmatprep.subr.bf16.mxu0 %v12696_v30 }
 0xb5e   :  { %12885 = vrsqrt.f32 %v4688_v28  ;;  %12071 = vmatpush3.bf16.msra.mxu0 %v12696_v30 }
 0xb5f   :  { %12108 = vmatprep.subr.bf16.mxu0 %v17414_v25 }
 0xb62   :  { %v12880_v5 = vpop.eup %12879 }
 0xb63   :  { %v4643_v11 = vpop.xlane.xlu0 %4642  ;;  %v4717_v31 = vmul.f32 %v12880_v5, %v14875_v16 }
 0xb64   :  { %v12882_v35 = vpop.eup %12881  ;;  %v4673_v55 = vmul.f32 0.03125, %v4643_v11 }
 0xb65   :  { %v4646_v53 = vpop.xlane.xlu1 %4645  ;;  %v4718_v23 = vmul.f32 %v12882_v35, %v14878_v63  ;;  %v4739_v39 = vmul.f32 %v14949_v9, %v4717_v31 }
 0xb66   :  { %v12884_v38 = vpop.eup %12883  ;;  %v4689_v32 = vadd.f32 1e-12, %v4673_v55  ;;  %v4674_v1 = vmul.f32 0.03125, %v4646_v53 }
 0xb67   :  { %v4649_v24 = vpop.xlane.xlu0 %4648  ;;  %v4740_v4 = vmul.f32 %v14949_v9, %v4718_v23  ;;  %v4719_v43 = vmul.f32 %v12884_v38, %v14883_v51  ;;  %v14988_v40 = vadd.f32 %v14957_v37, %v4739_v39 }
 0xb68   :  { %v12886_v46 = vpop.eup %12885  ;;  %12887 = vrsqrt.f32 %v4689_v32  ;;  %v4690_v48 = vadd.f32 1e-12, %v4674_v1  ;;  %v4675_v41 = vmul.f32 0.03125, %v4649_v24 }
 0xb69   :  { %v4652_v16 = vpop.xlane.xlu1 %4651  ;;  %v14991_v63 = vadd.f32 %v14957_v37, %v4740_v4  ;;  %v4720_v14 = vmul.f32 %v12886_v46, %v14889_v22  ;;  %v4741_v49 = vmul.f32 %v14949_v9, %v4719_v43 }
 0xb6a   :  { %12889 = vrsqrt.f32 %v4690_v48  ;;  %v4691_v56 = vadd.f32 1e-12, %v4675_v41  ;;  %v4676_v62 = vmul.f32 0.03125, %v4652_v16 }
 0xb6b   :  { %v4775_v51 = vpack.c.bf16 %v14991_v63, %v14988_v40  ;;  %v4742_v44 = vmul.f32 %v14949_v9, %v4720_v14  ;;  %v15003_v22 = vadd.f32 %v14957_v37, %v4741_v49 }
 0xb6c   :  { %12891 = vrsqrt.f32 %v4691_v56  ;;  %v4692_v27 = vadd.f32 1e-12, %v4676_v62 }
 0xb6d   :  { %12052 = vmatprep.mubr.msk.bf16.mxu1 %vm84_vm0, %v4775_v51  ;;  %v15006_v54 = vadd.f32 %v14957_v37, %v4742_v44 }
 0xb6e   :  { %12893 = vrsqrt.f32 %v4692_v27 }
 0xb6f   :  { %v4776_v42 = vpack.c.bf16 %v15006_v54, %v15003_v22 }
 0xb71   :  { %12053 = vmatmul.mubr.msk.bf16.gmra.mrb[156].mxu1 %vm84_vm0, %v4776_v42 }
 0xb72   :  { %v12888_v7 = vpop.eup %12887 }
 0xb73   :  { %v4655_v19 = vpop.xlane.xlu0 %4654  ;;  %v4721_v59 = vmul.f32 %v12888_v7, %v14899_v36 }
 0xb74   :  { %v12890_v18 = vpop.eup %12889  ;;  %v4677_v45 = vmul.f32 0.03125, %v4655_v19 }
 0xb75   :  { %v4658_v6 = vpop.xlane.xlu1 %4657  ;;  %v4722_v34 = vmul.f32 %v12890_v18, %v14902_v13  ;;  %v4743_v33 = vmul.f32 %v14949_v9, %v4721_v59 }
 0xb76   :  { %v12892_v57 = vpop.eup %12891  ;;  %v4693_v52 = vadd.f32 1e-12, %v4677_v45  ;;  %v4678_v29 = vmul.f32 0.03125, %v4658_v6 }
 0xb77   :  { %v4661_v58 = vpop.xlane.xlu0 %4660  ;;  %v4744_v17 = vmul.f32 %v14949_v9, %v4722_v34  ;;  %v4723_v36 = vmul.f32 %v12892_v57, %v14907_v60  ;;  %v15026_v11 = vadd.f32 %v14957_v37, %v4743_v33 }
 0xb78   :  { %v12894_v21 = vpop.eup %12893  ;;  %12895 = vrsqrt.f32 %v4693_v52  ;;  %v4694_v28 = vadd.f32 1e-12, %v4678_v29  ;;  %v4679_v13 = vmul.f32 0.03125, %v4661_v58 }
 0xb79   :  { %v4664_v5 = vpop.xlane.xlu1 %4663  ;;  %v15029_v31 = vadd.f32 %v14957_v37, %v4744_v17  ;;  %v4724_v35 = vmul.f32 %v12894_v21, %v14913_v26  ;;  %v4745_v55 = vmul.f32 %v14949_v9, %v4723_v36 }
 0xb7a   :  { %12897 = vrsqrt.f32 %v4694_v28  ;;  %v4695_v60 = vadd.f32 1e-12, %v4679_v13  ;;  %v4680_v53 = vmul.f32 0.03125, %v4664_v5 }
 0xb7b   :  { %v4777_v23 = vpack.c.bf16 %v15029_v31, %v15026_v11  ;;  %v4746_v39 = vmul.f32 %v14949_v9, %v4724_v35  ;;  %v15039_v26 = vadd.f32 %v14957_v37, %v4745_v55 }
 0xb7c   :  { %12899 = vrsqrt.f32 %v4695_v60  ;;  %v4696_v38 = vadd.f32 1e-12, %v4680_v53 }
 0xb7d   :  { %12056 = vmatprep.mubr.msk.bf16.mxu1 %vm84_vm0, %v4777_v23  ;;  %v15042_v32 = vadd.f32 %v14957_v37, %v4746_v39 }
 0xb7e   :  { %12901 = vrsqrt.f32 %v4696_v38 }
 0xb7f   :  { %v4778_v1 = vpack.c.bf16 %v15042_v32, %v15039_v26 }
 0xb81   :  { %12057 = vmatmul.mubr.msk.bf16.gmra.mrb[160].mxu1 %vm84_vm0, %v4778_v1 }
 0xb82   :  { %v12896_v24 = vpop.eup %12895 }
 0xb83   :  { %v4725_v4 = vmul.f32 %v12896_v24, %v14923_v47 }
 0xb84   :  { %v12898_v43 = vpop.eup %12897 }
 0xb85   :  { %v4726_v46 = vmul.f32 %v12898_v43, %v14926_v50  ;;  %v4747_v48 = vmul.f32 %v14949_v9, %v4725_v4 }
 0xb86   :  { %v12900_v41 = vpop.eup %12899 }
 0xb87   :  { %v4748_v16 = vmul.f32 %v14949_v9, %v4726_v46  ;;  %v4727_v14 = vmul.f32 %v12900_v41, %v14931_v20  ;;  %v15053_v56 = vadd.f32 %v14957_v37, %v4747_v48 }
 0xb88   :  { %v12902_v49 = vpop.eup %12901 }
 0xb89   :  { %v15056_v62 = vadd.f32 %v14957_v37, %v4748_v16  ;;  %v4728_v51 = vmul.f32 %v12902_v49, %v14937_v0  ;;  %v4749_v47 = vmul.f32 %v14949_v9, %v4727_v14  ;;  %v15076_v0 = vld [vmem:[%s17381_s11] ss:$0 sm:$0xff] }
 0xb8b   :  { %v4779_v50 = vpack.c.bf16 %v15056_v62, %v15053_v56  ;;  %v4750_v44 = vmul.f32 %v14949_v9, %v4728_v51  ;;  %v15065_v20 = vadd.f32 %v14957_v37, %v4749_v47 }
 0xb8d   :  { %12060 = vmatprep.mubr.msk.bf16.mxu1 %vm84_vm0, %v4779_v50  ;;  %v15068_v8 = vadd.f32 %v14957_v37, %v4750_v44 }
 0xb8f   :  { %v4780_v27 = vpack.c.bf16 %v15068_v8, %v15065_v20 }
 0xb91   :  { %12061 = vmatmul.mubr.msk.bf16.gmra.mrb[164].mxu1 %vm84_vm0, %v4780_v27 }
 0xbd7   :  { %v12050_v42 = vpop.f32.mrb[152].mxu1 }
 0xbd8   :  { %v4871_v9 = vadd.f32 %v12050_v42, %v15076_v0  ;;  %v4862_v2 = vpop.f32.mrb[153].mxu1 }
 0xbd9   :  { %v4863_v7 = vadd.f32 %v15076_v0, %v4862_v2  ;;  %v12051_v19 = vpop.f32.mrb[154].mxu1 }
 0xbda   :  { %v4927_v59 = vmul.f32 %v4871_v9, %v4871_v9  ;;  %v4874_v37 = vadd.f32 %v12051_v19, %v15076_v0  ;;  %v4865_v10 = vpop.f32.mrb[155].mxu1 }
 0xbdb   :  { %v4925_v18 = vmul.f32 %v4863_v7, %v4863_v7  ;;  %v4866_v45 = vadd.f32 %v15076_v0, %v4865_v10 }
 0xbdc   :  { %v4943_v6 = vmul.f32 %v4927_v59, %v4871_v9  ;;  %v4928_v34 = vmul.f32 %v4874_v37, %v4874_v37 }
 0xbdd   :  { %v4941_v33 = vmul.f32 %v4925_v18, %v4863_v7  ;;  %v4926_v57 = vmul.f32 %v4866_v45, %v4866_v45 }
 0xbde   :  { %v4959_v52 = vmul.f32 0.044715, %v4943_v6  ;;  %v4944_v29 = vmul.f32 %v4928_v34, %v4874_v37 }
 0xbdf   :  { %v4957_v58 = vmul.f32 0.044715, %v4941_v33  ;;  %v4942_v17 = vmul.f32 %v4926_v57, %v4866_v45 }
 0xbe0   :  { %v4975_v36 = vadd.f32 %v4959_v52, %v4871_v9  ;;  %v4960_v30 = vmul.f32 0.044715, %v4944_v29 }
 0xbe1   :  { %v4973_v21 = vadd.f32 %v4957_v58, %v4863_v7  ;;  %v4958_v28 = vmul.f32 0.044715, %v4942_v17 }
 0xbe2   :  { %v4991_v13 = vmul.f32 0.7978846, %v4975_v36  ;;  %v4976_v5 = vadd.f32 %v4960_v30, %v4874_v37 }
 0xbe3   :  { %v4989_v35 = vmul.f32 0.7978846, %v4973_v21  ;;  %v4974_v55 = vadd.f32 %v4958_v28, %v4866_v45 }
 0xbe4   :  { %12903 = vtanh.f32 %v4991_v13  ;;  %v4992_v60 = vmul.f32 0.7978846, %v4976_v5 }
 0xbe5   :  { %12905 = vtanh.f32 %v4989_v35  ;;  %v4990_v53 = vmul.f32 0.7978846, %v4974_v55 }
 0xbe6   :  { %12907 = vtanh.f32 %v4992_v60 }
 0xbe7   :  { %12909 = vtanh.f32 %v4990_v53 }
 0xbee   :  { %v12904_v23 = vpop.eup %12903 }
 0xbef   :  { %v12906_v39 = vpop.eup %12905  ;;  %v5023_v38 = vadd.f32 1.0, %v12904_v23 }
 0xbf0   :  { %v12908_v1 = vpop.eup %12907  ;;  %v5021_v24 = vadd.f32 1.0, %v12906_v39 }
 0xbf1   :  { %v12910_v4 = vpop.eup %12909  ;;  %v5039_v43 = vmul.f32 0.5, %v5023_v38  ;;  %v5024_v46 = vadd.f32 1.0, %v12908_v1 }
 0xbf2   :  { %v5037_v48 = vmul.f32 0.5, %v5021_v24  ;;  %v5022_v41 = vadd.f32 1.0, %v12910_v4 }
 0xbf3   :  { %v5040_v16 = vmul.f32 0.5, %v5024_v46  ;;  %v5055_v49 = vmul.f32 %v5039_v43, %v4871_v9 }
 0xbf4   :  { %v5038_v14 = vmul.f32 0.5, %v5022_v41  ;;  %v5053_v47 = vmul.f32 %v5037_v48, %v4863_v7 }
 0xbf5   :  { %v5056_v51 = vmul.f32 %v5040_v16, %v4874_v37 }
 0xbf6   :  { %v5054_v50 = vmul.f32 %v5038_v14, %v4866_v45 }
 0xbf7   :  { %v5070_v44 = vpack.c.bf16 %v5056_v51, %v5055_v49 }
 0xbf8   :  { %v5069_v27 = vpack.c.bf16 %v5054_v50, %v5053_v47 }
 0xbfa   :  { %12072 = vmatprep.mubr.msk.bf16.mxu0 %vm5116_vm5, %v5069_v27 }
 0xbfb   :  { %12073 = vmatmul.mubr.msk.bf16.vlgmr.msra.gmra.mrb[136].mxu0 %vm5116_vm5, %v5070_v44 }
 0xc44   :  { %v12054_v42 = vpop.f32.mrb[156].mxu1 }
 0xc45   :  { %v15085_v2 = vadd.f32 %v12054_v42, %v15076_v0  ;;  %v4878_v19 = vpop.f32.mrb[157].mxu1 }
 0xc46   :  { %v15088_v59 = vadd.f32 %v15076_v0, %v4878_v19  ;;  %v12055_v10 = vpop.f32.mrb[158].mxu1 }
 0xc47   :  { %v4931_v9 = vmul.f32 %v15085_v2, %v15085_v2  ;;  %v15093_v7 = vadd.f32 %v12055_v10, %v15076_v0  ;;  %v4881_v37 = vpop.f32.mrb[159].mxu1 }
 0xc48   :  { %v4929_v18 = vmul.f32 %v15088_v59, %v15088_v59  ;;  %v15098_v45 = vadd.f32 %v15076_v0, %v4881_v37 }
 0xc49   :  { %v4947_v6 = vmul.f32 %v4931_v9, %v15085_v2  ;;  %v4932_v34 = vmul.f32 %v15093_v7, %v15093_v7 }
 0xc4a   :  { %v4945_v33 = vmul.f32 %v4929_v18, %v15088_v59  ;;  %v4930_v57 = vmul.f32 %v15098_v45, %v15098_v45 }
 0xc4b   :  { %v4963_v52 = vmul.f32 0.044715, %v4947_v6  ;;  %v4948_v29 = vmul.f32 %v4932_v34, %v15093_v7 }
 0xc4c   :  { %v4961_v58 = vmul.f32 0.044715, %v4945_v33  ;;  %v4946_v17 = vmul.f32 %v4930_v57, %v15098_v45 }
 0xc4d   :  { %v4979_v36 = vadd.f32 %v4963_v52, %v15085_v2  ;;  %v4964_v30 = vmul.f32 0.044715, %v4948_v29 }
 0xc4e   :  { %v4977_v21 = vadd.f32 %v4961_v58, %v15088_v59  ;;  %v4962_v28 = vmul.f32 0.044715, %v4946_v17 }
 0xc4f   :  { %v4995_v13 = vmul.f32 0.7978846, %v4979_v36  ;;  %v4980_v5 = vadd.f32 %v4964_v30, %v15093_v7 }
 0xc50   :  { %v4993_v35 = vmul.f32 0.7978846, %v4977_v21  ;;  %v4978_v55 = vadd.f32 %v4962_v28, %v15098_v45 }
 0xc51   :  { %12911 = vtanh.f32 %v4995_v13  ;;  %v4996_v60 = vmul.f32 0.7978846, %v4980_v5 }
 0xc52   :  { %12913 = vtanh.f32 %v4993_v35  ;;  %v4994_v53 = vmul.f32 0.7978846, %v4978_v55 }
 0xc53   :  { %12915 = vtanh.f32 %v4996_v60 }
 0xc54   :  { %12917 = vtanh.f32 %v4994_v53  ;;  %v12058_v23 = vpop.f32.mrb[160].mxu1 }
 0xc55   :  { %v15113_v39 = vadd.f32 %v12058_v23, %v15076_v0  ;;  %v4894_v38 = vpop.f32.mrb[161].mxu1 }
 0xc56   :  { %v15116_v1 = vadd.f32 %v15076_v0, %v4894_v38  ;;  %v12059_v24 = vpop.f32.mrb[162].mxu1 }
 0xc57   :  { %v4935_v4 = vmul.f32 %v15113_v39, %v15113_v39  ;;  %v15121_v43 = vadd.f32 %v12059_v24, %v15076_v0  ;;  %v4897_v46 = vpop.f32.mrb[163].mxu1 }
 0xc58   :  { %v4933_v48 = vmul.f32 %v15116_v1, %v15116_v1  ;;  %v15126_v41 = vadd.f32 %v15076_v0, %v4897_v46 }
 0xc59   :  { %v4951_v16 = vmul.f32 %v4935_v4, %v15113_v39  ;;  %v4936_v14 = vmul.f32 %v15121_v43, %v15121_v43 }
 0xc5a   :  { %v4949_v49 = vmul.f32 %v4933_v48, %v15116_v1  ;;  %v4934_v51 = vmul.f32 %v15126_v41, %v15126_v41 }
 0xc5b   :  { %v12912_v47 = vpop.eup %12911  ;;  %v4967_v50 = vmul.f32 0.044715, %v4951_v16  ;;  %v4952_v44 = vmul.f32 %v4936_v14, %v15121_v43 }
 0xc5c   :  { %v12914_v27 = vpop.eup %12913  ;;  %v5027_v42 = vadd.f32 1.0, %v12912_v47  ;;  %v4965_v19 = vmul.f32 0.044715, %v4949_v49  ;;  %v4950_v10 = vmul.f32 %v4934_v51, %v15126_v41 }
 0xc5d   :  { %v12916_v9 = vpop.eup %12915  ;;  %v5025_v37 = vadd.f32 1.0, %v12914_v27  ;;  %v4983_v18 = vadd.f32 %v4967_v50, %v15113_v39  ;;  %v4968_v6 = vmul.f32 0.044715, %v4952_v44 }
 0xc5e   :  { %v12918_v34 = vpop.eup %12917  ;;  %v5043_v33 = vmul.f32 0.5, %v5027_v42  ;;  %v5028_v57 = vadd.f32 1.0, %v12916_v9  ;;  %v4981_v52 = vadd.f32 %v4965_v19, %v15116_v1  ;;  %v4966_v29 = vmul.f32 0.044715, %v4950_v10 }
 0xc5f   :  { %v5041_v58 = vmul.f32 0.5, %v5025_v37  ;;  %v5026_v17 = vadd.f32 1.0, %v12918_v34  ;;  %v4999_v36 = vmul.f32 0.7978846, %v4983_v18  ;;  %v4984_v30 = vadd.f32 %v4968_v6, %v15121_v43 }
 0xc60   :  { %v5044_v21 = vmul.f32 0.5, %v5028_v57  ;;  %v4997_v28 = vmul.f32 0.7978846, %v4981_v52  ;;  %v4982_v13 = vadd.f32 %v4966_v29, %v15126_v41  ;;  %v5059_v55 = vmul.f32 %v5043_v33, %v15085_v2 }
 0xc61   :  { %v5042_v5 = vmul.f32 0.5, %v5026_v17  ;;  %12919 = vtanh.f32 %v4999_v36  ;;  %v5000_v35 = vmul.f32 0.7978846, %v4984_v30  ;;  %v5057_v23 = vmul.f32 %v5041_v58, %v15088_v59 }
 0xc62   :  { %v5060_v60 = vmul.f32 %v5044_v21, %v15093_v7  ;;  %12921 = vtanh.f32 %v4997_v28  ;;  %v4998_v53 = vmul.f32 0.7978846, %v4982_v13 }
 0xc63   :  { %v5058_v38 = vmul.f32 %v5042_v5, %v15098_v45  ;;  %12923 = vtanh.f32 %v5000_v35 }
 0xc64   :  { %12925 = vtanh.f32 %v4998_v53  ;;  %v12062_v24 = vpop.f32.mrb[164].mxu1  ;;  %v5072_v4 = vpack.c.bf16 %v5060_v60, %v5059_v55 }
 0xc65   :  { %v15145_v46 = vadd.f32 %v12062_v24, %v15076_v0  ;;  %v4910_v48 = vpop.f32.mrb[165].mxu1  ;;  %v5071_v16 = vpack.c.bf16 %v5058_v38, %v5057_v23 }
 0xc66   :  { %v15148_v14 = vadd.f32 %v15076_v0, %v4910_v48  ;;  %v12063_v2 = vpop.f32.mrb[166].mxu1 }
 0xc67   :  { %v4939_v7 = vmul.f32 %v15145_v46, %v15145_v46  ;;  %v4922_v59 = vadd.f32 %v12063_v2, %v15076_v0  ;;  %v4913_v49 = vpop.f32.mrb[167].mxu1  ;;  %12076 = vmatprep.mubr.msk.bf16.mxu0 %vm5116_vm5, %v5071_v16 }
 0xc68   :  { %v4937_v45 = vmul.f32 %v15148_v14, %v15148_v14  ;;  %v4914_v51 = vadd.f32 %v15076_v0, %v4913_v49  ;;  %12077 = vmatmul.mubr.msk.bf16.gmra.mrb[140].mxu0 %vm5116_vm5, %v5072_v4 }
 0xc69   :  { %v4955_v47 = vmul.f32 %v4939_v7, %v15145_v46  ;;  %v4940_v50 = vmul.f32 %v4922_v59, %v4922_v59 }
 0xc6a   :  { %v4953_v44 = vmul.f32 %v4937_v45, %v15148_v14  ;;  %v4938_v27 = vmul.f32 %v4914_v51, %v4914_v51 }
 0xc6b   :  { %v12920_v42 = vpop.eup %12919  ;;  %v4971_v19 = vmul.f32 0.044715, %v4955_v47  ;;  %v4956_v10 = vmul.f32 %v4940_v50, %v4922_v59 }
 0xc6c   :  { %v12922_v9 = vpop.eup %12921  ;;  %v5031_v37 = vadd.f32 1.0, %v12920_v42  ;;  %v4969_v18 = vmul.f32 0.044715, %v4953_v44  ;;  %v4954_v6 = vmul.f32 %v4938_v27, %v4914_v51 }
 0xc6d   :  { %v12924_v34 = vpop.eup %12923  ;;  %v5029_v33 = vadd.f32 1.0, %v12922_v9  ;;  %v4987_v57 = vadd.f32 %v4971_v19, %v15145_v46  ;;  %v4972_v0 = vmul.f32 0.044715, %v4956_v10 }
 0xc6e   :  { %v12926_v52 = vpop.eup %12925  ;;  %v5047_v29 = vmul.f32 0.5, %v5031_v37  ;;  %v5032_v58 = vadd.f32 1.0, %v12924_v34  ;;  %v4985_v17 = vadd.f32 %v4969_v18, %v15148_v14  ;;  %v4970_v36 = vmul.f32 0.044715, %v4954_v6  ;;  %v15177_v34 = vld [vmem:[%s17382_s13] ss:$0 sm:$0xff] }
 0xc6f   :  { %v5045_v30 = vmul.f32 0.5, %v5029_v33  ;;  %v5030_v21 = vadd.f32 1.0, %v12926_v52  ;;  %v5003_v28 = vmul.f32 0.7978846, %v4987_v57  ;;  %v4988_v13 = vadd.f32 %v4972_v0, %v4922_v59 }
 0xc70   :  { %v5048_v5 = vmul.f32 0.5, %v5032_v58  ;;  %v5001_v35 = vmul.f32 0.7978846, %v4985_v17  ;;  %v4986_v55 = vadd.f32 %v4970_v36, %v4914_v51  ;;  %v5063_v23 = vmul.f32 %v5047_v29, %v15113_v39 }
 0xc71   :  { %v5046_v60 = vmul.f32 0.5, %v5030_v21  ;;  %12927 = vtanh.f32 %v5003_v28  ;;  %v5004_v53 = vmul.f32 0.7978846, %v4988_v13  ;;  %v5061_v4 = vmul.f32 %v5045_v30, %v15116_v1 }
 0xc72   :  { %v5064_v38 = vmul.f32 %v5048_v5, %v15121_v43  ;;  %12929 = vtanh.f32 %v5001_v35  ;;  %v5002_v24 = vmul.f32 0.7978846, %v4986_v55 }
 0xc73   :  { %v5062_v48 = vmul.f32 %v5046_v60, %v15126_v41  ;;  %12931 = vtanh.f32 %v5004_v53 }
 0xc74   :  { %12933 = vtanh.f32 %v5002_v24  ;;  %v5074_v16 = vpack.c.bf16 %v5064_v38, %v5063_v23 }
 0xc75   :  { %v5073_v2 = vpack.c.bf16 %v5062_v48, %v5061_v4 }
 0xc77   :  { %12080 = vmatprep.mubr.msk.bf16.mxu0 %vm5116_vm5, %v5073_v2 }
 0xc78   :  { %12081 = vmatmul.mubr.msk.bf16.gmra.mrb[144].mxu0 %vm5116_vm5, %v5074_v16 }
 0xc7b   :  { %v12928_v7 = vpop.eup %12927 }
 0xc7c   :  { %v12930_v49 = vpop.eup %12929  ;;  %v5035_v45 = vadd.f32 1.0, %v12928_v7 }
 0xc7d   :  { %v12932_v39 = vpop.eup %12931  ;;  %v5033_v47 = vadd.f32 1.0, %v12930_v49 }
 0xc7e   :  { %v12934_v43 = vpop.eup %12933  ;;  %v5051_v50 = vmul.f32 0.5, %v5035_v45  ;;  %v5036_v44 = vadd.f32 1.0, %v12932_v39 }
 0xc7f   :  { %v5049_v27 = vmul.f32 0.5, %v5033_v47  ;;  %v5034_v1 = vadd.f32 1.0, %v12934_v43 }
 0xc80   :  { %v5052_v42 = vmul.f32 0.5, %v5036_v44  ;;  %v5067_v19 = vmul.f32 %v5051_v50, %v15145_v46 }
 0xc81   :  { %v5050_v41 = vmul.f32 0.5, %v5034_v1  ;;  %v5065_v9 = vmul.f32 %v5049_v27, %v15148_v14 }
 0xc82   :  { %v5068_v10 = vmul.f32 %v5052_v42, %v4922_v59 }
 0xc83   :  { %v5066_v37 = vmul.f32 %v5050_v41, %v4914_v51 }
 0xc84   :  { %v5076_v18 = vpack.c.bf16 %v5068_v10, %v5067_v19 }
 0xc85   :  { %v5075_v6 = vpack.c.bf16 %v5066_v37, %v5065_v9 }
 0xc87   :  { %12084 = vmatprep.mubr.msk.bf16.mxu0 %vm5116_vm5, %v5075_v6 }
 0xc88   :  { %12085 = vmatmul.mubr.msk.bf16.gmra.mrb[148].mxu0 %vm5116_vm5, %v5076_v18 }
 0xc89   :  { %12110 = vmatprep.mubr.msk.bf16.mxu0 %vm13272_vm1, %v17414_v25 }
 0xcce   :  { %v12074_v33 = vpop.f32.mrb[136].mxu0 }
 0xccf   :  { %v5175_v46 = vpop.f32.mrb[137].mxu0  ;;  %v5184_v59 = vadd.f32 %v12074_v33, %v15177_v34 }
 0xcd0   :  { %v5176_v14 = vadd.f32 %v15177_v34, %v5175_v46  ;;  %v12075_v51 = vpop.f32.mrb[138].mxu0 }
 0xcd1   :  { %v5178_v57 = vpop.f32.mrb[139].mxu0  ;;  %v5187_v52 = vadd.f32 %v12075_v51, %v15177_v34  ;;  %v15187_v58 = vadd.f32 %v5184_v59, %v14974_v3 }
 0xcd2   :  { %v15182_v0 = vadd.f32 %v5176_v14, %v14964_v12  ;;  %v5179_v29 = vadd.f32 %v15177_v34, %v5178_v57 }
 0xcd3   :  { %v15195_v30 = vadd.f32 %v5187_v52, %v14977_v15  ;;  %v5262_v21 = vsel %vm84_vm0, %v15187_v58, 0.0 }
 0xcd4   :  { %v15190_v17 = vadd.f32 %v5179_v29, %v14967_v61  ;;  %v5256_v36 = vsel %vm84_vm0, %v15182_v0, 0.0 }
 0xcd5   :  { %5257 = vadd.xlane.f32.xlu0 %v5256_v36  ;;  %v5265_v3 = vsel %vm84_vm0, %v15195_v30, 0.0 }
 0xcd6   :  { %v5259_v12 = vsel %vm84_vm0, %v15190_v17, 0.0 }
 0xcd7   :  { %5260 = vadd.xlane.f32.xlu1 %v5259_v12 }
 0xcd9   :  { %5263 = vadd.xlane.f32.xlu0 %v5262_v21 }
 0xcdb   :  { %5266 = vadd.xlane.f32.xlu1 %v5265_v3 }
 0xd3b   :  { %v12078_v61 = vpop.f32.mrb[140].mxu0 }
 0xd3c   :  { %v5191_v28 = vpop.f32.mrb[141].mxu0  ;;  %v5200_v13 = vadd.f32 %v12078_v61, %v15177_v34 }
 0xd3d   :  { %v5192_v5 = vadd.f32 %v15177_v34, %v5191_v28  ;;  %v12079_v15 = vpop.f32.mrb[142].mxu0 }
 0xd3e   :  { %v5194_v35 = vpop.f32.mrb[143].mxu0  ;;  %v5203_v60 = vadd.f32 %v12079_v15, %v15177_v34  ;;  %v15211_v23 = vadd.f32 %v5200_v13, %v15003_v22 }
 0xd3f   :  { %v15206_v55 = vadd.f32 %v5192_v5, %v14988_v40  ;;  %v5195_v53 = vadd.f32 %v15177_v34, %v5194_v35 }
 0xd40   :  { %v15219_v4 = vadd.f32 %v5203_v60, %v15006_v54  ;;  %v5274_v48 = vsel %vm84_vm0, %v15211_v23, 0.0  ;;  %v12698_v60 = vld [vmem:[%s17408_s3 + $0x18] sm:$0xff]  }
 0xd41   :  { %v15214_v38 = vadd.f32 %v5195_v53, %v14991_v63  ;;  %v5268_v24 = vsel %vm84_vm0, %v15206_v55, 0.0 }
 0xd42   :  { %5269 = vadd.xlane.f32.xlu0 %v5268_v24  ;;  %v5277_v22 = vsel %vm84_vm0, %v15219_v4, 0.0 }
 0xd43   :  { %v5271_v40 = vsel %vm84_vm0, %v15214_v38, 0.0 }
 0xd44   :  { %5272 = vadd.xlane.f32.xlu1 %v5271_v40 }
 0xd46   :  { %5275 = vadd.xlane.f32.xlu0 %v5274_v48 }
 0xd48   :  { %5278 = vadd.xlane.f32.xlu1 %v5277_v22 }
 0xd4b   :  { %v12082_v63 = vpop.f32.mrb[144].mxu0 }
 0xd4c   :  { %v5207_v16 = vpop.f32.mrb[145].mxu0  ;;  %v5216_v2 = vadd.f32 %v12082_v63, %v15177_v34 }
 0xd4d   :  { %v5208_v7 = vadd.f32 %v15177_v34, %v5207_v16  ;;  %v12083_v54 = vpop.f32.mrb[146].mxu0 }
 0xd4e   :  { %v5210_v49 = vpop.f32.mrb[147].mxu0  ;;  %v5219_v39 = vadd.f32 %v12083_v54, %v15177_v34  ;;  %v15235_v43 = vadd.f32 %v5216_v2, %v15039_v26 }
 0xd4f   :  { %v15230_v45 = vadd.f32 %v5208_v7, %v15026_v11  ;;  %v5211_v47 = vadd.f32 %v15177_v34, %v5210_v49 }
 0xd50   :  { %v15243_v27 = vadd.f32 %v5219_v39, %v15042_v32  ;;  %v5286_v1 = vsel %vm84_vm0, %v15235_v43, 0.0 }
 0xd51   :  { %v15238_v50 = vadd.f32 %v5211_v47, %v15029_v31  ;;  %v5280_v44 = vsel %vm84_vm0, %v15230_v45, 0.0 }
 0xd52   :  { %5281 = vadd.xlane.f32.xlu0 %v5280_v44  ;;  %v5289_v26 = vsel %vm84_vm0, %v15243_v27, 0.0 }
 0xd53   :  { %v5283_v11 = vsel %vm84_vm0, %v15238_v50, 0.0 }
 0xd54   :  { %5284 = vadd.xlane.f32.xlu1 %v5283_v11 }
 0xd56   :  { %5287 = vadd.xlane.f32.xlu0 %v5286_v1 }
 0xd58   :  { %5290 = vadd.xlane.f32.xlu1 %v5289_v26 }
 0xd5b   :  { %v12086_v31 = vpop.f32.mrb[148].mxu0 }
 0xd5c   :  { %v5223_v42 = vpop.f32.mrb[149].mxu0  ;;  %v5232_v41 = vadd.f32 %v12086_v31, %v15177_v34 }
 0xd5d   :  { %v5224_v19 = vadd.f32 %v15177_v34, %v5223_v42  ;;  %v12087_v32 = vpop.f32.mrb[150].mxu0 }
 0xd5e   :  { %v5226_v10 = vpop.f32.mrb[151].mxu0  ;;  %v5235_v37 = vadd.f32 %v12087_v32, %v15177_v34  ;;  %v15259_v6 = vadd.f32 %v5232_v41, %v15065_v20 }
 0xd5f   :  { %v15254_v9 = vadd.f32 %v5224_v19, %v15053_v56  ;;  %v5227_v18 = vadd.f32 %v15177_v34, %v5226_v10 }
 0xd60   :  { %v15267_v14 = vadd.f32 %v5235_v37, %v15068_v8 }
 0xd61   :  { %v15262_v33 = vadd.f32 %v5227_v18, %v15056_v62  ;;  %v5292_v46 = vsel %vm84_vm0, %v15254_v9, 0.0  ;;  %v5298_v62 = vsel %vm84_vm0, %v15259_v6, 0.0 }
 0xd62   :  { %v5258_v59 = vpop.xlane.xlu0 %5257  ;;  %5293 = vadd.xlane.f32.xlu0 %v5292_v46  ;;  %v5301_v36 = vsel %vm84_vm0, %v15267_v14, 0.0 }
 0xd63   :  { %v5304_v56 = vmul.f32 0.03125, %v5258_v59  ;;  %v5295_v51 = vsel %vm84_vm0, %v15262_v33, 0.0 }
 0xd64   :  { %5296 = vadd.xlane.f32.xlu1 %v5295_v51  ;;  %v5261_v34 = vpop.xlane.xlu1 %5260 }
 0xd65   :  { %v15272_v20 = vsub.f32 %v15182_v0, %v5304_v56  ;;  %v5305_v57 = vmul.f32 0.03125, %v5261_v34 }
 0xd66   :  { %v5264_v52 = vpop.xlane.xlu0 %5263  ;;  %5299 = vadd.xlane.f32.xlu0 %v5298_v62 }
 0xd67   :  { %v15277_v29 = vsub.f32 %v15190_v17, %v5305_v57  ;;  %v5306_v8 = vmul.f32 0.03125, %v5264_v52  ;;  %v5336_v12 = vmul.f32 %v15272_v20, %v15272_v20 }
 0xd68   :  { %5302 = vadd.xlane.f32.xlu1 %v5301_v36  ;;  %v5267_v21 = vpop.xlane.xlu1 %5266 }
 0xd69   :  { %v15284_v0 = vsub.f32 %v15187_v58, %v5306_v8  ;;  %v5307_v3 = vmul.f32 0.03125, %v5267_v21  ;;  %v5352_v61 = vsel %vm84_vm0, %v5336_v12, 0.0  ;;  %v5337_v28 = vmul.f32 %v15277_v29, %v15277_v29 }
 0xd6a   :  { %5353 = vadd.xlane.f32.xlu0 %v5352_v61 }
 0xd6b   :  { %v15290_v17 = vsub.f32 %v15195_v30, %v5307_v3  ;;  %v5355_v13 = vsel %vm84_vm0, %v5337_v28, 0.0  ;;  %v5338_v5 = vmul.f32 %v15284_v0, %v15284_v0  ;;  %v12697_v30 = vld [vmem:[%s17408_s3 + $0x10] sm:$0xff]  }
 0xd6c   :  { %5356 = vadd.xlane.f32.xlu1 %v5355_v13  ;;  %12088 = vmatprep.subr.bf16.mxu1 %v12697_v30 }
 0xd6d   :  { %v5358_v15 = vsel %vm84_vm0, %v5338_v5, 0.0  ;;  %v5339_v58 = vmul.f32 %v15290_v17, %v15290_v17  ;;  %12089 = vmatpush3.bf16.msra.mxu1 %v12697_v30 }
 0xd6e   :  { %5359 = vadd.xlane.f32.xlu0 %v5358_v15  ;;  %12090 = vmatprep.subr.bf16.mxu1 %v12698_v60 }
 0xd6f   :  { %v5361_v35 = vsel %vm84_vm0, %v5339_v58, 0.0 }
 0xd70   :  { %5362 = vadd.xlane.f32.xlu1 %v5361_v35 }
 0xd71   :  { %12091 = vmatpush3.bf16.msra.mxu1 %v12698_v60 }
 0xd72   :  { %12114 = vmatprep.subr.bf16.mxu1 %v17414_v25 }
 0xdcf   :  { %v5270_v53 = vpop.xlane.xlu0 %5269 }
 0xdd0   :  { %v5308_v24 = vmul.f32 0.03125, %v5270_v53 }
 0xdd1   :  { %v5273_v40 = vpop.xlane.xlu1 %5272 }
 0xdd2   :  { %v15307_v48 = vsub.f32 %v15206_v55, %v5308_v24  ;;  %v5309_v22 = vmul.f32 0.03125, %v5273_v40 }
 0xdd3   :  { %v5276_v63 = vpop.xlane.xlu0 %5275 }
 0xdd4   :  { %v15310_v16 = vsub.f32 %v15214_v38, %v5309_v22  ;;  %v5310_v2 = vmul.f32 0.03125, %v5276_v63  ;;  %v5340_v7 = vmul.f32 %v15307_v48, %v15307_v48 }
 0xdd5   :  { %v5279_v54 = vpop.xlane.xlu1 %5278 }
 0xdd6   :  { %v15315_v49 = vsub.f32 %v15211_v23, %v5310_v2  ;;  %v5311_v39 = vmul.f32 0.03125, %v5279_v54  ;;  %v5364_v47 = vsel %vm84_vm0, %v5340_v7, 0.0  ;;  %v5341_v55 = vmul.f32 %v15310_v16, %v15310_v16 }
 0xdd7   :  { %5365 = vadd.xlane.f32.xlu0 %v5364_v47 }
 0xdd8   :  { %v15321_v44 = vsub.f32 %v15219_v4, %v5311_v39  ;;  %v5367_v38 = vsel %vm84_vm0, %v5341_v55, 0.0  ;;  %v5342_v11 = vmul.f32 %v15315_v49, %v15315_v49 }
 0xdd9   :  { %5368 = vadd.xlane.f32.xlu1 %v5367_v38 }
 0xdda   :  { %v5370_v1 = vsel %vm84_vm0, %v5342_v11, 0.0  ;;  %v5343_v23 = vmul.f32 %v15321_v44, %v15321_v44 }
 0xddb   :  { %5371 = vadd.xlane.f32.xlu0 %v5370_v1 }
 0xddc   :  { %v5373_v26 = vsel %vm84_vm0, %v5343_v23, 0.0  ;;  %v15381_v23 = vld [vmem:[%s17383_s14] ss:$0 sm:$0xff] }
 0xddd   :  { %5374 = vadd.xlane.f32.xlu1 %v5373_v26 }
 0xddf   :  { %v5282_v31 = vpop.xlane.xlu0 %5281 }
 0xde0   :  { %v5312_v42 = vmul.f32 0.03125, %v5282_v31 }
 0xde1   :  { %v5285_v41 = vpop.xlane.xlu1 %5284 }
 0xde2   :  { %v15331_v4 = vsub.f32 %v15230_v45, %v5312_v42  ;;  %v5313_v19 = vmul.f32 0.03125, %v5285_v41 }
 0xde3   :  { %v5288_v32 = vpop.xlane.xlu0 %5287 }
 0xde4   :  { %v15334_v10 = vsub.f32 %v15238_v50, %v5313_v19  ;;  %v5314_v37 = vmul.f32 0.03125, %v5288_v32  ;;  %v5344_v18 = vmul.f32 %v15331_v4, %v15331_v4  ;;  %v15389_v32 = vld [vmem:[%s17384_s15] ss:$0 sm:$0xff] }
 0xde5   :  { %v5291_v46 = vpop.xlane.xlu1 %5290 }
 0xde6   :  { %v15339_v59 = vsub.f32 %v15235_v43, %v5314_v37  ;;  %v5315_v56 = vmul.f32 0.03125, %v5291_v46  ;;  %v5376_v51 = vsel %vm84_vm0, %v5344_v18, 0.0  ;;  %v5345_v45 = vmul.f32 %v15334_v10, %v15334_v10 }
 0xde7   :  { %5377 = vadd.xlane.f32.xlu0 %v5376_v51 }
 0xde8   :  { %v15345_v34 = vsub.f32 %v15243_v27, %v5315_v56  ;;  %v5379_v50 = vsel %vm84_vm0, %v5345_v45, 0.0  ;;  %v5346_v57 = vmul.f32 %v15339_v59, %v15339_v59 }
 0xde9   :  { %5380 = vadd.xlane.f32.xlu1 %v5379_v50 }
 0xdea   :  { %v5382_v62 = vsel %vm84_vm0, %v5346_v57, 0.0  ;;  %v5347_v43 = vmul.f32 %v15345_v34, %v15345_v34 }
 0xdeb   :  { %5383 = vadd.xlane.f32.xlu0 %v5382_v62 }
 0xdec   :  { %v5385_v52 = vsel %vm84_vm0, %v5347_v43, 0.0 }
 0xded   :  { %5386 = vadd.xlane.f32.xlu1 %v5385_v52 }
 0xdef   :  { %v5294_v8 = vpop.xlane.xlu0 %5293 }
 0xdf0   :  { %v5316_v36 = vmul.f32 0.03125, %v5294_v8 }
 0xdf1   :  { %v5297_v12 = vpop.xlane.xlu1 %5296 }
 0xdf2   :  { %v15355_v27 = vsub.f32 %v15254_v9, %v5316_v36  ;;  %v5317_v21 = vmul.f32 0.03125, %v5297_v12 }
 0xdf3   :  { %v5300_v3 = vpop.xlane.xlu0 %5299 }
 0xdf4   :  { %v15358_v61 = vsub.f32 %v15262_v33, %v5317_v21  ;;  %v5318_v28 = vmul.f32 0.03125, %v5300_v3  ;;  %v5348_v13 = vmul.f32 %v15355_v27, %v15355_v27 }
 0xdf5   :  { %v5303_v5 = vpop.xlane.xlu1 %5302 }
 0xdf6   :  { %v15363_v15 = vsub.f32 %v15259_v6, %v5318_v28  ;;  %v5319_v58 = vmul.f32 0.03125, %v5303_v5  ;;  %v5388_v35 = vsel %vm84_vm0, %v5348_v13, 0.0  ;;  %v5349_v9 = vmul.f32 %v15358_v61, %v15358_v61 }
 0xdf7   :  { %5389 = vadd.xlane.f32.xlu0 %v5388_v35  ;;  %v5354_v30 = vpop.xlane.xlu0 %5353 }
 0xdf8   :  { %v15369_v60 = vsub.f32 %v15267_v14, %v5319_v58  ;;  %v5400_v33 = vmul.f32 0.03125, %v5354_v30  ;;  %v5391_v53 = vsel %vm84_vm0, %v5349_v9, 0.0  ;;  %v5350_v24 = vmul.f32 %v15363_v15, %v15363_v15 }
 0xdf9   :  { %5392 = vadd.xlane.f32.xlu1 %v5391_v53  ;;  %v5357_v6 = vpop.xlane.xlu1 %5356 }
 0xdfa   :  { %v5416_v40 = vadd.f32 1e-12, %v5400_v33  ;;  %v5401_v22 = vmul.f32 0.03125, %v5357_v6  ;;  %v5394_v63 = vsel %vm84_vm0, %v5350_v24, 0.0  ;;  %v5351_v2 = vmul.f32 %v15369_v60, %v15369_v60 }
 0xdfb   :  { %5395 = vadd.xlane.f32.xlu0 %v5394_v63  ;;  %v5360_v7 = vpop.xlane.xlu0 %5359 }
 0xdfc   :  { %12935 = vrsqrt.f32 %v5416_v40  ;;  %v5417_v14 = vadd.f32 1e-12, %v5401_v22  ;;  %v5402_v54 = vmul.f32 0.03125, %v5360_v7  ;;  %v5397_v39 = vsel %vm84_vm0, %v5351_v2, 0.0 }
 0xdfd   :  { %5398 = vadd.xlane.f32.xlu1 %v5397_v39  ;;  %v5363_v47 = vpop.xlane.xlu1 %5362 }
 0xdfe   :  { %12937 = vrsqrt.f32 %v5417_v14  ;;  %v5418_v55 = vadd.f32 1e-12, %v5402_v54  ;;  %v5403_v38 = vmul.f32 0.03125, %v5363_v47 }
 0xe00   :  { %12939 = vrsqrt.f32 %v5418_v55  ;;  %v5419_v11 = vadd.f32 1e-12, %v5403_v38 }
 0xe02   :  { %12941 = vrsqrt.f32 %v5419_v11 }
 0xe06   :  { %v12936_v1 = vpop.eup %12935 }
 0xe07   :  { %v5448_v26 = vmul.f32 %v12936_v1, %v15272_v20 }
 0xe08   :  { %v12938_v31 = vpop.eup %12937 }
 0xe09   :  { %v5449_v42 = vmul.f32 %v12938_v31, %v15277_v29  ;;  %v5470_v41 = vmul.f32 %v15381_v23, %v5448_v26 }
 0xe0a   :  { %v12940_v19 = vpop.eup %12939 }
 0xe0b   :  { %v5450_v37 = vmul.f32 %v12940_v19, %v15284_v0  ;;  %v5471_v18 = vmul.f32 %v15381_v23, %v5449_v42  ;;  %v15396_v51 = vadd.f32 %v15389_v32, %v5470_v41 }
 0xe0c   :  { %v12942_v46 = vpop.eup %12941 }
 0xe0d   :  { %v5472_v56 = vmul.f32 %v15381_v23, %v5450_v37  ;;  %v5451_v20 = vmul.f32 %v12942_v46, %v15290_v17  ;;  %v15399_v29 = vadd.f32 %v15389_v32, %v5471_v18 }
 0xe0f   :  { %v5473_v45 = vmul.f32 %v15381_v23, %v5451_v20  ;;  %v5508_v50 = vpack.c.bf16 %v15399_v29, %v15396_v51  ;;  %v15405_v0 = vadd.f32 %v15389_v32, %v5472_v56 }
 0xe11   :  { %v15408_v57 = vadd.f32 %v15389_v32, %v5473_v45  ;;  %12092 = vmatprep.mubr.msk.bf16.mxu1 %vm84_vm0, %v5508_v50 }
 0xe13   :  { %v5509_v17 = vpack.c.bf16 %v15408_v57, %v15405_v0 }
 0xe15   :  { %12093 = vmatmul.mubr.msk.bf16.vlgmr.msra.gmra.mrb[168].mxu1 %vm84_vm0, %v5509_v17 }
 0xe64   :  { %v5366_v62 = vpop.xlane.xlu0 %5365 }
 0xe65   :  { %v5404_v43 = vmul.f32 0.03125, %v5366_v62 }
 0xe66   :  { %v5369_v52 = vpop.xlane.xlu1 %5368 }
 0xe67   :  { %v5420_v8 = vadd.f32 1e-12, %v5404_v43  ;;  %v5405_v36 = vmul.f32 0.03125, %v5369_v52 }
 0xe68   :  { %v5372_v12 = vpop.xlane.xlu0 %5371 }
 0xe69   :  { %12943 = vrsqrt.f32 %v5420_v8  ;;  %v5421_v21 = vadd.f32 1e-12, %v5405_v36  ;;  %v5406_v3 = vmul.f32 0.03125, %v5372_v12 }
 0xe6a   :  { %v5375_v28 = vpop.xlane.xlu1 %5374 }
 0xe6b   :  { %12945 = vrsqrt.f32 %v5421_v21  ;;  %v5422_v13 = vadd.f32 1e-12, %v5406_v3  ;;  %v5407_v5 = vmul.f32 0.03125, %v5375_v28 }
 0xe6d   :  { %12947 = vrsqrt.f32 %v5422_v13  ;;  %v5423_v58 = vadd.f32 1e-12, %v5407_v5 }
 0xe6f   :  { %12949 = vrsqrt.f32 %v5423_v58 }
 0xe73   :  { %v12944_v35 = vpop.eup %12943 }
 0xe74   :  { %v5378_v9 = vpop.xlane.xlu0 %5377  ;;  %v5452_v30 = vmul.f32 %v12944_v35, %v15307_v48 }
 0xe75   :  { %v12946_v33 = vpop.eup %12945  ;;  %v5408_v53 = vmul.f32 0.03125, %v5378_v9 }
 0xe76   :  { %v5381_v24 = vpop.xlane.xlu1 %5380  ;;  %v5453_v6 = vmul.f32 %v12946_v33, %v15310_v16  ;;  %v5474_v40 = vmul.f32 %v15381_v23, %v5452_v30 }
 0xe77   :  { %v12948_v22 = vpop.eup %12947  ;;  %v5424_v63 = vadd.f32 1e-12, %v5408_v53  ;;  %v5409_v2 = vmul.f32 0.03125, %v5381_v24 }
 0xe78   :  { %v5384_v7 = vpop.xlane.xlu0 %5383  ;;  %v5475_v14 = vmul.f32 %v15381_v23, %v5453_v6  ;;  %v5454_v54 = vmul.f32 %v12948_v22, %v15315_v49  ;;  %v15420_v38 = vadd.f32 %v15389_v32, %v5474_v40 }
 0xe79   :  { %v12950_v39 = vpop.eup %12949  ;;  %12951 = vrsqrt.f32 %v5424_v63  ;;  %v5425_v47 = vadd.f32 1e-12, %v5409_v2  ;;  %v5410_v55 = vmul.f32 0.03125, %v5384_v7 }
 0xe7a   :  { %v5387_v48 = vpop.xlane.xlu1 %5386  ;;  %v15423_v16 = vadd.f32 %v15389_v32, %v5475_v14  ;;  %v5455_v11 = vmul.f32 %v12950_v39, %v15321_v44  ;;  %v5476_v1 = vmul.f32 %v15381_v23, %v5454_v54 }
 0xe7b   :  { %12953 = vrsqrt.f32 %v5425_v47  ;;  %v5426_v26 = vadd.f32 1e-12, %v5410_v55  ;;  %v5411_v31 = vmul.f32 0.03125, %v5387_v48 }
 0xe7c   :  { %v5510_v49 = vpack.c.bf16 %v15423_v16, %v15420_v38  ;;  %v5477_v42 = vmul.f32 %v15381_v23, %v5455_v11  ;;  %v15432_v19 = vadd.f32 %v15389_v32, %v5476_v1 }
 0xe7d   :  { %12955 = vrsqrt.f32 %v5426_v26  ;;  %v5427_v41 = vadd.f32 1e-12, %v5411_v31 }
 0xe7e   :  { %12096 = vmatprep.mubr.msk.bf16.mxu1 %vm84_vm0, %v5510_v49  ;;  %v15435_v37 = vadd.f32 %v15389_v32, %v5477_v42 }
 0xe7f   :  { %12957 = vrsqrt.f32 %v5427_v41 }
 0xe80   :  { %v5511_v44 = vpack.c.bf16 %v15435_v37, %v15432_v19 }
 0xe82   :  { %12097 = vmatmul.mubr.msk.bf16.gmra.mrb[172].mxu1 %vm84_vm0, %v5511_v44 }
 0xe83   :  { %v12952_v18 = vpop.eup %12951 }
 0xe84   :  { %v5390_v46 = vpop.xlane.xlu0 %5389  ;;  %v5456_v56 = vmul.f32 %v12952_v18, %v15331_v4 }
 0xe85   :  { %v12954_v20 = vpop.eup %12953  ;;  %v5412_v45 = vmul.f32 0.03125, %v5390_v46 }
 0xe86   :  { %v5393_v50 = vpop.xlane.xlu1 %5392  ;;  %v5457_v17 = vmul.f32 %v12954_v20, %v15334_v10  ;;  %v5478_v62 = vmul.f32 %v15381_v23, %v5456_v56 }
 0xe87   :  { %v12956_v43 = vpop.eup %12955  ;;  %v5428_v52 = vadd.f32 1e-12, %v5412_v45  ;;  %v5413_v8 = vmul.f32 0.03125, %v5393_v50 }
 0xe88   :  { %v5396_v36 = vpop.xlane.xlu0 %5395  ;;  %v5479_v12 = vmul.f32 %v15381_v23, %v5457_v17  ;;  %v5458_v21 = vmul.f32 %v12956_v43, %v15339_v59  ;;  %v15446_v5 = vadd.f32 %v15389_v32, %v5478_v62 }
 0xe89   :  { %v12958_v3 = vpop.eup %12957  ;;  %12959 = vrsqrt.f32 %v5428_v52  ;;  %v5429_v28 = vadd.f32 1e-12, %v5413_v8  ;;  %v5414_v13 = vmul.f32 0.03125, %v5396_v36 }
 0xe8a   :  { %v5399_v4 = vpop.xlane.xlu1 %5398  ;;  %v15449_v10 = vadd.f32 %v15389_v32, %v5479_v12  ;;  %v5459_v58 = vmul.f32 %v12958_v3, %v15345_v34  ;;  %v5480_v35 = vmul.f32 %v15381_v23, %v5458_v21 }
 0xe8b   :  { %12961 = vrsqrt.f32 %v5429_v28  ;;  %v5430_v9 = vadd.f32 1e-12, %v5414_v13  ;;  %v5415_v30 = vmul.f32 0.03125, %v5399_v4 }
 0xe8c   :  { %v5512_v59 = vpack.c.bf16 %v15449_v10, %v15446_v5  ;;  %v5481_v33 = vmul.f32 %v15381_v23, %v5459_v58  ;;  %v15458_v24 = vadd.f32 %v15389_v32, %v5480_v35 }
 0xe8d   :  { %12963 = vrsqrt.f32 %v5430_v9  ;;  %v5431_v53 = vadd.f32 1e-12, %v5415_v30 }
 0xe8e   :  { %12100 = vmatprep.mubr.msk.bf16.mxu1 %vm84_vm0, %v5512_v59  ;;  %v15461_v6 = vadd.f32 %v15389_v32, %v5481_v33 }
 0xe8f   :  { %12965 = vrsqrt.f32 %v5431_v53 }
 0xe90   :  { %17417 = vst [vmem:[#allocation2_spill] sm:$0xff] %v15461_v6  ;;  %v5513_v34 = vpack.c.bf16 %v15461_v6, %v15458_v24 }
 0xe92   :  { %12101 = vmatmul.mubr.msk.bf16.gmra.mrb[176].mxu1 %vm84_vm0, %v5513_v34 }
 0xe93   :  { %v12960_v40 = vpop.eup %12959 }
 0xe94   :  { %v5460_v22 = vmul.f32 %v12960_v40, %v15355_v27 }
 0xe95   :  { %v12962_v63 = vpop.eup %12961 }
 0xe96   :  { %v5461_v2 = vmul.f32 %v12962_v63, %v15358_v61  ;;  %v5482_v7 = vmul.f32 %v15381_v23, %v5460_v22 }
 0xe97   :  { %v12964_v14 = vpop.eup %12963 }
 0xe98   :  { %v5483_v54 = vmul.f32 %v15381_v23, %v5461_v2  ;;  %v5462_v39 = vmul.f32 %v12964_v14, %v15363_v15  ;;  %v15472_v55 = vadd.f32 %v15389_v32, %v5482_v7 }
 0xe99   :  { %v12966_v47 = vpop.eup %12965 }
 0xe9a   :  { %17418 = vst [vmem:[#allocation3_spill] sm:$0xff] %v15472_v55  ;;  %v15475_v48 = vadd.f32 %v15389_v32, %v5483_v54  ;;  %v5463_v11 = vmul.f32 %v12966_v47, %v15369_v60  ;;  %v5484_v27 = vmul.f32 %v15381_v23, %v5462_v39  ;;  %v15497_v60 = vld [vmem:[%s17413_s24 + $0x1] ss:$0 sm:$0xff] }
 0xe9c   :  { %17419 = vst [vmem:[#allocation4_spill] sm:$0xff] %v15475_v48  ;;  %v5514_v61 = vpack.c.bf16 %v15475_v48, %v15472_v55  ;;  %v5485_v1 = vmul.f32 %v15381_v23, %v5463_v11  ;;  %v15484_v15 = vadd.f32 %v15389_v32, %v5484_v27 }
 0xe9e   :  { %12104 = vmatprep.mubr.msk.bf16.mxu1 %vm84_vm0, %v5514_v61  ;;  %17420 = vst [vmem:[#allocation5_spill] sm:$0xff] %v15484_v15  ;;  %v15487_v26 = vadd.f32 %v15389_v32, %v5485_v1 }
 0xea0   :  { %17421 = vst [vmem:[#allocation6_spill] sm:$0xff] %v15487_v26  ;;  %v5515_v31 = vpack.c.bf16 %v15487_v26, %v15484_v15 }
 0xea2   :  { %12105 = vmatmul.mubr.msk.bf16.gmra.mrb[180].mxu1 %vm84_vm0, %v5515_v31 }
 0xea3   :  { %12116 = vmatprep.mubr.msk.bf16.mxu1 %vm13272_vm1, %v17414_v25 }
 0xee8   :  { %v12094_v23 = vpop.f32.mrb[168].mxu1 }
 0xee9   :  { %v5599_v49 = vpop.f32.mrb[169].mxu1  ;;  %v5608_v46 = vadd.f32 %v12094_v23, %v15497_v60 }
 0xeea   :  { %v5600_v42 = vadd.f32 %v15497_v60, %v5599_v49  ;;  %v12095_v41 = vpop.f32.mrb[170].mxu1 }
 0xeeb   :  { %v5602_v32 = vpop.f32.mrb[171].mxu1  ;;  %v15510_v20 = vpack.c.bf16 %v5608_v46, %v5608_v46  ;;  %v5611_v45 = vadd.f32 %v12095_v41, %v15497_v60 }
 0xeec   :  { %v15500_v44 = vpack.c.bf16 %v5600_v42, %v5600_v42  ;;  %v5603_v18 = vadd.f32 %v15497_v60, %v5602_v32 }
 0xeed   :  { %v15515_v50 = vpack.c.bf16 %v5611_v45, %v5611_v45 }
 0xeee   :  { %v15504_v56 = vpack.c.bf16 %v5603_v18, %v5603_v18  ;;  %5681 = vrot.lane.b32.xlu0 %v15500_v44, %s13273_s2 }
 0xef0   :  { %5730 = vrot.lane.b32.xlu1 %v15504_v56, %s13273_s2 }
 0xef4   :  { %5779 = vrot.lane.b32.xlu1 %v15510_v20, %s13273_s2 }
 0xef8   :  { %5828 = vrot.lane.b32.xlu1 %v15515_v50, %s13273_s2 }
 0xf55   :  { %v12098_v17 = vpop.f32.mrb[172].mxu1 }
 0xf56   :  { %v5615_v62 = vpop.f32.mrb[173].mxu1  ;;  %v5624_v36 = vadd.f32 %v12098_v17, %v15497_v60 }
 0xf57   :  { %v5616_v43 = vadd.f32 %v15497_v60, %v5615_v62  ;;  %v12099_v52 = vpop.f32.mrb[174].mxu1 }
 0xf58   :  { %v5618_v8 = vpop.f32.mrb[175].mxu1  ;;  %v5627_v3 = vadd.f32 %v12099_v52, %v15497_v60  ;;  %v15529_v13 = vpack.c.bf16 %v5624_v36, %v5624_v36 }
 0xf59   :  { %v15521_v12 = vpack.c.bf16 %v5616_v43, %v5616_v43  ;;  %v5619_v21 = vadd.f32 %v15497_v60, %v5618_v8 }
 0xf5a   :  { %v15533_v4 = vpack.c.bf16 %v5627_v3, %v5627_v3 }
 0xf5b   :  { %v15525_v28 = vpack.c.bf16 %v5619_v21, %v5619_v21  ;;  %5877 = vrot.lane.b32.xlu0 %v15521_v12, %s13273_s2 }
 0xf5d   :  { %5926 = vrot.lane.b32.xlu1 %v15525_v28, %s13273_s2 }
 0xf5f   :  { %5975 = vrot.lane.b32.xlu0 %v15529_v13, %s13273_s2 }
 0xf60   :  { %v5682_v58 = vpop.permute.xlu0 %5681 }
 0xf61   :  { %v5687_v35 = vsel %vm526_vm2, %v5682_v58, 0  ;;  %6024 = vrot.lane.b32.xlu1 %v15533_v4, %s13273_s2 }
 0xf62   :  { %12109 = vmatpush3.bf16.xpose.msra.mxu0 %v5687_v35  ;;  %v5731_v9 = vpop.permute.xlu1 %5730 }
 0xf63   :  { %v5736_v30 = vsel %vm526_vm2, %v5731_v9, 0  ;;  %12120 = vmatprep.subr.bf16.mxu0 %v17414_v25 }
 0xf64   :  { %12115 = vmatpush3.bf16.xpose.msra.mxu1 %v5736_v30 }
 0xf65   :  { %v12102_v59 = vpop.f32.mrb[176].mxu1  ;;  %12126 = vmatprep.subr.bf16.mxu1 %v17414_v25 }
 0xf66   :  { %v5631_v33 = vpop.f32.mrb[177].mxu1  ;;  %v5780_v53 = vpop.permute.xlu1 %5779  ;;  %v5640_v63 = vadd.f32 %v12102_v59, %v15497_v60 }
 0xf67   :  { %v5632_v34 = vadd.f32 %v15497_v60, %v5631_v33  ;;  %v12103_v40 = vpop.f32.mrb[178].mxu1  ;;  %v5785_v7 = vsel %vm526_vm2, %v5780_v53, 0 }
 0xf68   :  { %v5634_v22 = vpop.f32.mrb[179].mxu1  ;;  %v5643_v39 = vadd.f32 %v12103_v40, %v15497_v60  ;;  %v15563_v27 = vpack.c.bf16 %v5640_v63, %v5640_v63 }
 0xf69   :  { %v15545_v2 = vpack.c.bf16 %v5632_v34, %v5632_v34  ;;  %v5635_v14 = vadd.f32 %v15497_v60, %v5634_v22  ;;  %12111 = vmatmul.mubr.msk.bf16.vlgmr.msra.gmra.mrb[152].mxu0 %vm526_vm2, %v15500_v44 }
 0xf6a   :  { %12121 = vmatpush3.bf16.xpose.msra.mxu0 %v5785_v7  ;;  %v5829_v54 = vpop.permute.xlu1 %5828  ;;  %12122 = vmatprep.mubr.msk.bf16.mxu0 %vm13272_vm1, %v17414_v25  ;;  %v15569_v61 = vpack.c.bf16 %v5643_v39, %v5643_v39 }
 0xf6b   :  { %v15554_v47 = vpack.c.bf16 %v5635_v14, %v5635_v14  ;;  %v5834_v11 = vsel %vm526_vm2, %v5829_v54, 0  ;;  %6073 = vrot.lane.b32.xlu0 %v15545_v2, %s13273_s2  ;;  %12117 = vmatmul.mubr.msk.bf16.vlgmr.msra.gmra.mrb[184].mxu1 %vm526_vm2, %v15504_v56 }
 0xf6c   :  { %12127 = vmatpush3.bf16.xpose.msra.mxu1 %v5834_v11  ;;  %12128 = vmatprep.mubr.msk.bf16.mxu1 %vm13272_vm1, %v17414_v25 }
 0xf6d   :  { %6122 = vrot.lane.b32.xlu1 %v15554_v47, %s13273_s2  ;;  %12132 = vmatprep.subr.bf16.mxu0 %v17414_v25 }
 0xf6e   :  { %12138 = vmatprep.subr.bf16.mxu1 %v17414_v25 }
 0xf6f   :  { %6171 = vrot.lane.b32.xlu0 %v15563_v27, %s13273_s2 }
 0xf71   :  { %6220 = vrot.lane.b32.xlu1 %v15569_v61, %s13273_s2  ;;  %12123 = vmatmul.mubr.msk.bf16.vlgmr.msra.gmra.mrb[156].mxu0 %vm526_vm2, %v15510_v20 }
 0xf72   :  { %12134 = vmatprep.mubr.msk.bf16.mxu0 %vm13272_vm1, %v17414_v25 }
 0xf73   :  { %12129 = vmatmul.mubr.msk.bf16.vlgmr.msra.gmra.mrb[188].mxu1 %vm526_vm2, %v15515_v50 }
 0xf74   :  { %12140 = vmatprep.mubr.msk.bf16.mxu1 %vm13272_vm1, %v17414_v25 }
 0xf75   :  { %v12106_v1 = vpop.f32.mrb[180].mxu1 }
 0xf76   :  { %v5647_v31 = vpop.f32.mrb[181].mxu1  ;;  %v5656_v41 = vadd.f32 %v12106_v1, %v15497_v60 }
 0xf77   :  { %v5648_v23 = vadd.f32 %v15497_v60, %v5647_v31  ;;  %v12107_v49 = vpop.f32.mrb[182].mxu1 }
 0xf78   :  { %v5650_v42 = vpop.f32.mrb[183].mxu1  ;;  %v5659_v46 = vadd.f32 %v12107_v49, %v15497_v60  ;;  %v15593_v17 = vpack.c.bf16 %v5656_v41, %v5656_v41 }
 0xf79   :  { %v15585_v32 = vpack.c.bf16 %v5648_v23, %v5648_v23  ;;  %v5651_v18 = vadd.f32 %v15497_v60, %v5650_v42 }
 0xf7a   :  { %v15597_v62 = vpack.c.bf16 %v5659_v46, %v5659_v46 }
 0xf7b   :  { %v15589_v45 = vpack.c.bf16 %v5651_v18, %v5651_v18  ;;  %6269 = vrot.lane.b32.xlu0 %v15585_v32, %s13273_s2 }
 0xf7d   :  { %6318 = vrot.lane.b32.xlu1 %v15589_v45, %s13273_s2 }
 0xf7f   :  { %6367 = vrot.lane.b32.xlu0 %v15593_v17, %s13273_s2 }
 0xf81   :  { %6416 = vrot.lane.b32.xlu1 %v15597_v62, %s13273_s2 }
 0xf83   :  { %6688 = vrot.lane.b32.xlu0 %v15500_v44, %s13274_s23 }
 0xf85   :  { %6736 = vrot.lane.b32.xlu1 %v15504_v56, %s13274_s23 }
 0xf87   :  { %6784 = vrot.lane.b32.xlu0 %v15510_v20, %s13274_s23 }
 0xf89   :  { %6832 = vrot.lane.b32.xlu1 %v15515_v50, %s13274_s23 }
 0xf8b   :  { %6880 = vrot.lane.b32.xlu0 %v15521_v12, %s13274_s23 }
 0xf8d   :  { %6928 = vrot.lane.b32.xlu1 %v15525_v28, %s13274_s23 }
 0xf8f   :  { %6976 = vrot.lane.b32.xlu0 %v15529_v13, %s13274_s23 }
 0xf91   :  { %7024 = vrot.lane.b32.xlu1 %v15533_v4, %s13274_s23 }
 0xfcd   :  { %v5878_v60 = vpop.permute.xlu0 %5877 }
 0xfce   :  { %v5883_v43 = vsel %vm526_vm2, %v5878_v60, 0 }
 0xfcf   :  { %12133 = vmatpush3.bf16.xpose.msra.mxu0 %v5883_v43  ;;  %v5927_v52 = vpop.permute.xlu1 %5926 }
 0xfd0   :  { %v5932_v8 = vsel %vm526_vm2, %v5927_v52, 0  ;;  %12144 = vmatprep.subr.bf16.mxu0 %v17414_v25  ;;  %v13239_v52 = vld [vmem:[%s17374_s1] ss:$0 sm:$0xff] }
 0xfd1   :  { %12139 = vmatpush3.bf16.xpose.msra.mxu1 %v5932_v8  ;;  %v5976_v36 = vpop.permute.xlu0 %5975 }
 0xfd2   :  { %12150 = vmatprep.subr.bf16.mxu1 %v17414_v25  ;;  %v5981_v3 = vsel %vm526_vm2, %v5976_v36, 0 }
 0xfd3   :  { %v6025_v21 = vpop.permute.xlu1 %6024 }
 0xfd4   :  { %v6030_v58 = vsel %vm526_vm2, %v6025_v21, 0 }
 0xfd6   :  { %12135 = vmatmul.mubr.msk.bf16.vlgmr.msra.gmra.mrb[160].mxu0 %vm526_vm2, %v15521_v12 }
 0xfd7   :  { %12145 = vmatpush3.bf16.xpose.msra.mxu0 %v5981_v3  ;;  %12146 = vmatprep.mubr.msk.bf16.mxu0 %vm13272_vm1, %v17414_v25 }
 0xfd8   :  { %12141 = vmatmul.mubr.msk.bf16.vlgmr.msra.gmra.mrb[192].mxu1 %vm526_vm2, %v15525_v28  ;;  %12156 = vmatprep.subr.bf16.mxu0 %v17414_v25 }
 0xfd9   :  { %12151 = vmatpush3.bf16.xpose.msra.mxu1 %v6030_v58  ;;  %12152 = vmatprep.mubr.msk.bf16.mxu1 %vm13272_vm1, %v17414_v25 }
 0xfda   :  { %12162 = vmatprep.subr.bf16.mxu1 %v17414_v25 }
 0xfdd   :  { %v6074_v35 = vpop.permute.xlu0 %6073 }
 0xfde   :  { %v6079_v9 = vsel %vm526_vm2, %v6074_v35, 0  ;;  %12147 = vmatmul.mubr.msk.bf16.vlgmr.msra.gmra.mrb[164].mxu0 %vm526_vm2, %v15529_v13  ;;  %v13240_v35 = vld [vmem:[%s17374_s1 + $0x1] ss:$0 sm:$0xff] }
 0xfdf   :  { %12157 = vmatpush3.bf16.xpose.msra.mxu0 %v6079_v9  ;;  %v6123_v30 = vpop.permute.xlu1 %6122  ;;  %12158 = vmatprep.mubr.msk.bf16.mxu0 %vm13272_vm1, %v17414_v25 }
 0xfe0   :  { %v6128_v59 = vsel %vm526_vm2, %v6123_v30, 0  ;;  %12153 = vmatmul.mubr.msk.bf16.vlgmr.msra.gmra.mrb[196].mxu1 %vm526_vm2, %v15533_v4  ;;  %12168 = vmatprep.subr.bf16.mxu0 %v17414_v25 }
 0xfe1   :  { %12163 = vmatpush3.bf16.xpose.msra.mxu1 %v6128_v59  ;;  %12164 = vmatprep.mubr.msk.bf16.mxu1 %vm13272_vm1, %v17414_v25  ;;  %v6172_v33 = vpop.permute.xlu0 %6171 }
 0xfe2   :  { %12174 = vmatprep.subr.bf16.mxu1 %v17414_v25  ;;  %v6177_v34 = vsel %vm526_vm2, %v6172_v33, 0 }
 0xfe3   :  { %v6221_v53 = vpop.permute.xlu1 %6220 }
 0xfe4   :  { %v6226_v40 = vsel %vm526_vm2, %v6221_v53, 0 }
 0xfe6   :  { %12159 = vmatmul.mubr.msk.bf16.vlgmr.msra.gmra.mrb[168].mxu0 %vm526_vm2, %v15545_v2 }
 0xfe7   :  { %12169 = vmatpush3.bf16.xpose.msra.mxu0 %v6177_v34  ;;  %12170 = vmatprep.mubr.msk.bf16.mxu0 %vm13272_vm1, %v17414_v25 }
 0xfe8   :  { %12165 = vmatmul.mubr.msk.bf16.vlgmr.msra.gmra.mrb[200].mxu1 %vm526_vm2, %v15554_v47  ;;  %12180 = vmatprep.subr.bf16.mxu0 %v17414_v25 }
 0xfe9   :  { %12175 = vmatpush3.bf16.xpose.msra.mxu1 %v6226_v40  ;;  %12176 = vmatprep.mubr.msk.bf16.mxu1 %vm13272_vm1, %v17414_v25 }
 0xfea   :  { %12186 = vmatprep.subr.bf16.mxu1 %v17414_v25 }
 0xfed   :  { %v6270_v22 = vpop.permute.xlu0 %6269 }
 0xfee   :  { %v6275_v63 = vsel %vm526_vm2, %v6270_v22, 0  ;;  %12171 = vmatmul.mubr.msk.bf16.vlgmr.msra.gmra.mrb[172].mxu0 %vm526_vm2, %v15563_v27 }
 0xfef   :  { %12181 = vmatpush3.bf16.xpose.msra.mxu0 %v6275_v63  ;;  %v6319_v7 = vpop.permute.xlu1 %6318  ;;  %12182 = vmatprep.mubr.msk.bf16.mxu0 %vm13272_vm1, %v17414_v25 }
 0xff0   :  { %v6324_v14 = vsel %vm526_vm2, %v6319_v7, 0  ;;  %12177 = vmatmul.mubr.msk.bf16.vlgmr.msra.gmra.mrb[204].mxu1 %vm526_vm2, %v15569_v61  ;;  %12192 = vmatprep.subr.bf16.mxu0 %v17414_v25  ;;  %v13241_v7 = vld [vmem:[%s17374_s1 + $0x2] ss:$0 sm:$0xff] }
 0xff1   :  { %12187 = vmatpush3.bf16.xpose.msra.mxu1 %v6324_v14  ;;  %12188 = vmatprep.mubr.msk.bf16.mxu1 %vm13272_vm1, %v17414_v25  ;;  %v6368_v54 = vpop.permute.xlu0 %6367 }
 0xff2   :  { %12198 = vmatprep.subr.bf16.mxu1 %v17414_v25  ;;  %v6373_v11 = vsel %vm526_vm2, %v6368_v54, 0 }
 0xff3   :  { %v6417_v39 = vpop.permute.xlu1 %6416 }
 0xff4   :  { %v6422_v1 = vsel %vm526_vm2, %v6417_v39, 0 }
 0xff5   :  { %v6689_v31 = vpop.permute.xlu0 %6688 }
 0xff6   :  { %12183 = vmatmul.mubr.msk.bf16.vlgmr.msra.gmra.mrb[176].mxu0 %vm526_vm2, %v15585_v32  ;;  %v6694_v49 = vsel %vm1634_vm3, %v6689_v31, 0  ;;  %v13242_v31 = vld [vmem:[%s17374_s1 + $0x3] ss:$0 sm:$0xff] }
 0xff7   :  { %12193 = vmatpush3.bf16.xpose.msra.mxu0 %v6373_v11  ;;  %12194 = vmatprep.mubr.msk.bf16.mxu0 %vm13272_vm1, %v17414_v25  ;;  %v6737_v23 = vpop.permute.xlu1 %6736 }
 0xff8   :  { %12189 = vmatmul.mubr.msk.bf16.vlgmr.msra.gmra.mrb[208].mxu1 %vm526_vm2, %v15589_v45  ;;  %12204 = vmatprep.subr.bf16.mxu0 %v17414_v25  ;;  %v6742_v42 = vsel %vm1634_vm3, %v6737_v23, 0 }
 0xff9   :  { %12199 = vmatpush3.bf16.xpose.msra.mxu1 %v6422_v1  ;;  %12200 = vmatprep.mubr.msk.bf16.mxu1 %vm13272_vm1, %v17414_v25 }
 0xffa   :  { %12210 = vmatprep.subr.bf16.mxu1 %v17414_v25 }
 0xffe   :  { %12195 = vmatmul.mubr.msk.bf16.vlgmr.msra.gmra.mrb[180].mxu0 %vm526_vm2, %v15593_v17 }
 0xfff   :  { %12205 = vmatpush3.bf16.msra.mxu0 %v6694_v49  ;;  %12206 = vmatprep.mubr.msk.bf16.mxu0 %vm13272_vm1, %v17414_v25 }
0x1000   :  { %12201 = vmatmul.mubr.msk.bf16.vlgmr.msra.gmra.mrb[212].mxu1 %vm526_vm2, %v15597_v62  ;;  %12216 = vmatprep.subr.bf16.mxu0 %v17414_v25 }
0x1001   :  { %12211 = vmatpush3.bf16.msra.mxu1 %v6742_v42  ;;  %12212 = vmatprep.mubr.msk.bf16.mxu1 %vm13272_vm1, %v17414_v25 }
0x1002   :  { %12222 = vmatprep.subr.bf16.mxu1 %v17414_v25 }
0x103c   :  { %v5723_v41 = vpop.f32.mrb[152].mxu0 }
0x103d   :  { %v6464_v18 = vmul.f32 0.25, %v5723_v41  ;;  %v12112_v46 = vpop.f32.mrb[153].mxu0 }
0x103e   :  { %v5726_v60 = vpop.f32.mrb[154].mxu0  ;;  %v5772_v43 = vpop.f32.mrb[184].mxu1 }
0x103f   :  { %v15698_v8 = vadd.f32 %v13239_v52, %v6464_v18  ;;  %v6465_v36 = vmul.f32 0.25, %v5772_v43  ;;  %v12113_v21 = vpop.f32.mrb[155].mxu0  ;;  %v12118_v3 = vpop.f32.mrb[185].mxu1 }
0x1040   :  { %v5775_v58 = vpop.f32.mrb[186].mxu1 }
0x1041   :  { %v15703_v9 = vadd.f32 %v13240_v35, %v6465_v36  ;;  %v12119_v30 = vpop.f32.mrb[187].mxu1  ;;  %v6496_v59 = vsel %vm1436_vm4, %v15698_v8, -inf }
0x1042   :  { %6497 = vmax.xlane.f32.xlu0 %v6496_v59 }
0x1043   :  { %v6499_v33 = vsel %vm1436_vm4, %v15703_v9, -inf }
0x1044   :  { %6500 = vmax.xlane.f32.xlu1 %v6499_v33  ;;  %v5821_v53 = vpop.f32.mrb[156].mxu0 }
0x1045   :  { %v6466_v34 = vmul.f32 0.25, %v5821_v53  ;;  %v12124_v40 = vpop.f32.mrb[157].mxu0 }
0x1046   :  { %v5824_v22 = vpop.f32.mrb[158].mxu0  ;;  %v5870_v63 = vpop.f32.mrb[188].mxu1 }
0x1047   :  { %v15712_v14 = vadd.f32 %v13241_v7, %v6466_v34  ;;  %v6467_v54 = vmul.f32 0.25, %v5870_v63  ;;  %v12125_v39 = vpop.f32.mrb[159].mxu0  ;;  %v12130_v11 = vpop.f32.mrb[189].mxu1 }
0x1048   :  { %v5873_v1 = vpop.f32.mrb[190].mxu1  ;;  %v15733_v63 = vpop.permute.xlu0 %6784 }
0x1049   :  { %v15717_v23 = vadd.f32 %v13242_v31, %v6467_v54  ;;  %v12131_v49 = vpop.f32.mrb[191].mxu1  ;;  %v6502_v42 = vsel %vm1436_vm4, %v15712_v14, -inf }
0x104a   :  { %6503 = vmax.xlane.f32.xlu0 %v6502_v42  ;;  %v15737_v42 = vpop.permute.xlu1 %6832 }
0x104b   :  { %v6505_v41 = vsel %vm1436_vm4, %v15717_v23, -inf }
0x104e   :  { %6506 = vmax.xlane.f32.xlu0 %v6505_v41 }
0x10a9   :  { %v15723_v18 = vpop.f32.mrb[160].mxu0 }
0x10aa   :  { %v12136_v46 = vpop.f32.mrb[161].mxu0 }
0x10ab   :  { %v5922_v60 = vpop.f32.mrb[162].mxu0  ;;  %v15725_v43 = vpop.f32.mrb[192].mxu1 }
0x10ac   :  { %v12137_v52 = vpop.f32.mrb[163].mxu0  ;;  %v12142_v36 = vpop.f32.mrb[193].mxu1 }
0x10ad   :  { %v5971_v21 = vpop.f32.mrb[194].mxu1  ;;  %v15741_v46 = vpop.permute.xlu0 %6880 }
0x10ae   :  { %v12143_v3 = vpop.f32.mrb[195].mxu1 }
0x10b1   :  { %v15727_v58 = vpop.f32.mrb[164].mxu0 }
0x10b2   :  { %v12148_v35 = vpop.f32.mrb[165].mxu0 }
0x10b3   :  { %v6020_v30 = vpop.f32.mrb[166].mxu0  ;;  %v15729_v59 = vpop.f32.mrb[196].mxu1 }
0x10b4   :  { %v12149_v33 = vpop.f32.mrb[167].mxu0  ;;  %v12154_v53 = vpop.f32.mrb[197].mxu1 }
0x10b5   :  { %v6069_v34 = vpop.f32.mrb[198].mxu1  ;;  %v15745_v33 = vpop.permute.xlu1 %6928 }
0x10b6   :  { %v12155_v40 = vpop.f32.mrb[199].mxu1  ;;  %v15749_v34 = vpop.permute.xlu0 %6976 }
0x10b9   :  { %v15731_v22 = vpop.f32.mrb[168].mxu0 }
0x10ba   :  { %v12160_v7 = vpop.f32.mrb[169].mxu0 }
0x10bb   :  { %v6118_v54 = vpop.f32.mrb[170].mxu0  ;;  %v15735_v39 = vpop.f32.mrb[200].mxu1 }
0x10bc   :  { %v12161_v11 = vpop.f32.mrb[171].mxu0  ;;  %v12166_v1 = vpop.f32.mrb[201].mxu1 }
0x10bd   :  { %v6167_v31 = vpop.f32.mrb[202].mxu1 }
0x10be   :  { %v12167_v49 = vpop.f32.mrb[203].mxu1  ;;  %v15753_v31 = vpop.permute.xlu1 %7024 }
0x10c1   :  { %v15739_v41 = vpop.f32.mrb[172].mxu0 }
0x10c2   :  { %v12172_v60 = vpop.f32.mrb[173].mxu0 }
0x10c3   :  { %v6216_v52 = vpop.f32.mrb[174].mxu0  ;;  %v15743_v36 = vpop.f32.mrb[204].mxu1 }
0x10c4   :  { %v12173_v21 = vpop.f32.mrb[175].mxu0  ;;  %v12178_v3 = vpop.f32.mrb[205].mxu1 }
0x10c5   :  { %v6265_v35 = vpop.f32.mrb[206].mxu1 }
0x10c6   :  { %v12179_v30 = vpop.f32.mrb[207].mxu1 }
0x10c9   :  { %v15747_v53 = vpop.f32.mrb[176].mxu0 }
0x10ca   :  { %v12184_v40 = vpop.f32.mrb[177].mxu0 }
0x10cb   :  { %v6314_v7 = vpop.f32.mrb[178].mxu0  ;;  %v15751_v54 = vpop.f32.mrb[208].mxu1 }
0x10cc   :  { %v12185_v11 = vpop.f32.mrb[179].mxu0  ;;  %v12190_v1 = vpop.f32.mrb[209].mxu1 }
0x10cd   :  { %v6363_v49 = vpop.f32.mrb[210].mxu1 }
0x10ce   :  { %v12191_v60 = vpop.f32.mrb[211].mxu1 }
0x10cf   :  { %v6498_v52 = vpop.xlane.xlu0 %6497 }
0x10d0   :  { %v6544_v21 = vsub.f32 %v15698_v8, %v6498_v52 }
0x10d1   :  { %v15756_v3 = vpop.f32.mrb[180].mxu0  ;;  %v6501_v35 = vpop.xlane.xlu1 %6500 }
0x10d2   :  { %v6560_v30 = vmul.f32 1.442695, %v6544_v21  ;;  %v6545_v26 = vsub.f32 %v15703_v9, %v6501_v35  ;;  %v12196_v48 = vpop.f32.mrb[181].mxu0 }
0x10d3   :  { %v6412_v40 = vpop.f32.mrb[182].mxu0  ;;  %v15759_v7 = vpop.f32.mrb[212].mxu1 }
0x10d4   :  { %12967 = vpow2.f32 %v6560_v30  ;;  %v6562_v11 = vmul.f32 1.442695, %v6545_v26  ;;  %v12197_v1 = vpop.f32.mrb[183].mxu0  ;;  %v12202_v15 = vpop.f32.mrb[213].mxu1  ;;  %v6469_v30 = vmul.f32 0.25, %v15725_v43  ;;  %v6470_v40 = vmul.f32 0.25, %v15727_v58 }
0x10d5   :  { %v6461_v55 = vpop.f32.mrb[214].mxu1  ;;  %v6468_v15 = vmul.f32 0.25, %v15723_v18  ;;  %v13244_v18 = vld [vmem:[%s17374_s1 + $0x5] ss:$0 sm:$0xff]  ;;  %v13245_v43 = vld [vmem:[%s17374_s1 + $0x6] ss:$0 sm:$0xff] }
0x10d6   :  { %12969 = vpow2.f32 %v6562_v11  ;;  %v12203_v49 = vpop.f32.mrb[215].mxu1  ;;  %v15795_v58 = vadd.f32 %v13245_v43, %v6470_v40 }
0x10d7   :  { %v6504_v60 = vpop.xlane.xlu0 %6503  ;;  %v15788_v49 = vadd.f32 %v13244_v18, %v6469_v30  ;;  %v13248_v30 = vld [vmem:[%s17374_s1 + $0x9] ss:$0 sm:$0xff]  ;;  %v13249_v18 = vld [vmem:[%s17374_s1 + $0xa] ss:$0 sm:$0xff] }
0x10d8   :  { %v6546_v8 = vsub.f32 %v15712_v14, %v6504_v60 }
0x10da   :  { %v6564_v52 = vmul.f32 1.442695, %v6546_v8  ;;  %v6471_v8 = vmul.f32 0.25, %v15729_v59  ;;  %v13247_v59 = vld [vmem:[%s17374_s1 + $0x8] ss:$0 sm:$0xff] }
0x10db   :  { %v6507_v6 = vpop.xlane.xlu0 %6506 }
0x10dc   :  { %12971 = vpow2.f32 %v6564_v52  ;;  %v6547_v21 = vsub.f32 %v15717_v23, %v6507_v6  ;;  %v13243_v6 = vld [vmem:[%s17374_s1 + $0x4] ss:$0 sm:$0xff]  ;;  %v6472_v52 = vmul.f32 0.25, %v15731_v22 }
0x10dd   :  { %v15777_v23 = vadd.f32 %v13243_v6, %v6468_v15  ;;  %v6474_v6 = vmul.f32 0.25, %v15739_v41  ;;  %v6476_v41 = vmul.f32 0.25, %v15747_v53  ;;  %v13251_v53 = vld [vmem:[%s17374_s1 + $0xc] ss:$0 sm:$0xff] }
0x10de   :  { %v15763_v9 = vpop.eup %12967  ;;  %v6566_v48 = vmul.f32 1.442695, %v6547_v21  ;;  %v15812_v22 = vadd.f32 %v13247_v59, %v6472_v52 }
0x10df   :  { %v6592_v35 = vsel %vm1436_vm4, %v15763_v9, 0.0  ;;  %v6508_v60 = vsel %vm1436_vm4, %v15777_v23, -inf }
0x10e0   :  { %v15767_v26 = vpop.eup %12969  ;;  %12973 = vpow2.f32 %v6566_v48  ;;  %6593 = vadd.xlane.f32.xlu0 %v6592_v35  ;;  %v6473_v48 = vmul.f32 0.25, %v15735_v39  ;;  %v6511_v35 = vsel %vm1436_vm4, %v15788_v49, -inf  ;;  %v6514_v39 = vsel %vm1436_vm4, %v15795_v58, -inf }
0x10e1   :  { %v6595_v55 = vsel %vm1436_vm4, %v15767_v26, 0.0  ;;  %v6520_v43 = vsel %vm1436_vm4, %v15812_v22, -inf }
0x10e2   :  { %6596 = vadd.xlane.f32.xlu1 %v6595_v55  ;;  %v13246_v55 = vld [vmem:[%s17374_s1 + $0x7] ss:$0 sm:$0xff]  ;;  %v15820_v40 = vadd.f32 %v13248_v30, %v6473_v48  ;;  %v15843_v48 = vadd.f32 %v13251_v53, %v6476_v41  ;;  %v13253_v30 = vld [vmem:[%s17374_s1 + $0xe] ss:$0 sm:$0xff] }
0x10e3   :  { %v15807_v15 = vadd.f32 %v13246_v55, %v6471_v8  ;;  %v6478_v55 = vmul.f32 0.25, %v15756_v3 }
0x10e5   :  { %v6517_v8 = vsel %vm1436_vm4, %v15807_v15, -inf }
0x10e6   :  { %v15772_v14 = vpop.eup %12971 }
0x10e7   :  { %v6598_v11 = vsel %vm1436_vm4, %v15772_v14, 0.0 }
0x10e8   :  { %6599 = vadd.xlane.f32.xlu0 %v6598_v11  ;;  %v6475_v11 = vmul.f32 0.25, %v15743_v36  ;;  %v13250_v36 = vld [vmem:[%s17374_s1 + $0xb] ss:$0 sm:$0xff] }
0x10ea   :  { %v15783_v1 = vpop.eup %12973  ;;  %v15836_v52 = vadd.f32 %v13250_v36, %v6475_v11  ;;  %v15857_v11 = vadd.f32 %v13253_v30, %v6478_v55 }
0x10eb   :  { %v6601_v21 = vsel %vm1436_vm4, %v15783_v1, 0.0 }
0x10ec   :  { %6509 = vmax.xlane.f32.xlu0 %v6508_v60  ;;  %6602 = vadd.xlane.f32.xlu1 %v6601_v21  ;;  %v15826_v60 = vadd.f32 %v13249_v18, %v6474_v6  ;;  %v6523_v21 = vsel %vm1436_vm4, %v15820_v40, -inf  ;;  %v13252_v6 = vld [vmem:[%s17374_s1 + $0xd] ss:$0 sm:$0xff]  ;;  %v6529_v3 = vsel %vm1436_vm4, %v15836_v52, -inf  ;;  %v6538_v18 = vsel %vm1436_vm4, %v15857_v11, -inf }
0x10ee   :  { %v6526_v59 = vsel %vm1436_vm4, %v15826_v60, -inf }
0x10f0   :  { %6515 = vmax.xlane.f32.xlu0 %v6514_v39  ;;  %6512 = vmax.xlane.f32.xlu1 %v6511_v35  ;;  %v6477_v35 = vmul.f32 0.25, %v15751_v54  ;;  %v6532_v54 = vsel %vm1436_vm4, %v15843_v48, -inf }
0x10f2   :  { %v15852_v39 = vadd.f32 %v13252_v6, %v6477_v35 }
0x10f4   :  { %6521 = vmax.xlane.f32.xlu0 %v6520_v43  ;;  %6518 = vmax.xlane.f32.xlu1 %v6517_v8  ;;  %v6535_v41 = vsel %vm1436_vm4, %v15852_v39, -inf  ;;  %v6479_v43 = vmul.f32 0.25, %v15759_v7  ;;  %v13254_v8 = vld [vmem:[%s17374_s1 + $0xf] ss:$0 sm:$0xff] }
0x10f6   :  { %v15877_v36 = vadd.f32 %v13254_v8, %v6479_v43  ;;  %v6790_v8 = vsel %vm1634_vm3, %v15733_v63, 0 }
0x10f8   :  { %6527 = vmax.xlane.f32.xlu0 %v6526_v59  ;;  %6524 = vmax.xlane.f32.xlu1 %v6523_v21  ;;  %v6541_v21 = vsel %vm1436_vm4, %v15877_v36, -inf }
0x10fc   :  { %6533 = vmax.xlane.f32.xlu0 %v6532_v54  ;;  %6530 = vmax.xlane.f32.xlu1 %v6529_v3 }
0x1100   :  { %6539 = vmax.xlane.f32.xlu0 %v6538_v18  ;;  %6536 = vmax.xlane.f32.xlu1 %v6535_v41 }
0x1111   :  { %7120 = vrot.lane.b32.xlu1 %v15554_v47, %s13274_s23 }
0x1115   :  { %7168 = vrot.lane.b32.xlu1 %v15563_v27, %s13274_s23 }
0x1116   :  { %7072 = vrot.lane.b32.xlu0 %v15545_v2, %s13274_s23 }
0x1139   :  { %6542 = vmax.xlane.f32.xlu1 %v6541_v21 }
0x114a   :  { %7216 = vrot.lane.b32.xlu1 %v15569_v61, %s13274_s23 }
0x116d   :  { %v6594_v53 = vpop.xlane.xlu0 %6593 }
0x116e   :  { %12975 = vrcp.f32 %v6594_v53 }
0x116f   :  { %v6597_v35 = vpop.xlane.xlu1 %6596 }
0x1170   :  { %12977 = vrcp.f32 %v6597_v35 }
0x1175   :  { %v6600_v55 = vpop.xlane.xlu0 %6599 }
0x1176   :  { %12979 = vrcp.f32 %v6600_v55 }
0x1178   :  { %v12976_v7 = vpop.eup %12975 }
0x1179   :  { %v6510_v59 = vpop.xlane.xlu0 %6509  ;;  %v6603_v6 = vpop.xlane.xlu1 %6602  ;;  %v6656_v30 = vmul.f32 %v12976_v7, %v15763_v9 }
0x117a   :  { %v12978_v54 = vpop.eup %12977  ;;  %v6548_v3 = vsub.f32 %v15777_v23, %v6510_v59  ;;  %12981 = vrcp.f32 %v6603_v6 }
0x117b   :  { %v6672_v18 = vpack.c.bf16 %v6656_v30, %v6656_v30  ;;  %v6657_v41 = vmul.f32 %v12978_v54, %v15767_v26  ;;  %v6838_v26 = vsel %vm1634_vm3, %v15737_v42, 0 }
0x117c   :  { %v6568_v43 = vmul.f32 1.442695, %v6548_v3 }
0x117d   :  { %12207 = vmatmul.mubr.msk.bf16.vlgmr.msra.gmra.mrb[184].mxu0 %vm1436_vm4, %v6672_v18  ;;  %v6516_v21 = vpop.xlane.xlu0 %6515  ;;  %v6513_v53 = vpop.xlane.xlu1 %6512  ;;  %v6673_v35 = vpack.c.bf16 %v6657_v41, %v6657_v41  ;;  %v6886_v18 = vsel %vm1634_vm3, %v15741_v46, 0 }
0x117e   :  { %12983 = vpow2.f32 %v6568_v43  ;;  %12217 = vmatpush3.bf16.msra.mxu0 %v6790_v8  ;;  %v6550_v9 = vsub.f32 %v15795_v58, %v6516_v21  ;;  %v6549_v55 = vsub.f32 %v15788_v49, %v6513_v53  ;;  %12218 = vmatprep.mubr.msk.bf16.mxu0 %vm13272_vm1, %v17414_v25 }
0x117f   :  { %12213 = vmatmul.mubr.msk.bf16.vlgmr.msra.gmra.mrb[216].mxu1 %vm1436_vm4, %v6673_v35  ;;  %12228 = vmatprep.subr.bf16.mxu0 %v17414_v25  ;;  %v6934_v35 = vsel %vm1634_vm3, %v15745_v33, 0 }
0x1180   :  { %v12980_v63 = vpop.eup %12979  ;;  %v6572_v23 = vmul.f32 1.442695, %v6550_v9  ;;  %v6570_v7 = vmul.f32 1.442695, %v6549_v55  ;;  %12223 = vmatpush3.bf16.msra.mxu1 %v6838_v26  ;;  %12224 = vmatprep.mubr.msk.bf16.mxu1 %vm13272_vm1, %v17414_v25 }
0x1181   :  { %v6522_v58 = vpop.xlane.xlu0 %6521  ;;  %v6519_v59 = vpop.xlane.xlu1 %6518  ;;  %v6658_v49 = vmul.f32 %v12980_v63, %v15772_v14  ;;  %12234 = vmatprep.subr.bf16.mxu1 %v17414_v25 }
0x1182   :  { %12985 = vpow2.f32 %v6572_v23  ;;  %v6552_v42 = vsub.f32 %v15812_v22, %v6522_v58  ;;  %v6551_v6 = vsub.f32 %v15807_v15, %v6519_v59 }
0x1183   :  { %12987 = vpow2.f32 %v6570_v7  ;;  %v6674_v30 = vpack.c.bf16 %v6658_v49, %v6658_v49 }
0x1184   :  { %v12982_v54 = vpop.eup %12981  ;;  %v6574_v3 = vmul.f32 1.442695, %v6551_v6  ;;  %v6576_v41 = vmul.f32 1.442695, %v6552_v42 }
0x1185   :  { %12219 = vmatmul.mubr.msk.bf16.vlgmr.msra.gmra.mrb[188].mxu0 %vm1436_vm4, %v6674_v30  ;;  %v6528_v43 = vpop.xlane.xlu0 %6527  ;;  %v6525_v8 = vpop.xlane.xlu1 %6524  ;;  %v6659_v14 = vmul.f32 %v12982_v54, %v15783_v1 }
0x1186   :  { %12229 = vmatpush3.bf16.msra.mxu0 %v6886_v18  ;;  %v6554_v21 = vsub.f32 %v15826_v60, %v6528_v43  ;;  %v6553_v22 = vsub.f32 %v15820_v40, %v6525_v8  ;;  %12230 = vmatprep.mubr.msk.bf16.mxu0 %vm13272_vm1, %v17414_v25  ;;  %12989 = vpow2.f32 %v6574_v3 }
0x1187   :  { %v6675_v15 = vpack.c.bf16 %v6659_v14, %v6659_v14  ;;  %12240 = vmatprep.subr.bf16.mxu0 %v17414_v25  ;;  %12991 = vpow2.f32 %v6576_v41 }
0x1188   :  { %v15912_v46 = vpop.eup %12983  ;;  %v6578_v53 = vmul.f32 1.442695, %v6553_v22  ;;  %v6580_v1 = vmul.f32 1.442695, %v6554_v21 }
0x1189   :  { %12225 = vmatmul.mubr.msk.bf16.vlgmr.msra.gmra.mrb[220].mxu1 %vm1436_vm4, %v6675_v15  ;;  %v6531_v60 = vpop.xlane.xlu1 %6530  ;;  %v6604_v40 = vsel %vm1436_vm4, %v15912_v46, 0.0  ;;  %v6534_v18 = vpop.xlane.xlu0 %6533 }
0x118a   :  { %12235 = vmatpush3.bf16.msra.mxu1 %v6934_v35  ;;  %v6555_v9 = vsub.f32 %v15836_v52, %v6531_v60  ;;  %6605 = vadd.xlane.f32.xlu0 %v6604_v40  ;;  %12993 = vpow2.f32 %v6578_v53  ;;  %v6556_v43 = vsub.f32 %v15843_v48, %v6534_v18 }
0x118b   :  { %12236 = vmatprep.mubr.msk.bf16.mxu1 %vm13272_vm1, %v17414_v25  ;;  %12246 = vmatprep.subr.bf16.mxu1 %v17414_v25  ;;  %12995 = vpow2.f32 %v6580_v1 }
0x118c   :  { %v15923_v55 = vpop.eup %12985  ;;  %v6582_v33 = vmul.f32 1.442695, %v6555_v9  ;;  %v6584_v22 = vmul.f32 1.442695, %v6556_v43 }
0x118d   :  { %v15925_v26 = vpop.eup %12987  ;;  %v6610_v63 = vsel %vm1436_vm4, %v15923_v55, 0.0  ;;  %v6537_v41 = vpop.xlane.xlu1 %6536 }
0x118e   :  { %6611 = vadd.xlane.f32.xlu0 %v6610_v63  ;;  %v6607_v52 = vsel %vm1436_vm4, %v15925_v26, 0.0  ;;  %12997 = vpow2.f32 %v6582_v33  ;;  %v6557_v8 = vsub.f32 %v15852_v39, %v6537_v41  ;;  %v6540_v14 = vpop.xlane.xlu0 %6539 }
0x118f   :  { %6608 = vadd.xlane.f32.xlu1 %v6607_v52  ;;  %v6558_v15 = vsub.f32 %v15857_v11, %v6540_v14  ;;  %12999 = vpow2.f32 %v6584_v22 }
0x1190   :  { %v15931_v23 = vpop.eup %12989  ;;  %v6586_v53 = vmul.f32 1.442695, %v6557_v8 }
0x1191   :  { %v6613_v7 = vsel %vm1436_vm4, %v15931_v23, 0.0  ;;  %v15935_v58 = vpop.eup %12991  ;;  %v15957_v21 = vpop.permute.xlu1 %7120  ;;  %v6588_v35 = vmul.f32 1.442695, %v6558_v15 }
0x1192   :  { %v6616_v49 = vsel %vm1436_vm4, %v15935_v58, 0.0  ;;  %13001 = vpow2.f32 %v6586_v53 }
0x1193   :  { %6614 = vadd.xlane.f32.xlu1 %v6613_v7  ;;  %13003 = vpow2.f32 %v6588_v35 }
0x1194   :  { %v15937_v59 = vpop.eup %12993 }
0x1195   :  { %v6619_v42 = vsel %vm1436_vm4, %v15937_v59, 0.0  ;;  %v15943_v6 = vpop.eup %12995  ;;  %v15960_v1 = vpop.permute.xlu1 %7168 }
0x1196   :  { %6620 = vadd.xlane.f32.xlu0 %v6619_v42  ;;  %v6622_v54 = vsel %vm1436_vm4, %v15943_v6, 0.0 }
0x1197   :  { %6617 = vadd.xlane.f32.xlu1 %v6616_v49  ;;  %v7073_v49 = vpop.permute.xlu0 %7072 }
0x1198   :  { %v15945_v30 = vpop.eup %12997 }
0x1199   :  { %v6625_v3 = vsel %vm1436_vm4, %v15945_v30, 0.0  ;;  %v15963_v48 = vpop.eup %12999 }
0x119a   :  { %6626 = vadd.xlane.f32.xlu0 %v6625_v3  ;;  %v6628_v33 = vsel %vm1436_vm4, %v15963_v48, 0.0 }
0x119b   :  { %6623 = vadd.xlane.f32.xlu1 %v6622_v54 }
0x119c   :  { %v15965_v39 = vpop.eup %13001 }
0x119d   :  { %v6631_v11 = vsel %vm1436_vm4, %v15965_v39, 0.0  ;;  %v15971_v63 = vpop.eup %13003 }
0x119e   :  { %v6634_v52 = vsel %vm1436_vm4, %v15971_v63, 0.0 }
0x11ac   :  { %7312 = vrot.lane.b32.xlu1 %v15589_v45, %s13274_s23 }
0x11b0   :  { %7264 = vrot.lane.b32.xlu0 %v15585_v32, %s13274_s23 }
0x11c6   :  { %v6543_v60 = vpop.xlane.xlu1 %6542 }
0x11c7   :  { %v6559_v40 = vsub.f32 %v15877_v36, %v6543_v60  ;;  %v6982_v60 = vsel %vm1634_vm3, %v15749_v34, 0 }
0x11c9   :  { %v6590_v9 = vmul.f32 1.442695, %v6559_v40 }
0x11ca   :  { %v16027_v54 = vpop.permute.xlu1 %7216 }
0x11cb   :  { %13005 = vpow2.f32 %v6590_v9 }
0x11cf   :  { %6632 = vadd.xlane.f32.xlu0 %v6631_v11 }
0x11d0   :  { %6629 = vadd.xlane.f32.xlu1 %v6628_v33 }
0x11d4   :  { %6635 = vadd.xlane.f32.xlu1 %v6634_v52  ;;  %v7078_v52 = vsel %vm1634_vm3, %v7073_v49, 0  ;;  %v7126_v49 = vsel %vm1634_vm3, %v15957_v21, 0 }
0x11d5   :  { %v15975_v36 = vpop.eup %13005 }
0x11d6   :  { %v6637_v7 = vsel %vm1436_vm4, %v15975_v36, 0.0 }
0x11d7   :  { %6638 = vadd.xlane.f32.xlu0 %v6637_v7 }
0x11e5   :  { %7408 = vrot.lane.b32.xlu1 %v15597_v62, %s13274_s23 }
0x11e9   :  { %7616 = vrot.lane.b32.xlu1 %v15500_v44, %s13275_s22 }
0x11ed   :  { %7666 = vrot.lane.b32.xlu1 %v15504_v56, %s13275_s22  ;;  %7360 = vrot.lane.b32.xlu0 %v15593_v17, %s13274_s23 }
0x11f1   :  { %7716 = vrot.lane.b32.xlu1 %v15510_v20, %s13275_s22  ;;  %7618 = vrot.lane.b32.xlu0 %v15500_v44, %s13276_s25 }
0x11f5   :  { %7766 = vrot.lane.b32.xlu1 %v15515_v50, %s13275_s22  ;;  %7668 = vrot.lane.b32.xlu0 %v15504_v56, %s13276_s25 }
0x11f9   :  { %7868 = vrot.lane.b32.xlu1 %v15525_v28, %s13276_s25  ;;  %7718 = vrot.lane.b32.xlu0 %v15510_v20, %s13276_s25 }
0x11fd   :  { %7866 = vrot.lane.b32.xlu1 %v15525_v28, %s13275_s22  ;;  %7768 = vrot.lane.b32.xlu0 %v15515_v50, %s13276_s25 }
0x1201   :  { %7968 = vrot.lane.b32.xlu1 %v15533_v4, %s13276_s25  ;;  %7818 = vrot.lane.b32.xlu0 %v15521_v12, %s13276_s25 }
0x1205   :  { %7966 = vrot.lane.b32.xlu1 %v15533_v4, %s13275_s22  ;;  %7816 = vrot.lane.b32.xlu0 %v15521_v12, %s13275_s22 }
0x1209   :  { %8068 = vrot.lane.b32.xlu1 %v15554_v47, %s13276_s25  ;;  %7918 = vrot.lane.b32.xlu0 %v15529_v13, %s13276_s25 }
0x120d   :  { %8066 = vrot.lane.b32.xlu1 %v15554_v47, %s13275_s22  ;;  %7916 = vrot.lane.b32.xlu0 %v15529_v13, %s13275_s22 }
0x1211   :  { %8168 = vrot.lane.b32.xlu1 %v15569_v61, %s13276_s25  ;;  %8018 = vrot.lane.b32.xlu0 %v15545_v2, %s13276_s25 }
0x1215   :  { %8166 = vrot.lane.b32.xlu1 %v15569_v61, %s13275_s22  ;;  %8016 = vrot.lane.b32.xlu0 %v15545_v2, %s13275_s22 }
0x1217   :  { %v6606_v42 = vpop.xlane.xlu0 %6605 }
0x1218   :  { %13007 = vrcp.f32 %v6606_v42 }
0x1219   :  { %8268 = vrot.lane.b32.xlu1 %v15589_v45, %s13276_s25  ;;  %8118 = vrot.lane.b32.xlu0 %v15563_v27, %s13276_s25 }
0x121b   :  { %v6612_v3 = vpop.xlane.xlu0 %6611 }
0x121c   :  { %13009 = vrcp.f32 %v6612_v3  ;;  %v6609_v18 = vpop.xlane.xlu1 %6608 }
0x121d   :  { %13011 = vrcp.f32 %v6609_v18  ;;  %8266 = vrot.lane.b32.xlu1 %v15589_v45, %s13275_s22  ;;  %8116 = vrot.lane.b32.xlu0 %v15563_v27, %s13275_s22 }
0x1220   :  { %v6615_v41 = vpop.xlane.xlu1 %6614 }
0x1221   :  { %13013 = vrcp.f32 %v6615_v41  ;;  %8368 = vrot.lane.b32.xlu1 %v15597_v62, %s13276_s25  ;;  %8218 = vrot.lane.b32.xlu0 %v15585_v32, %s13276_s25 }
0x1222   :  { %v13008_v43 = vpop.eup %13007 }
0x1223   :  { %v6660_v8 = vmul.f32 %v13008_v43, %v15912_v46  ;;  %v6621_v53 = vpop.xlane.xlu0 %6620 }
0x1224   :  { %v6618_v14 = vpop.xlane.xlu1 %6617 }
0x1225   :  { %8366 = vrot.lane.b32.xlu1 %v15597_v62, %s13275_s22  ;;  %8216 = vrot.lane.b32.xlu0 %v15585_v32, %s13275_s22  ;;  %v6676_v22 = vpack.c.bf16 %v6660_v8, %v6660_v8  ;;  %13015 = vrcp.f32 %v6618_v14 }
0x1226   :  { %v13010_v15 = vpop.eup %13009  ;;  %13017 = vrcp.f32 %v6621_v53 }
0x1227   :  { %v13012_v35 = vpop.eup %13011  ;;  %12231 = vmatmul.mubr.msk.bf16.vlgmr.msra.gmra.mrb[192].mxu0 %vm1436_vm4, %v6676_v22  ;;  %v6662_v9 = vmul.f32 %v13010_v15, %v15923_v55  ;;  %v6627_v11 = vpop.xlane.xlu0 %6626 }
0x1228   :  { %12241 = vmatpush3.bf16.msra.mxu0 %v6982_v60  ;;  %v6661_v46 = vmul.f32 %v13012_v35, %v15925_v26  ;;  %12242 = vmatprep.mubr.msk.bf16.mxu0 %vm13272_vm1, %v17414_v25  ;;  %v6624_v40 = vpop.xlane.xlu1 %6623  ;;  %v7030_v26 = vsel %vm1634_vm3, %v15753_v31, 0 }
0x1229   :  { %8688 = vrot.lane.b32.xlu1 %v15504_v56, %s13277_s26  ;;  %8318 = vrot.lane.b32.xlu0 %v15593_v17, %s13276_s25  ;;  %13019 = vrcp.f32 %v6624_v40  ;;  %v6678_v56 = vpack.c.bf16 %v6662_v9, %v6662_v9 }
0x122a   :  { %v6677_v33 = vpack.c.bf16 %v6661_v46, %v6661_v46  ;;  %12252 = vmatprep.subr.bf16.mxu0 %v17414_v25  ;;  %13021 = vrcp.f32 %v6627_v11 }
0x122b   :  { %v13014_v34 = vpop.eup %13013  ;;  %v7265_v43 = vpop.permute.xlu0 %7264 }
0x122c   :  { %12237 = vmatmul.mubr.msk.bf16.vlgmr.msra.gmra.mrb[224].mxu1 %vm1436_vm4, %v6677_v33  ;;  %v6663_v55 = vmul.f32 %v13014_v34, %v15931_v23  ;;  %v7270_v8 = vsel %vm1634_vm3, %v7265_v43, 0 }
0x122d   :  { %12247 = vmatpush3.bf16.msra.mxu1 %v7030_v26  ;;  %8784 = vrot.lane.b32.xlu1 %v15515_v50, %s13277_s26 }
0x122e   :  { %8316 = vrot.lane.b32.xlu0 %v15593_v17, %s13275_s22  ;;  %12248 = vmatprep.mubr.msk.bf16.mxu1 %vm13272_vm1, %v17414_v25  ;;  %v6679_v23 = vpack.c.bf16 %v6663_v55, %v6663_v55 }
0x122f   :  { %12243 = vmatmul.mubr.msk.bf16.vlgmr.msra.gmra.mrb[196].mxu0 %vm1436_vm4, %v6678_v56  ;;  %12258 = vmatprep.subr.bf16.mxu1 %v17414_v25  ;;  %v13016_v31 = vpop.eup %13015 }
0x1230   :  { %12253 = vmatpush3.bf16.msra.mxu0 %v7078_v52  ;;  %12254 = vmatprep.mubr.msk.bf16.mxu0 %vm13272_vm1, %v17414_v25  ;;  %v6664_v50 = vmul.f32 %v13016_v31, %v15935_v58  ;;  %v13018_v7 = vpop.eup %13017  ;;  %v7174_v58 = vsel %vm1634_vm3, %v15960_v1, 0 }
0x1231   :  { %12264 = vmatprep.subr.bf16.mxu0 %v17414_v25 }
0x1232   :  { %8640 = vrot.lane.b32.xlu0 %v15500_v44, %s13277_s26  ;;  %v6680_v42 = vpack.c.bf16 %v6664_v50, %v6664_v50  ;;  %v6665_v44 = vmul.f32 %v13018_v7, %v15937_v59 }
0x1233   :  { %v13020_v3 = vpop.eup %13019 }
0x1234   :  { %12249 = vmatmul.mubr.msk.bf16.vlgmr.msra.gmra.mrb[228].mxu1 %vm1436_vm4, %v6679_v23  ;;  %v6666_v21 = vmul.f32 %v13020_v3, %v15943_v6  ;;  %v6681_v18 = vpack.c.bf16 %v6665_v44, %v6665_v44  ;;  %v13022_v41 = vpop.eup %13021  ;;  %v7313_v6 = vpop.permute.xlu1 %7312 }
0x1235   :  { %12259 = vmatpush3.bf16.msra.mxu1 %v7126_v49  ;;  %12260 = vmatprep.mubr.msk.bf16.mxu1 %vm13272_vm1, %v17414_v25  ;;  %v6667_v1 = vmul.f32 %v13022_v41, %v15945_v30  ;;  %v7318_v14 = vsel %vm1634_vm3, %v7313_v6, 0 }
0x1236   :  { %8736 = vrot.lane.b32.xlu0 %v15510_v20, %s13277_s26  ;;  %12270 = vmatprep.subr.bf16.mxu1 %v17414_v25  ;;  %v7222_v20 = vsel %vm1634_vm3, %v16027_v54, 0  ;;  %v6682_v59 = vpack.c.bf16 %v6666_v21, %v6666_v21 }
0x1237   :  { %12255 = vmatmul.mubr.msk.bf16.vlgmr.msra.gmra.mrb[200].mxu0 %vm1436_vm4, %v6680_v42  ;;  %v6683_v54 = vpack.c.bf16 %v6667_v1, %v6667_v1 }
0x1238   :  { %12265 = vmatpush3.bf16.msra.mxu0 %v7174_v58  ;;  %12266 = vmatprep.mubr.msk.bf16.mxu0 %vm13272_vm1, %v17414_v25 }
0x1239   :  { %12276 = vmatprep.subr.bf16.mxu0 %v17414_v25 }
0x123c   :  { %12261 = vmatmul.mubr.msk.bf16.vlgmr.msra.gmra.mrb[232].mxu1 %vm1436_vm4, %v6681_v18 }
0x123d   :  { %12271 = vmatpush3.bf16.msra.mxu1 %v7222_v20  ;;  %12272 = vmatprep.mubr.msk.bf16.mxu1 %vm13272_vm1, %v17414_v25 }
0x123e   :  { %12282 = vmatprep.subr.bf16.mxu1 %v17414_v25 }
0x123f   :  { %12267 = vmatmul.mubr.msk.bf16.vlgmr.msra.gmra.mrb[204].mxu0 %vm1436_vm4, %v6682_v59 }
0x1240   :  { %12277 = vmatpush3.bf16.msra.mxu0 %v7270_v8  ;;  %12278 = vmatprep.mubr.msk.bf16.mxu0 %vm13272_vm1, %v17414_v25  ;;  %v12699_v8 = vld [vmem:[%s17375_s6 + $0x10] sm:$0xff]  }
0x1241   :  { %12288 = vmatprep.subr.bf16.mxu0 %v17414_v25 }
0x1244   :  { %12273 = vmatmul.mubr.msk.bf16.vlgmr.msra.gmra.mrb[236].mxu1 %vm1436_vm4, %v6683_v54 }
0x1245   :  { %12283 = vmatpush3.bf16.msra.mxu1 %v7318_v14  ;;  %12284 = vmatprep.mubr.msk.bf16.mxu1 %vm13272_vm1, %v17414_v25 }
0x1246   :  { %12294 = vmatprep.subr.bf16.mxu1 %v17414_v25 }
0x1250   :  { %v16110_v30 = vpop.f32.mrb[184].mxu0 }
0x1251   :  { %v12208_v22 = vpop.f32.mrb[185].mxu0 }
0x1252   :  { %v6733_v15 = vpop.f32.mrb[186].mxu0  ;;  %v6778_v53 = vpop.f32.mrb[216].mxu1 }
0x1253   :  { %v7456_v35 = vpack.c.bf16 %v6778_v53, %v16110_v30  ;;  %v12209_v60 = vpop.f32.mrb[187].mxu0  ;;  %v12214_v46 = vpop.f32.mrb[217].mxu1 }
0x1254   :  { %v6781_v40 = vpop.f32.mrb[218].mxu1 }
0x1255   :  { %v12215_v9 = vpop.f32.mrb[219].mxu1 }
0x1258   :  { %v16113_v33 = vpop.f32.mrb[188].mxu0 }
0x1259   :  { %v12220_v34 = vpop.f32.mrb[189].mxu0 }
0x125a   :  { %v6829_v26 = vpop.f32.mrb[190].mxu0 }
0x125b   :  { %v12221_v56 = vpop.f32.mrb[191].mxu0 }
0x125c   :  { %v6874_v11 = vpop.f32.mrb[220].mxu1  ;;  %v6633_v52 = vpop.xlane.xlu0 %6632 }
0x125d   :  { %v7457_v55 = vpack.c.bf16 %v6874_v11, %v16113_v33  ;;  %v6630_v31 = vpop.xlane.xlu1 %6629  ;;  %13023 = vrcp.f32 %v6633_v52  ;;  %v12226_v50 = vpop.f32.mrb[221].mxu1 }
0x125e   :  { %13025 = vrcp.f32 %v6630_v31  ;;  %v6877_v23 = vpop.f32.mrb[222].mxu1 }
0x125f   :  { %v12227_v7 = vpop.f32.mrb[223].mxu1 }
0x1261   :  { %v6636_v49 = vpop.xlane.xlu1 %6635 }
0x1262   :  { %13027 = vrcp.f32 %v6636_v49 }
0x1264   :  { %v6639_v42 = vpop.xlane.xlu0 %6638 }
0x1265   :  { %13029 = vrcp.f32 %v6639_v42  ;;  %v7409_v3 = vpop.permute.xlu1 %7408 }
0x1266   :  { %v7414_v54 = vsel %vm1634_vm3, %v7409_v3, 0 }
0x1267   :  { %v13024_v44 = vpop.eup %13023 }
0x1268   :  { %v7361_v58 = vpop.permute.xlu0 %7360  ;;  %v13026_v21 = vpop.eup %13025  ;;  %v6669_v41 = vmul.f32 %v13024_v44, %v15965_v39 }
0x1269   :  { %v7617_v18 = vpop.permute.xlu1 %7616  ;;  %v6668_v20 = vmul.f32 %v13026_v21, %v15963_v48  ;;  %v7366_v30 = vsel %vm1634_vm3, %v7361_v58, 0 }
0x126a   :  { %v6685_v43 = vpack.c.bf16 %v6669_v41, %v6669_v41 }
0x126b   :  { %v6684_v1 = vpack.c.bf16 %v6668_v20, %v6668_v20 }
0x126c   :  { %v7619_v59 = vpop.permute.xlu0 %7618  ;;  %v13028_v6 = vpop.eup %13027  ;;  %12285 = vmatmul.mubr.msk.bf16.vlgmr.msra.gmra.mrb[240].mxu1 %vm1436_vm4, %v6685_v43 }
0x126d   :  { %v7667_v14 = vpop.permute.xlu1 %7666  ;;  %12279 = vmatmul.mubr.msk.bf16.vlgmr.msra.gmra.mrb[208].mxu0 %vm1436_vm4, %v6684_v1  ;;  %12295 = vmatpush3.bf16.msra.mxu1 %v7414_v54  ;;  %v6670_v22 = vmul.f32 %v13028_v6, %v15971_v63  ;;  %v7624_v33 = vsel %vm526_vm2, %v7619_v59, 0 }
0x126e   :  { %12289 = vmatpush3.bf16.msra.mxu0 %v7366_v30  ;;  %12290 = vmatprep.mubr.msk.bf16.mxu0 %vm13272_vm1, %v17414_v25 }
0x126f   :  { %v13030_v39 = vpop.eup %13029  ;;  %12296 = vmatprep.mubr.msk.bf16.mxu1 %vm13272_vm1, %v17414_v25  ;;  %12300 = vmatprep.subr.bf16.mxu0 %v12699_v8  ;;  %v6686_v40 = vpack.c.bf16 %v6670_v22, %v6670_v22 }
0x1270   :  { %v7669_v48 = vpop.permute.xlu0 %7668  ;;  %v6671_v15 = vmul.f32 %v13030_v39, %v15975_v36  ;;  %12318 = vmatprep.subr.bf16.mxu1 %v17414_v25 }
0x1271   :  { %v7717_v53 = vpop.permute.xlu1 %7716  ;;  %v7674_v56 = vsel %vm526_vm2, %v7669_v48, 0 }
0x1272   :  { %v6687_v60 = vpack.c.bf16 %v6671_v15, %v6671_v15 }
0x1274   :  { %v7719_v46 = vpop.permute.xlu0 %7718  ;;  %12297 = vmatmul.mubr.msk.bf16.vlgmr.msra.gmra.mrb[244].mxu1 %vm1436_vm4, %v6687_v60 }
0x1275   :  { %12291 = vmatmul.mubr.msk.bf16.vlgmr.msra.gmra.mrb[212].mxu0 %vm1436_vm4, %v6686_v40  ;;  %v7767_v9 = vpop.permute.xlu1 %7766  ;;  %12320 = vmatprep.mubr.msk.bf16.mxu1 %vm13272_vm1, %v17414_v25  ;;  %v7724_v11 = vsel %vm526_vm2, %v7719_v46, 0 }
0x1276   :  { %12301 = vmatpush3.bf16.msra.mxu0 %v12699_v8  ;;  %12302 = vmatprep.mubr.msk.bf16.mxu0 %vm526_vm2, %v7456_v35 }
0x1277   :  { %12319 = vmatpush3.bf16.xpose.msra.mxu1 %v7624_v33  ;;  %12342 = vmatprep.subr.bf16.mxu0 %v17414_v25 }
0x1278   :  { %v7769_v63 = vpop.permute.xlu0 %7768  ;;  %12324 = vmatprep.subr.bf16.mxu1 %v17414_v25 }
0x1279   :  { %v7869_v36 = vpop.permute.xlu1 %7868  ;;  %v7774_v31 = vsel %vm526_vm2, %v7769_v63, 0 }
0x127a   :  { %v7874_v23 = vsel %vm526_vm2, %v7869_v36, 0 }
0x127c   :  { %v7819_v34 = vpop.permute.xlu0 %7818 }
0x127d   :  { %v7824_v26 = vsel %vm526_vm2, %v7819_v34, 0  ;;  %12303 = vmatmul.mubr.msk.bf16.vlgmr.msra.gmra.mrb[216].mxu0 %vm526_vm2, %v7457_v55  ;;  %v7867_v35 = vpop.permute.xlu1 %7866 }
0x127e   :  { %12321 = vmatmul.mubr.msk.bf16.vlgmr.msra.gmra.mrb[248].mxu1 %vm526_vm2, %v7617_v18 }
0x127f   :  { %12325 = vmatpush3.bf16.xpose.msra.mxu1 %v7674_v56  ;;  %12343 = vmatpush3.bf16.xpose.msra.mxu0 %v7824_v26 }
0x1280   :  { %12326 = vmatprep.mubr.msk.bf16.mxu1 %vm13272_vm1, %v17414_v25  ;;  %12330 = vmatprep.subr.bf16.mxu1 %v17414_v25 }
0x1281   :  { %12354 = vmatprep.subr.bf16.mxu0 %v17414_v25  ;;  %v7969_v52 = vpop.permute.xlu1 %7968 }
0x1282   :  { %v7974_v49 = vsel %vm526_vm2, %v7969_v52, 0 }
0x1285   :  { %v7967_v55 = vpop.permute.xlu1 %7966 }
0x1286   :  { %12327 = vmatmul.mubr.msk.bf16.vlgmr.msra.gmra.mrb[252].mxu1 %vm526_vm2, %v7667_v14 }
0x1287   :  { %12331 = vmatpush3.bf16.xpose.msra.mxu1 %v7724_v11  ;;  %12332 = vmatprep.mubr.msk.bf16.mxu1 %vm13272_vm1, %v17414_v25 }
0x1288   :  { %12336 = vmatprep.subr.bf16.mxu1 %v17414_v25 }
0x1289   :  { %v8069_v50 = vpop.permute.xlu1 %8068 }
0x128a   :  { %v8074_v44 = vsel %vm526_vm2, %v8069_v50, 0 }
0x128d   :  { %v8067_v7 = vpop.permute.xlu1 %8066 }
0x128e   :  { %12333 = vmatmul.mubr.msk.bf16.vlgmr.msra.gmra.mrb[0].mxu1 %vm526_vm2, %v7717_v53 }
0x128f   :  { %12337 = vmatpush3.bf16.xpose.msra.mxu1 %v7774_v31  ;;  %12338 = vmatprep.mubr.msk.bf16.mxu1 %vm13272_vm1, %v17414_v25 }
0x1290   :  { %12348 = vmatprep.subr.bf16.mxu1 %v17414_v25 }
0x1291   :  { %v8169_v42 = vpop.permute.xlu1 %8168 }
0x1292   :  { %v8174_v21 = vsel %vm526_vm2, %v8169_v42, 0 }
0x1295   :  { %v8167_v3 = vpop.permute.xlu1 %8166 }
0x1296   :  { %12339 = vmatmul.mubr.msk.bf16.vlgmr.msra.gmra.mrb[4].mxu1 %vm526_vm2, %v7767_v9 }
0x1297   :  { %12349 = vmatpush3.bf16.xpose.msra.mxu1 %v7874_v23  ;;  %12350 = vmatprep.mubr.msk.bf16.mxu1 %vm13272_vm1, %v17414_v25 }
0x1298   :  { %12360 = vmatprep.subr.bf16.mxu1 %v17414_v25 }
0x1299   :  { %v8269_v58 = vpop.permute.xlu1 %8268 }
0x129a   :  { %v8274_v41 = vsel %vm526_vm2, %v8269_v58, 0 }
0x129d   :  { %v8267_v18 = vpop.permute.xlu1 %8266 }
0x129e   :  { %12351 = vmatmul.mubr.msk.bf16.vlgmr.msra.gmra.mrb[8].mxu1 %vm526_vm2, %v7867_v35 }
0x129f   :  { %12361 = vmatpush3.bf16.xpose.msra.mxu1 %v7974_v49  ;;  %12362 = vmatprep.mubr.msk.bf16.mxu1 %vm13272_vm1, %v17414_v25 }
0x12a0   :  { %12372 = vmatprep.subr.bf16.mxu1 %v17414_v25 }
0x12a1   :  { %v8369_v20 = vpop.permute.xlu1 %8368 }
0x12a2   :  { %v8374_v59 = vsel %vm526_vm2, %v8369_v20, 0 }
0x12a5   :  { %v8367_v43 = vpop.permute.xlu1 %8366 }
0x12a6   :  { %12363 = vmatmul.mubr.msk.bf16.vlgmr.msra.gmra.mrb[12].mxu1 %vm526_vm2, %v7967_v55 }
0x12a7   :  { %12373 = vmatpush3.bf16.xpose.msra.mxu1 %v8074_v44  ;;  %12374 = vmatprep.mubr.msk.bf16.mxu1 %vm13272_vm1, %v17414_v25 }
0x12a8   :  { %12384 = vmatprep.subr.bf16.mxu1 %v17414_v25 }
0x12a9   :  { %v8689_v1 = vpop.permute.xlu1 %8688 }
0x12aa   :  { %v8694_v8 = vsel %vm1634_vm3, %v8689_v1, 0 }
0x12ae   :  { %12375 = vmatmul.mubr.msk.bf16.vlgmr.msra.gmra.mrb[16].mxu1 %vm526_vm2, %v8067_v7 }
0x12af   :  { %12385 = vmatpush3.bf16.xpose.msra.mxu1 %v8174_v21  ;;  %12386 = vmatprep.mubr.msk.bf16.mxu1 %vm13272_vm1, %v17414_v25 }
0x12b0   :  { %12396 = vmatprep.subr.bf16.mxu1 %v17414_v25 }
0x12b6   :  { %12387 = vmatmul.mubr.msk.bf16.vlgmr.msra.gmra.mrb[20].mxu1 %vm526_vm2, %v8167_v3 }
0x12b7   :  { %12397 = vmatpush3.bf16.xpose.msra.mxu1 %v8274_v41  ;;  %12398 = vmatprep.mubr.msk.bf16.mxu1 %vm13272_vm1, %v17414_v25 }
0x12b8   :  { %12408 = vmatprep.subr.bf16.mxu1 %v17414_v25 }
0x12be   :  { %12399 = vmatmul.mubr.msk.bf16.vlgmr.msra.gmra.mrb[24].mxu1 %vm526_vm2, %v8267_v18 }
0x12bf   :  { %12409 = vmatpush3.bf16.xpose.msra.mxu1 %v8374_v59  ;;  %12410 = vmatprep.mubr.msk.bf16.mxu1 %vm13272_vm1, %v17414_v25 }
0x12c0   :  { %12420 = vmatprep.subr.bf16.mxu1 %v17414_v25 }
0x12c6   :  { %12411 = vmatmul.mubr.msk.bf16.vlgmr.msra.gmra.mrb[28].mxu1 %vm526_vm2, %v8367_v43  ;;  %v7817_v43 = vpop.permute.xlu0 %7816 }
0x12c7   :  { %12421 = vmatpush3.bf16.msra.mxu1 %v8694_v8  ;;  %12422 = vmatprep.mubr.msk.bf16.mxu1 %vm13272_vm1, %v17414_v25 }
0x12c8   :  { %12432 = vmatprep.subr.bf16.mxu1 %v17414_v25 }
0x12ca   :  { %v7919_v59 = vpop.permute.xlu0 %7918 }
0x12ce   :  { %v7917_v1 = vpop.permute.xlu0 %7916 }
0x12fa   :  { %v6922_v6 = vpop.f32.mrb[192].mxu0 }
0x12fb   :  { %v12232_v54 = vpop.f32.mrb[193].mxu0 }
0x12fc   :  { %v6925_v14 = vpop.f32.mrb[194].mxu0 }
0x12fd   :  { %v12233_v30 = vpop.f32.mrb[195].mxu0 }
0x12ff   :  { %v6970_v39 = vpop.f32.mrb[224].mxu1 }
0x1300   :  { %v7458_v48 = vpack.c.bf16 %v6970_v39, %v6922_v6  ;;  %v12238_v22 = vpop.f32.mrb[225].mxu1 }
0x1301   :  { %v6973_v15 = vpop.f32.mrb[226].mxu1 }
0x1302   :  { %v12239_v53 = vpop.f32.mrb[227].mxu1  ;;  %12306 = vmatprep.mubr.msk.bf16.mxu0 %vm526_vm2, %v7458_v48  ;;  %v7018_v60 = vpop.f32.mrb[196].mxu0 }
0x1303   :  { %v12244_v46 = vpop.f32.mrb[197].mxu0  ;;  %v8019_v53 = vpop.permute.xlu0 %8018 }
0x1304   :  { %v7021_v40 = vpop.f32.mrb[198].mxu0 }
0x1305   :  { %v12245_v9 = vpop.f32.mrb[199].mxu0 }
0x1307   :  { %v7066_v33 = vpop.f32.mrb[228].mxu1 }
0x1308   :  { %v7459_v63 = vpack.c.bf16 %v7066_v33, %v7018_v60  ;;  %v12250_v36 = vpop.f32.mrb[229].mxu1 }
0x1309   :  { %v7069_v34 = vpop.f32.mrb[230].mxu1 }
0x130a   :  { %v12251_v26 = vpop.f32.mrb[231].mxu1  ;;  %12307 = vmatmul.mubr.msk.bf16.gmra.mrb[220].mxu0 %vm526_vm2, %v7459_v63  ;;  %v7114_v56 = vpop.f32.mrb[200].mxu0 }
0x130b   :  { %v12256_v35 = vpop.f32.mrb[201].mxu0 }
0x130c   :  { %v7117_v11 = vpop.f32.mrb[202].mxu0 }
0x130d   :  { %v12257_v52 = vpop.f32.mrb[203].mxu0 }
0x130f   :  { %v7162_v55 = vpop.f32.mrb[232].mxu1 }
0x1310   :  { %v7460_v31 = vpack.c.bf16 %v7162_v55, %v7114_v56  ;;  %v12262_v50 = vpop.f32.mrb[233].mxu1  ;;  %v8017_v56 = vpop.permute.xlu0 %8016  ;;  %v7924_v55 = vsel %vm526_vm2, %v7919_v59, 0 }
0x1311   :  { %v7165_v23 = vpop.f32.mrb[234].mxu1 }
0x1312   :  { %v12263_v7 = vpop.f32.mrb[235].mxu1  ;;  %12310 = vmatprep.mubr.msk.bf16.mxu0 %vm526_vm2, %v7460_v31  ;;  %v7210_v49 = vpop.f32.mrb[204].mxu0  ;;  %v13255_v23 = vld [vmem:[%s17374_s1] ss:$0 sm:$0xff] }
0x1313   :  { %v12268_v42 = vpop.f32.mrb[205].mxu0 }
0x1314   :  { %v7213_v3 = vpop.f32.mrb[206].mxu0  ;;  %v8119_v50 = vpop.permute.xlu0 %8118 }
0x1315   :  { %v12269_v44 = vpop.f32.mrb[207].mxu0 }
0x1317   :  { %v7258_v58 = vpop.f32.mrb[236].mxu1 }
0x1318   :  { %v7461_v21 = vpack.c.bf16 %v7258_v58, %v7210_v49  ;;  %v12274_v18 = vpop.f32.mrb[237].mxu1  ;;  %v8117_v44 = vpop.permute.xlu0 %8116 }
0x1319   :  { %v7261_v41 = vpop.f32.mrb[238].mxu1  ;;  %v8024_v18 = vsel %vm526_vm2, %v8019_v53, 0 }
0x131a   :  { %v12275_v20 = vpop.f32.mrb[239].mxu1  ;;  %12311 = vmatmul.mubr.msk.bf16.gmra.mrb[224].mxu0 %vm526_vm2, %v7461_v21 }
0x131b   :  { %v13256_v20 = vld [vmem:[%s17374_s1 + $0x1] ss:$0 sm:$0xff] }
0x133f   :  { %v7354_v8 = vpop.f32.mrb[240].mxu1 }
0x1340   :  { %v7306_v6 = vpop.f32.mrb[208].mxu0  ;;  %v12286_v54 = vpop.f32.mrb[241].mxu1 }
0x1341   :  { %v7462_v14 = vpack.c.bf16 %v7354_v8, %v7306_v6  ;;  %v12280_v30 = vpop.f32.mrb[209].mxu0  ;;  %v7357_v39 = vpop.f32.mrb[242].mxu1 }
0x1342   :  { %v7309_v48 = vpop.f32.mrb[210].mxu0  ;;  %v12287_v22 = vpop.f32.mrb[243].mxu1  ;;  %v8124_v30 = vsel %vm526_vm2, %v8119_v50, 0 }
0x1343   :  { %v12281_v15 = vpop.f32.mrb[211].mxu0  ;;  %12314 = vmatprep.mubr.msk.bf16.mxu0 %vm526_vm2, %v7462_v14  ;;  %v8219_v6 = vpop.permute.xlu0 %8218  ;;  %v13257_v48 = vld [vmem:[%s17374_s1 + $0x2] ss:$0 sm:$0xff] }
0x1347   :  { %v7450_v60 = vpop.f32.mrb[244].mxu1  ;;  %v8217_v53 = vpop.permute.xlu0 %8216 }
0x1348   :  { %v7402_v46 = vpop.f32.mrb[212].mxu0  ;;  %v12298_v40 = vpop.f32.mrb[245].mxu1 }
0x1349   :  { %v7463_v9 = vpack.c.bf16 %v7450_v60, %v7402_v46  ;;  %v12292_v33 = vpop.f32.mrb[213].mxu0  ;;  %v7453_v63 = vpop.f32.mrb[246].mxu1 }
0x134a   :  { %v7405_v36 = vpop.f32.mrb[214].mxu0  ;;  %v12299_v34 = vpop.f32.mrb[247].mxu1  ;;  %v8224_v33 = vsel %vm526_vm2, %v8219_v6, 0 }
0x134b   :  { %v12293_v26 = vpop.f32.mrb[215].mxu0  ;;  %12315 = vmatmul.mubr.msk.bf16.gmra.mrb[228].mxu0 %vm526_vm2, %v7463_v9  ;;  %v8319_v36 = vpop.permute.xlu0 %8318  ;;  %v13258_v34 = vld [vmem:[%s17374_s1 + $0x3] ss:$0 sm:$0xff] }
0x134c   :  { %12344 = vmatprep.mubr.msk.bf16.mxu0 %vm13272_vm1, %v17414_v25  ;;  %v8324_v50 = vsel %vm526_vm2, %v8319_v36, 0  ;;  %v13262_v36 = vld [vmem:[%s17374_s1 + $0xb] ss:$0 sm:$0xff] }
0x1351   :  { %v7660_v35 = vpop.f32.mrb[248].mxu1 }
0x1352   :  { %v8416_v11 = vmul.f32 0.25, %v7660_v35  ;;  %v12322_v52 = vpop.f32.mrb[249].mxu1 }
0x1353   :  { %v7663_v31 = vpop.f32.mrb[250].mxu1  ;;  %12345 = vmatmul.mubr.msk.bf16.vlgmr.msra.gmra.mrb[232].mxu0 %vm526_vm2, %v7817_v43  ;;  %v8317_v52 = vpop.permute.xlu0 %8316 }
0x1354   :  { %v16206_v7 = vadd.f32 %v13255_v23, %v8416_v11  ;;  %v12323_v49 = vpop.f32.mrb[251].mxu1  ;;  %12355 = vmatpush3.bf16.xpose.msra.mxu0 %v7924_v55  ;;  %12356 = vmatprep.mubr.msk.bf16.mxu0 %vm13272_vm1, %v17414_v25 }
0x1355   :  { %12366 = vmatprep.subr.bf16.mxu0 %v17414_v25  ;;  %v13259_v49 = vld [vmem:[%s17374_s1 + $0x5] ss:$0 sm:$0xff] }
0x1356   :  { %v8448_v42 = vsel %vm1436_vm4, %v16206_v7, -inf }
0x1357   :  { %8449 = vmax.xlane.f32.xlu0 %v8448_v42 }
0x1359   :  { %v7710_v3 = vpop.f32.mrb[252].mxu1 }
0x135a   :  { %v8417_v58 = vmul.f32 0.25, %v7710_v3  ;;  %v12328_v21 = vpop.f32.mrb[253].mxu1 }
0x135b   :  { %v7713_v41 = vpop.f32.mrb[254].mxu1  ;;  %12357 = vmatmul.mubr.msk.bf16.vlgmr.msra.gmra.mrb[236].mxu0 %vm526_vm2, %v7917_v1 }
0x135c   :  { %v16218_v43 = vadd.f32 %v13256_v20, %v8417_v58  ;;  %v12329_v59 = vpop.f32.mrb[255].mxu1  ;;  %12367 = vmatpush3.bf16.xpose.msra.mxu0 %v8024_v18  ;;  %12368 = vmatprep.mubr.msk.bf16.mxu0 %vm13272_vm1, %v17414_v25  ;;  %v8641_v58 = vpop.permute.xlu0 %8640 }
0x135d   :  { %12378 = vmatprep.subr.bf16.mxu0 %v17414_v25  ;;  %v8646_v20 = vsel %vm1634_vm3, %v8641_v58, 0 }
0x135e   :  { %v8451_v8 = vsel %vm1436_vm4, %v16218_v43, -inf }
0x135f   :  { %8452 = vmax.xlane.f32.xlu1 %v8451_v8  ;;  %v13260_v8 = vld [vmem:[%s17374_s1 + $0x7] ss:$0 sm:$0xff] }
0x1361   :  { %v7760_v54 = vpop.f32.mrb[0].mxu1 }
0x1362   :  { %v8418_v1 = vmul.f32 0.25, %v7760_v54  ;;  %v12334_v14 = vpop.f32.mrb[1].mxu1 }
0x1363   :  { %v7763_v39 = vpop.f32.mrb[2].mxu1  ;;  %12369 = vmatmul.mubr.msk.bf16.vlgmr.msra.gmra.mrb[240].mxu0 %vm526_vm2, %v8017_v56 }
0x1364   :  { %v16230_v22 = vadd.f32 %v13257_v48, %v8418_v1  ;;  %v12335_v15 = vpop.f32.mrb[3].mxu1  ;;  %12379 = vmatpush3.bf16.xpose.msra.mxu0 %v8124_v30  ;;  %12380 = vmatprep.mubr.msk.bf16.mxu0 %vm13272_vm1, %v17414_v25 }
0x1365   :  { %12390 = vmatprep.subr.bf16.mxu0 %v17414_v25  ;;  %v13261_v15 = vld [vmem:[%s17374_s1 + $0x9] ss:$0 sm:$0xff] }
0x1366   :  { %v8454_v60 = vsel %vm1436_vm4, %v16230_v22, -inf }
0x1367   :  { %8455 = vmax.xlane.f32.xlu0 %v8454_v60 }
0x1369   :  { %v7810_v46 = vpop.f32.mrb[4].mxu1 }
0x136a   :  { %v8419_v40 = vmul.f32 0.25, %v7810_v46  ;;  %v12340_v9 = vpop.f32.mrb[5].mxu1 }
0x136b   :  { %v7813_v63 = vpop.f32.mrb[6].mxu1  ;;  %12381 = vmatmul.mubr.msk.bf16.vlgmr.msra.gmra.mrb[244].mxu0 %vm526_vm2, %v8117_v44 }
0x136c   :  { %v16242_v26 = vadd.f32 %v13258_v34, %v8419_v40  ;;  %v12341_v56 = vpop.f32.mrb[7].mxu1  ;;  %12391 = vmatpush3.bf16.xpose.msra.mxu0 %v8224_v33  ;;  %12392 = vmatprep.mubr.msk.bf16.mxu0 %vm13272_vm1, %v17414_v25 }
0x136d   :  { %12402 = vmatprep.subr.bf16.mxu0 %v17414_v25 }
0x136e   :  { %v8457_v35 = vsel %vm1436_vm4, %v16242_v26, -inf }
0x136f   :  { %8458 = vmax.xlane.f32.xlu0 %v8457_v35 }
0x1371   :  { %v7910_v11 = vpop.f32.mrb[8].mxu1 }
0x1372   :  { %v8421_v55 = vmul.f32 0.25, %v7910_v11  ;;  %v12352_v31 = vpop.f32.mrb[9].mxu1 }
0x1373   :  { %v7913_v23 = vpop.f32.mrb[10].mxu1  ;;  %12393 = vmatmul.mubr.msk.bf16.vlgmr.msra.gmra.mrb[248].mxu0 %vm526_vm2, %v8217_v53 }
0x1374   :  { %v16254_v42 = vadd.f32 %v13259_v49, %v8421_v55  ;;  %v12353_v3 = vpop.f32.mrb[11].mxu1  ;;  %12403 = vmatpush3.bf16.xpose.msra.mxu0 %v8324_v50  ;;  %12404 = vmatprep.mubr.msk.bf16.mxu0 %vm13272_vm1, %v17414_v25  ;;  %v13263_v50 = vld [vmem:[%s17374_s1 + $0xd] ss:$0 sm:$0xff] }
0x1375   :  { %12414 = vmatprep.subr.bf16.mxu0 %v17414_v25 }
0x1376   :  { %v8463_v44 = vsel %vm1436_vm4, %v16254_v42, -inf }
0x1377   :  { %8464 = vmax.xlane.f32.xlu1 %v8463_v44 }
0x1379   :  { %v8010_v21 = vpop.f32.mrb[12].mxu1 }
0x137a   :  { %v8423_v18 = vmul.f32 0.25, %v8010_v21  ;;  %v12364_v41 = vpop.f32.mrb[13].mxu1 }
0x137b   :  { %v8013_v59 = vpop.f32.mrb[14].mxu1  ;;  %12405 = vmatmul.mubr.msk.bf16.vlgmr.msra.gmra.mrb[252].mxu0 %vm526_vm2, %v8317_v52  ;;  %v13264_v41 = vld [vmem:[%s17374_s1 + $0xf] ss:$0 sm:$0xff] }
0x137c   :  { %v16266_v6 = vadd.f32 %v13260_v8, %v8423_v18  ;;  %v12365_v54 = vpop.f32.mrb[15].mxu1  ;;  %12415 = vmatpush3.bf16.msra.mxu0 %v8646_v20  ;;  %12416 = vmatprep.mubr.msk.bf16.mxu0 %vm13272_vm1, %v17414_v25 }
0x137d   :  { %12426 = vmatprep.subr.bf16.mxu0 %v17414_v25  ;;  %v16301_v54 = vpop.permute.xlu0 %8736 }
0x137e   :  { %v8469_v1 = vsel %vm1436_vm4, %v16266_v6, -inf }
0x137f   :  { %8470 = vmax.xlane.f32.xlu1 %v8469_v1 }
0x1381   :  { %v8110_v14 = vpop.f32.mrb[16].mxu1 }
0x1382   :  { %v8425_v30 = vmul.f32 0.25, %v8110_v14  ;;  %v12376_v39 = vpop.f32.mrb[17].mxu1 }
0x1383   :  { %v8113_v48 = vpop.f32.mrb[18].mxu1  ;;  %v16304_v39 = vpop.permute.xlu1 %8784 }
0x1384   :  { %v16276_v53 = vadd.f32 %v13261_v15, %v8425_v30  ;;  %v12377_v60 = vpop.f32.mrb[19].mxu1 }
0x1386   :  { %v8475_v46 = vsel %vm1436_vm4, %v16276_v53, -inf }
0x1387   :  { %8476 = vmax.xlane.f32.xlu1 %v8475_v46 }
0x1389   :  { %v8210_v40 = vpop.f32.mrb[20].mxu1 }
0x138a   :  { %v8427_v9 = vmul.f32 0.25, %v8210_v40  ;;  %v12388_v33 = vpop.f32.mrb[21].mxu1 }
0x138b   :  { %v8213_v63 = vpop.f32.mrb[22].mxu1 }
0x138c   :  { %v16283_v34 = vadd.f32 %v13262_v36, %v8427_v9  ;;  %v12389_v56 = vpop.f32.mrb[23].mxu1 }
0x138e   :  { %v8481_v35 = vsel %vm1436_vm4, %v16283_v34, -inf }
0x138f   :  { %8482 = vmax.xlane.f32.xlu1 %v8481_v35 }
0x1391   :  { %v8310_v11 = vpop.f32.mrb[24].mxu1 }
0x1392   :  { %v8429_v52 = vmul.f32 0.25, %v8310_v11  ;;  %v12400_v55 = vpop.f32.mrb[25].mxu1 }
0x1393   :  { %v8313_v31 = vpop.f32.mrb[26].mxu1 }
0x1394   :  { %v16290_v23 = vadd.f32 %v13263_v50, %v8429_v52  ;;  %v12401_v49 = vpop.f32.mrb[27].mxu1 }
0x1396   :  { %v8487_v3 = vsel %vm1436_vm4, %v16290_v23, -inf }
0x1397   :  { %8488 = vmax.xlane.f32.xlu1 %v8487_v3 }
0x1399   :  { %v8410_v44 = vpop.f32.mrb[28].mxu1 }
0x139a   :  { %v8431_v58 = vmul.f32 0.25, %v8410_v44  ;;  %v12412_v21 = vpop.f32.mrb[29].mxu1 }
0x139b   :  { %v8413_v18 = vpop.f32.mrb[30].mxu1 }
0x139c   :  { %v16297_v20 = vadd.f32 %v13264_v41, %v8431_v58  ;;  %v12413_v59 = vpop.f32.mrb[31].mxu1 }
0x139e   :  { %v8493_v8 = vsel %vm1436_vm4, %v16297_v20, -inf }
0x139f   :  { %8494 = vmax.xlane.f32.xlu1 %v8493_v8 }
0x13e4   :  { %v8450_v1 = vpop.xlane.xlu0 %8449 }
0x13e5   :  { %v8496_v14 = vsub.f32 %v16206_v7, %v8450_v1 }
0x13e7   :  { %v8512_v30 = vmul.f32 1.442695, %v8496_v14 }
0x13e9   :  { %13031 = vpow2.f32 %v8512_v30 }
0x13ec   :  { %v8453_v48 = vpop.xlane.xlu1 %8452 }
0x13ed   :  { %v8497_v15 = vsub.f32 %v16218_v43, %v8453_v48 }
0x13ef   :  { %v8514_v60 = vmul.f32 1.442695, %v8497_v15 }
0x13f1   :  { %13033 = vpow2.f32 %v8514_v60 }
0x13f3   :  { %v16307_v46 = vpop.eup %13031 }
0x13f4   :  { %v8456_v40 = vpop.xlane.xlu0 %8455  ;;  %v8544_v9 = vsel %vm1436_vm4, %v16307_v46, 0.0 }
0x13f5   :  { %v8498_v33 = vsub.f32 %v16230_v22, %v8456_v40  ;;  %8545 = vadd.xlane.f32.xlu0 %v8544_v9  ;;  %v13265_v9 = vld [vmem:[%s17374_s1 + $0x4] ss:$0 sm:$0xff] }
0x13f7   :  { %v8516_v63 = vmul.f32 1.442695, %v8498_v33 }
0x13f9   :  { %13035 = vpow2.f32 %v8516_v63 }
0x13fb   :  { %v16312_v7 = vpop.eup %13033 }
0x13fc   :  { %v8459_v36 = vpop.xlane.xlu0 %8458  ;;  %v8547_v56 = vsel %vm1436_vm4, %v16312_v7, 0.0 }
0x13fd   :  { %v8499_v43 = vsub.f32 %v16242_v26, %v8459_v36  ;;  %8548 = vadd.xlane.f32.xlu1 %v8547_v56 }
0x13ff   :  { %v8518_v35 = vmul.f32 1.442695, %v8499_v43 }
0x1401   :  { %13037 = vpow2.f32 %v8518_v35 }
0x1403   :  { %v16317_v11 = vpop.eup %13035 }
0x1404   :  { %v8465_v52 = vpop.xlane.xlu1 %8464  ;;  %v8550_v22 = vsel %vm1436_vm4, %v16317_v11, 0.0 }
0x1405   :  { %v8501_v55 = vsub.f32 %v16254_v42, %v8465_v52  ;;  %8551 = vadd.xlane.f32.xlu0 %v8550_v22 }
0x1407   :  { %v8522_v31 = vmul.f32 1.442695, %v8501_v55  ;;  %v13266_v55 = vld [vmem:[%s17374_s1 + $0x6] ss:$0 sm:$0xff] }
0x1409   :  { %13039 = vpow2.f32 %v8522_v31 }
0x140b   :  { %v16322_v50 = vpop.eup %13037 }
0x140c   :  { %v8471_v49 = vpop.xlane.xlu1 %8470  ;;  %v8553_v26 = vsel %vm1436_vm4, %v16322_v50, 0.0 }
0x140d   :  { %v8503_v3 = vsub.f32 %v16266_v6, %v8471_v49  ;;  %8554 = vadd.xlane.f32.xlu1 %v8553_v26 }
0x140f   :  { %v8526_v44 = vmul.f32 1.442695, %v8503_v3 }
0x1411   :  { %13041 = vpow2.f32 %v8526_v44 }
0x1413   :  { %v16327_v58 = vpop.eup %13039 }
0x1414   :  { %v8477_v21 = vpop.xlane.xlu1 %8476  ;;  %v8559_v42 = vsel %vm1436_vm4, %v16327_v58, 0.0 }
0x1415   :  { %v8505_v18 = vsub.f32 %v16276_v53, %v8477_v21  ;;  %8560 = vadd.xlane.f32.xlu1 %v8559_v42  ;;  %v13267_v42 = vld [vmem:[%s17374_s1 + $0x8] ss:$0 sm:$0xff] }
0x1417   :  { %v8530_v41 = vmul.f32 1.442695, %v8505_v18 }
0x1419   :  { %13043 = vpow2.f32 %v8530_v41 }
0x141b   :  { %v16332_v59 = vpop.eup %13041 }
0x141c   :  { %v8483_v8 = vpop.xlane.xlu1 %8482  ;;  %v8565_v6 = vsel %vm1436_vm4, %v16332_v59, 0.0 }
0x141d   :  { %v8507_v1 = vsub.f32 %v16283_v34, %v8483_v8  ;;  %8566 = vadd.xlane.f32.xlu1 %v8565_v6 }
0x141f   :  { %v8534_v14 = vmul.f32 1.442695, %v8507_v1 }
0x1421   :  { %13045 = vpow2.f32 %v8534_v14  ;;  %v13268_v14 = vld [vmem:[%s17374_s1 + $0xa] ss:$0 sm:$0xff] }
0x1423   :  { %v16337_v30 = vpop.eup %13043 }
0x1424   :  { %v8571_v48 = vsel %vm1436_vm4, %v16337_v30, 0.0 }
0x1425   :  { %8572 = vadd.xlane.f32.xlu0 %v8571_v48 }
0x1426   :  { %v7860_v53 = vpop.f32.mrb[232].mxu0 }
0x1427   :  { %v8420_v15 = vmul.f32 0.25, %v7860_v53  ;;  %v12346_v60 = vpop.f32.mrb[233].mxu0 }
0x1428   :  { %v7863_v40 = vpop.f32.mrb[234].mxu0 }
0x1429   :  { %v16344_v33 = vadd.f32 %v13265_v9, %v8420_v15  ;;  %v12347_v34 = vpop.f32.mrb[235].mxu0 }
0x142b   :  { %v8460_v63 = vsel %vm1436_vm4, %v16344_v33, -inf  ;;  %v16348_v36 = vpop.eup %13045 }
0x142c   :  { %8461 = vmax.xlane.f32.xlu0 %v8460_v63  ;;  %v8577_v52 = vsel %vm1436_vm4, %v16348_v36, 0.0 }
0x142e   :  { %8880 = vrot.lane.b32.xlu1 %v15525_v28, %s13277_s26  ;;  %v7960_v56 = vpop.f32.mrb[236].mxu0 }
0x142f   :  { %v8422_v43 = vmul.f32 0.25, %v7960_v56  ;;  %v12358_v35 = vpop.f32.mrb[237].mxu0 }
0x1430   :  { %v7963_v22 = vpop.f32.mrb[238].mxu0  ;;  %8578 = vadd.xlane.f32.xlu0 %v8577_v52 }
0x1431   :  { %v16357_v31 = vadd.f32 %v13266_v55, %v8422_v43  ;;  %v12359_v49 = vpop.f32.mrb[239].mxu0  ;;  %v8489_v43 = vpop.xlane.xlu1 %8488  ;;  %v13269_v55 = vld [vmem:[%s17374_s1 + $0xc] ss:$0 sm:$0xff] }
0x1432   :  { %8976 = vrot.lane.b32.xlu1 %v15533_v4, %s13277_s26  ;;  %v8509_v35 = vsub.f32 %v16290_v23, %v8489_v43 }
0x1433   :  { %v8466_v28 = vsel %vm1436_vm4, %v16357_v31, -inf }
0x1434   :  { %8467 = vmax.xlane.f32.xlu0 %v8466_v28  ;;  %v8538_v52 = vmul.f32 1.442695, %v8509_v35 }
0x1436   :  { %9072 = vrot.lane.b32.xlu1 %v15554_v47, %s13277_s26  ;;  %v8060_v26 = vpop.f32.mrb[240].mxu0  ;;  %13047 = vpow2.f32 %v8538_v52 }
0x1437   :  { %v8424_v3 = vmul.f32 0.25, %v8060_v26  ;;  %v12370_v44 = vpop.f32.mrb[241].mxu0 }
0x1438   :  { %v8063_v21 = vpop.f32.mrb[242].mxu0 }
0x1439   :  { %v16368_v18 = vadd.f32 %v13267_v42, %v8424_v3  ;;  %v12371_v41 = vpop.f32.mrb[243].mxu0 }
0x143a   :  { %9120 = vrot.lane.b32.xlu1 %v15563_v27, %s13277_s26  ;;  %v16404_v41 = vpop.xlane.xlu1 %8494 }
0x143b   :  { %v8472_v4 = vsel %vm1436_vm4, %v16368_v18, -inf }
0x143c   :  { %8473 = vmax.xlane.f32.xlu0 %v8472_v4 }
0x143e   :  { %9168 = vrot.lane.b32.xlu1 %v15569_v61, %s13277_s26  ;;  %v8160_v47 = vpop.f32.mrb[244].mxu0 }
0x143f   :  { %v8426_v8 = vmul.f32 0.25, %v8160_v47  ;;  %v12382_v6 = vpop.f32.mrb[245].mxu0 }
0x1440   :  { %v8163_v1 = vpop.f32.mrb[246].mxu0  ;;  %v16393_v3 = vpop.eup %13047 }
0x1441   :  { %v16379_v48 = vadd.f32 %v13268_v14, %v8426_v8  ;;  %v12383_v53 = vpop.f32.mrb[247].mxu0  ;;  %v8583_v44 = vsel %vm1436_vm4, %v16393_v3, 0.0  ;;  %v8742_v1 = vsel %vm1634_vm3, %v16301_v54, 0 }
0x1443   :  { %v8478_v27 = vsel %vm1436_vm4, %v16379_v48, -inf }
0x1444   :  { %8479 = vmax.xlane.f32.xlu0 %v8478_v27 }
0x1446   :  { %v8260_v15 = vpop.f32.mrb[248].mxu0 }
0x1447   :  { %v12394_v60 = vpop.f32.mrb[249].mxu0  ;;  %v8428_v22 = vmul.f32 0.25, %v8260_v15 }
0x1448   :  { %v8263_v40 = vpop.f32.mrb[250].mxu0 }
0x1449   :  { %v12395_v9 = vpop.f32.mrb[251].mxu0  ;;  %v16389_v49 = vadd.f32 %v13269_v55, %v8428_v22 }
0x144b   :  { %v8484_v26 = vsel %vm1436_vm4, %v16389_v49, -inf }
0x144e   :  { %v8360_v61 = vpop.f32.mrb[252].mxu0 }
0x144f   :  { %v12406_v34 = vpop.f32.mrb[253].mxu0  ;;  %v8430_v28 = vmul.f32 0.25, %v8360_v61 }
0x1450   :  { %v8363_v63 = vpop.f32.mrb[254].mxu0 }
0x1451   :  { %v12407_v56 = vpop.f32.mrb[255].mxu0 }
0x145a   :  { %8832 = vrot.lane.b32.xlu0 %v15521_v12, %s13277_s26  ;;  %v13270_v12 = vld [vmem:[%s17374_s1 + $0xe] ss:$0 sm:$0xff] }
0x145b   :  { %v16398_v23 = vadd.f32 %v13270_v12, %v8430_v28 }
0x145d   :  { %v8490_v21 = vsel %vm1436_vm4, %v16398_v23, -inf }
0x1479   :  { %8485 = vmax.xlane.f32.xlu0 %v8484_v26 }
0x147d   :  { %8584 = vadd.xlane.f32.xlu0 %v8583_v44 }
0x1481   :  { %8491 = vmax.xlane.f32.xlu0 %v8490_v21 }
0x1482   :  { %v8546_v42 = vpop.xlane.xlu0 %8545 }
0x1483   :  { %13049 = vrcp.f32 %v8546_v42 }
0x148a   :  { %v8549_v4 = vpop.xlane.xlu1 %8548 }
0x148b   :  { %13051 = vrcp.f32 %v8549_v4 }
0x148d   :  { %v13050_v47 = vpop.eup %13049 }
0x148e   :  { %v8608_v8 = vmul.f32 %v13050_v47, %v16307_v46  ;;  %v8790_v46 = vsel %vm1634_vm3, %v16304_v39, 0 }
0x1490   :  { %v8624_v6 = vpack.c.bf16 %v8608_v8, %v8608_v8 }
0x1492   :  { %12417 = vmatmul.mubr.msk.bf16.vlgmr.msra.gmra.mrb[0].mxu0 %vm1436_vm4, %v8624_v6  ;;  %v8552_v14 = vpop.xlane.xlu0 %8551 }
0x1493   :  { %12427 = vmatpush3.bf16.msra.mxu0 %v8742_v1  ;;  %13053 = vrcp.f32 %v8552_v14  ;;  %12428 = vmatprep.mubr.msk.bf16.mxu0 %vm13272_vm1, %v17414_v25 }
0x1494   :  { %12438 = vmatprep.subr.bf16.mxu0 %v17414_v25 }
0x1495   :  { %v13052_v53 = vpop.eup %13051 }
0x1496   :  { %v8609_v27 = vmul.f32 %v13052_v53, %v16312_v7 }
0x1498   :  { %v8625_v15 = vpack.c.bf16 %v8609_v27, %v8609_v27 }
0x149a   :  { %12423 = vmatmul.mubr.msk.bf16.vlgmr.msra.gmra.mrb[32].mxu1 %vm1436_vm4, %v8625_v15  ;;  %v8555_v54 = vpop.xlane.xlu1 %8554 }
0x149b   :  { %12433 = vmatpush3.bf16.msra.mxu1 %v8790_v46  ;;  %13055 = vrcp.f32 %v8555_v54  ;;  %12434 = vmatprep.mubr.msk.bf16.mxu1 %vm13272_vm1, %v17414_v25 }
0x149c   :  { %12444 = vmatprep.subr.bf16.mxu1 %v17414_v25 }
0x149d   :  { %v13054_v60 = vpop.eup %13053 }
0x149e   :  { %v8610_v40 = vmul.f32 %v13054_v60, %v16317_v11 }
0x14a0   :  { %v8626_v9 = vpack.c.bf16 %v8610_v40, %v8610_v40 }
0x14a2   :  { %12429 = vmatmul.mubr.msk.bf16.vlgmr.msra.gmra.mrb[4].mxu0 %vm1436_vm4, %v8626_v9  ;;  %v8561_v7 = vpop.xlane.xlu1 %8560 }
0x14a3   :  { %13057 = vrcp.f32 %v8561_v7  ;;  %12440 = vmatprep.mubr.msk.bf16.mxu0 %vm13272_vm1, %v17414_v25 }
0x14a5   :  { %v13056_v39 = vpop.eup %13055 }
0x14a6   :  { %v8611_v61 = vmul.f32 %v13056_v39, %v16322_v50 }
0x14a8   :  { %v8627_v34 = vpack.c.bf16 %v8611_v61, %v8611_v61 }
0x14aa   :  { %12435 = vmatmul.mubr.msk.bf16.vlgmr.msra.gmra.mrb[36].mxu1 %vm1436_vm4, %v8627_v34  ;;  %v8567_v63 = vpop.xlane.xlu1 %8566 }
0x14ab   :  { %13059 = vrcp.f32 %v8567_v63  ;;  %12446 = vmatprep.mubr.msk.bf16.mxu1 %vm13272_vm1, %v17414_v25  ;;  %v8511_v63 = vsub.f32 %v16297_v20, %v16404_v41 }
0x14ad   :  { %v13058_v11 = vpop.eup %13057 }
0x14ae   :  { %v8613_v56 = vmul.f32 %v13058_v11, %v16327_v58  ;;  %v8881_v43 = vpop.permute.xlu1 %8880 }
0x14af   :  { %v8886_v35 = vsel %vm1634_vm3, %v8881_v43, 0 }
0x14b0   :  { %v8629_v52 = vpack.c.bf16 %v8613_v56, %v8613_v56  ;;  %12445 = vmatpush3.bf16.msra.mxu1 %v8886_v35  ;;  %v8542_v56 = vmul.f32 1.442695, %v8511_v63 }
0x14b1   :  { %12456 = vmatprep.subr.bf16.mxu1 %v17414_v25 }
0x14b2   :  { %v8573_v22 = vpop.xlane.xlu0 %8572  ;;  %v8977_v50 = vpop.permute.xlu1 %8976 }
0x14b3   :  { %13061 = vrcp.f32 %v8573_v22  ;;  %v8982_v55 = vsel %vm1634_vm3, %v8977_v50, 0  ;;  %12447 = vmatmul.mubr.msk.bf16.vlgmr.msra.gmra.mrb[40].mxu1 %vm1436_vm4, %v8629_v52 }
0x14b4   :  { %12457 = vmatpush3.bf16.msra.mxu1 %v8982_v55  ;;  %12458 = vmatprep.mubr.msk.bf16.mxu1 %vm13272_vm1, %v17414_v25 }
0x14b5   :  { %v13060_v28 = vpop.eup %13059  ;;  %12468 = vmatprep.subr.bf16.mxu1 %v17414_v25 }
0x14b6   :  { %v8615_v58 = vmul.f32 %v13060_v28, %v16332_v59  ;;  %v9073_v26 = vpop.permute.xlu1 %9072 }
0x14b7   :  { %v9078_v4 = vsel %vm1634_vm3, %v9073_v26, 0 }
0x14b8   :  { %v8631_v12 = vpack.c.bf16 %v8615_v58, %v8615_v58 }
0x14b9   :  { %v8462_v44 = vpop.xlane.xlu0 %8461 }
0x14ba   :  { %v8500_v21 = vsub.f32 %v16344_v33, %v8462_v44  ;;  %v16438_v42 = vpop.permute.xlu1 %9120 }
0x14bb   :  { %12459 = vmatmul.mubr.msk.bf16.vlgmr.msra.gmra.mrb[44].mxu1 %vm1436_vm4, %v8631_v12 }
0x14bc   :  { %v8520_v47 = vmul.f32 1.442695, %v8500_v21  ;;  %12469 = vmatpush3.bf16.msra.mxu1 %v9078_v4  ;;  %12470 = vmatprep.mubr.msk.bf16.mxu1 %vm13272_vm1, %v17414_v25 }
0x14bd   :  { %v13062_v8 = vpop.eup %13061  ;;  %v8579_v6 = vpop.xlane.xlu0 %8578  ;;  %12480 = vmatprep.subr.bf16.mxu1 %v17414_v25 }
0x14be   :  { %v8617_v59 = vmul.f32 %v13062_v8, %v16337_v30  ;;  %13063 = vpow2.f32 %v8520_v47  ;;  %v9169_v1 = vpop.permute.xlu1 %9168 }
0x14bf   :  { %13065 = vrcp.f32 %v8579_v6  ;;  %v9174_v14 = vsel %vm1634_vm3, %v9169_v1, 0 }
0x14c0   :  { %v8633_v33 = vpack.c.bf16 %v8617_v59, %v8617_v59 }
0x14c1   :  { %v8468_v53 = vpop.xlane.xlu0 %8467 }
0x14c3   :  { %12471 = vmatmul.mubr.msk.bf16.vlgmr.msra.gmra.mrb[48].mxu1 %vm1436_vm4, %v8633_v33 }
0x14c4   :  { %12481 = vmatpush3.bf16.msra.mxu1 %v9174_v14  ;;  %12482 = vmatprep.mubr.msk.bf16.mxu1 %vm13272_vm1, %v17414_v25 }
0x14c5   :  { %12492 = vmatprep.subr.bf16.mxu1 %v17414_v25 }
0x14c8   :  { %v16451_v27 = vpop.eup %13063 }
0x14c9   :  { %v13066_v15 = vpop.eup %13065  ;;  %v8474_v46 = vpop.xlane.xlu0 %8473  ;;  %v8556_v30 = vsel %vm1436_vm4, %v16451_v27, 0.0 }
0x14ca   :  { %v8619_v54 = vmul.f32 %v13066_v15, %v16348_v36  ;;  %v8504_v60 = vsub.f32 %v16368_v18, %v8474_v46  ;;  %8557 = vadd.xlane.f32.xlu0 %v8556_v30  ;;  %v8502_v18 = vsub.f32 %v16357_v31, %v8468_v53 }
0x14cc   :  { %v8635_v40 = vpack.c.bf16 %v8619_v54, %v8619_v54  ;;  %v8528_v9 = vmul.f32 1.442695, %v8504_v60  ;;  %v8524_v11 = vmul.f32 1.442695, %v8502_v18 }
0x14ce   :  { %13067 = vpow2.f32 %v8528_v9  ;;  %12483 = vmatmul.mubr.msk.bf16.vlgmr.msra.gmra.mrb[52].mxu1 %vm1436_vm4, %v8635_v40 }
0x14cf   :  { %12494 = vmatprep.mubr.msk.bf16.mxu1 %vm13272_vm1, %v17414_v25  ;;  %13069 = vpow2.f32 %v8524_v11 }
0x14d0   :  { %13071 = vpow2.f32 %v8542_v56 }
0x14d1   :  { %v8480_v7 = vpop.xlane.xlu0 %8479 }
0x14d2   :  { %v8506_v43 = vsub.f32 %v16379_v48, %v8480_v7 }
0x14d4   :  { %v8532_v52 = vmul.f32 1.442695, %v8506_v43 }
0x14d5   :  { %v8833_v39 = vpop.permute.xlu0 %8832 }
0x14d6   :  { %v8838_v61 = vsel %vm1634_vm3, %v8833_v39, 0  ;;  %13073 = vpow2.f32 %v8532_v52 }
0x14d7   :  { %12439 = vmatpush3.bf16.msra.mxu0 %v8838_v61 }
0x14d8   :  { %v16461_v34 = vpop.eup %13067  ;;  %12450 = vmatprep.subr.bf16.mxu0 %v17414_v25 }
0x14d9   :  { %v8568_v36 = vsel %vm1436_vm4, %v16461_v34, 0.0  ;;  %v16474_v35 = vpop.eup %13069 }
0x14da   :  { %8569 = vadd.xlane.f32.xlu1 %v8568_v36  ;;  %v16478_v22 = vpop.eup %13071 }
0x14e0   :  { %8928 = vrot.lane.b32.xlu0 %v15529_v13, %s13277_s26  ;;  %v8562_v13 = vsel %vm1436_vm4, %v16474_v35, 0.0  ;;  %v16483_v48 = vpop.eup %13073 }
0x14e1   :  { %v8574_v28 = vsel %vm1436_vm4, %v16483_v48, 0.0 }
0x14eb   :  { %9264 = vrot.lane.b32.xlu1 %v15589_v45, %s13277_s26  ;;  %v8589_v45 = vsel %vm1436_vm4, %v16478_v22, 0.0 }
0x14ff   :  { %8563 = vadd.xlane.f32.xlu0 %v8562_v13 }
0x1503   :  { %8590 = vadd.xlane.f32.xlu0 %v8589_v45 }
0x1506   :  { %v8486_v20 = vpop.xlane.xlu0 %8485 }
0x1507   :  { %v8508_v31 = vsub.f32 %v16389_v49, %v8486_v20 }
0x1509   :  { %v8536_v41 = vmul.f32 1.442695, %v8508_v31 }
0x150a   :  { %v8585_v50 = vpop.xlane.xlu0 %8584 }
0x150b   :  { %13075 = vpow2.f32 %v8536_v41 }
0x150e   :  { %v8492_v55 = vpop.xlane.xlu0 %8491 }
0x150f   :  { %v8510_v58 = vsub.f32 %v16398_v23, %v8492_v55  ;;  %8575 = vadd.xlane.f32.xlu1 %v8574_v28 }
0x1511   :  { %v8540_v26 = vmul.f32 1.442695, %v8510_v58 }
0x1513   :  { %13077 = vpow2.f32 %v8540_v26 }
0x1515   :  { %v16488_v12 = vpop.eup %13075 }
0x1516   :  { %v8580_v44 = vsel %vm1436_vm4, %v16488_v12, 0.0 }
0x1517   :  { %8581 = vadd.xlane.f32.xlu1 %v8580_v44 }
0x1519   :  { %9024 = vrot.lane.b32.xlu0 %v15545_v2, %s13277_s26 }
0x151d   :  { %v16494_v49 = vpop.eup %13077  ;;  %9216 = vrot.lane.b32.xlu0 %v15585_v32, %s13277_s26 }
0x151e   :  { %v8586_v23 = vsel %vm1436_vm4, %v16494_v49, 0.0 }
0x151f   :  { %8587 = vadd.xlane.f32.xlu1 %v8586_v23 }
0x1521   :  { %9312 = vrot.lane.b32.xlu0 %v15593_v17, %s13277_s26 }
0x1530   :  { %9360 = vrot.lane.b32.xlu1 %v15597_v62, %s13277_s26 }
0x1557   :  { %v8558_v21 = vpop.xlane.xlu0 %8557 }
0x1558   :  { %13079 = vrcp.f32 %v8558_v21 }
0x1559   :  { %13081 = vrcp.f32 %v8585_v50 }
0x155b   :  { %v8929_v47 = vpop.permute.xlu0 %8928 }
0x155c   :  { %v8934_v33 = vsel %vm1634_vm3, %v8929_v47, 0 }
0x1562   :  { %v13080_v4 = vpop.eup %13079 }
0x1563   :  { %v8612_v2 = vmul.f32 %v13080_v4, %v16451_v27  ;;  %v13082_v59 = vpop.eup %13081 }
0x1564   :  { %v8621_v62 = vmul.f32 %v13082_v59, %v16393_v3 }
0x1565   :  { %v8628_v8 = vpack.c.bf16 %v8612_v2, %v8612_v2  ;;  %v16505_v6 = vpop.f32.mrb[0].mxu0 }
0x1566   :  { %v12418_v32 = vpop.f32.mrb[1].mxu0  ;;  %v8637_v46 = vpack.c.bf16 %v8621_v62, %v8621_v62 }
0x1567   :  { %v8685_v1 = vpop.f32.mrb[2].mxu0  ;;  %12441 = vmatmul.mubr.msk.bf16.vlgmr.msra.gmra.mrb[8].mxu0 %vm1436_vm4, %v8628_v8  ;;  %v8570_v17 = vpop.xlane.xlu1 %8569 }
0x1568   :  { %v12419_v14 = vpop.f32.mrb[3].mxu0  ;;  %12451 = vmatpush3.bf16.msra.mxu0 %v8934_v33  ;;  %12452 = vmatprep.mubr.msk.bf16.mxu0 %vm13272_vm1, %v17414_v25 }
0x1569   :  { %12462 = vmatprep.subr.bf16.mxu0 %v17414_v25  ;;  %v9126_v14 = vsel %vm1634_vm3, %v16438_v42, 0 }
0x156b   :  { %v9265_v53 = vpop.permute.xlu1 %9264 }
0x156c   :  { %v9270_v27 = vsel %vm1634_vm3, %v9265_v53, 0 }
0x156d   :  { %v16514_v15 = vpop.f32.mrb[32].mxu1  ;;  %12493 = vmatpush3.bf16.msra.mxu1 %v9270_v27 }
0x156e   :  { %v9408_v30 = vpack.c.bf16 %v16514_v15, %v16505_v6  ;;  %v12424_v54 = vpop.f32.mrb[33].mxu1  ;;  %12504 = vmatprep.subr.bf16.mxu1 %v17414_v25 }
0x156f   :  { %v8733_v60 = vpop.f32.mrb[34].mxu1 }
0x1570   :  { %v12425_v40 = vpop.f32.mrb[35].mxu1  ;;  %12495 = vmatmul.mubr.msk.bf16.vlgmr.msra.gmra.mrb[56].mxu1 %vm1436_vm4, %v8637_v46 }
0x1571   :  { %12506 = vmatprep.mubr.msk.bf16.mxu1 %vm13272_vm1, %v17414_v25 }
0x1575   :  { %v16522_v3 = vpop.f32.mrb[4].mxu0 }
0x1576   :  { %v12430_v9 = vpop.f32.mrb[5].mxu0 }
0x1577   :  { %v8781_v7 = vpop.f32.mrb[6].mxu0 }
0x1578   :  { %v12431_v39 = vpop.f32.mrb[7].mxu0 }
0x157d   :  { %v16524_v61 = vpop.f32.mrb[36].mxu1 }
0x157e   :  { %v9409_v36 = vpack.c.bf16 %v16524_v61, %v16522_v3  ;;  %v12436_v18 = vpop.f32.mrb[37].mxu1 }
0x157f   :  { %v8829_v63 = vpop.f32.mrb[38].mxu1 }
0x1580   :  { %v12437_v11 = vpop.f32.mrb[39].mxu1 }
0x1586   :  { %v16528_v56 = vpop.f32.mrb[40].mxu1 }
0x1587   :  { %v12448_v43 = vpop.f32.mrb[41].mxu1 }
0x1588   :  { %v8925_v52 = vpop.f32.mrb[42].mxu1  ;;  %v12700_v43 = vld [vmem:[%s17375_s6 + $0x18] sm:$0xff]  }
0x1589   :  { %v12449_v13 = vpop.f32.mrb[43].mxu1 }
0x158c   :  { %v8564_v45 = vpop.xlane.xlu0 %8563 }
0x158d   :  { %13083 = vrcp.f32 %v8564_v45 }
0x158e   :  { %v16530_v20 = vpop.f32.mrb[44].mxu1  ;;  %13085 = vrcp.f32 %v8570_v17 }
0x158f   :  { %v12460_v31 = vpop.f32.mrb[45].mxu1 }
0x1590   :  { %v9021_v41 = vpop.f32.mrb[46].mxu1  ;;  %v8591_v55 = vpop.xlane.xlu0 %8590 }
0x1591   :  { %v12461_v50 = vpop.f32.mrb[47].mxu1 }
0x1594   :  { %v9025_v21 = vpop.permute.xlu0 %9024 }
0x1595   :  { %v9030_v8 = vsel %vm1634_vm3, %v9025_v21, 0 }
0x1596   :  { %v16532_v28 = vpop.f32.mrb[48].mxu1 }
0x1597   :  { %v13084_v58 = vpop.eup %13083  ;;  %v12472_v26 = vpop.f32.mrb[49].mxu1 }
0x1598   :  { %v8614_v44 = vmul.f32 %v13084_v58, %v16474_v35  ;;  %v9117_v23 = vpop.f32.mrb[50].mxu1  ;;  %v13086_v47 = vpop.eup %13085 }
0x1599   :  { %v12473_v4 = vpop.f32.mrb[51].mxu1  ;;  %v8616_v59 = vmul.f32 %v13086_v47, %v16461_v34  ;;  %v9217_v46 = vpop.permute.xlu0 %9216 }
0x159a   :  { %v8630_v2 = vpack.c.bf16 %v8614_v44, %v8614_v44  ;;  %v9222_v40 = vsel %vm1634_vm3, %v9217_v46, 0 }
0x159b   :  { %v8632_v33 = vpack.c.bf16 %v8616_v59, %v8616_v59 }
0x159c   :  { %12453 = vmatmul.mubr.msk.bf16.vlgmr.msra.gmra.mrb[12].mxu0 %vm1436_vm4, %v8630_v2  ;;  %v8576_v32 = vpop.xlane.xlu1 %8575 }
0x159d   :  { %12463 = vmatpush3.bf16.msra.mxu0 %v9030_v8  ;;  %13087 = vrcp.f32 %v8576_v32  ;;  %12464 = vmatprep.mubr.msk.bf16.mxu0 %vm13272_vm1, %v17414_v25  ;;  %v9313_v18 = vpop.permute.xlu0 %9312 }
0x159e   :  { %12474 = vmatprep.subr.bf16.mxu0 %v17414_v25  ;;  %13089 = vrcp.f32 %v8591_v55  ;;  %v9318_v13 = vsel %vm1634_vm3, %v9313_v18, 0 }
0x15a1   :  { %v16541_v35 = vpop.f32.mrb[52].mxu1 }
0x15a2   :  { %v12484_v1 = vpop.f32.mrb[53].mxu1 }
0x15a3   :  { %v9213_v17 = vpop.f32.mrb[54].mxu1 }
0x15a4   :  { %v12485_v62 = vpop.f32.mrb[55].mxu1  ;;  %12465 = vmatmul.mubr.msk.bf16.vlgmr.msra.gmra.mrb[16].mxu0 %vm1436_vm4, %v8632_v33  ;;  %v8582_v53 = vpop.xlane.xlu1 %8581 }
0x15a5   :  { %12475 = vmatpush3.bf16.msra.mxu0 %v9126_v14  ;;  %13091 = vrcp.f32 %v8582_v53  ;;  %12476 = vmatprep.mubr.msk.bf16.mxu0 %vm13272_vm1, %v17414_v25 }
0x15a6   :  { %12486 = vmatprep.subr.bf16.mxu0 %v17414_v25 }
0x15a7   :  { %v13088_v34 = vpop.eup %13087 }
0x15a8   :  { %v8618_v27 = vmul.f32 %v13088_v34, %v16483_v48  ;;  %v13090_v60 = vpop.eup %13089 }
0x15a9   :  { %v8623_v7 = vmul.f32 %v13090_v60, %v16478_v22 }
0x15aa   :  { %v8634_v54 = vpack.c.bf16 %v8618_v27, %v8618_v27 }
0x15ab   :  { %v8639_v52 = vpack.c.bf16 %v8623_v7, %v8623_v7 }
0x15ac   :  { %12477 = vmatmul.mubr.msk.bf16.vlgmr.msra.gmra.mrb[20].mxu0 %vm1436_vm4, %v8634_v54  ;;  %v8588_v42 = vpop.xlane.xlu1 %8587 }
0x15ad   :  { %12487 = vmatpush3.bf16.msra.mxu0 %v9222_v40  ;;  %13093 = vrcp.f32 %v8588_v42  ;;  %12488 = vmatprep.mubr.msk.bf16.mxu0 %vm13272_vm1, %v17414_v25  ;;  %v16589_v40 = vld [vmem:[%s17376_s7 + $0x1] ss:$0 sm:$0xff] }
0x15ae   :  { %12498 = vmatprep.subr.bf16.mxu0 %v17414_v25 }
0x15af   :  { %v13092_v9 = vpop.eup %13091 }
0x15b0   :  { %v8620_v48 = vmul.f32 %v13092_v9, %v16488_v12  ;;  %v9361_v39 = vpop.permute.xlu1 %9360 }
0x15b1   :  { %v9366_v63 = vsel %vm1634_vm3, %v9361_v39, 0 }
0x15b2   :  { %v8636_v11 = vpack.c.bf16 %v8620_v48, %v8620_v48  ;;  %12505 = vmatpush3.bf16.msra.mxu1 %v9366_v63 }
0x15b4   :  { %12489 = vmatmul.mubr.msk.bf16.vlgmr.msra.gmra.mrb[24].mxu0 %vm1436_vm4, %v8636_v11 }
0x15b5   :  { %12499 = vmatpush3.bf16.msra.mxu0 %v9318_v13  ;;  %12507 = vmatmul.mubr.msk.bf16.vlgmr.msra.gmra.mrb[60].mxu1 %vm1436_vm4, %v8639_v52 }
0x15b6   :  { %12500 = vmatprep.mubr.msk.bf16.mxu0 %vm13272_vm1, %v17414_v25  ;;  %12510 = vmatprep.subr.bf16.mxu0 %v12700_v43 }
0x15b7   :  { %v13094_v22 = vpop.eup %13093 }
0x15b8   :  { %v8622_v12 = vmul.f32 %v13094_v22, %v16494_v49 }
0x15ba   :  { %v8638_v45 = vpack.c.bf16 %v8622_v12, %v8622_v12 }
0x15bc   :  { %12501 = vmatmul.mubr.msk.bf16.vlgmr.msra.gmra.mrb[28].mxu0 %vm1436_vm4, %v8638_v45 }
0x15bd   :  { %12512 = vmatprep.mubr.msk.bf16.mxu0 %vm526_vm2, %v9408_v30  ;;  %12511 = vmatpush3.bf16.msra.mxu0 %v12700_v43 }
0x15c4   :  { %12513 = vmatmul.mubr.msk.bf16.vlgmr.msra.gmra.mrb[216].mxu0 %vm526_vm2, %v9409_v36 }
0x163a   :  { %v8874_v31 = vpop.f32.mrb[8].mxu0 }
0x163b   :  { %v9410_v25 = vpack.c.bf16 %v16528_v56, %v8874_v31  ;;  %v12442_v41 = vpop.f32.mrb[9].mxu0 }
0x163c   :  { %v8877_v50 = vpop.f32.mrb[10].mxu0 }
0x163d   :  { %v12443_v49 = vpop.f32.mrb[11].mxu0  ;;  %12516 = vmatprep.mubr.msk.bf16.mxu0 %vm526_vm2, %v9410_v25 }
0x1643   :  { %v9306_v55 = vpop.f32.mrb[56].mxu1 }
0x1644   :  { %v12496_v58 = vpop.f32.mrb[57].mxu1 }
0x1645   :  { %v9309_v26 = vpop.f32.mrb[58].mxu1 }
0x1646   :  { %v12497_v6 = vpop.f32.mrb[59].mxu1 }
0x166f   :  { %v8970_v15 = vpop.f32.mrb[12].mxu0 }
0x1670   :  { %v9411_v30 = vpack.c.bf16 %v16530_v20, %v8970_v15  ;;  %v12454_v44 = vpop.f32.mrb[13].mxu0 }
0x1671   :  { %v8973_v23 = vpop.f32.mrb[14].mxu0 }
0x1672   :  { %v12455_v3 = vpop.f32.mrb[15].mxu0  ;;  %12517 = vmatmul.mubr.msk.bf16.gmra.mrb[220].mxu0 %vm526_vm2, %v9411_v30 }
0x1677   :  { %v9066_v61 = vpop.f32.mrb[16].mxu0 }
0x1678   :  { %v9412_v36 = vpack.c.bf16 %v16532_v28, %v9066_v61  ;;  %v12466_v56 = vpop.f32.mrb[17].mxu0 }
0x1679   :  { %v9069_v21 = vpop.f32.mrb[18].mxu0 }
0x167a   :  { %v12467_v4 = vpop.f32.mrb[19].mxu0  ;;  %12520 = vmatprep.mubr.msk.bf16.mxu0 %vm526_vm2, %v9412_v36 }
0x167f   :  { %v9162_v2 = vpop.f32.mrb[20].mxu0 }
0x1680   :  { %v9413_v47 = vpack.c.bf16 %v16541_v35, %v9162_v2  ;;  %v12478_v8 = vpop.f32.mrb[21].mxu0 }
0x1681   :  { %v9165_v32 = vpop.f32.mrb[22].mxu0 }
0x1682   :  { %v12479_v59 = vpop.f32.mrb[23].mxu0  ;;  %12521 = vmatmul.mubr.msk.bf16.gmra.mrb[224].mxu0 %vm526_vm2, %v9413_v47  ;;  %v17422_v32 = vld [vmem:[#allocation2_spill] sm:$0xff] }
0x1687   :  { %v9258_v20 = vpop.f32.mrb[24].mxu0 }
0x1688   :  { %v9414_v33 = vpack.c.bf16 %v9306_v55, %v9258_v20  ;;  %v12490_v1 = vpop.f32.mrb[25].mxu0  ;;  %v9402_v17 = vpop.f32.mrb[60].mxu1 }
0x1689   :  { %v9261_v14 = vpop.f32.mrb[26].mxu0  ;;  %v12508_v62 = vpop.f32.mrb[61].mxu1 }
0x168a   :  { %v12491_v28 = vpop.f32.mrb[27].mxu0  ;;  %v9405_v53 = vpop.f32.mrb[62].mxu1  ;;  %12524 = vmatprep.mubr.msk.bf16.mxu0 %vm526_vm2, %v9414_v33 }
0x168b   :  { %v12509_v34 = vpop.f32.mrb[63].mxu1 }
0x168f   :  { %v9354_v27 = vpop.f32.mrb[28].mxu0 }
0x1690   :  { %v9415_v46 = vpack.c.bf16 %v9402_v17, %v9354_v27  ;;  %v12502_v54 = vpop.f32.mrb[29].mxu0 }
0x1691   :  { %v9357_v35 = vpop.f32.mrb[30].mxu0  ;;  %v17423_v54 = vld [vmem:[#allocation3_spill] sm:$0xff] }
0x1692   :  { %v12503_v60 = vpop.f32.mrb[31].mxu0  ;;  %12525 = vmatmul.mubr.msk.bf16.gmra.mrb[228].mxu0 %vm526_vm2, %v9415_v46 }
0x1697   :  { %v12514_v42 = vpop.f32.mrb[216].mxu0 }
0x1698   :  { %v9483_v9 = vpop.f32.mrb[217].mxu0  ;;  %v12632_v7 = vadd.f32 %v12514_v42, %v16589_v40 }
0x1699   :  { %v12633_v48 = vadd.f32 %v16589_v40, %v9483_v9  ;;  %v12515_v39 = vpop.f32.mrb[218].mxu0 }
0x169a   :  { %v9486_v18 = vpop.f32.mrb[219].mxu0  ;;  %v16598_v43 = vadd.f32 %v12632_v7, %v15405_v0  ;;  %v12634_v52 = vadd.f32 %v12515_v39, %v16589_v40  ;;  %v17424_v39 = vld [vmem:[#allocation5_spill] sm:$0xff] }
0x169b   :  { %v16594_v63 = vadd.f32 %v12633_v48, %v15396_v51  ;;  %v12635_v11 = vadd.f32 %v16589_v40, %v9486_v18 }
0x169c   :  { %v16609_v51 = vadd.f32 %v12634_v52, %v15408_v57  ;;  %v9588_v0 = vsel %vm84_vm0, %v16598_v43, 0.0 }
0x169d   :  { %v16602_v13 = vadd.f32 %v12635_v11, %v15399_v29  ;;  %v9582_v22 = vsel %vm84_vm0, %v16594_v63, 0.0  ;;  %v17425_v11 = vld [vmem:[#allocation4_spill] sm:$0xff] }
0x169e   :  { %9583 = vadd.xlane.f32.xlu0 %v9582_v22  ;;  %v9591_v45 = vsel %vm84_vm0, %v16609_v51, 0.0 }
0x169f   :  { %v9585_v12 = vsel %vm84_vm0, %v16602_v13, 0.0 }
0x16a0   :  { %9586 = vadd.xlane.f32.xlu1 %v9585_v12 }
0x16a2   :  { %9589 = vadd.xlane.f32.xlu0 %v9588_v0 }
0x16a6   :  { %9592 = vadd.xlane.f32.xlu0 %v9591_v45 }
0x172b   :  { %v9584_v20 = vpop.xlane.xlu0 %9583 }
0x172c   :  { %v9630_v17 = vmul.f32 0.03125, %v9584_v20 }
0x172d   :  { %v9587_v14 = vpop.xlane.xlu1 %9586 }
0x172e   :  { %v9631_v46 = vmul.f32 0.03125, %v9587_v14  ;;  %v16671_v9 = vsub.f32 %v16594_v63, %v9630_v17 }
0x1730   :  { %v16682_v12 = vsub.f32 %v16602_v13, %v9631_v46 }
0x1745   :  { %v12518_v29 = vpop.f32.mrb[220].mxu0 }
0x1746   :  { %v9499_v31 = vpop.f32.mrb[221].mxu0  ;;  %v12636_v25 = vadd.f32 %v12518_v29, %v16589_v40 }
0x1747   :  { %v12637_v41 = vadd.f32 %v16589_v40, %v9499_v31  ;;  %v12519_v50 = vpop.f32.mrb[222].mxu0 }
0x1748   :  { %v9502_v49 = vpop.f32.mrb[223].mxu0  ;;  %v12638_v57 = vadd.f32 %v12519_v50, %v16589_v40  ;;  %v16623_v26 = vadd.f32 %v12636_v25, %v15432_v19  ;;  %v9662_v25 = vmul.f32 %v16671_v9, %v16671_v9  ;;  %v9663_v50 = vmul.f32 %v16682_v12, %v16682_v12 }
0x1749   :  { %v16618_v55 = vadd.f32 %v12637_v41, %v15420_v38  ;;  %v12639_v58 = vadd.f32 %v16589_v40, %v9502_v49 }
0x174a   :  { %v16631_v30 = vadd.f32 %v12638_v57, %v15435_v37  ;;  %v9600_v44 = vsel %vm84_vm0, %v16623_v26, 0.0  ;;  %v9681_v57 = vsel %vm84_vm0, %v9663_v50, 0.0 }
0x174b   :  { %v16626_v6 = vadd.f32 %v12639_v58, %v15423_v16  ;;  %v9594_v15 = vsel %vm84_vm0, %v16618_v55, 0.0 }
0x174c   :  { %9595 = vadd.xlane.f32.xlu0 %v9594_v15  ;;  %v9603_v19 = vsel %vm84_vm0, %v16631_v30, 0.0 }
0x174d   :  { %v9597_v38 = vsel %vm84_vm0, %v16626_v6, 0.0 }
0x174e   :  { %9598 = vadd.xlane.f32.xlu1 %v9597_v38  ;;  %v12701_v38 = vld [vmem:[%s17377_s10 + $0x10] sm:$0xff]  }
0x174f   :  { %12528 = vmatprep.subr.bf16.mxu1 %v12701_v38 }
0x1750   :  { %9601 = vadd.xlane.f32.xlu0 %v9600_v44  ;;  %12529 = vmatpush3.bf16.msra.mxu1 %v12701_v38  ;;  %v12702_v44 = vld [vmem:[%s17377_s10 + $0x18] sm:$0xff]  }
0x1751   :  { %12530 = vmatprep.subr.bf16.mxu1 %v12702_v44 }
0x1752   :  { %9604 = vadd.xlane.f32.xlu1 %v9603_v19 }
0x1754   :  { %12531 = vmatpush3.bf16.msra.mxu1 %v12702_v44 }
0x1755   :  { %v12522_v16 = vpop.f32.mrb[224].mxu0 }
0x1756   :  { %v9515_v23 = vpop.f32.mrb[225].mxu0  ;;  %v12640_v3 = vadd.f32 %v12522_v16, %v16589_v40 }
0x1757   :  { %v12641_v61 = vadd.f32 %v16589_v40, %v9515_v23  ;;  %v12523_v37 = vpop.f32.mrb[226].mxu0 }
0x1758   :  { %v9518_v36 = vpop.f32.mrb[227].mxu0  ;;  %v12642_v21 = vadd.f32 %v12523_v37, %v16589_v40  ;;  %v16647_v2 = vadd.f32 %v12640_v3, %v15458_v24  ;;  %v9590_v24 = vpop.xlane.xlu0 %9589 }
0x1759   :  { %v16642_v56 = vadd.f32 %v12641_v61, %v15446_v5  ;;  %v12643_v4 = vadd.f32 %v16589_v40, %v9518_v36  ;;  %v9632_v48 = vmul.f32 0.03125, %v9590_v24 }
0x175a   :  { %v16655_v59 = vadd.f32 %v12642_v21, %v17422_v32  ;;  %v9612_v33 = vsel %vm84_vm0, %v16647_v2, 0.0 }
0x175b   :  { %v16650_v47 = vadd.f32 %v12643_v4, %v15449_v10  ;;  %v9606_v8 = vsel %vm84_vm0, %v16642_v56, 0.0  ;;  %v16690_v29 = vsub.f32 %v16598_v43, %v9632_v48  ;;  %v9678_v43 = vsel %vm84_vm0, %v9662_v25, 0.0 }
0x175c   :  { %9607 = vadd.xlane.f32.xlu0 %v9606_v8  ;;  %v9615_v10 = vsel %vm84_vm0, %v16655_v59, 0.0  ;;  %v9593_v7 = vpop.xlane.xlu0 %9592 }
0x175d   :  { %v9609_v5 = vsel %vm84_vm0, %v16650_v47, 0.0  ;;  %v9633_v0 = vmul.f32 0.03125, %v9593_v7  ;;  %v9664_v49 = vmul.f32 %v16690_v29, %v16690_v29 }
0x175e   :  { %9610 = vadd.xlane.f32.xlu1 %v9609_v5 }
0x175f   :  { %v16697_v13 = vsub.f32 %v16609_v51, %v9633_v0  ;;  %v9684_v51 = vsel %vm84_vm0, %v9664_v49, 0.0 }
0x1760   :  { %9613 = vadd.xlane.f32.xlu0 %v9612_v33 }
0x1761   :  { %v9665_v58 = vmul.f32 %v16697_v13, %v16697_v13 }
0x1762   :  { %9616 = vadd.xlane.f32.xlu1 %v9615_v10 }
0x1763   :  { %v9687_v15 = vsel %vm84_vm0, %v9665_v58, 0.0 }
0x1765   :  { %v12526_v1 = vpop.f32.mrb[228].mxu0 }
0x1766   :  { %v9531_v62 = vpop.f32.mrb[229].mxu0  ;;  %v12644_v28 = vadd.f32 %v12526_v1, %v16589_v40 }
0x1767   :  { %v12645_v53 = vadd.f32 %v16589_v40, %v9531_v62  ;;  %v12527_v34 = vpop.f32.mrb[230].mxu0 }
0x1768   :  { %v9534_v27 = vpop.f32.mrb[231].mxu0  ;;  %v12646_v60 = vadd.f32 %v12527_v34, %v16589_v40  ;;  %v16674_v18 = vadd.f32 %v12644_v28, %v17424_v39 }
0x1769   :  { %v16666_v35 = vadd.f32 %v12645_v53, %v17423_v54  ;;  %v12647_v42 = vadd.f32 %v16589_v40, %v9534_v27  ;;  %v17426_v40 = vld [vmem:[#allocation6_spill] sm:$0xff] }
0x176a   :  { %v16685_v45 = vadd.f32 %v12646_v60, %v17426_v40  ;;  %v9624_v31 = vsel %vm84_vm0, %v16674_v18, 0.0 }
0x176b   :  { %v16677_v52 = vadd.f32 %v12647_v42, %v17425_v11  ;;  %v9618_v22 = vsel %vm84_vm0, %v16666_v35, 0.0 }
0x176c   :  { %9619 = vadd.xlane.f32.xlu0 %v9618_v22  ;;  %v9627_v41 = vsel %vm84_vm0, %v16685_v45, 0.0 }
0x176d   :  { %v9621_v63 = vsel %vm84_vm0, %v16677_v52, 0.0 }
0x176e   :  { %9622 = vadd.xlane.f32.xlu1 %v9621_v63 }
0x1770   :  { %9625 = vadd.xlane.f32.xlu0 %v9624_v31 }
0x1772   :  { %9628 = vadd.xlane.f32.xlu1 %v9627_v41 }
0x1774   :  { %9679 = vadd.xlane.f32.xlu0 %v9678_v43 }
0x1776   :  { %9682 = vadd.xlane.f32.xlu1 %v9681_v57 }
0x1778   :  { %9685 = vadd.xlane.f32.xlu0 %v9684_v51 }
0x177a   :  { %9688 = vadd.xlane.f32.xlu1 %v9687_v15 }
0x17d9   :  { %v9596_v19 = vpop.xlane.xlu0 %9595 }
0x17da   :  { %v9634_v16 = vmul.f32 0.03125, %v9596_v19 }
0x17db   :  { %v9599_v23 = vpop.xlane.xlu1 %9598 }
0x17dc   :  { %v16718_v3 = vsub.f32 %v16618_v55, %v9634_v16  ;;  %v9635_v61 = vmul.f32 0.03125, %v9599_v23 }
0x17dd   :  { %v9602_v37 = vpop.xlane.xlu0 %9601 }
0x17de   :  { %v16721_v36 = vsub.f32 %v16626_v6, %v9635_v61  ;;  %v9636_v21 = vmul.f32 0.03125, %v9602_v37  ;;  %v9666_v4 = vmul.f32 %v16718_v3, %v16718_v3 }
0x17df   :  { %v9605_v8 = vpop.xlane.xlu1 %9604 }
0x17e0   :  { %v16726_v32 = vsub.f32 %v16623_v26, %v9636_v21  ;;  %v9637_v5 = vmul.f32 0.03125, %v9605_v8  ;;  %v9690_v20 = vsel %vm84_vm0, %v9666_v4, 0.0  ;;  %v9667_v55 = vmul.f32 %v16721_v36, %v16721_v36 }
0x17e1   :  { %9691 = vadd.xlane.f32.xlu0 %v9690_v20 }
0x17e2   :  { %v16732_v33 = vsub.f32 %v16631_v30, %v9637_v5  ;;  %v9693_v6 = vsel %vm84_vm0, %v9667_v55, 0.0  ;;  %v9668_v10 = vmul.f32 %v16726_v32, %v16726_v32 }
0x17e3   :  { %9694 = vadd.xlane.f32.xlu1 %v9693_v6 }
0x17e4   :  { %v9696_v24 = vsel %vm84_vm0, %v9668_v10, 0.0  ;;  %v9669_v26 = vmul.f32 %v16732_v33, %v16732_v33 }
0x17e5   :  { %9697 = vadd.xlane.f32.xlu0 %v9696_v24  ;;  %v16792_v24 = vld [vmem:[%s17378_s8 + $0x1] ss:$0 sm:$0xff] }
0x17e6   :  { %v9699_v1 = vsel %vm84_vm0, %v9669_v26, 0.0 }
0x17e7   :  { %9700 = vadd.xlane.f32.xlu1 %v9699_v1 }
0x17e9   :  { %v9608_v17 = vpop.xlane.xlu0 %9607 }
0x17ea   :  { %v9638_v14 = vmul.f32 0.03125, %v9608_v17 }
0x17eb   :  { %v9611_v62 = vpop.xlane.xlu1 %9610 }
0x17ec   :  { %v16742_v30 = vsub.f32 %v16642_v56, %v9638_v14  ;;  %v9639_v28 = vmul.f32 0.03125, %v9611_v62 }
0x17ed   :  { %v9614_v53 = vpop.xlane.xlu0 %9613 }
0x17ee   :  { %v16745_v34 = vsub.f32 %v16650_v47, %v9639_v28  ;;  %v9640_v27 = vmul.f32 0.03125, %v9614_v53  ;;  %v9670_v46 = vmul.f32 %v16742_v30, %v16742_v30  ;;  %v16800_v28 = vld [vmem:[%s17379_s9 + $0x1] ss:$0 sm:$0xff] }
0x17ef   :  { %v9617_v54 = vpop.xlane.xlu1 %9616 }
0x17f0   :  { %v16750_v60 = vsub.f32 %v16647_v2, %v9640_v27  ;;  %v9641_v42 = vmul.f32 0.03125, %v9617_v54  ;;  %v9702_v7 = vsel %vm84_vm0, %v9670_v46, 0.0  ;;  %v9671_v56 = vmul.f32 %v16745_v34, %v16745_v34 }
0x17f1   :  { %9703 = vadd.xlane.f32.xlu0 %v9702_v7 }
0x17f2   :  { %v16756_v48 = vsub.f32 %v16655_v59, %v9641_v42  ;;  %v9705_v47 = vsel %vm84_vm0, %v9671_v56, 0.0  ;;  %v9672_v39 = vmul.f32 %v16750_v60, %v16750_v60 }
0x17f3   :  { %9706 = vadd.xlane.f32.xlu1 %v9705_v47 }
0x17f4   :  { %v9708_v11 = vsel %vm84_vm0, %v9672_v39, 0.0  ;;  %v9673_v2 = vmul.f32 %v16756_v48, %v16756_v48 }
0x17f5   :  { %9709 = vadd.xlane.f32.xlu0 %v9708_v11 }
0x17f6   :  { %v9711_v22 = vsel %vm84_vm0, %v9673_v2, 0.0 }
0x17f7   :  { %9712 = vadd.xlane.f32.xlu1 %v9711_v22 }
0x17f9   :  { %v9620_v0 = vpop.xlane.xlu0 %9619 }
0x17fa   :  { %v9642_v40 = vmul.f32 0.03125, %v9620_v0 }
0x17fb   :  { %v9623_v63 = vpop.xlane.xlu1 %9622 }
0x17fc   :  { %v16766_v59 = vsub.f32 %v16666_v35, %v9642_v40  ;;  %v9643_v31 = vmul.f32 0.03125, %v9623_v63 }
0x17fd   :  { %v9626_v25 = vpop.xlane.xlu0 %9625 }
0x17fe   :  { %v16769_v41 = vsub.f32 %v16677_v52, %v9643_v31  ;;  %v9644_v50 = vmul.f32 0.03125, %v9626_v25  ;;  %v9674_v43 = vmul.f32 %v16766_v59, %v16766_v59 }
0x17ff   :  { %v9629_v49 = vpop.xlane.xlu1 %9628 }
0x1800   :  { %v16774_v57 = vsub.f32 %v16674_v18, %v9644_v50  ;;  %v9645_v58 = vmul.f32 0.03125, %v9629_v49  ;;  %v9714_v51 = vsel %vm84_vm0, %v9674_v43, 0.0  ;;  %v9675_v35 = vmul.f32 %v16769_v41, %v16769_v41 }
0x1801   :  { %9715 = vadd.xlane.f32.xlu0 %v9714_v51  ;;  %v9680_v15 = vpop.xlane.xlu0 %9679 }
0x1802   :  { %v16780_v38 = vsub.f32 %v16685_v45, %v9645_v58  ;;  %v9726_v52 = vmul.f32 0.03125, %v9680_v15  ;;  %v9717_v44 = vsel %vm84_vm0, %v9675_v35, 0.0  ;;  %v9676_v19 = vmul.f32 %v16774_v57, %v16774_v57 }
0x1803   :  { %9718 = vadd.xlane.f32.xlu1 %v9717_v44  ;;  %v9683_v18 = vpop.xlane.xlu1 %9682 }
0x1804   :  { %v9742_v16 = vadd.f32 1e-12, %v9726_v52  ;;  %v9727_v23 = vmul.f32 0.03125, %v9683_v18  ;;  %v9720_v61 = vsel %vm84_vm0, %v9676_v19, 0.0  ;;  %v9677_v37 = vmul.f32 %v16780_v38, %v16780_v38 }
0x1805   :  { %9721 = vadd.xlane.f32.xlu0 %v9720_v61  ;;  %v9686_v21 = vpop.xlane.xlu0 %9685 }
0x1806   :  { %13095 = vrsqrt.f32 %v9742_v16  ;;  %v9743_v45 = vadd.f32 1e-12, %v9727_v23  ;;  %v9728_v4 = vmul.f32 0.03125, %v9686_v21  ;;  %v9723_v8 = vsel %vm84_vm0, %v9677_v37, 0.0 }
0x1807   :  { %9724 = vadd.xlane.f32.xlu1 %v9723_v8  ;;  %v9689_v5 = vpop.xlane.xlu1 %9688 }
0x1808   :  { %13097 = vrsqrt.f32 %v9743_v45  ;;  %v9744_v20 = vadd.f32 1e-12, %v9728_v4  ;;  %v9729_v55 = vmul.f32 0.03125, %v9689_v5 }
0x180a   :  { %13099 = vrsqrt.f32 %v9744_v20  ;;  %v9745_v6 = vadd.f32 1e-12, %v9729_v55 }
0x180c   :  { %13101 = vrsqrt.f32 %v9745_v6 }
0x1810   :  { %v13096_v10 = vpop.eup %13095 }
0x1811   :  { %v9774_v26 = vmul.f32 %v13096_v10, %v16671_v9 }
0x1812   :  { %v13098_v1 = vpop.eup %13097 }
0x1813   :  { %v9775_v17 = vmul.f32 %v13098_v1, %v16682_v12  ;;  %v9796_v14 = vmul.f32 %v16792_v24, %v9774_v26 }
0x1814   :  { %v13100_v62 = vpop.eup %13099 }
0x1815   :  { %v9776_v53 = vmul.f32 %v13100_v62, %v16690_v29  ;;  %v9797_v27 = vmul.f32 %v16792_v24, %v9775_v17  ;;  %v16807_v42 = vadd.f32 %v16800_v28, %v9796_v14  ;;  %v12703_v17 = vld [vmem:[%s17380_s12 + $0x20] sm:$0xff]  }
0x1816   :  { %v13102_v46 = vpop.eup %13101  ;;  %12548 = vmatprep.subr.bf16.mxu0 %v12703_v17 }
0x1817   :  { %v9798_v54 = vmul.f32 %v16792_v24, %v9776_v53  ;;  %v9777_v9 = vmul.f32 %v13102_v46, %v16697_v13  ;;  %v16810_v12 = vadd.f32 %v16800_v28, %v9797_v27  ;;  %12549 = vmatpush3.bf16.msra.mxu0 %v12703_v17  ;;  %v12704_v27 = vld [vmem:[%s17380_s12 + $0x28] sm:$0xff]  }
0x1818   :  { %12550 = vmatprep.subr.bf16.mxu0 %v12704_v27 }
0x1819   :  { %v9799_v7 = vmul.f32 %v16792_v24, %v9777_v9  ;;  %v9834_v56 = vpack.c.bf16 %v16810_v12, %v16807_v42  ;;  %v16816_v29 = vadd.f32 %v16800_v28, %v9798_v54 }
0x181b   :  { %v16819_v47 = vadd.f32 %v16800_v28, %v9799_v7  ;;  %12532 = vmatprep.mubr.msk.bf16.mxu1 %vm84_vm0, %v9834_v56  ;;  %12551 = vmatpush3.bf16.msra.mxu0 %v12704_v27  ;;  %v12705_v7 = vld [vmem:[%s17380_s12 + $0x30] sm:$0xff]  }
0x181c   :  { %12552 = vmatprep.subr.bf16.mxu0 %v12705_v7 }
0x181d   :  { %v9835_v13 = vpack.c.bf16 %v16819_v47, %v16816_v29 }
0x181f   :  { %12533 = vmatmul.mubr.msk.bf16.vlgmr.msra.gmra.mrb[64].mxu1 %vm84_vm0, %v9835_v13  ;;  %12553 = vmatpush3.bf16.msra.mxu0 %v12705_v7 }
0x186e   :  { %v9692_v39 = vpop.xlane.xlu0 %9691 }
0x186f   :  { %v9730_v11 = vmul.f32 0.03125, %v9692_v39 }
0x1870   :  { %v9695_v2 = vpop.xlane.xlu1 %9694 }
0x1871   :  { %v9746_v22 = vadd.f32 1e-12, %v9730_v11  ;;  %v9731_v0 = vmul.f32 0.03125, %v9695_v2 }
0x1872   :  { %v9698_v40 = vpop.xlane.xlu0 %9697 }
0x1873   :  { %13103 = vrsqrt.f32 %v9746_v22  ;;  %v9747_v63 = vadd.f32 1e-12, %v9731_v0  ;;  %v9732_v31 = vmul.f32 0.03125, %v9698_v40 }
0x1874   :  { %v9701_v25 = vpop.xlane.xlu1 %9700 }
0x1875   :  { %13105 = vrsqrt.f32 %v9747_v63  ;;  %v9748_v50 = vadd.f32 1e-12, %v9732_v31  ;;  %v9733_v43 = vmul.f32 0.03125, %v9701_v25  ;;  %v12706_v25 = vld [vmem:[%s17380_s12 + $0x38] sm:$0xff]  }
0x1876   :  { %12554 = vmatprep.subr.bf16.mxu0 %v12706_v25 }
0x1877   :  { %13107 = vrsqrt.f32 %v9748_v50  ;;  %v9749_v49 = vadd.f32 1e-12, %v9733_v43  ;;  %12555 = vmatpush3.bf16.msra.mxu0 %v12706_v25 }
0x1879   :  { %13109 = vrsqrt.f32 %v9749_v49 }
0x187d   :  { %v13104_v58 = vpop.eup %13103 }
0x187e   :  { %v9778_v51 = vmul.f32 %v13104_v58, %v16718_v3  ;;  %v9704_v35 = vpop.xlane.xlu0 %9703 }
0x187f   :  { %v13106_v15 = vpop.eup %13105  ;;  %v9734_v52 = vmul.f32 0.03125, %v9704_v35 }
0x1880   :  { %v9779_v44 = vmul.f32 %v13106_v15, %v16721_v36  ;;  %v9707_v19 = vpop.xlane.xlu1 %9706  ;;  %v9800_v18 = vmul.f32 %v16792_v24, %v9778_v51 }
0x1881   :  { %v13108_v16 = vpop.eup %13107  ;;  %v9750_v23 = vadd.f32 1e-12, %v9734_v52  ;;  %v9735_v61 = vmul.f32 0.03125, %v9707_v19 }
0x1882   :  { %v9780_v37 = vmul.f32 %v13108_v16, %v16726_v32  ;;  %v9710_v21 = vpop.xlane.xlu0 %9709  ;;  %v9801_v45 = vmul.f32 %v16792_v24, %v9779_v44  ;;  %v16833_v55 = vadd.f32 %v16800_v28, %v9800_v18 }
0x1883   :  { %v13110_v4 = vpop.eup %13109  ;;  %13111 = vrsqrt.f32 %v9750_v23  ;;  %v9751_v8 = vadd.f32 1e-12, %v9735_v61  ;;  %v9736_v3 = vmul.f32 0.03125, %v9710_v21 }
0x1884   :  { %v9802_v5 = vmul.f32 %v16792_v24, %v9780_v37  ;;  %v9781_v20 = vmul.f32 %v13110_v4, %v16732_v33  ;;  %v9713_v36 = vpop.xlane.xlu1 %9712  ;;  %v16836_v6 = vadd.f32 %v16800_v28, %v9801_v45 }
0x1885   :  { %13113 = vrsqrt.f32 %v9751_v8  ;;  %v9752_v32 = vadd.f32 1e-12, %v9736_v3  ;;  %v9737_v10 = vmul.f32 0.03125, %v9713_v36 }
0x1886   :  { %v9803_v26 = vmul.f32 %v16792_v24, %v9781_v20  ;;  %v9836_v1 = vpack.c.bf16 %v16836_v6, %v16833_v55  ;;  %v16845_v14 = vadd.f32 %v16800_v28, %v9802_v5 }
0x1887   :  { %13115 = vrsqrt.f32 %v9752_v32  ;;  %v9753_v33 = vadd.f32 1e-12, %v9737_v10 }
0x1888   :  { %v16848_v62 = vadd.f32 %v16800_v28, %v9803_v26  ;;  %12536 = vmatprep.mubr.msk.bf16.mxu1 %vm84_vm0, %v9836_v1 }
0x1889   :  { %13117 = vrsqrt.f32 %v9753_v33 }
0x188a   :  { %v9837_v53 = vpack.c.bf16 %v16848_v62, %v16845_v14 }
0x188c   :  { %12537 = vmatmul.mubr.msk.bf16.gmra.mrb[68].mxu1 %vm84_vm0, %v9837_v53 }
0x188d   :  { %v13112_v46 = vpop.eup %13111 }
0x188e   :  { %v9782_v54 = vmul.f32 %v13112_v46, %v16742_v30  ;;  %v9716_v9 = vpop.xlane.xlu0 %9715 }
0x188f   :  { %v13114_v56 = vpop.eup %13113  ;;  %v9738_v13 = vmul.f32 0.03125, %v9716_v9 }
0x1890   :  { %v9783_v39 = vmul.f32 %v13114_v56, %v16745_v34  ;;  %v9719_v11 = vpop.xlane.xlu1 %9718  ;;  %v9804_v2 = vmul.f32 %v16792_v24, %v9782_v54 }
0x1891   :  { %v13116_v22 = vpop.eup %13115  ;;  %v9754_v0 = vadd.f32 1e-12, %v9738_v13  ;;  %v9739_v40 = vmul.f32 0.03125, %v9719_v11 }
0x1892   :  { %v9784_v63 = vmul.f32 %v13116_v22, %v16750_v60  ;;  %v9722_v30 = vpop.xlane.xlu0 %9721  ;;  %v9805_v31 = vmul.f32 %v16792_v24, %v9783_v39  ;;  %v16871_v35 = vadd.f32 %v16800_v28, %v9804_v2 }
0x1893   :  { %v13118_v50 = vpop.eup %13117  ;;  %13119 = vrsqrt.f32 %v9754_v0  ;;  %v9755_v34 = vadd.f32 1e-12, %v9739_v40  ;;  %v9740_v43 = vmul.f32 0.03125, %v9722_v30 }
0x1894   :  { %v9806_v49 = vmul.f32 %v16792_v24, %v9784_v63  ;;  %v9785_v58 = vmul.f32 %v13118_v50, %v16756_v48  ;;  %v9725_v51 = vpop.xlane.xlu1 %9724  ;;  %v16874_v60 = vadd.f32 %v16800_v28, %v9805_v31 }
0x1895   :  { %13121 = vrsqrt.f32 %v9755_v34  ;;  %v9756_v15 = vadd.f32 1e-12, %v9740_v43  ;;  %v9741_v52 = vmul.f32 0.03125, %v9725_v51 }
0x1896   :  { %v9807_v44 = vmul.f32 %v16792_v24, %v9785_v58  ;;  %v9838_v19 = vpack.c.bf16 %v16874_v60, %v16871_v35  ;;  %v16880_v48 = vadd.f32 %v16800_v28, %v9806_v49 }
0x1897   :  { %13123 = vrsqrt.f32 %v9756_v15  ;;  %v9757_v18 = vadd.f32 1e-12, %v9741_v52 }
0x1898   :  { %v16883_v16 = vadd.f32 %v16800_v28, %v9807_v44  ;;  %12540 = vmatprep.mubr.msk.bf16.mxu1 %vm84_vm0, %v9838_v19 }
0x1899   :  { %13125 = vrsqrt.f32 %v9757_v18 }
0x189a   :  { %v9839_v23 = vpack.c.bf16 %v16883_v16, %v16880_v48 }
0x189c   :  { %12541 = vmatmul.mubr.msk.bf16.gmra.mrb[72].mxu1 %vm84_vm0, %v9839_v23 }
0x189d   :  { %v13120_v61 = vpop.eup %13119 }
0x189e   :  { %v9786_v37 = vmul.f32 %v13120_v61, %v16766_v59 }
0x189f   :  { %v13122_v21 = vpop.eup %13121 }
0x18a0   :  { %v9787_v45 = vmul.f32 %v13122_v21, %v16769_v41  ;;  %v9808_v4 = vmul.f32 %v16792_v24, %v9786_v37 }
0x18a1   :  { %v13124_v8 = vpop.eup %13123 }
0x18a2   :  { %v9788_v3 = vmul.f32 %v13124_v8, %v16774_v57  ;;  %v9809_v5 = vmul.f32 %v16792_v24, %v9787_v45  ;;  %v16897_v10 = vadd.f32 %v16800_v28, %v9808_v4 }
0x18a3   :  { %v13126_v20 = vpop.eup %13125 }
0x18a4   :  { %v9810_v36 = vmul.f32 %v16792_v24, %v9788_v3  ;;  %v9789_v32 = vmul.f32 %v13126_v20, %v16780_v38  ;;  %v16900_v59 = vadd.f32 %v16800_v28, %v9809_v5 }
0x18a6   :  { %v9811_v41 = vmul.f32 %v16792_v24, %v9789_v32  ;;  %v9840_v26 = vpack.c.bf16 %v16900_v59, %v16897_v10  ;;  %v16906_v57 = vadd.f32 %v16800_v28, %v9810_v36  ;;  %v16918_v24 = vld [vmem:[%s17381_s11 + $0x1] ss:$0 sm:$0xff] }
0x18a8   :  { %v16909_v1 = vadd.f32 %v16800_v28, %v9811_v41  ;;  %12544 = vmatprep.mubr.msk.bf16.mxu1 %vm84_vm0, %v9840_v26 }
0x18aa   :  { %v9841_v38 = vpack.c.bf16 %v16909_v1, %v16906_v57 }
0x18ac   :  { %12545 = vmatmul.mubr.msk.bf16.gmra.mrb[76].mxu1 %vm84_vm0, %v9841_v38 }
0x18f2   :  { %v12534_v17 = vpop.f32.mrb[64].mxu1 }
0x18f3   :  { %v9934_v33 = vadd.f32 %v12534_v17, %v16918_v24  ;;  %v9925_v53 = vpop.f32.mrb[65].mxu1 }
0x18f4   :  { %v9926_v27 = vadd.f32 %v16918_v24, %v9925_v53  ;;  %v12535_v28 = vpop.f32.mrb[66].mxu1 }
0x18f5   :  { %v9990_v46 = vmul.f32 %v9934_v33, %v9934_v33  ;;  %v9937_v54 = vadd.f32 %v12535_v28, %v16918_v24  ;;  %v9928_v9 = vpop.f32.mrb[67].mxu1 }
0x18f6   :  { %v9988_v7 = vmul.f32 %v9926_v27, %v9926_v27  ;;  %v9929_v56 = vadd.f32 %v16918_v24, %v9928_v9 }
0x18f7   :  { %v10006_v13 = vmul.f32 %v9990_v46, %v9934_v33  ;;  %v9991_v39 = vmul.f32 %v9937_v54, %v9937_v54 }
0x18f8   :  { %v10004_v11 = vmul.f32 %v9988_v7, %v9926_v27  ;;  %v9989_v2 = vmul.f32 %v9929_v56, %v9929_v56 }
0x18f9   :  { %v10022_v22 = vmul.f32 0.044715, %v10006_v13  ;;  %v10007_v0 = vmul.f32 %v9991_v39, %v9937_v54 }
0x18fa   :  { %v10020_v40 = vmul.f32 0.044715, %v10004_v11  ;;  %v10005_v63 = vmul.f32 %v9989_v2, %v9929_v56 }
0x18fb   :  { %v10038_v30 = vadd.f32 %v10022_v22, %v9934_v33  ;;  %v10023_v31 = vmul.f32 0.044715, %v10007_v0 }
0x18fc   :  { %v10036_v25 = vadd.f32 %v10020_v40, %v9926_v27  ;;  %v10021_v50 = vmul.f32 0.044715, %v10005_v63 }
0x18fd   :  { %v10054_v34 = vmul.f32 0.7978846, %v10038_v30  ;;  %v10039_v43 = vadd.f32 %v10023_v31, %v9937_v54 }
0x18fe   :  { %v10052_v49 = vmul.f32 0.7978846, %v10036_v25  ;;  %v10037_v58 = vadd.f32 %v10021_v50, %v9929_v56 }
0x18ff   :  { %13127 = vtanh.f32 %v10054_v34  ;;  %v10055_v51 = vmul.f32 0.7978846, %v10039_v43 }
0x1900   :  { %13129 = vtanh.f32 %v10052_v49  ;;  %v10053_v15 = vmul.f32 0.7978846, %v10037_v58 }
0x1901   :  { %13131 = vtanh.f32 %v10055_v51 }
0x1902   :  { %13133 = vtanh.f32 %v10053_v15 }
0x1909   :  { %v13128_v52 = vpop.eup %13127 }
0x190a   :  { %v13130_v44 = vpop.eup %13129  ;;  %v10086_v19 = vadd.f32 1.0, %v13128_v52 }
0x190b   :  { %v13132_v18 = vpop.eup %13131  ;;  %v10084_v23 = vadd.f32 1.0, %v13130_v44 }
0x190c   :  { %v13134_v61 = vpop.eup %13133  ;;  %v10102_v37 = vmul.f32 0.5, %v10086_v19  ;;  %v10087_v21 = vadd.f32 1.0, %v13132_v18 }
0x190d   :  { %v10100_v45 = vmul.f32 0.5, %v10084_v23  ;;  %v10085_v4 = vadd.f32 1.0, %v13134_v61 }
0x190e   :  { %v10103_v8 = vmul.f32 0.5, %v10087_v21  ;;  %v10118_v5 = vmul.f32 %v10102_v37, %v9934_v33 }
0x190f   :  { %v10101_v3 = vmul.f32 0.5, %v10085_v4  ;;  %v10116_v36 = vmul.f32 %v10100_v45, %v9926_v27 }
0x1910   :  { %v10119_v20 = vmul.f32 %v10103_v8, %v9937_v54 }
0x1911   :  { %v10117_v32 = vmul.f32 %v10101_v3, %v9929_v56 }
0x1912   :  { %v10133_v41 = vpack.c.bf16 %v10119_v20, %v10118_v5 }
0x1913   :  { %v10132_v26 = vpack.c.bf16 %v10117_v32, %v10116_v36 }
0x1915   :  { %12556 = vmatprep.mubr.msk.bf16.mxu0 %vm5116_vm5, %v10132_v26 }
0x1916   :  { %12557 = vmatmul.mubr.msk.bf16.vlgmr.msra.gmra.mrb[32].mxu0 %vm5116_vm5, %v10133_v41 }
0x195f   :  { %v12538_v38 = vpop.f32.mrb[68].mxu1 }
0x1960   :  { %v16927_v17 = vadd.f32 %v12538_v38, %v16918_v24  ;;  %v9941_v53 = vpop.f32.mrb[69].mxu1 }
0x1961   :  { %v16930_v28 = vadd.f32 %v16918_v24, %v9941_v53  ;;  %v12539_v46 = vpop.f32.mrb[70].mxu1 }
0x1962   :  { %v9994_v33 = vmul.f32 %v16927_v17, %v16927_v17  ;;  %v16935_v27 = vadd.f32 %v12539_v46, %v16918_v24  ;;  %v9944_v54 = vpop.f32.mrb[71].mxu1 }
0x1963   :  { %v9992_v9 = vmul.f32 %v16930_v28, %v16930_v28  ;;  %v16940_v7 = vadd.f32 %v16918_v24, %v9944_v54 }
0x1964   :  { %v10010_v56 = vmul.f32 %v9994_v33, %v16927_v17  ;;  %v9995_v13 = vmul.f32 %v16935_v27, %v16935_v27 }
0x1965   :  { %v10008_v39 = vmul.f32 %v9992_v9, %v16930_v28  ;;  %v9993_v11 = vmul.f32 %v16940_v7, %v16940_v7 }
0x1966   :  { %v10026_v2 = vmul.f32 0.044715, %v10010_v56  ;;  %v10011_v22 = vmul.f32 %v9995_v13, %v16935_v27 }
0x1967   :  { %v10024_v0 = vmul.f32 0.044715, %v10008_v39  ;;  %v10009_v40 = vmul.f32 %v9993_v11, %v16940_v7 }
0x1968   :  { %v10042_v63 = vadd.f32 %v10026_v2, %v16927_v17  ;;  %v10027_v30 = vmul.f32 0.044715, %v10011_v22 }
0x1969   :  { %v10040_v31 = vadd.f32 %v10024_v0, %v16930_v28  ;;  %v10025_v25 = vmul.f32 0.044715, %v10009_v40 }
0x196a   :  { %v10058_v50 = vmul.f32 0.7978846, %v10042_v63  ;;  %v10043_v34 = vadd.f32 %v10027_v30, %v16935_v27 }
0x196b   :  { %v10056_v43 = vmul.f32 0.7978846, %v10040_v31  ;;  %v10041_v49 = vadd.f32 %v10025_v25, %v16940_v7 }
0x196c   :  { %13135 = vtanh.f32 %v10058_v50  ;;  %v10059_v58 = vmul.f32 0.7978846, %v10043_v34 }
0x196d   :  { %13137 = vtanh.f32 %v10056_v43  ;;  %v10057_v51 = vmul.f32 0.7978846, %v10041_v49 }
0x196e   :  { %13139 = vtanh.f32 %v10059_v58 }
0x196f   :  { %13141 = vtanh.f32 %v10057_v51  ;;  %v12542_v15 = vpop.f32.mrb[72].mxu1 }
0x1970   :  { %v16955_v52 = vadd.f32 %v12542_v15, %v16918_v24  ;;  %v9957_v44 = vpop.f32.mrb[73].mxu1 }
0x1971   :  { %v16958_v19 = vadd.f32 %v16918_v24, %v9957_v44  ;;  %v12543_v18 = vpop.f32.mrb[74].mxu1 }
0x1972   :  { %v9998_v23 = vmul.f32 %v16955_v52, %v16955_v52  ;;  %v16963_v61 = vadd.f32 %v12543_v18, %v16918_v24  ;;  %v9960_v37 = vpop.f32.mrb[75].mxu1 }
0x1973   :  { %v9996_v21 = vmul.f32 %v16958_v19, %v16958_v19  ;;  %v16968_v45 = vadd.f32 %v16918_v24, %v9960_v37 }
0x1974   :  { %v10014_v4 = vmul.f32 %v9998_v23, %v16955_v52  ;;  %v9999_v8 = vmul.f32 %v16963_v61, %v16963_v61 }
0x1975   :  { %v10012_v3 = vmul.f32 %v9996_v21, %v16958_v19  ;;  %v9997_v5 = vmul.f32 %v16968_v45, %v16968_v45 }
0x1976   :  { %v13136_v20 = vpop.eup %13135  ;;  %v10030_v36 = vmul.f32 0.044715, %v10014_v4  ;;  %v10015_v32 = vmul.f32 %v9999_v8, %v16963_v61 }
0x1977   :  { %v13138_v41 = vpop.eup %13137  ;;  %v10090_v26 = vadd.f32 1.0, %v13136_v20  ;;  %v10028_v38 = vmul.f32 0.044715, %v10012_v3  ;;  %v10013_v53 = vmul.f32 %v9997_v5, %v16968_v45 }
0x1978   :  { %v13140_v46 = vpop.eup %13139  ;;  %v10088_v33 = vadd.f32 1.0, %v13138_v41  ;;  %v10046_v54 = vadd.f32 %v10030_v36, %v16955_v52  ;;  %v10031_v9 = vmul.f32 0.044715, %v10015_v32 }
0x1979   :  { %v13142_v56 = vpop.eup %13141  ;;  %v10106_v13 = vmul.f32 0.5, %v10090_v26  ;;  %v10091_v39 = vadd.f32 1.0, %v13140_v46  ;;  %v10044_v11 = vadd.f32 %v10028_v38, %v16958_v19  ;;  %v10029_v2 = vmul.f32 0.044715, %v10013_v53 }
0x197a   :  { %v10104_v22 = vmul.f32 0.5, %v10088_v33  ;;  %v10089_v0 = vadd.f32 1.0, %v13142_v56  ;;  %v10062_v40 = vmul.f32 0.7978846, %v10046_v54  ;;  %v10047_v63 = vadd.f32 %v10031_v9, %v16963_v61 }
0x197b   :  { %v10107_v30 = vmul.f32 0.5, %v10091_v39  ;;  %v10060_v31 = vmul.f32 0.7978846, %v10044_v11  ;;  %v10045_v25 = vadd.f32 %v10029_v2, %v16968_v45  ;;  %v10122_v43 = vmul.f32 %v10106_v13, %v16927_v17 }
0x197c   :  { %v10105_v50 = vmul.f32 0.5, %v10089_v0  ;;  %13143 = vtanh.f32 %v10062_v40  ;;  %v10063_v34 = vmul.f32 0.7978846, %v10047_v63  ;;  %v10120_v51 = vmul.f32 %v10104_v22, %v16930_v28 }
0x197d   :  { %v10123_v49 = vmul.f32 %v10107_v30, %v16935_v27  ;;  %13145 = vtanh.f32 %v10060_v31  ;;  %v10061_v58 = vmul.f32 0.7978846, %v10045_v25 }
0x197e   :  { %v10121_v15 = vmul.f32 %v10105_v50, %v16940_v7  ;;  %13147 = vtanh.f32 %v10063_v34 }
0x197f   :  { %v10135_v44 = vpack.c.bf16 %v10123_v49, %v10122_v43  ;;  %13149 = vtanh.f32 %v10061_v58  ;;  %v12546_v18 = vpop.f32.mrb[76].mxu1 }
0x1980   :  { %v16987_v23 = vadd.f32 %v12546_v18, %v16918_v24  ;;  %v9973_v37 = vpop.f32.mrb[77].mxu1  ;;  %v10134_v21 = vpack.c.bf16 %v10121_v15, %v10120_v51 }
0x1981   :  { %v16990_v4 = vadd.f32 %v16918_v24, %v9973_v37  ;;  %v12547_v17 = vpop.f32.mrb[78].mxu1 }
0x1982   :  { %v10002_v27 = vmul.f32 %v16987_v23, %v16987_v23  ;;  %v9985_v28 = vadd.f32 %v12547_v17, %v16918_v24  ;;  %v9976_v8 = vpop.f32.mrb[79].mxu1  ;;  %12560 = vmatprep.mubr.msk.bf16.mxu0 %vm5116_vm5, %v10134_v21 }
0x1983   :  { %v10000_v7 = vmul.f32 %v16990_v4, %v16990_v4  ;;  %v9977_v3 = vadd.f32 %v16918_v24, %v9976_v8  ;;  %12561 = vmatmul.mubr.msk.bf16.gmra.mrb[36].mxu0 %vm5116_vm5, %v10135_v44 }
0x1984   :  { %v10018_v5 = vmul.f32 %v10002_v27, %v16987_v23  ;;  %v10003_v20 = vmul.f32 %v9985_v28, %v9985_v28 }
0x1985   :  { %v10016_v36 = vmul.f32 %v10000_v7, %v16990_v4  ;;  %v10001_v32 = vmul.f32 %v9977_v3, %v9977_v3 }
0x1986   :  { %v13144_v41 = vpop.eup %13143  ;;  %v10034_v26 = vmul.f32 0.044715, %v10018_v5  ;;  %v10019_v38 = vmul.f32 %v10003_v20, %v9985_v28 }
0x1987   :  { %v13146_v53 = vpop.eup %13145  ;;  %v10094_v46 = vadd.f32 1.0, %v13144_v41  ;;  %v10032_v33 = vmul.f32 0.044715, %v10016_v36  ;;  %v10017_v54 = vmul.f32 %v10001_v32, %v9977_v3 }
0x1988   :  { %v13148_v9 = vpop.eup %13147  ;;  %v10092_v56 = vadd.f32 1.0, %v13146_v53  ;;  %v10050_v13 = vadd.f32 %v10034_v26, %v16987_v23  ;;  %v10035_v24 = vmul.f32 0.044715, %v10019_v38 }
0x1989   :  { %v13150_v39 = vpop.eup %13149  ;;  %v10110_v11 = vmul.f32 0.5, %v10094_v46  ;;  %v10095_v2 = vadd.f32 1.0, %v13148_v9  ;;  %v10048_v22 = vadd.f32 %v10032_v33, %v16990_v4  ;;  %v10033_v0 = vmul.f32 0.044715, %v10017_v54  ;;  %v17017_v54 = vld [vmem:[%s17382_s13 + $0x1] ss:$0 sm:$0xff] }
0x198a   :  { %v10108_v40 = vmul.f32 0.5, %v10092_v56  ;;  %v10093_v63 = vadd.f32 1.0, %v13150_v39  ;;  %v10066_v30 = vmul.f32 0.7978846, %v10050_v13  ;;  %v10051_v31 = vadd.f32 %v10035_v24, %v9985_v28 }
0x198b   :  { %v10111_v25 = vmul.f32 0.5, %v10095_v2  ;;  %v10064_v50 = vmul.f32 0.7978846, %v10048_v22  ;;  %v10049_v34 = vadd.f32 %v10033_v0, %v9977_v3  ;;  %v10126_v58 = vmul.f32 %v10110_v11, %v16955_v52 }
0x198c   :  { %v10109_v43 = vmul.f32 0.5, %v10093_v63  ;;  %13151 = vtanh.f32 %v10066_v30  ;;  %v10067_v49 = vmul.f32 0.7978846, %v10051_v31  ;;  %v10124_v44 = vmul.f32 %v10108_v40, %v16958_v19 }
0x198d   :  { %v10127_v51 = vmul.f32 %v10111_v25, %v16963_v61  ;;  %13153 = vtanh.f32 %v10064_v50  ;;  %v10065_v15 = vmul.f32 0.7978846, %v10049_v34 }
0x198e   :  { %v10125_v18 = vmul.f32 %v10109_v43, %v16968_v45  ;;  %13155 = vtanh.f32 %v10067_v49 }
0x198f   :  { %v10137_v37 = vpack.c.bf16 %v10127_v51, %v10126_v58  ;;  %13157 = vtanh.f32 %v10065_v15 }
0x1990   :  { %v10136_v21 = vpack.c.bf16 %v10125_v18, %v10124_v44 }
0x1992   :  { %12564 = vmatprep.mubr.msk.bf16.mxu0 %vm5116_vm5, %v10136_v21 }
0x1993   :  { %12565 = vmatmul.mubr.msk.bf16.gmra.mrb[40].mxu0 %vm5116_vm5, %v10137_v37 }
0x1996   :  { %v13152_v17 = vpop.eup %13151 }
0x1997   :  { %v13154_v27 = vpop.eup %13153  ;;  %v10098_v8 = vadd.f32 1.0, %v13152_v17 }
0x1998   :  { %v13156_v52 = vpop.eup %13155  ;;  %v10096_v7 = vadd.f32 1.0, %v13154_v27 }
0x1999   :  { %v13158_v61 = vpop.eup %13157  ;;  %v10114_v5 = vmul.f32 0.5, %v10098_v8  ;;  %v10099_v20 = vadd.f32 1.0, %v13156_v52 }
0x199a   :  { %v10112_v36 = vmul.f32 0.5, %v10096_v7  ;;  %v10097_v19 = vadd.f32 1.0, %v13158_v61 }
0x199b   :  { %v10115_v32 = vmul.f32 0.5, %v10099_v20  ;;  %v10130_v41 = vmul.f32 %v10114_v5, %v16987_v23 }
0x199c   :  { %v10113_v45 = vmul.f32 0.5, %v10097_v19  ;;  %v10128_v38 = vmul.f32 %v10112_v36, %v16990_v4 }
0x199d   :  { %v10131_v26 = vmul.f32 %v10115_v32, %v9985_v28 }
0x199e   :  { %v10129_v53 = vmul.f32 %v10113_v45, %v9977_v3 }
0x199f   :  { %v10139_v46 = vpack.c.bf16 %v10131_v26, %v10130_v41 }
0x19a0   :  { %v10138_v33 = vpack.c.bf16 %v10129_v53, %v10128_v38 }
0x19a2   :  { %12568 = vmatprep.mubr.msk.bf16.mxu0 %vm5116_vm5, %v10138_v33 }
0x19a3   :  { %12569 = vmatmul.mubr.msk.bf16.gmra.mrb[44].mxu0 %vm5116_vm5, %v10139_v46 }
0x19e9   :  { %v12558_v9 = vpop.f32.mrb[32].mxu0 }
0x19ea   :  { %v10239_v56 = vpop.f32.mrb[33].mxu0  ;;  %v10248_v13 = vadd.f32 %v12558_v9, %v17017_v54 }
0x19eb   :  { %v10240_v23 = vadd.f32 %v17017_v54, %v10239_v56  ;;  %v12559_v28 = vpop.f32.mrb[34].mxu0 }
0x19ec   :  { %v10242_v4 = vpop.f32.mrb[35].mxu0  ;;  %v10251_v24 = vadd.f32 %v12559_v28, %v17017_v54  ;;  %v17027_v11 = vadd.f32 %v10248_v13, %v16816_v29 }
0x19ed   :  { %v17022_v3 = vadd.f32 %v10240_v23, %v16807_v42  ;;  %v10243_v39 = vadd.f32 %v17017_v54, %v10242_v4 }
0x19ee   :  { %v17035_v0 = vadd.f32 %v10251_v24, %v16819_v47  ;;  %v10328_v40 = vsel %vm84_vm0, %v17027_v11, 0.0 }
0x19ef   :  { %v17030_v2 = vadd.f32 %v10243_v39, %v16810_v12  ;;  %v10322_v22 = vsel %vm84_vm0, %v17022_v3, 0.0 }
0x19f0   :  { %10323 = vadd.xlane.f32.xlu0 %v10322_v22  ;;  %v10331_v29 = vsel %vm84_vm0, %v17035_v0, 0.0 }
0x19f1   :  { %v10325_v42 = vsel %vm84_vm0, %v17030_v2, 0.0 }
0x19f2   :  { %10326 = vadd.xlane.f32.xlu1 %v10325_v42 }
0x19f4   :  { %10329 = vadd.xlane.f32.xlu0 %v10328_v40 }
0x19f6   :  { %10332 = vadd.xlane.f32.xlu1 %v10331_v29 }
0x1a56   :  { %v12562_v12 = vpop.f32.mrb[36].mxu0 }
0x1a57   :  { %v10255_v63 = vpop.f32.mrb[37].mxu0  ;;  %v10264_v30 = vadd.f32 %v12562_v12, %v17017_v54 }
0x1a58   :  { %v10256_v31 = vadd.f32 %v17017_v54, %v10255_v63  ;;  %v12563_v47 = vpop.f32.mrb[38].mxu0 }
0x1a59   :  { %v10258_v25 = vpop.f32.mrb[39].mxu0  ;;  %v10267_v34 = vadd.f32 %v12563_v47, %v17017_v54  ;;  %v17051_v49 = vadd.f32 %v10264_v30, %v16845_v14 }
0x1a5a   :  { %v17046_v50 = vadd.f32 %v10256_v31, %v16833_v55  ;;  %v10259_v43 = vadd.f32 %v17017_v54, %v10258_v25  ;;  %v12708_v25 = vld [vmem:[%s17385_s16 + $0x8] sm:$0xff]  }
0x1a5b   :  { %v17059_v15 = vadd.f32 %v10267_v34, %v16848_v62  ;;  %v10340_v44 = vsel %vm84_vm0, %v17051_v49, 0.0 }
0x1a5c   :  { %v17054_v58 = vadd.f32 %v10259_v43, %v16836_v6  ;;  %v10334_v51 = vsel %vm84_vm0, %v17046_v50, 0.0 }
0x1a5d   :  { %10335 = vadd.xlane.f32.xlu0 %v10334_v51  ;;  %v10343_v14 = vsel %vm84_vm0, %v17059_v15, 0.0 }
0x1a5e   :  { %v10337_v55 = vsel %vm84_vm0, %v17054_v58, 0.0 }
0x1a5f   :  { %10338 = vadd.xlane.f32.xlu1 %v10337_v55 }
0x1a61   :  { %10341 = vadd.xlane.f32.xlu0 %v10340_v44 }
0x1a63   :  { %10344 = vadd.xlane.f32.xlu1 %v10343_v14 }
0x1a66   :  { %v12566_v6 = vpop.f32.mrb[40].mxu0 }
0x1a67   :  { %v10271_v18 = vpop.f32.mrb[41].mxu0  ;;  %v10280_v37 = vadd.f32 %v12566_v6, %v17017_v54 }
0x1a68   :  { %v10272_v21 = vadd.f32 %v17017_v54, %v10271_v18  ;;  %v12567_v62 = vpop.f32.mrb[42].mxu0 }
0x1a69   :  { %v10274_v17 = vpop.f32.mrb[43].mxu0  ;;  %v10283_v8 = vadd.f32 %v12567_v62, %v17017_v54  ;;  %v17075_v7 = vadd.f32 %v10280_v37, %v16880_v48 }
0x1a6a   :  { %v17070_v27 = vadd.f32 %v10272_v21, %v16871_v35  ;;  %v10275_v52 = vadd.f32 %v17017_v54, %v10274_v17 }
0x1a6b   :  { %v17083_v20 = vadd.f32 %v10283_v8, %v16883_v16  ;;  %v10352_v36 = vsel %vm84_vm0, %v17075_v7, 0.0 }
0x1a6c   :  { %v17078_v61 = vadd.f32 %v10275_v52, %v16874_v60  ;;  %v10346_v5 = vsel %vm84_vm0, %v17070_v27, 0.0 }
0x1a6d   :  { %10347 = vadd.xlane.f32.xlu0 %v10346_v5  ;;  %v10355_v48 = vsel %vm84_vm0, %v17083_v20, 0.0 }
0x1a6e   :  { %v10349_v35 = vsel %vm84_vm0, %v17078_v61, 0.0 }
0x1a6f   :  { %10350 = vadd.xlane.f32.xlu1 %v10349_v35 }
0x1a71   :  { %10353 = vadd.xlane.f32.xlu0 %v10352_v36 }
0x1a73   :  { %10356 = vadd.xlane.f32.xlu1 %v10355_v48 }
0x1a76   :  { %v12570_v60 = vpop.f32.mrb[44].mxu0 }
0x1a77   :  { %v10287_v19 = vpop.f32.mrb[45].mxu0  ;;  %v10296_v32 = vadd.f32 %v12570_v60, %v17017_v54 }
0x1a78   :  { %v10288_v45 = vadd.f32 %v17017_v54, %v10287_v19  ;;  %v12571_v16 = vpop.f32.mrb[46].mxu0 }
0x1a79   :  { %v10290_v41 = vpop.f32.mrb[47].mxu0  ;;  %v10299_v38 = vadd.f32 %v12571_v16, %v17017_v54  ;;  %v17099_v46 = vadd.f32 %v10296_v32, %v16906_v57 }
0x1a7a   :  { %v17094_v26 = vadd.f32 %v10288_v45, %v16897_v10  ;;  %v10291_v53 = vadd.f32 %v17017_v54, %v10290_v41 }
0x1a7b   :  { %v17107_v13 = vadd.f32 %v10299_v38, %v16909_v1 }
0x1a7c   :  { %v17102_v33 = vadd.f32 %v10291_v53, %v16900_v59  ;;  %v10358_v9 = vsel %vm84_vm0, %v17094_v26, 0.0  ;;  %v10364_v59 = vsel %vm84_vm0, %v17099_v46, 0.0 }
0x1a7d   :  { %v10324_v56 = vpop.xlane.xlu0 %10323  ;;  %10359 = vadd.xlane.f32.xlu0 %v10358_v9  ;;  %v10367_v39 = vsel %vm84_vm0, %v17107_v13, 0.0 }
0x1a7e   :  { %v10370_v10 = vmul.f32 0.03125, %v10324_v56  ;;  %v10361_v23 = vsel %vm84_vm0, %v17102_v33, 0.0 }
0x1a7f   :  { %10362 = vadd.xlane.f32.xlu1 %v10361_v23  ;;  %v10327_v54 = vpop.xlane.xlu1 %10326 }
0x1a80   :  { %v17112_v57 = vsub.f32 %v17022_v3, %v10370_v10  ;;  %v10371_v28 = vmul.f32 0.03125, %v10327_v54 }
0x1a81   :  { %v10330_v4 = vpop.xlane.xlu0 %10329  ;;  %10365 = vadd.xlane.f32.xlu0 %v10364_v59 }
0x1a82   :  { %v17117_v24 = vsub.f32 %v17030_v2, %v10371_v28  ;;  %v10372_v1 = vmul.f32 0.03125, %v10330_v4  ;;  %v10402_v22 = vmul.f32 %v17112_v57, %v17112_v57 }
0x1a83   :  { %10368 = vadd.xlane.f32.xlu1 %v10367_v39  ;;  %v10333_v42 = vpop.xlane.xlu1 %10332 }
0x1a84   :  { %v17124_v3 = vsub.f32 %v17027_v11, %v10372_v1  ;;  %v10373_v40 = vmul.f32 0.03125, %v10333_v42  ;;  %v10418_v29 = vsel %vm84_vm0, %v10402_v22, 0.0  ;;  %v10403_v12 = vmul.f32 %v17117_v24, %v17117_v24 }
0x1a85   :  { %10419 = vadd.xlane.f32.xlu0 %v10418_v29 }
0x1a86   :  { %v17130_v2 = vsub.f32 %v17035_v0, %v10373_v40  ;;  %v10421_v63 = vsel %vm84_vm0, %v10403_v12, 0.0  ;;  %v10404_v30 = vmul.f32 %v17124_v3, %v17124_v3  ;;  %v12707_v0 = vld [vmem:[%s17385_s16] sm:$0xff]  }
0x1a87   :  { %10422 = vadd.xlane.f32.xlu1 %v10421_v63  ;;  %12572 = vmatprep.subr.bf16.mxu1 %v12707_v0 }
0x1a88   :  { %v10424_v31 = vsel %vm84_vm0, %v10404_v30, 0.0  ;;  %v10405_v11 = vmul.f32 %v17130_v2, %v17130_v2  ;;  %12573 = vmatpush3.bf16.msra.mxu1 %v12707_v0 }
0x1a89   :  { %10425 = vadd.xlane.f32.xlu0 %v10424_v31  ;;  %12574 = vmatprep.subr.bf16.mxu1 %v12708_v25 }
0x1a8a   :  { %v10427_v47 = vsel %vm84_vm0, %v10405_v11, 0.0 }
0x1a8b   :  { %10428 = vadd.xlane.f32.xlu1 %v10427_v47 }
0x1a8c   :  { %12575 = vmatpush3.bf16.msra.mxu1 %v12708_v25 }
0x1aea   :  { %v10336_v34 = vpop.xlane.xlu0 %10335 }
0x1aeb   :  { %v10374_v43 = vmul.f32 0.03125, %v10336_v34 }
0x1aec   :  { %v10339_v51 = vpop.xlane.xlu1 %10338 }
0x1aed   :  { %v17146_v55 = vsub.f32 %v17046_v50, %v10374_v43  ;;  %v10375_v44 = vmul.f32 0.03125, %v10339_v51 }
0x1aee   :  { %v10342_v14 = vpop.xlane.xlu0 %10341 }
0x1aef   :  { %v17149_v6 = vsub.f32 %v17054_v58, %v10375_v44  ;;  %v10376_v18 = vmul.f32 0.03125, %v10342_v14  ;;  %v10406_v37 = vmul.f32 %v17146_v55, %v17146_v55 }
0x1af0   :  { %v10345_v21 = vpop.xlane.xlu1 %10344 }
0x1af1   :  { %v17154_v62 = vsub.f32 %v17051_v49, %v10376_v18  ;;  %v10377_v17 = vmul.f32 0.03125, %v10345_v21  ;;  %v10430_v8 = vsel %vm84_vm0, %v10406_v37, 0.0  ;;  %v10407_v50 = vmul.f32 %v17149_v6, %v17149_v6 }
0x1af2   :  { %10431 = vadd.xlane.f32.xlu0 %v10430_v8 }
0x1af3   :  { %v17160_v52 = vsub.f32 %v17059_v15, %v10377_v17  ;;  %v10433_v58 = vsel %vm84_vm0, %v10407_v50, 0.0  ;;  %v10408_v5 = vmul.f32 %v17154_v62, %v17154_v62 }
0x1af4   :  { %10434 = vadd.xlane.f32.xlu1 %v10433_v58 }
0x1af5   :  { %v10436_v35 = vsel %vm84_vm0, %v10408_v5, 0.0  ;;  %v10409_v49 = vmul.f32 %v17160_v52, %v17160_v52 }
0x1af6   :  { %10437 = vadd.xlane.f32.xlu0 %v10436_v35  ;;  %v17220_v35 = vld [vmem:[%s17383_s14 + $0x1] ss:$0 sm:$0xff] }
0x1af7   :  { %v10439_v36 = vsel %vm84_vm0, %v10409_v49, 0.0 }
0x1af8   :  { %10440 = vadd.xlane.f32.xlu1 %v10439_v36 }
0x1afa   :  { %v10348_v48 = vpop.xlane.xlu0 %10347 }
0x1afb   :  { %v10378_v60 = vmul.f32 0.03125, %v10348_v48 }
0x1afc   :  { %v10351_v19 = vpop.xlane.xlu1 %10350 }
0x1afd   :  { %v17170_v15 = vsub.f32 %v17070_v27, %v10378_v60  ;;  %v10379_v32 = vmul.f32 0.03125, %v10351_v19 }
0x1afe   :  { %v10354_v45 = vpop.xlane.xlu0 %10353 }
0x1aff   :  { %v17173_v16 = vsub.f32 %v17078_v61, %v10379_v32  ;;  %v10380_v41 = vmul.f32 0.03125, %v10354_v45  ;;  %v10410_v38 = vmul.f32 %v17170_v15, %v17170_v15  ;;  %v17228_v32 = vld [vmem:[%s17384_s15 + $0x1] ss:$0 sm:$0xff] }
0x1b00   :  { %v10357_v53 = vpop.xlane.xlu1 %10356 }
0x1b01   :  { %v17178_v9 = vsub.f32 %v17075_v7, %v10380_v41  ;;  %v10381_v56 = vmul.f32 0.03125, %v10357_v53  ;;  %v10442_v10 = vsel %vm84_vm0, %v10410_v38, 0.0  ;;  %v10411_v27 = vmul.f32 %v17173_v16, %v17173_v16 }
0x1b02   :  { %10443 = vadd.xlane.f32.xlu0 %v10442_v10 }
0x1b03   :  { %v17184_v23 = vsub.f32 %v17083_v20, %v10381_v56  ;;  %v10445_v61 = vsel %vm84_vm0, %v10411_v27, 0.0  ;;  %v10412_v54 = vmul.f32 %v17178_v9, %v17178_v9 }
0x1b04   :  { %10446 = vadd.xlane.f32.xlu1 %v10445_v61 }
0x1b05   :  { %v10448_v28 = vsel %vm84_vm0, %v10412_v54, 0.0  ;;  %v10413_v7 = vmul.f32 %v17184_v23, %v17184_v23 }
0x1b06   :  { %10449 = vadd.xlane.f32.xlu0 %v10448_v28 }
0x1b07   :  { %v10451_v59 = vsel %vm84_vm0, %v10413_v7, 0.0 }
0x1b08   :  { %10452 = vadd.xlane.f32.xlu1 %v10451_v59 }
0x1b0a   :  { %v10360_v4 = vpop.xlane.xlu0 %10359 }
0x1b0b   :  { %v10382_v1 = vmul.f32 0.03125, %v10360_v4 }
0x1b0c   :  { %v10363_v39 = vpop.xlane.xlu1 %10362 }
0x1b0d   :  { %v17194_v20 = vsub.f32 %v17094_v26, %v10382_v1  ;;  %v10383_v22 = vmul.f32 0.03125, %v10363_v39 }
0x1b0e   :  { %v10366_v42 = vpop.xlane.xlu0 %10365 }
0x1b0f   :  { %v17197_v40 = vsub.f32 %v17102_v33, %v10383_v22  ;;  %v10384_v29 = vmul.f32 0.03125, %v10366_v42  ;;  %v10414_v12 = vmul.f32 %v17194_v20, %v17194_v20 }
0x1b10   :  { %v10369_v63 = vpop.xlane.xlu1 %10368 }
0x1b11   :  { %v17202_v30 = vsub.f32 %v17099_v46, %v10384_v29  ;;  %v10385_v31 = vmul.f32 0.03125, %v10369_v63  ;;  %v10454_v11 = vsel %vm84_vm0, %v10414_v12, 0.0  ;;  %v10415_v26 = vmul.f32 %v17197_v40, %v17197_v40 }
0x1b12   :  { %10455 = vadd.xlane.f32.xlu0 %v10454_v11  ;;  %v10420_v47 = vpop.xlane.xlu0 %10419 }
0x1b13   :  { %v17208_v0 = vsub.f32 %v17107_v13, %v10385_v31  ;;  %v10466_v33 = vmul.f32 0.03125, %v10420_v47  ;;  %v10457_v25 = vsel %vm84_vm0, %v10415_v26, 0.0  ;;  %v10416_v34 = vmul.f32 %v17202_v30, %v17202_v30  ;;  %v12709_v47 = vld [vmem:[%s17386_s18] sm:$0xff]  }
0x1b14   :  { %10458 = vadd.xlane.f32.xlu1 %v10457_v25  ;;  %v10423_v46 = vpop.xlane.xlu1 %10422  ;;  %12592 = vmatprep.subr.bf16.mxu0 %v12709_v47 }
0x1b15   :  { %v10482_v43 = vadd.f32 1e-12, %v10466_v33  ;;  %v10467_v51 = vmul.f32 0.03125, %v10423_v46  ;;  %v10460_v44 = vsel %vm84_vm0, %v10416_v34, 0.0  ;;  %v10417_v14 = vmul.f32 %v17208_v0, %v17208_v0  ;;  %12593 = vmatpush3.bf16.msra.mxu0 %v12709_v47 }
0x1b16   :  { %10461 = vadd.xlane.f32.xlu0 %v10460_v44  ;;  %v10426_v18 = vpop.xlane.xlu0 %10425 }
0x1b17   :  { %13159 = vrsqrt.f32 %v10482_v43  ;;  %v10483_v13 = vadd.f32 1e-12, %v10467_v51  ;;  %v10468_v37 = vmul.f32 0.03125, %v10426_v18  ;;  %v10463_v21 = vsel %vm84_vm0, %v10417_v14, 0.0 }
0x1b18   :  { %10464 = vadd.xlane.f32.xlu1 %v10463_v21  ;;  %v10429_v17 = vpop.xlane.xlu1 %10428 }
0x1b19   :  { %13161 = vrsqrt.f32 %v10483_v13  ;;  %v10484_v8 = vadd.f32 1e-12, %v10468_v37  ;;  %v10469_v50 = vmul.f32 0.03125, %v10429_v17  ;;  %v12710_v37 = vld [vmem:[%s17386_s18 + $0x8] sm:$0xff]  }
0x1b1a   :  { %12594 = vmatprep.subr.bf16.mxu0 %v12710_v37 }
0x1b1b   :  { %13163 = vrsqrt.f32 %v10484_v8  ;;  %v10485_v58 = vadd.f32 1e-12, %v10469_v50  ;;  %12595 = vmatpush3.bf16.msra.mxu0 %v12710_v37 }
0x1b1d   :  { %13165 = vrsqrt.f32 %v10485_v58 }
0x1b21   :  { %v13160_v5 = vpop.eup %13159 }
0x1b22   :  { %v10514_v49 = vmul.f32 %v13160_v5, %v17112_v57 }
0x1b23   :  { %v13162_v36 = vpop.eup %13161 }
0x1b24   :  { %v10515_v48 = vmul.f32 %v13162_v36, %v17117_v24  ;;  %v10536_v60 = vmul.f32 %v17220_v35, %v10514_v49 }
0x1b25   :  { %v13164_v19 = vpop.eup %13163 }
0x1b26   :  { %v10516_v45 = vmul.f32 %v13164_v19, %v17124_v3  ;;  %v10537_v41 = vmul.f32 %v17220_v35, %v10515_v48  ;;  %v10558_v56 = vadd.f32 %v17228_v32, %v10536_v60 }
0x1b27   :  { %v13166_v38 = vpop.eup %13165 }
0x1b28   :  { %v10538_v53 = vmul.f32 %v17220_v35, %v10516_v45  ;;  %v10517_v57 = vmul.f32 %v13166_v38, %v17130_v2  ;;  %v10559_v24 = vadd.f32 %v17228_v32, %v10537_v41 }
0x1b2a   :  { %v10539_v10 = vmul.f32 %v17220_v35, %v10517_v57  ;;  %v10574_v27 = vpack.c.bf16 %v10559_v24, %v10558_v56  ;;  %v10560_v61 = vadd.f32 %v17228_v32, %v10538_v53 }
0x1b2c   :  { %v10561_v54 = vadd.f32 %v17228_v32, %v10539_v10  ;;  %12576 = vmatprep.mubr.msk.bf16.mxu1 %vm84_vm0, %v10574_v27 }
0x1b2e   :  { %v10575_v3 = vpack.c.bf16 %v10561_v54, %v10560_v61 }
0x1b30   :  { %12577 = vmatmul.mubr.msk.bf16.vlgmr.msra.gmra.mrb[80].mxu1 %vm84_vm0, %v10575_v3 }
0x1b7f   :  { %v10432_v28 = vpop.xlane.xlu0 %10431 }
0x1b80   :  { %v10470_v7 = vmul.f32 0.03125, %v10432_v28 }
0x1b81   :  { %v10435_v59 = vpop.xlane.xlu1 %10434 }
0x1b82   :  { %v10486_v2 = vadd.f32 1e-12, %v10470_v7  ;;  %v10471_v4 = vmul.f32 0.03125, %v10435_v59 }
0x1b83   :  { %v10438_v1 = vpop.xlane.xlu0 %10437 }
0x1b84   :  { %13167 = vrsqrt.f32 %v10486_v2  ;;  %v10487_v39 = vadd.f32 1e-12, %v10471_v4  ;;  %v10472_v22 = vmul.f32 0.03125, %v10438_v1 }
0x1b85   :  { %v10441_v42 = vpop.xlane.xlu1 %10440 }
0x1b86   :  { %13169 = vrsqrt.f32 %v10487_v39  ;;  %v10488_v29 = vadd.f32 1e-12, %v10472_v22  ;;  %v10473_v12 = vmul.f32 0.03125, %v10441_v42 }
0x1b88   :  { %13171 = vrsqrt.f32 %v10488_v29  ;;  %v10489_v63 = vadd.f32 1e-12, %v10473_v12 }
0x1b8a   :  { %13173 = vrsqrt.f32 %v10489_v63 }
0x1b8e   :  { %v13168_v31 = vpop.eup %13167 }
0x1b8f   :  { %v10518_v11 = vmul.f32 %v13168_v31, %v17146_v55  ;;  %v10444_v26 = vpop.xlane.xlu0 %10443 }
0x1b90   :  { %v13170_v33 = vpop.eup %13169  ;;  %v10474_v25 = vmul.f32 0.03125, %v10444_v26 }
0x1b91   :  { %v10519_v34 = vmul.f32 %v13170_v33, %v17149_v6  ;;  %v10447_v46 = vpop.xlane.xlu1 %10446  ;;  %v10540_v43 = vmul.f32 %v17220_v35, %v10518_v11 }
0x1b92   :  { %v13172_v51 = vpop.eup %13171  ;;  %v10490_v44 = vadd.f32 1e-12, %v10474_v25  ;;  %v10475_v14 = vmul.f32 0.03125, %v10447_v46 }
0x1b93   :  { %v10520_v18 = vmul.f32 %v13172_v51, %v17154_v62  ;;  %v10450_v55 = vpop.xlane.xlu0 %10449  ;;  %v10541_v13 = vmul.f32 %v17220_v35, %v10519_v34  ;;  %v10562_v5 = vadd.f32 %v17228_v32, %v10540_v43 }
0x1b94   :  { %v13174_v21 = vpop.eup %13173  ;;  %13175 = vrsqrt.f32 %v10490_v44  ;;  %v10491_v6 = vadd.f32 1e-12, %v10475_v14  ;;  %v10476_v17 = vmul.f32 0.03125, %v10450_v55 }
0x1b95   :  { %v10542_v8 = vmul.f32 %v17220_v35, %v10520_v18  ;;  %v10521_v50 = vmul.f32 %v13174_v21, %v17160_v52  ;;  %v10453_v58 = vpop.xlane.xlu1 %10452  ;;  %v10563_v62 = vadd.f32 %v17228_v32, %v10541_v13 }
0x1b96   :  { %13177 = vrsqrt.f32 %v10491_v6  ;;  %v10492_v49 = vadd.f32 1e-12, %v10476_v17  ;;  %v10477_v36 = vmul.f32 0.03125, %v10453_v58 }
0x1b97   :  { %v10543_v48 = vmul.f32 %v17220_v35, %v10521_v50  ;;  %v10576_v60 = vpack.c.bf16 %v10563_v62, %v10562_v5  ;;  %v10564_v45 = vadd.f32 %v17228_v32, %v10542_v8 }
0x1b98   :  { %13179 = vrsqrt.f32 %v10492_v49  ;;  %v10493_v19 = vadd.f32 1e-12, %v10477_v36 }
0x1b99   :  { %v10565_v41 = vadd.f32 %v17228_v32, %v10543_v48  ;;  %12580 = vmatprep.mubr.msk.bf16.mxu1 %vm84_vm0, %v10576_v60 }
0x1b9a   :  { %13181 = vrsqrt.f32 %v10493_v19 }
0x1b9b   :  { %v10577_v52 = vpack.c.bf16 %v10565_v41, %v10564_v45 }
0x1b9d   :  { %12581 = vmatmul.mubr.msk.bf16.gmra.mrb[84].mxu1 %vm84_vm0, %v10577_v52 }
0x1b9e   :  { %v13176_v38 = vpop.eup %13175 }
0x1b9f   :  { %v10522_v53 = vmul.f32 %v13176_v38, %v17170_v15  ;;  %v10456_v57 = vpop.xlane.xlu0 %10455 }
0x1ba0   :  { %v13178_v56 = vpop.eup %13177  ;;  %v10478_v24 = vmul.f32 0.03125, %v10456_v57 }
0x1ba1   :  { %v10523_v10 = vmul.f32 %v13178_v56, %v17173_v16  ;;  %v10459_v27 = vpop.xlane.xlu1 %10458  ;;  %v10544_v61 = vmul.f32 %v17220_v35, %v10522_v53 }
0x1ba2   :  { %v13180_v54 = vpop.eup %13179  ;;  %v10494_v3 = vadd.f32 1e-12, %v10478_v24  ;;  %v10479_v28 = vmul.f32 0.03125, %v10459_v27 }
0x1ba3   :  { %v10524_v7 = vmul.f32 %v13180_v54, %v17178_v9  ;;  %v10462_v59 = vpop.xlane.xlu0 %10461  ;;  %v10545_v2 = vmul.f32 %v17220_v35, %v10523_v10  ;;  %v10566_v42 = vadd.f32 %v17228_v32, %v10544_v61 }
0x1ba4   :  { %v13182_v4 = vpop.eup %13181  ;;  %13183 = vrsqrt.f32 %v10494_v3  ;;  %v10495_v1 = vadd.f32 1e-12, %v10479_v28  ;;  %v10480_v15 = vmul.f32 0.03125, %v10462_v59 }
0x1ba5   :  { %v10546_v39 = vmul.f32 %v17220_v35, %v10524_v7  ;;  %v10525_v22 = vmul.f32 %v13182_v4, %v17184_v23  ;;  %v10465_v16 = vpop.xlane.xlu1 %10464  ;;  %v10567_v29 = vadd.f32 %v17228_v32, %v10545_v2 }
0x1ba6   :  { %13185 = vrsqrt.f32 %v10495_v1  ;;  %v10496_v12 = vadd.f32 1e-12, %v10480_v15  ;;  %v10481_v63 = vmul.f32 0.03125, %v10465_v16 }
0x1ba7   :  { %v10547_v9 = vmul.f32 %v17220_v35, %v10525_v22  ;;  %v10578_v31 = vpack.c.bf16 %v10567_v29, %v10566_v42  ;;  %v10568_v26 = vadd.f32 %v17228_v32, %v10546_v39 }
0x1ba8   :  { %13187 = vrsqrt.f32 %v10496_v12  ;;  %v10497_v11 = vadd.f32 1e-12, %v10481_v63 }
0x1ba9   :  { %v10569_v47 = vadd.f32 %v17228_v32, %v10547_v9  ;;  %12584 = vmatprep.mubr.msk.bf16.mxu1 %vm84_vm0, %v10578_v31 }
0x1baa   :  { %13189 = vrsqrt.f32 %v10497_v11 }
0x1bab   :  { %v10579_v23 = vpack.c.bf16 %v10569_v47, %v10568_v26 }
0x1bad   :  { %12585 = vmatmul.mubr.msk.bf16.gmra.mrb[88].mxu1 %vm84_vm0, %v10579_v23 }
0x1bae   :  { %v13184_v33 = vpop.eup %13183 }
0x1baf   :  { %v10526_v25 = vmul.f32 %v13184_v33, %v17194_v20 }
0x1bb0   :  { %v13186_v34 = vpop.eup %13185 }
0x1bb1   :  { %v10527_v46 = vmul.f32 %v13186_v34, %v17197_v40  ;;  %v10548_v43 = vmul.f32 %v17220_v35, %v10526_v25 }
0x1bb2   :  { %v13188_v51 = vpop.eup %13187 }
0x1bb3   :  { %v10528_v44 = vmul.f32 %v13188_v51, %v17202_v30  ;;  %v10549_v14 = vmul.f32 %v17220_v35, %v10527_v46  ;;  %v10570_v37 = vadd.f32 %v17228_v32, %v10548_v43 }
0x1bb4   :  { %v13190_v18 = vpop.eup %13189 }
0x1bb5   :  { %v10550_v55 = vmul.f32 %v17220_v35, %v10528_v44  ;;  %v10529_v13 = vmul.f32 %v13190_v18, %v17208_v0  ;;  %v10571_v21 = vadd.f32 %v17228_v32, %v10549_v14  ;;  %v17292_v0 = vld [vmem:[%s17387_s17] ss:$0 sm:$0xff] }
0x1bb7   :  { %v10551_v20 = vmul.f32 %v17220_v35, %v10529_v13  ;;  %v10580_v6 = vpack.c.bf16 %v10571_v21, %v10570_v37  ;;  %v10572_v40 = vadd.f32 %v17228_v32, %v10550_v55  ;;  %v11217_v37 = vld [vmem:[%s17388_s19] ss:$0 sm:$0xff] }
0x1bb9   :  { %v10573_v17 = vadd.f32 %v17228_v32, %v10551_v20  ;;  %12588 = vmatprep.mubr.msk.bf16.mxu1 %vm84_vm0, %v10580_v6 }
0x1bbb   :  { %v10581_v30 = vpack.c.bf16 %v10573_v17, %v10572_v40 }
0x1bbd   :  { %12589 = vmatmul.mubr.msk.bf16.gmra.mrb[92].mxu1 %vm84_vm0, %v10581_v30 }
0x1c03   :  { %v12578_v8 = vpop.f32.mrb[80].mxu1 }
0x1c04   :  { %v10672_v50 = vadd.f32 %v12578_v8, %v17292_v0  ;;  %v10663_v58 = vpop.f32.mrb[81].mxu1 }
0x1c05   :  { %v10664_v35 = vadd.f32 %v17292_v0, %v10663_v58  ;;  %v12579_v5 = vpop.f32.mrb[82].mxu1 }
0x1c06   :  { %13191 = vtanh.f32 %v10672_v50  ;;  %v10675_v32 = vadd.f32 %v12579_v5, %v17292_v0  ;;  %v10666_v62 = vpop.f32.mrb[83].mxu1 }
0x1c07   :  { %13193 = vtanh.f32 %v10664_v35  ;;  %v10667_v49 = vadd.f32 %v17292_v0, %v10666_v62 }
0x1c08   :  { %13195 = vtanh.f32 %v10675_v32 }
0x1c09   :  { %13197 = vtanh.f32 %v10667_v49 }
0x1c10   :  { %v13192_v36 = vpop.eup %13191 }
0x1c11   :  { %v13194_v48 = vpop.eup %13193 }
0x1c12   :  { %v13196_v60 = vpop.eup %13195 }
0x1c13   :  { %v13198_v19 = vpop.eup %13197  ;;  %v10743_v45 = vpack.c.bf16 %v13196_v60, %v13192_v36 }
0x1c14   :  { %v10742_v41 = vpack.c.bf16 %v13198_v19, %v13194_v48 }
0x1c16   :  { %12596 = vmatprep.mubr.msk.bf16.mxu0 %vm84_vm0, %v10742_v41 }
0x1c17   :  { %12597 = vmatmul.mubr.msk.bf16.vlgmr.msra.gmra.mrb[48].mxu0 %vm84_vm0, %v10743_v45 }
0x1c70   :  { %v12582_v52 = vpop.f32.mrb[84].mxu1 }
0x1c71   :  { %v10688_v38 = vadd.f32 %v12582_v52, %v17292_v0  ;;  %v10679_v53 = vpop.f32.mrb[85].mxu1 }
0x1c72   :  { %v10680_v57 = vadd.f32 %v17292_v0, %v10679_v53  ;;  %v12583_v56 = vpop.f32.mrb[86].mxu1 }
0x1c73   :  { %13199 = vtanh.f32 %v10688_v38  ;;  %v10691_v24 = vadd.f32 %v12583_v56, %v17292_v0  ;;  %v10682_v10 = vpop.f32.mrb[87].mxu1 }
0x1c74   :  { %13201 = vtanh.f32 %v10680_v57  ;;  %v10683_v27 = vadd.f32 %v17292_v0, %v10682_v10 }
0x1c75   :  { %13203 = vtanh.f32 %v10691_v24 }
0x1c76   :  { %13205 = vtanh.f32 %v10683_v27 }
0x1c7d   :  { %v13200_v61 = vpop.eup %13199 }
0x1c7e   :  { %v13202_v54 = vpop.eup %13201 }
0x1c7f   :  { %v13204_v3 = vpop.eup %13203 }
0x1c80   :  { %v13206_v28 = vpop.eup %13205  ;;  %v10745_v7 = vpack.c.bf16 %v13204_v3, %v13200_v61  ;;  %v12586_v59 = vpop.f32.mrb[88].mxu1 }
0x1c81   :  { %v10704_v2 = vadd.f32 %v12586_v59, %v17292_v0  ;;  %v10695_v4 = vpop.f32.mrb[89].mxu1  ;;  %v10744_v1 = vpack.c.bf16 %v13206_v28, %v13202_v54 }
0x1c82   :  { %v10696_v15 = vadd.f32 %v17292_v0, %v10695_v4  ;;  %v12587_v39 = vpop.f32.mrb[90].mxu1 }
0x1c83   :  { %13207 = vtanh.f32 %v10704_v2  ;;  %v10707_v22 = vadd.f32 %v12587_v39, %v17292_v0  ;;  %v10698_v16 = vpop.f32.mrb[91].mxu1  ;;  %12600 = vmatprep.mubr.msk.bf16.mxu0 %vm84_vm0, %v10744_v1 }
0x1c84   :  { %13209 = vtanh.f32 %v10696_v15  ;;  %v10699_v42 = vadd.f32 %v17292_v0, %v10698_v16  ;;  %12601 = vmatmul.mubr.msk.bf16.gmra.mrb[52].mxu0 %vm84_vm0, %v10745_v7 }
0x1c85   :  { %13211 = vtanh.f32 %v10707_v22 }
0x1c86   :  { %13213 = vtanh.f32 %v10699_v42 }
0x1c8d   :  { %v13208_v29 = vpop.eup %13207 }
0x1c8e   :  { %v13210_v12 = vpop.eup %13209 }
0x1c8f   :  { %v13212_v63 = vpop.eup %13211 }
0x1c90   :  { %v13214_v9 = vpop.eup %13213  ;;  %v10747_v31 = vpack.c.bf16 %v13212_v63, %v13208_v29  ;;  %v12590_v11 = vpop.f32.mrb[92].mxu1 }
0x1c91   :  { %v10720_v26 = vadd.f32 %v12590_v11, %v17292_v0  ;;  %v10711_v47 = vpop.f32.mrb[93].mxu1  ;;  %v10746_v23 = vpack.c.bf16 %v13214_v9, %v13210_v12 }
0x1c92   :  { %v10712_v33 = vadd.f32 %v17292_v0, %v10711_v47  ;;  %v12591_v25 = vpop.f32.mrb[94].mxu1 }
0x1c93   :  { %13215 = vtanh.f32 %v10720_v26  ;;  %v10723_v34 = vadd.f32 %v12591_v25, %v17292_v0  ;;  %v10714_v46 = vpop.f32.mrb[95].mxu1  ;;  %12604 = vmatprep.mubr.msk.bf16.mxu0 %vm84_vm0, %v10746_v23 }
0x1c94   :  { %13217 = vtanh.f32 %v10712_v33  ;;  %v10715_v43 = vadd.f32 %v17292_v0, %v10714_v46  ;;  %12605 = vmatmul.mubr.msk.bf16.gmra.mrb[56].mxu0 %vm84_vm0, %v10747_v31 }
0x1c95   :  { %13219 = vtanh.f32 %v10723_v34 }
0x1c96   :  { %13221 = vtanh.f32 %v10715_v43 }
0x1c9d   :  { %v13216_v51 = vpop.eup %13215 }
0x1c9e   :  { %v13218_v44 = vpop.eup %13217 }
0x1c9f   :  { %v13220_v14 = vpop.eup %13219 }
0x1ca0   :  { %v13222_v18 = vpop.eup %13221  ;;  %v10749_v55 = vpack.c.bf16 %v13220_v14, %v13216_v51 }
0x1ca1   :  { %v10748_v13 = vpack.c.bf16 %v13222_v18, %v13218_v44 }
0x1ca3   :  { %12608 = vmatprep.mubr.msk.bf16.mxu0 %vm84_vm0, %v10748_v13 }
0x1ca4   :  { %12609 = vmatmul.mubr.msk.bf16.gmra.mrb[60].mxu0 %vm84_vm0, %v10749_v55 }
0x1cea   :  { %v12598_v21 = vpop.f32.mrb[48].mxu0 }
0x1ceb   :  { %v10840_v20 = vadd.f32 %v12598_v21, %v11217_v37  ;;  %v10831_v6 = vpop.f32.mrb[49].mxu0 }
0x1cec   :  { %v10832_v40 = vadd.f32 %v11217_v37, %v10831_v6  ;;  %v12599_v17 = vpop.f32.mrb[50].mxu0 }
0x1ced   :  { %10896 = vst [vmem:[%s17389_s20 + $0x10] sm:$0xff] %v10840_v20  ;;  %v10843_v30 = vadd.f32 %v12599_v17, %v11217_v37  ;;  %v10834_v0 = vpop.f32.mrb[51].mxu0 }
0x1cee   :  { %10894 = vst [vmem:[%s17389_s20] sm:$0xff] %v10832_v40  ;;  %v10835_v8 = vadd.f32 %v11217_v37, %v10834_v0 }
0x1cef   :  { %10897 = vst [vmem:[%s17389_s20 + $0x18] sm:$0xff] %v10843_v30 }
0x1cf0   :  { %10895 = vst [vmem:[%s17389_s20 + $0x8] sm:$0xff] %v10835_v8 }
0x1d57   :  { %v12602_v50 = vpop.f32.mrb[52].mxu0 }
0x1d58   :  { %v10856_v58 = vadd.f32 %v12602_v50, %v11217_v37  ;;  %v10847_v35 = vpop.f32.mrb[53].mxu0 }
0x1d59   :  { %v10848_v5 = vadd.f32 %v11217_v37, %v10847_v35  ;;  %v12603_v32 = vpop.f32.mrb[54].mxu0 }
0x1d5a   :  { %10900 = vst [vmem:[%s17389_s20 + $0x30] sm:$0xff] %v10856_v58  ;;  %v10859_v62 = vadd.f32 %v12603_v32, %v11217_v37  ;;  %v10850_v49 = vpop.f32.mrb[55].mxu0 }
0x1d5b   :  { %10898 = vst [vmem:[%s17389_s20 + $0x20] sm:$0xff] %v10848_v5  ;;  %v10851_v36 = vadd.f32 %v11217_v37, %v10850_v49 }
0x1d5c   :  { %10901 = vst [vmem:[%s17389_s20 + $0x38] sm:$0xff] %v10859_v62 }
0x1d5d   :  { %10899 = vst [vmem:[%s17389_s20 + $0x28] sm:$0xff] %v10851_v36 }
0x1d67   :  { %v12606_v48 = vpop.f32.mrb[56].mxu0 }
0x1d68   :  { %v10872_v60 = vadd.f32 %v12606_v48, %v11217_v37  ;;  %v10863_v19 = vpop.f32.mrb[57].mxu0 }
0x1d69   :  { %v10864_v45 = vadd.f32 %v11217_v37, %v10863_v19  ;;  %v12607_v41 = vpop.f32.mrb[58].mxu0 }
0x1d6a   :  { %10904 = vst [vmem:[%s17389_s20 + $0x50] sm:$0xff] %v10872_v60  ;;  %v10875_v52 = vadd.f32 %v12607_v41, %v11217_v37  ;;  %v10866_v38 = vpop.f32.mrb[59].mxu0 }
0x1d6b   :  { %10902 = vst [vmem:[%s17389_s20 + $0x40] sm:$0xff] %v10864_v45  ;;  %v10867_v53 = vadd.f32 %v11217_v37, %v10866_v38 }
0x1d6c   :  { %10905 = vst [vmem:[%s17389_s20 + $0x58] sm:$0xff] %v10875_v52 }
0x1d6d   :  { %10903 = vst [vmem:[%s17389_s20 + $0x48] sm:$0xff] %v10867_v53 }
0x1d77   :  { %v12610_v57 = vpop.f32.mrb[60].mxu0 }
0x1d78   :  { %v10888_v56 = vadd.f32 %v12610_v57, %v11217_v37  ;;  %v10879_v24 = vpop.f32.mrb[61].mxu0 }
0x1d79   :  { %v10880_v10 = vadd.f32 %v11217_v37, %v10879_v24  ;;  %v12611_v27 = vpop.f32.mrb[62].mxu0 }
0x1d7a   :  { %10908 = vst [vmem:[%s17389_s20 + $0x70] sm:$0xff] %v10888_v56  ;;  %v10891_v61 = vadd.f32 %v12611_v27, %v11217_v37  ;;  %v10882_v54 = vpop.f32.mrb[63].mxu0 }
0x1d7b   :  { %10906 = vst [vmem:[%s17389_s20 + $0x60] sm:$0xff] %v10880_v10  ;;  %v10883_v3 = vadd.f32 %v11217_v37, %v10882_v54 }
0x1d7c   :  { %10909 = vst [vmem:[%s17389_s20 + $0x78] sm:$0xff] %v10891_v61 }
0x1d7d   :  { %10907 = vst [vmem:[%s17389_s20 + $0x68] sm:$0xff] %v10883_v3 }

</bundles_post_ra>
